<compile_context>
chip_gen: v6e
topology: v6e:2x2x1
jax: 0.10.0
libtpu: 0.0.40
codegen_flags: <defaults>
</compile_context>

<pallas_src>
import functools

import jax
import jax.numpy as jnp
import numpy as np
from jax.experimental import pallas as pl
from jax.experimental.pallas import tpu as pltpu

_BN_EPS = 1e-5
_POOL_K = 5
_POOL_S = 3


def _round_up(x, m):
    return ((x + m - 1) // m) * m


# ----------------------------- Pallas kernel ------------------------------- #

def _aux_head_kernel(x_ref, poolw_ref, w0_ref, s0_ref, w1_ref, s1_ref,
                     w2_ref, b2_ref, o_ref):
    """Entire InceptionAux head on VMEM-resident operands.

    x_ref:     (N, Cin*H*W)      f32   input, NCHW-flattened (pure reshape)
    poolw_ref: (Cin*H*W, S*Cin)  f32   AvgPool2d(5,3) as a matmul
    w0_ref:    (S*Cin, S*C0)     bf16  kron(I_S, conv0 1x1 weight * bn0 scale)
    s0_ref:    (1, S*C0)         f32   conv0 folded BN shift (tiled over S)
    w1_ref:    (S*C0, C1)        bf16  conv1 5x5 (full-extent) weight * bn1 scale
    s1_ref:    (1, C1)           f32   conv1 folded BN shift
    w2_ref:    (C1, Cpad)        bf16  conv2 1x1 weight (Cout padded to 128)
    b2_ref:    (1, Cpad)         f32   conv2 bias
    o_ref:     (N, Cpad)         f32   logits
    """
    # AvgPool2d(5, 3): exact f32 matmul against the precomputed pooling matrix.
    p0 = jnp.dot(x_ref[...], poolw_ref[...], preferred_element_type=jnp.float32)

    # conv0 (1x1) + BN + ReLU. The block-diagonal weight keeps the spatial index
    # in the lane dimension, so the result is already conv1's im2col layout —
    # no cross-lane reshape needed between layers.
    h = jnp.dot(p0.astype(jnp.bfloat16), w0_ref[...],
                preferred_element_type=jnp.float32)
    h = jnp.maximum(h + s0_ref[...], 0.0)

    # conv1 (5x5 covering the full pooled extent -> 1x1 output) + BN + ReLU.
    h = jnp.dot(h.astype(jnp.bfloat16), w1_ref[...],
                preferred_element_type=jnp.float32)
    h = jnp.maximum(h + s1_ref[...], 0.0)

    # conv2 (1x1 output layer): conv + bias only.
    y = jnp.dot(h.astype(jnp.bfloat16), w2_ref[...],
                preferred_element_type=jnp.float32)
    o_ref[...] = y + b2_ref[...]


# ------------------------ one-time weight preparation ----------------------- #

def prepare_inception_aux(params, x_shape):
    """Fold/reshape/cast all weights ONCE (hoisted out of the forward path)."""
    _, Cin, H, W = x_shape
    OH = (H - _POOL_K) // _POOL_S + 1
    OW = (W - _POOL_K) // _POOL_S + 1
    S = OH * OW

    w0 = params["conv0"]["conv_w"]          # (C0, Cin, 1, 1) OIHW
    w1 = params["conv1"]["conv_w"]          # (C1, C0, 5, 5)
    w2 = params["conv2"]["conv_w"]          # (C2, C1, 1, 1)
    C0 = w0.shape[0]
    C1, _, KH1, KW1 = w1.shape
    C2 = w2.shape[0]

    # The fused path relies on conv1's 5x5 kernel covering the full pooled
    # extent (true for the canonical 17x17 aux input), so every conv is a GEMM.
    # TODO(synk): general overlapping-window conv1 would need an im2col path.
    assert (KH1, KW1) == (OH, OW), "conv1 kernel must cover the pooled extent"

    # AvgPool2d(5, 3) as a (Cin*H*W, S*Cin) matrix: NCHW-flat -> (spatial, ci).
    pmat = np.zeros((S, H * W), np.float32)
    for oh in range(OH):
        for ow in range(OW):
            s = oh * OW + ow
            for kh in range(_POOL_K):
                for kw in range(_POOL_K):
                    pmat[s, (oh * _POOL_S + kh) * W + (ow * _POOL_S + kw)] = \
                        1.0 / (_POOL_K * _POOL_K)
    poolw = np.zeros((Cin * H * W, S * Cin), np.float32)
    for ci in range(Cin):
        poolw[ci * H * W:(ci + 1) * H * W, ci::Cin] = pmat.T

    def fold_bn(p):
        scale = p["bn_gamma"] / jnp.sqrt(p["bn_var"] + _BN_EPS)
        shift = (p["conv_b"] - p["bn_mean"]) * scale + p["bn_beta"]
        return scale.astype(jnp.float32), shift.astype(jnp.float32)

    sc0, sh0 = fold_bn(params["conv0"])
    sc1, sh1 = fold_bn(params["conv1"])

    # conv0: (C0, Cin, 1, 1) -> (Cin, C0), fold BN scale, block-diag over S so
    # the output column index is s*C0 + co (conv1's im2col ordering).
    w0m = jnp.transpose(w0[:, :, 0, 0], (1, 0)) * sc0[None, :]
    w0big = jnp.kron(jnp.eye(S, dtype=jnp.float32), w0m).astype(jnp.bfloat16)
    s0big = jnp.tile(sh0, S).reshape(1, S * C0).astype(jnp.float32)

    # conv1: OIHW -> (KH, KW, Cin, Cout) -> (S*C0, C1); matches (s, ci) order.
    w1m = (jnp.transpose(w1, (2, 3, 1, 0)).reshape(S * C0, C1)
           * sc1[None, :]).astype(jnp.bfloat16)
    s1v = sh1.reshape(1, C1).astype(jnp.float32)

    # conv2 (output layer): pad Cout to a lane-dense multiple of 128.
    cpad = _round_up(C2, 128)
    w2m = jnp.transpose(w2[:, :, 0, 0], (1, 0))                       # (C1, C2)
    w2m = jnp.pad(w2m, ((0, 0), (0, cpad - C2))).astype(jnp.bfloat16)
    b2 = jnp.pad(params["conv2"]["conv_b"].astype(jnp.float32),
                 (0, cpad - C2)).reshape(1, cpad)

    return {"poolw": jnp.asarray(poolw), "w0": w0big, "s0": s0big,
            "w1": w1m, "s1": s1v, "w2": w2m, "b2": b2}


# -------------------------------- forward ----------------------------------- #

def inception_aux_forward(x, prepared, *, num_classes):
    """x: (N, C, H, W) f32 NCHW -> logits with torch.squeeze semantics."""
    N, Cin, H, W = x.shape
    x_flat = x.reshape(N, Cin * H * W)                  # copy-free NCHW flatten
    cpad = prepared["w2"].shape[1]

    vmem = pl.BlockSpec(memory_space=pltpu.MemorySpace.VMEM)
    out = pl.pallas_call(
        _aux_head_kernel,
        out_shape=jax.ShapeDtypeStruct((N, cpad), jnp.float32),
        in_specs=[vmem] * 8,
        out_specs=vmem,
        compiler_params=pltpu.CompilerParams(
            vmem_limit_bytes=32 * 1024 * 1024),         # ~8 MiB used; headroom
    )(x_flat, prepared["poolw"], prepared["w0"], prepared["s0"],
      prepared["w1"], prepared["s1"], prepared["w2"], prepared["b2"])

    return jnp.squeeze(out[:, :num_classes])            # torch.squeeze(x)


# -------------------------------- reference --------------------------------- #

def _reference(x, params):
    y = jax.lax.reduce_window(x, 0.0, jax.lax.add,
                              (1, 1, 5, 5), (1, 1, 3, 3), "VALID") / 25.0

    def conv(y, p, output):
        w, b = p["conv_w"], p["conv_b"]
        y = jax.lax.conv_general_dilated(
            y, w, (1, 1), "VALID",
            dimension_numbers=("NCHW", "OIHW", "NCHW")) + b.reshape(1, -1, 1, 1)
        if not output:
            s = p["bn_gamma"] / jnp.sqrt(p["bn_var"] + _BN_EPS)
            y = (y - p["bn_mean"].reshape(1, -1, 1, 1)) * s.reshape(1, -1, 1, 1) \
                + p["bn_beta"].reshape(1, -1, 1, 1)
            y = jnp.maximum(y, 0.0)
        return y

    y = conv(y, params["conv0"], False)
    y = conv(y, params["conv1"], False)
    y = conv(y, params["conv2"], True)
    return jnp.squeeze(y)


# ---------------------------------- main ------------------------------------ #

def _make_conv_params(key, cin, cout, k, *, output=False):
    ks = jax.random.split(key, 6)
    p = {
        "conv_w": jax.random.normal(ks[0], (cout, cin, k, k), jnp.float32) * 0.1,
        "conv_b": jax.random.normal(ks[1], (cout,), jnp.float32) * 0.1,
    }
    if not output:
        p.update({
            "bn_gamma": jnp.abs(jax.random.normal(ks[2], (cout,), jnp.float32)) + 0.5,
            "bn_beta": jax.random.normal(ks[3], (cout,), jnp.float32) * 0.1,
            "bn_mean": jax.random.normal(ks[4], (cout,), jnp.float32) * 0.1,
            "bn_var": jnp.abs(jax.random.normal(ks[5], (cout,), jnp.float32)) + 0.5,
        })
    return p


if __name__ == "__main__":
    # InceptionAux(input_channel=4, num_classes=10); 17x17 is the canonical aux
    # input: avgpool(5,3) -> 5x5 -> conv1x1 -> conv5x5 -> 1x1 -> conv1x1 -> squeeze.
    N, Cin, H, W = 2, 4, 17, 17
    num_classes = 10

    key = jax.random.PRNGKey(0)
    kx, k0, k1, k2 = jax.random.split(key, 4)
    x = jax.random.normal(kx, (N, Cin, H, W), jnp.float32)
    params = {
        "conv0": _make_conv_params(k0, Cin, 128, 1),
        "conv1": _make_conv_params(k1, 128, 1024, 5),
        "conv2": _make_conv_params(k2, 1024, num_classes, 1, output=True),
    }

    prepared = prepare_inception_aux(params, x.shape)      # one-time weight fold
    fwd = jax.jit(functools.partial(inception_aux_forward,
                                    num_classes=num_classes))
    out = jax.block_until_ready(fwd(x, prepared))

    # Correctness check against the f32 XLA reference (bf16 weights/activations
    # in the Pallas path -> loosened tolerance; f32 accumulation keeps it tight).
    ref = jax.block_until_ready(_reference(x, params))
    out_np, ref_np = np.asarray(out), np.asarray(ref)
    assert out_np.shape == ref_np.shape == (N, num_classes)
    assert np.allclose(out_np, ref_np, rtol=5e-2, atol=1e-1), \
        float(np.max(np.abs(out_np - ref_np)))

    print("KERNEL_OK")
</pallas_src>

<mosaic_0001>
module attributes {stable_mosaic.version = 11 : i64} {
  func.func @_aux_head_kernel(%arg0: memref<2x1156xf32, #tpu.memory_space<vmem>>, %arg1: memref<1156x100xf32, #tpu.memory_space<vmem>>, %arg2: memref<100x3200xbf16, #tpu.memory_space<vmem>>, %arg3: memref<1x3200xf32, #tpu.memory_space<vmem>>, %arg4: memref<3200x1024xbf16, #tpu.memory_space<vmem>>, %arg5: memref<1x1024xf32, #tpu.memory_space<vmem>>, %arg6: memref<1024x128xbf16, #tpu.memory_space<vmem>>, %arg7: memref<1x128xf32, #tpu.memory_space<vmem>>, %arg8: memref<2x128xf32, #tpu.memory_space<vmem>>) attributes {dimension_semantics = [], scalar_prefetch = 0 : i64, scratch_operands = 0 : i64, tpu.core_type = #tpu.core_type<tc>} {
    %c0 = arith.constant 0 : index
    %c0_0 = arith.constant 0 : index
    %0 = vector.load %arg0[%c0, %c0_0] : memref<2x1156xf32, #tpu.memory_space<vmem>>, vector<2x1156xf32>
    %c0_1 = arith.constant 0 : index
    %c0_2 = arith.constant 0 : index
    %1 = vector.load %arg1[%c0_1, %c0_2] : memref<1156x100xf32, #tpu.memory_space<vmem>>, vector<1156x100xf32>
    %cst = arith.constant dense<0.000000e+00> : vector<2x100xf32>
    %2 = tpu.matmul %0, %1, %cst {dimension_numbers = #tpu.dot_dimension_numbers<[1], [0], [0], [1], [0, 0, 1, 1], [], []>} : vector<2x1156xf32>, vector<1156x100xf32>, vector<2x100xf32> -> vector<2x100xf32>
    %3 = arith.truncf %2 : vector<2x100xf32> to vector<2x100xbf16>
    %c0_3 = arith.constant 0 : index
    %c0_4 = arith.constant 0 : index
    %4 = vector.load %arg2[%c0_3, %c0_4] : memref<100x3200xbf16, #tpu.memory_space<vmem>>, vector<100x3200xbf16>
    %cst_5 = arith.constant dense<0.000000e+00> : vector<2x3200xf32>
    %5 = tpu.matmul %3, %4, %cst_5 {dimension_numbers = #tpu.dot_dimension_numbers<[1], [0], [0], [1], [0, 0, 1, 1], [], []>} : vector<2x100xbf16>, vector<100x3200xbf16>, vector<2x3200xf32> -> vector<2x3200xf32>
    %c0_6 = arith.constant 0 : index
    %c0_7 = arith.constant 0 : index
    %6 = vector.load %arg3[%c0_6, %c0_7] : memref<1x3200xf32, #tpu.memory_space<vmem>>, vector<1x3200xf32>
    %7 = vector.broadcast %6 : vector<1x3200xf32> to vector<2x3200xf32>
    %8 = arith.addf %5, %7 : vector<2x3200xf32>
    %cst_8 = arith.constant 0.000000e+00 : f32
    %9 = vector.broadcast %cst_8 : f32 to vector<2x3200xf32>
    %10 = arith.maximumf %8, %9 : vector<2x3200xf32>
    %11 = arith.truncf %10 : vector<2x3200xf32> to vector<2x3200xbf16>
    %c0_9 = arith.constant 0 : index
    %c0_10 = arith.constant 0 : index
    %12 = vector.load %arg4[%c0_9, %c0_10] : memref<3200x1024xbf16, #tpu.memory_space<vmem>>, vector<3200x1024xbf16>
    %cst_11 = arith.constant dense<0.000000e+00> : vector<2x1024xf32>
    %13 = tpu.matmul %11, %12, %cst_11 {dimension_numbers = #tpu.dot_dimension_numbers<[1], [0], [0], [1], [0, 0, 1, 1], [], []>} : vector<2x3200xbf16>, vector<3200x1024xbf16>, vector<2x1024xf32> -> vector<2x1024xf32>
    %c0_12 = arith.constant 0 : index
    %c0_13 = arith.constant 0 : index
    %14 = vector.load %arg5[%c0_12, %c0_13] : memref<1x1024xf32, #tpu.memory_space<vmem>>, vector<1x1024xf32>
    %15 = vector.broadcast %14 : vector<1x1024xf32> to vector<2x1024xf32>
    %16 = arith.addf %13, %15 : vector<2x1024xf32>
    %cst_14 = arith.constant 0.000000e+00 : f32
    %17 = vector.broadcast %cst_14 : f32 to vector<2x1024xf32>
    %18 = arith.maximumf %16, %17 : vector<2x1024xf32>
    %19 = arith.truncf %18 : vector<2x1024xf32> to vector<2x1024xbf16>
    %c0_15 = arith.constant 0 : index
    %c0_16 = arith.constant 0 : index
    %20 = vector.load %arg6[%c0_15, %c0_16] : memref<1024x128xbf16, #tpu.memory_space<vmem>>, vector<1024x128xbf16>
    %cst_17 = arith.constant dense<0.000000e+00> : vector<2x128xf32>
    %21 = tpu.matmul %19, %20, %cst_17 {dimension_numbers = #tpu.dot_dimension_numbers<[1], [0], [0], [1], [0, 0, 1, 1], [], []>} : vector<2x1024xbf16>, vector<1024x128xbf16>, vector<2x128xf32> -> vector<2x128xf32>
    %c0_18 = arith.constant 0 : index
    %c0_19 = arith.constant 0 : index
    %22 = vector.load %arg7[%c0_18, %c0_19] : memref<1x128xf32, #tpu.memory_space<vmem>>, vector<1x128xf32>
    %23 = vector.broadcast %22 : vector<1x128xf32> to vector<2x128xf32>
    %24 = arith.addf %21, %23 : vector<2x128xf32>
    %c0_20 = arith.constant 0 : index
    %c0_21 = arith.constant 0 : index
    %25 = vector.load %arg8[%c0_20, %c0_21] : memref<2x128xf32, #tpu.memory_space<vmem>>, vector<2x128xf32>
    tpu.vector_store %arg8[%c0_20, %c0_21], %24 {strides = array<i32>} : memref<2x128xf32, #tpu.memory_space<vmem>>, vector<2x128xf32>,
    return
  }
}

</mosaic_0001>

<bundles_post_ra>
// kernel: inception_aux_forward.1
= control target key start
LH: loop header
LB: loop body
LE: loop exit
PB: predicated region body
PF: predicated region fallthrough
CT: control target
= control target key end

     0   :  { %13 = vsyncpa [#allocation3], 0  ;;  %s18675_s0 = inlined_call_operand.vmem [shape: f32[2,1156], index: 0, kind: input, shape index: {}]   ;;  %s18676_s1 = inlined_call_operand.vmem [shape: f32[1156,100], index: 1, kind: input, shape index: {}]   ;;  %s18677_s2 = inlined_call_operand.hbm [shape: bf16[100,3200], index: 2, kind: input, shape index: {}]   ;;  %s18678_s3 = inlined_call_operand.hbm [shape: f32[1,3200], index: 3, kind: input, shape index: {}]   ;;  %s18679_s4 = inlined_call_operand.hbm [shape: bf16[3200,1024], index: 4, kind: input, shape index: {}]   ;;  %s18680_s5 = inlined_call_operand.hbm [shape: f32[1,1024], index: 5, kind: input, shape index: {}]   ;;  %s18681_s6 = inlined_call_operand.hbm [shape: bf16[1024,128], index: 6, kind: input, shape index: {}]   ;;  %s18682_s7 = inlined_call_operand.hbm [shape: f32[1,128], index: 7, kind: input, shape index: {}]   ;;  %s18683_s8 = inlined_call_operand.hbm [shape: f32[2,128], index: 8, kind: output, shape index: {}]  }
   0x1   :  { %14 = vsyncpa [#allocation6], 0 }
   0x2   :  { %15 = vsyncpa [#allocation9], 0 }
   0x3   :  { %16 = vsyncpa [#allocation12], 0 }
   0x4   :  { %17 = vsyncpa [#allocation4], 0  ;;  %s17544_s27 = smov [#allocation5]   ;;  %s17545_s29 = smov [#allocation8]  }
   0x5   :  { %s40_s28 = sshll.u32 %s17544_s27, 4  ;;  %s62_s30 = sshll.u32 %s17545_s29, 4  ;;  %s41_s28 = int_to_ptr.vmem [resolvable:$true] %s40_s28  ;;  %s63_s30 = int_to_ptr.vmem [resolvable:$true] %s62_s30 }
   0x6   :  { %s17402_s9 = scalar_lea.vmem %s41_s28, 400  ;;  %s17406_s10 = scalar_lea.vmem %s41_s28, 416 }
   0x7   :  { %p17403_p0 = scmp.ne.s32.totalorder %s41_s28, %s17402_s9  ;;  %p17407_p1 = scmp.lt.s32.totalorder %s41_s28, %s41_s28 }
   0x8   :  { %p17408_p2 = scmp.lt.s32.totalorder %s17406_s10, %s17402_s9 }
   0xa   :  { %p17409_p3 = por %p17408_p2, %p17407_p1 }
   0xc   :  { %p17410_p4 = pnand %p17409_p3, %p17403_p0 }
   0xe   :  { %17413 = shalt.err (!%p17410_p4)
}
   0xf   :  { %43 = dma.hbm_to_vmem [thread:$0]  %s18678_s3, 400, %s41_s28, [#allocation6]  }
  0x10   :  { %s17422_s13 = scalar_lea.vmem %s63_s30, 128  ;;  %p17427_p6 = scmp.lt.s32.totalorder %s63_s30, %s63_s30 }
  0x11   :  { %p17423_p5 = scmp.ne.s32.totalorder %s63_s30, %s17422_s13  ;;  %p17428_p7 = scmp.lt.s32.totalorder %s17422_s13, %s17422_s13 }
  0x13   :  { %p17429_p8 = por %p17428_p7, %p17427_p6 }
  0x15   :  { %p17430_p9 = pnand %p17429_p8, %p17423_p5 }
  0x17   :  { %17433 = shalt.err (!%p17430_p9)
}
  0x18   :  { %65 = dma.hbm_to_vmem [thread:$0]  %s18680_s5, 128, %s63_s30, [#allocation9]  }
  0x19   :  { %s17546_s16 = smov [#allocation2]  }
  0x1a   :  { %s27_s17 = sshll.u32 %s17546_s16, 4  ;;  %s28_s17 = int_to_ptr.vmem [resolvable:$true] %s27_s17 }
  0x1b   :  { %s17442_s18 = scalar_lea.vmem %s28_s17, 20800  ;;  %p17447_p11 = scmp.lt.s32.totalorder %s28_s17, %s28_s17 }
  0x1c   :  { %p17443_p10 = scmp.ne.s32.totalorder %s28_s17, %s17442_s18  ;;  %p17448_p12 = scmp.lt.s32.totalorder %s17442_s18, %s17442_s18 }
  0x1e   :  { %p17449_p13 = por %p17448_p12, %p17447_p11 }
  0x20   :  { %p17450_p0 = pnand %p17449_p13, %p17443_p10 }
  0x22   :  { %17453 = shalt.err (!%p17450_p0)
}
  0x23   :  { %s17547_s3 = smov 1600   ;;  %s17548_s19 = smov 100  }
  0x24   :  { %33 = dma.hbm_to_vmem [thread:$0]  %s18677_s2, 20800, %s28_s17, [#allocation3], %s17547_s3, %s17547_s3, %s17548_s19  }
  0x25   :  { %s17549_s22 = smov [#allocation7]  }
  0x26   :  { %s49_s23 = sshll.u32 %s17549_s22, 4  ;;  %s50_s23 = int_to_ptr.vmem [resolvable:$true] %s49_s23 }
  0x27   :  { %s17462_s5 = scalar_lea.vmem %s50_s23, 204800  ;;  %p17467_p2 = scmp.lt.s32.totalorder %s50_s23, %s50_s23 }
  0x28   :  { %p17463_p1 = scmp.ne.s32.totalorder %s50_s23, %s17462_s5  ;;  %p17468_p3 = scmp.lt.s32.totalorder %s17462_s5, %s17462_s5 }
  0x2a   :  { %p17469_p4 = por %p17468_p3, %p17467_p2 }
  0x2c   :  { %p17470_p5 = pnand %p17469_p4, %p17463_p1 }
  0x2e   :  { %17473 = shalt.err (!%p17470_p5)
}
  0x2f   :  { %s17550_s24 = smov 512   ;;  %s17551_s25 = smov 32  }
  0x30   :  { %55 = dma.hbm_to_vmem [thread:$0]  %s18679_s4, 204800, %s50_s23, [#allocation6], %s17550_s24, %s17550_s24, %s17551_s25  }
  0x31   :  { %s17552_s28 = smov [#allocation10]  }
  0x32   :  { %s71_s29 = sshll.u32 %s17552_s28, 4  ;;  %s72_s29 = int_to_ptr.vmem [resolvable:$true] %s71_s29 }
  0x33   :  { %s17482_s2 = scalar_lea.vmem %s72_s29, 8192  ;;  %p17487_p7 = scmp.lt.s32.totalorder %s72_s29, %s72_s29 }
  0x34   :  { %p17483_p6 = scmp.ne.s32.totalorder %s72_s29, %s17482_s2  ;;  %p17488_p8 = scmp.lt.s32.totalorder %s17482_s2, %s17482_s2 }
  0x36   :  { %p17489_p9 = por %p17488_p8, %p17487_p7 }
  0x38   :  { %p17490_p10 = pnand %p17489_p9, %p17483_p6 }
  0x3a   :  { %17493 = shalt.err (!%p17490_p10)
}
  0x3b   :  { %s17553_s30 = smov 64   ;;  %s17554_s9 = smov 4  }
  0x3c   :  { %77 = dma.hbm_to_vmem [thread:$0]  %s18681_s6, 8192, %s72_s29, [#allocation9], %s17553_s30, %s17553_s30, %s17554_s9  }
  0x3d   :  { %s17555_s12 = smov [#allocation11]  }
  0x3e   :  { %s84_s13 = sshll.u32 %s17555_s12, 4  ;;  %s85_s13 = int_to_ptr.vmem [resolvable:$true] %s84_s13 }
  0x3f   :  { %s17502_s4 = scalar_lea.vmem %s85_s13, 16  ;;  %s17506_s14 = scalar_lea.vmem %s85_s13, 32 }
  0x40   :  { %p17503_p11 = scmp.ne.s32.totalorder %s85_s13, %s17502_s4  ;;  %p17507_p12 = scmp.lt.s32.totalorder %s85_s13, %s85_s13 }
  0x41   :  { %p17508_p13 = scmp.lt.s32.totalorder %s17506_s14, %s17502_s4 }
  0x43   :  { %p17509_p0 = por %p17508_p13, %p17507_p12 }
  0x45   :  { %p17510_p1 = pnand %p17509_p0, %p17503_p11 }
  0x47   :  { %17513 = shalt.err (!%p17510_p1)
}
  0x48   :  { %87 = dma.hbm_to_vmem [thread:$0]  %s18682_s7, 16, %s85_s13, [#allocation12]  }
  0x49   :  { %17534 = dma.done.wait [#allocation3], 20800  }
  0x4a   :  { %17535 = vsyncadd [#allocation3], 4294946496 }
  0x4b   :  { %17536 = dma.done.wait [#allocation6], 205200  }
  0x4c   :  { %17537 = vsyncadd [#allocation6], 4294762096 }
  0x4d   :  { %17538 = dma.done.wait [#allocation9], 8320  }
  0x4e   :  { %17539 = vsyncadd [#allocation9], 4294958976 }
  0x4f   :  { %17540 = dma.done.wait [#allocation12], 16  }
  0x50   :  { %17541 = vsyncadd [#allocation12], 4294967280  ;;  %v141_v0 = vld [vmem:[%s18676_s1 + $0xf8] sm:$0xff]  ;;  %v140_v4 = vld [vmem:[%s18676_s1 + $0xf0] sm:$0xff]  ;;  %v17556_v30 = vmov 1983009808   ;;  %v262_v32 = vlaneseq }
  0x51   :  { %v173_v1 = vld [vmem:[%s18676_s1 + $0x1f8] sm:$0xff]  ;;  %16807 = vmatprep.subr.mxu0 %v141_v0  ;;  %v172_v5 = vld [vmem:[%s18676_s1 + $0x1f0] sm:$0xff]  ;;  %v139_v8 = vld [vmem:[%s18676_s1 + $0xe8] sm:$0xff]  ;;  %v260_v31 = vunpack.c.l.s4 %v17556_v30  ;;  %vm309_vm0 = vcmask 31744   ;;  %vm312_vm1 = vcmask 1043456   ;;  %vm1792_vm2 = vcmask 1041408  }
  0x52   :  { %v125_v2 = vld [vmem:[%s18676_s1 + $0x78] sm:$0xff]  ;;  %16842 = vmatprep.subr.mxu1 %v173_v1  ;;  %v124_v6 = vld [vmem:[%s18676_s1 + $0x70] sm:$0xff]  ;;  %v171_v9 = vld [vmem:[%s18676_s1 + $0x1e8] sm:$0xff]  ;;  %v17738_v42 = vshrl.u32 %v262_v32, 7  ;;  %vm1788_vm3 = vcmask 818176   ;;  %vm17559_vm4 = vmmov 0  }
  0x53   :  { %v157_v3 = vld [vmem:[%s18676_s1 + $0x178] sm:$0xff]  ;;  %16808 = vmatpush3.msra.mxu0 %v125_v2  ;;  %v156_v7 = vld [vmem:[%s18676_s1 + $0x170] sm:$0xff]  ;;  %v123_v10 = vld [vmem:[%s18676_s1 + $0x68] sm:$0xff]  ;;  %v261_v41 = vunpack.c.0.s8 %v260_v31 }
  0x54   :  { %16843 = vmatpush3.msra.mxu1 %v157_v3  ;;  %16809 = vmatprep.subr.mxu0 %v140_v4  ;;  %v155_v11 = vld [vmem:[%s18676_s1 + $0x168] sm:$0xff]  ;;  %v138_v12 = vld [vmem:[%s18676_s1 + $0xe0] sm:$0xff]  ;;  %v137_v16 = vld [vmem:[%s18676_s1 + $0xd8] sm:$0xff] }
  0x55   :  { %16844 = vmatprep.subr.mxu1 %v172_v5  ;;  %16810 = vmatpush3.msra.mxu0 %v124_v6  ;;  %v170_v13 = vld [vmem:[%s18676_s1 + $0x1e0] sm:$0xff]  ;;  %v169_v17 = vld [vmem:[%s18676_s1 + $0x1d8] sm:$0xff]  ;;  %v136_v20 = vld [vmem:[%s18676_s1 + $0xd0] sm:$0xff]  ;;  %v17765_v51 = vsub.s32 %v261_v41, %v17738_v42 }
  0x56   :  { %16845 = vmatpush3.msra.mxu1 %v156_v7  ;;  %16811 = vmatprep.subr.mxu0 %v139_v8  ;;  %v122_v14 = vld [vmem:[%s18676_s1 + $0x60] sm:$0xff]  ;;  %v121_v18 = vld [vmem:[%s18676_s1 + $0x58] sm:$0xff]  ;;  %v168_v21 = vld [vmem:[%s18676_s1 + $0x1d0] sm:$0xff] }
  0x57   :  { %16846 = vmatprep.subr.mxu1 %v171_v9  ;;  %v154_v15 = vld [vmem:[%s18676_s1 + $0x160] sm:$0xff]  ;;  %16812 = vmatpush3.msra.mxu0 %v123_v10  ;;  %v153_v19 = vld [vmem:[%s18676_s1 + $0x158] sm:$0xff]  ;;  %v120_v22 = vld [vmem:[%s18676_s1 + $0x50] sm:$0xff] }
  0x58   :  { %16847 = vmatpush3.msra.mxu1 %v155_v11  ;;  %16813 = vmatprep.subr.mxu0 %v138_v12  ;;  %v152_v23 = vld [vmem:[%s18676_s1 + $0x150] sm:$0xff]  ;;  %v135_v24 = vld [vmem:[%s18676_s1 + $0xc8] sm:$0xff]  ;;  %v134_v28 = vld [vmem:[%s18676_s1 + $0xc0] sm:$0xff] }
  0x59   :  { %16848 = vmatprep.subr.mxu1 %v170_v13  ;;  %16814 = vmatpush3.msra.mxu0 %v122_v14  ;;  %v167_v25 = vld [vmem:[%s18676_s1 + $0x1c8] sm:$0xff]  ;;  %v166_v29 = vld [vmem:[%s18676_s1 + $0x1c0] sm:$0xff]  ;;  %v133_v35 = vld [vmem:[%s18676_s1 + $0xb8] sm:$0xff] }
  0x5a   :  { %16849 = vmatpush3.msra.mxu1 %v154_v15  ;;  %16815 = vmatprep.subr.mxu0 %v137_v16  ;;  %v119_v26 = vld [vmem:[%s18676_s1 + $0x48] sm:$0xff]  ;;  %v118_v33 = vld [vmem:[%s18676_s1 + $0x40] sm:$0xff]  ;;  %v165_v36 = vld [vmem:[%s18676_s1 + $0x1b8] sm:$0xff] }
  0x5b   :  { %16850 = vmatprep.subr.mxu1 %v169_v17  ;;  %16816 = vmatpush3.msra.mxu0 %v121_v18  ;;  %v151_v27 = vld [vmem:[%s18676_s1 + $0x148] sm:$0xff]  ;;  %v150_v34 = vld [vmem:[%s18676_s1 + $0x140] sm:$0xff]  ;;  %v117_v37 = vld [vmem:[%s18676_s1 + $0x38] sm:$0xff] }
  0x5c   :  { %16851 = vmatpush3.msra.mxu1 %v153_v19  ;;  %16817 = vmatprep.subr.mxu0 %v136_v20  ;;  %v149_v38 = vld [vmem:[%s18676_s1 + $0x138] sm:$0xff]  ;;  %v132_v39 = vld [vmem:[%s18676_s1 + $0xb0] sm:$0xff]  ;;  %v131_v45 = vld [vmem:[%s18676_s1 + $0xa8] sm:$0xff] }
  0x5d   :  { %16852 = vmatprep.subr.mxu1 %v168_v21  ;;  %16818 = vmatpush3.msra.mxu0 %v120_v22  ;;  %v164_v40 = vld [vmem:[%s18676_s1 + $0x1b0] sm:$0xff]  ;;  %v163_v46 = vld [vmem:[%s18676_s1 + $0x1a8] sm:$0xff]  ;;  %v130_v49 = vld [vmem:[%s18676_s1 + $0xa0] sm:$0xff] }
  0x5e   :  { %16853 = vmatpush3.msra.mxu1 %v152_v23  ;;  %16819 = vmatprep.subr.mxu0 %v135_v24  ;;  %v116_v43 = vld [vmem:[%s18676_s1 + $0x30] sm:$0xff]  ;;  %v115_v47 = vld [vmem:[%s18676_s1 + $0x28] sm:$0xff]  ;;  %v162_v50 = vld [vmem:[%s18676_s1 + $0x1a0] sm:$0xff] }
  0x5f   :  { %16854 = vmatprep.subr.mxu1 %v167_v25  ;;  %16820 = vmatpush3.msra.mxu0 %v119_v26  ;;  %v148_v44 = vld [vmem:[%s18676_s1 + $0x130] sm:$0xff]  ;;  %v147_v48 = vld [vmem:[%s18676_s1 + $0x128] sm:$0xff]  ;;  %v114_v52 = vld [vmem:[%s18676_s1 + $0x20] sm:$0xff] }
  0x60   :  { %16855 = vmatpush3.msra.mxu1 %v151_v27  ;;  %16821 = vmatprep.subr.mxu0 %v134_v28  ;;  %v146_v53 = vld [vmem:[%s18676_s1 + $0x120] sm:$0xff]  ;;  %v129_v55 = vld [vmem:[%s18676_s1 + $0x98] sm:$0xff]  ;;  %v128_v60 = vld [vmem:[%s18676_s1 + $0x90] sm:$0xff] }
  0x61   :  { %16856 = vmatprep.subr.mxu1 %v166_v29  ;;  %16822 = vmatpush3.msra.mxu0 %v118_v33  ;;  %v107_v54 = vld [vmem:[%s18675_s0] sm:$0xff]  ;;  %v161_v56 = vld [vmem:[%s18676_s1 + $0x198] sm:$0xff]  ;;  %v160_v61 = vld [vmem:[%s18676_s1 + $0x190] sm:$0xff] }
  0x62   :  { %16857 = vmatpush3.msra.mxu1 %v150_v34  ;;  %16823 = vmatprep.subr.mxu0 %v133_v35  ;;  %v258_v57 = vcombine.high %v107_v54, %v107_v54  ;;  %v113_v58 = vld [vmem:[%s18676_s1 + $0x18] sm:$0xff]  ;;  %v265_v62 = vrot.slane %v107_v54, %v17765_v51  ;;  %v112_v63 = vld [vmem:[%s18676_s1 + $0x10] sm:$0xff]  ;;  %v127_v2 = vld [vmem:[%s18676_s1 + $0x88] sm:$0xff] }
  0x63   :  { %16858 = vmatprep.subr.mxu1 %v165_v36  ;;  %16824 = vmatpush3.msra.mxu0 %v117_v37  ;;  %v145_v59 = vld [vmem:[%s18676_s1 + $0x118] sm:$0xff]  ;;  %v144_v0 = vld [vmem:[%s18676_s1 + $0x110] sm:$0xff]  ;;  %v159_v3 = vld [vmem:[%s18676_s1 + $0x188] sm:$0xff] }
  0x64   :  { %16859 = vmatpush3.msra.mxu1 %v149_v38  ;;  %16825 = vmatprep.subr.mxu0 %v132_v39  ;;  %v272_v1 = vrot.slane %v258_v57, %v17765_v51  ;;  %v111_v4 = vld [vmem:[%s18676_s1 + $0x8] sm:$0xff]  ;;  %v126_v6 = vld [vmem:[%s18676_s1 + $0x80] sm:$0xff]  ;;  %v273_v8 = vcombine.high %v265_v62, %v265_v62  ;;  %v205_v12 = vld [vmem:[%s18676_s1 + $0x2f8] sm:$0xff] }
  0x65   :  { %16860 = vmatprep.subr.mxu1 %v164_v40  ;;  %16826 = vmatpush3.msra.mxu0 %v116_v43  ;;  %v143_v5 = vld [vmem:[%s18676_s1 + $0x108] sm:$0xff]  ;;  %v158_v7 = vld [vmem:[%s18676_s1 + $0x180] sm:$0xff]  ;;  %v237_v13 = vld [vmem:[%s18676_s1 + $0x3f8] sm:$0xff] }
  0x66   :  { %16861 = vmatpush3.msra.mxu1 %v148_v44  ;;  %16827 = vmatprep.subr.mxu0 %v131_v45  ;;  %v110_v9 = vld [vmem:[%s18676_s1] sm:$0xff]  ;;  %v274_v10 = vcombine.high %v272_v1, %v272_v1  ;;  %v189_v14 = vld [vmem:[%s18676_s1 + $0x278] sm:$0xff]  ;;  %v204_v16 = vld [vmem:[%s18676_s1 + $0x2f0] sm:$0xff] }
  0x67   :  { %16862 = vmatprep.subr.mxu1 %v163_v46  ;;  %16828 = vmatpush3.msra.mxu0 %v115_v47  ;;  %v142_v11 = vld [vmem:[%s18676_s1 + $0x100] sm:$0xff]  ;;  %v221_v15 = vld [vmem:[%s18676_s1 + $0x378] sm:$0xff]  ;;  %v236_v17 = vld [vmem:[%s18676_s1 + $0x3f0] sm:$0xff] }
  0x68   :  { %16863 = vmatpush3.msra.mxu1 %v147_v48  ;;  %16829 = vmatprep.subr.mxu0 %v130_v49  ;;  %v188_v18 = vld [vmem:[%s18676_s1 + $0x270] sm:$0xff]  ;;  %v203_v20 = vld [vmem:[%s18676_s1 + $0x2e8] sm:$0xff]  ;;  %v202_v24 = vld [vmem:[%s18676_s1 + $0x2e0] sm:$0xff] }
  0x69   :  { %16864 = vmatprep.subr.mxu1 %v162_v50  ;;  %16830 = vmatpush3.msra.mxu0 %v114_v52  ;;  %v220_v19 = vld [vmem:[%s18676_s1 + $0x370] sm:$0xff]  ;;  %v235_v21 = vld [vmem:[%s18676_s1 + $0x3e8] sm:$0xff]  ;;  %v234_v25 = vld [vmem:[%s18676_s1 + $0x3e0] sm:$0xff] }
  0x6a   :  { %16865 = vmatpush3.msra.mxu1 %v146_v53  ;;  %16831 = vmatprep.subr.mxu0 %v129_v55  ;;  %v187_v22 = vld [vmem:[%s18676_s1 + $0x268] sm:$0xff]  ;;  %v186_v26 = vld [vmem:[%s18676_s1 + $0x260] sm:$0xff]  ;;  %v201_v28 = vld [vmem:[%s18676_s1 + $0x2d8] sm:$0xff] }
  0x6b   :  { %16866 = vmatprep.subr.mxu1 %v161_v56  ;;  %16832 = vmatpush3.msra.mxu0 %v113_v58  ;;  %v219_v23 = vld [vmem:[%s18676_s1 + $0x368] sm:$0xff]  ;;  %v218_v27 = vld [vmem:[%s18676_s1 + $0x360] sm:$0xff]  ;;  %v233_v29 = vld [vmem:[%s18676_s1 + $0x3d8] sm:$0xff] }
  0x6c   :  { %16867 = vmatpush3.msra.mxu1 %v145_v59  ;;  %16833 = vmatprep.subr.mxu0 %v128_v60  ;;  %v185_v30 = vld [vmem:[%s18676_s1 + $0x258] sm:$0xff]  ;;  %v200_v32 = vld [vmem:[%s18676_s1 + $0x2d0] sm:$0xff]  ;;  %v199_v36 = vld [vmem:[%s18676_s1 + $0x2c8] sm:$0xff] }
  0x6d   :  { %16868 = vmatprep.subr.mxu1 %v160_v61  ;;  %16834 = vmatpush3.msra.mxu0 %v112_v63  ;;  %v217_v31 = vld [vmem:[%s18676_s1 + $0x358] sm:$0xff]  ;;  %v232_v33 = vld [vmem:[%s18676_s1 + $0x3d0] sm:$0xff]  ;;  %v231_v37 = vld [vmem:[%s18676_s1 + $0x3c8] sm:$0xff] }
  0x6e   :  { %16869 = vmatpush3.msra.mxu1 %v144_v0  ;;  %16835 = vmatprep.subr.mxu0 %v127_v2  ;;  %v184_v34 = vld [vmem:[%s18676_s1 + $0x250] sm:$0xff]  ;;  %v183_v38 = vld [vmem:[%s18676_s1 + $0x248] sm:$0xff]  ;;  %v198_v40 = vld [vmem:[%s18676_s1 + $0x2c0] sm:$0xff] }
  0x6f   :  { %16870 = vmatprep.subr.mxu1 %v159_v3  ;;  %16836 = vmatpush3.msra.mxu0 %v111_v4  ;;  %v216_v35 = vld [vmem:[%s18676_s1 + $0x350] sm:$0xff]  ;;  %v215_v39 = vld [vmem:[%s18676_s1 + $0x348] sm:$0xff]  ;;  %v182_v41 = vld [vmem:[%s18676_s1 + $0x240] sm:$0xff] }
  0x70   :  { %16871 = vmatpush3.msra.mxu1 %v143_v5  ;;  %16837 = vmatprep.subr.mxu0 %v126_v6  ;;  %v230_v43 = vld [vmem:[%s18676_s1 + $0x3c0] sm:$0xff]  ;;  %v197_v44 = vld [vmem:[%s18676_s1 + $0x2b8] sm:$0xff]  ;;  %v196_v47 = vld [vmem:[%s18676_s1 + $0x2b0] sm:$0xff] }
  0x71   :  { %16872 = vmatprep.subr.mxu1 %v158_v7  ;;  %16838 = vmatpush3.msra.mxu0 %v110_v9  ;;  %v181_v45 = vld [vmem:[%s18676_s1 + $0x238] sm:$0xff]  ;;  %v214_v46 = vld [vmem:[%s18676_s1 + $0x340] sm:$0xff]  ;;  %v228_v50 = vld [vmem:[%s18676_s1 + $0x3b0] sm:$0xff] }
  0x72   :  { %380 = vmatprep.mubr.f32.mxu0 %v273_v8  ;;  %16873 = vmatpush3.msra.mxu1 %v142_v11  ;;  %v229_v48 = vld [vmem:[%s18676_s1 + $0x3b8] sm:$0xff]  ;;  %v180_v52 = vld [vmem:[%s18676_s1 + $0x230] sm:$0xff]  ;;  %v195_v54 = vld [vmem:[%s18676_s1 + $0x2a8] sm:$0xff] }
  0x73   :  { %450 = vmatprep.mubr.f32.mxu1 %v274_v10  ;;  %381 = vmatmul.mubr.f32.vlgmr.msra.gmra.mxu0 %v265_v62  ;;  %v213_v49 = vld [vmem:[%s18676_s1 + $0x338] sm:$0xff]  ;;  %v212_v53 = vld [vmem:[%s18676_s1 + $0x330] sm:$0xff]  ;;  %v227_v55 = vld [vmem:[%s18676_s1 + $0x3a8] sm:$0xff] }
  0x74   :  { %451 = vmatmul.mubr.f32.vlgmr.msra.gmra.mxu1 %v272_v1  ;;  %16877 = vmatprep.subr.mxu0 %v205_v12  ;;  %v179_v56 = vld [vmem:[%s18676_s1 + $0x228] sm:$0xff]  ;;  %v194_v59 = vld [vmem:[%s18676_s1 + $0x2a0] sm:$0xff]  ;;  %v193_v63 = vld [vmem:[%s18676_s1 + $0x298] sm:$0xff] }
  0x75   :  { %16912 = vmatprep.subr.mxu1 %v237_v13  ;;  %16878 = vmatpush3.msra.mxu0 %v189_v14  ;;  %v211_v57 = vld [vmem:[%s18676_s1 + $0x328] sm:$0xff]  ;;  %v226_v60 = vld [vmem:[%s18676_s1 + $0x3a0] sm:$0xff]  ;;  %v225_v0 = vld [vmem:[%s18676_s1 + $0x398] sm:$0xff] }
  0x76   :  { %16913 = vmatpush3.msra.mxu1 %v221_v15  ;;  %16879 = vmatprep.subr.mxu0 %v204_v16  ;;  %v108_v58 = vld [vmem:[%s18675_s0 + $0x8] sm:$0xff]  ;;  %v178_v61 = vld [vmem:[%s18676_s1 + $0x220] sm:$0xff]  ;;  %v177_v1 = vld [vmem:[%s18676_s1 + $0x218] sm:$0xff] }
  0x77   :  { %16914 = vmatprep.subr.mxu1 %v236_v17  ;;  %16880 = vmatpush3.msra.mxu0 %v188_v18  ;;  %v210_v62 = vld [vmem:[%s18676_s1 + $0x320] sm:$0xff]  ;;  %v209_v2 = vld [vmem:[%s18676_s1 + $0x318] sm:$0xff]  ;;  %v192_v3 = vld [vmem:[%s18676_s1 + $0x290] sm:$0xff]  ;;  %v282_v5 = vrot.slane %v108_v58, %v17765_v51  ;;  %v275_v6 = vcombine.high %v108_v58, %v108_v58 }
  0x78   :  { %16915 = vmatpush3.msra.mxu1 %v220_v19  ;;  %16881 = vmatprep.subr.mxu0 %v203_v20  ;;  %v224_v4 = vld [vmem:[%s18676_s1 + $0x390] sm:$0xff]  ;;  %v191_v9 = vld [vmem:[%s18676_s1 + $0x288] sm:$0xff]  ;;  %v190_v12 = vld [vmem:[%s18676_s1 + $0x280] sm:$0xff] }
  0x79   :  { %16916 = vmatprep.subr.mxu1 %v235_v21  ;;  %16882 = vmatpush3.msra.mxu0 %v187_v22  ;;  %v176_v7 = vld [vmem:[%s18676_s1 + $0x210] sm:$0xff]  ;;  %v223_v10 = vld [vmem:[%s18676_s1 + $0x388] sm:$0xff]  ;;  %v290_v13 = vcombine.high %v282_v5, %v282_v5  ;;  %v289_v15 = vrot.slane %v275_v6, %v17765_v51  ;;  %v174_v16 = vld [vmem:[%s18676_s1 + $0x200] sm:$0xff] }
  0x7a   :  { %16917 = vmatpush3.msra.mxu1 %v219_v23  ;;  %16883 = vmatprep.subr.mxu0 %v202_v24  ;;  %v208_v8 = vld [vmem:[%s18676_s1 + $0x310] sm:$0xff]  ;;  %v175_v11 = vld [vmem:[%s18676_s1 + $0x208] sm:$0xff]  ;;  %v222_v17 = vld [vmem:[%s18676_s1 + $0x380] sm:$0xff]  ;;  %v17557_v23 = vmov 0.0  }
  0x7b   :  { %16918 = vmatprep.subr.mxu1 %v234_v25  ;;  %16884 = vmatpush3.msra.mxu0 %v186_v26  ;;  %v207_v14 = vld [vmem:[%s18676_s1 + $0x308] sm:$0xff]  ;;  %v18023_v18 = vld.sshfl [vmem:[%s18675_s0 + $0x10] sm:$0x33 pattern:$0x76325410]  ;;  %v206_v51 = vld [vmem:[%s18676_s1 + $0x300] sm:$0xff]  ;;  %v291_v19 = vcombine.high %v289_v15, %v289_v15 }
  0x7c   :  { %16919 = vmatpush3.msra.mxu1 %v218_v27  ;;  %16885 = vmatprep.subr.mxu0 %v201_v28  ;;  %v253_v20 = vld [vmem:[%s18676_s1 + $0x478] sm:$0xff]  ;;  %v252_v21 = vld [vmem:[%s18676_s1 + $0x470] sm:$0xff]  ;;  %v299_v22 = vcombine.high %v18023_v18, %v18023_v18  ;;  %v251_v24 = vld [vmem:[%s18676_s1 + $0x468] sm:$0xff] }
  0x7d   :  { %16920 = vmatprep.subr.mxu1 %v233_v29  ;;  %16886 = vmatpush3.msra.mxu0 %v185_v30  ;;  %v250_v25 = vld [vmem:[%s18676_s1 + $0x460] sm:$0xff]  ;;  %v249_v26 = vld [vmem:[%s18676_s1 + $0x458] sm:$0xff]  ;;  %v248_v27 = vld [vmem:[%s18676_s1 + $0x450] sm:$0xff] }
  0x7e   :  { %16921 = vmatpush3.msra.mxu1 %v217_v31  ;;  %16887 = vmatprep.subr.mxu0 %v200_v32  ;;  %v247_v28 = vld [vmem:[%s18676_s1 + $0x448] sm:$0xff]  ;;  %v246_v29 = vld [vmem:[%s18676_s1 + $0x440] sm:$0xff]  ;;  %v245_v30 = vld [vmem:[%s18676_s1 + $0x438] sm:$0xff] }
  0x7f   :  { %16922 = vmatprep.subr.mxu1 %v232_v33  ;;  %16888 = vmatpush3.msra.mxu0 %v184_v34  ;;  %v244_v31 = vld [vmem:[%s18676_s1 + $0x430] sm:$0xff]  ;;  %v243_v32 = vld [vmem:[%s18676_s1 + $0x428] sm:$0xff]  ;;  %v242_v33 = vld [vmem:[%s18676_s1 + $0x420] sm:$0xff] }
  0x80   :  { %16923 = vmatpush3.msra.mxu1 %v216_v35  ;;  %16889 = vmatprep.subr.mxu0 %v199_v36  ;;  %v241_v34 = vld [vmem:[%s18676_s1 + $0x418] sm:$0xff]  ;;  %v240_v35 = vld [vmem:[%s18676_s1 + $0x410] sm:$0xff]  ;;  %v239_v36 = vld [vmem:[%s18676_s1 + $0x408] sm:$0xff] }
  0x81   :  { %16924 = vmatprep.subr.mxu1 %v231_v37  ;;  %16890 = vmatpush3.msra.mxu0 %v183_v38  ;;  %v238_v37 = vld [vmem:[%s18676_s1 + $0x400] sm:$0xff]  ;;  %v17101_v58 = vld [vmem:[#allocation2 + $0x26c] ss:$100 sps:$4 sm:$0xff]   ;;  %v17119_v6 = vld [vmem:[#allocation2 + $0x14] ss:$100 sps:$4 sm:$0xff]  }
  0x82   :  { %16925 = vmatpush3.msra.mxu1 %v215_v39  ;;  %16891 = vmatprep.subr.mxu0 %v198_v40  ;;  %v254_v38 = vld [vmem:[%s18676_s1 + $0x480] sm:$0xf]  ;;  %v823_v39 = vld [vmem:[#allocation2 + $0x4b0] sm:$0x33]  ;;  %s17560_s1 = smov [#allocation13]  }
  0x83   :  { %16926 = vmatprep.subr.mxu1 %v230_v43  ;;  %16892 = vmatpush3.msra.mxu0 %v182_v41  ;;  %v825_v40 = vld [vmem:[#allocation2 + $0x4c0] sm:$0x33]  ;;  %v15093_v41 = vcombine.high %v823_v39, %v823_v39  ;;  %s14926_s27 = sshll.u32 %s17560_s1, 4  ;;  %s14927_s27 = int_to_ptr.vmem [resolvable:$true] %s14926_s27 }
  0x84   :  { %16927 = vmatpush3.msra.mxu1 %v214_v46  ;;  %16893 = vmatprep.subr.mxu0 %v197_v44  ;;  %v15097_v43 = vcombine.high %v825_v40, %v825_v40  ;;  %v15092_v44 = vcombine.low %v823_v39, %v823_v39  ;;  %v17086_v46 = vld [vmem:[#allocation2 + $0x3ec] ss:$100 sps:$4 sm:$0xff]   ;;  %s17514_s28 = scalar_lea.vmem %s14927_s27, 32  ;;  %p17519_p3 = scmp.lt.s32.totalorder %s14927_s27, %s14927_s27 }
  0x85   :  { %16928 = vmatprep.subr.mxu1 %v229_v48  ;;  %16894 = vmatpush3.msra.mxu0 %v181_v45  ;;  %v15096_v45 = vcombine.low %v825_v40, %v825_v40  ;;  %v17124_v39 = vld [vmem:[#allocation2 + $0x3f0] ss:$100 sps:$4 sm:$0xff]   ;;  %v17127_v40 = vld [vmem:[#allocation2 + $0x408] ss:$100 sps:$4 sm:$0xff]   ;;  %p17515_p2 = scmp.ne.s32.totalorder %s14927_s27, %s17514_s28  ;;  %p17520_p4 = scmp.lt.s32.totalorder %s17514_s28, %s17514_s28 }
  0x86   :  { %16929 = vmatpush3.msra.mxu1 %v213_v49  ;;  %16895 = vmatprep.subr.mxu0 %v196_v47  ;;  %v17089_v47 = vld [vmem:[#allocation2 + $0x3fc] ss:$100 sps:$4 sm:$0xff]   ;;  %v1794_v48 = vsel %vm1792_vm2, %v15092_v44, 0  ;;  %v17130_v44 = vld [vmem:[#allocation2 + $0x328] ss:$100 sps:$4 sm:$0xff]  }
  0x87   :  { %16930 = vmatprep.subr.mxu1 %v228_v50  ;;  %16896 = vmatpush3.msra.mxu0 %v180_v52  ;;  %v1806_v49 = vsel %vm1792_vm2, %v15096_v45, 0  ;;  %v17084_v50 = vld [vmem:[#allocation2 + $0x3e8] ss:$100 sps:$4 sm:$0xff]   ;;  %v17087_v52 = vld [vmem:[#allocation2 + $0x3f8] ss:$100 sps:$4 sm:$0xff]   ;;  %p17521_p5 = por %p17520_p4, %p17519_p3 }
  0x88   :  { %16931 = vmatpush3.msra.mxu1 %v212_v53  ;;  %16897 = vmatprep.subr.mxu0 %v195_v54  ;;  %v17092_v53 = vld [vmem:[#allocation2 + $0x324] ss:$100 sps:$4 sm:$0xff]   ;;  %v17095_v54 = vld [vmem:[#allocation2 + $0x334] ss:$100 sps:$4 sm:$0xff]  }
  0x89   :  { %16932 = vmatprep.subr.mxu1 %v227_v55  ;;  %16898 = vmatpush3.msra.mxu0 %v179_v56  ;;  %v17090_v55 = vld [vmem:[#allocation2 + $0x320] ss:$100 sps:$4 sm:$0xff]   ;;  %v17093_v56 = vld [vmem:[#allocation2 + $0x330] ss:$100 sps:$4 sm:$0xff]   ;;  %p17522_p6 = pnand %p17521_p5, %p17515_p2 }
  0x8a   :  { %16933 = vmatpush3.msra.mxu1 %v211_v57  ;;  %16899 = vmatprep.subr.mxu0 %v194_v59  ;;  %v17098_v57 = vld [vmem:[#allocation2 + $0x25c] ss:$100 sps:$4 sm:$0xff]  }
  0x8b   :  { %16934 = vmatprep.subr.mxu1 %v226_v60  ;;  %16900 = vmatpush3.msra.mxu0 %v178_v61  ;;  %v17096_v59 = vld [vmem:[#allocation2 + $0x258] ss:$100 sps:$4 sm:$0xff]   ;;  %v17099_v60 = vld [vmem:[#allocation2 + $0x268] ss:$100 sps:$4 sm:$0xff]   ;;  %v17133_v45 = vld [vmem:[#allocation2 + $0x340] ss:$100 sps:$4 sm:$0xff]  }
  0x8c   :  { %16935 = vmatpush3.msra.mxu1 %v210_v62  ;;  %16901 = vmatprep.subr.mxu0 %v193_v63  ;;  %v17104_v61 = vld [vmem:[#allocation2 + $0x194] ss:$100 sps:$4 sm:$0xff]   ;;  %v17107_v62 = vld [vmem:[#allocation2 + $0x1a4] ss:$100 sps:$4 sm:$0xff]  }
  0x8d   :  { %16936 = vmatprep.subr.mxu1 %v225_v0  ;;  %16902 = vmatpush3.msra.mxu0 %v177_v1  ;;  %v17102_v63 = vld [vmem:[#allocation2 + $0x190] ss:$100 sps:$4 sm:$0xff]   ;;  %v17105_v0 = vld [vmem:[#allocation2 + $0x1a0] ss:$100 sps:$4 sm:$0xff]  }
  0x8e   :  { %16937 = vmatpush3.msra.mxu1 %v209_v2  ;;  %16903 = vmatprep.subr.mxu0 %v192_v3  ;;  %v17110_v1 = vld [vmem:[#allocation2 + $0xcc] ss:$100 sps:$4 sm:$0xff]   ;;  %v17113_v2 = vld [vmem:[#allocation2 + $0xdc] ss:$100 sps:$4 sm:$0xff]  }
  0x8f   :  { %16938 = vmatprep.subr.mxu1 %v224_v4  ;;  %16904 = vmatpush3.msra.mxu0 %v176_v7  ;;  %v17108_v3 = vld [vmem:[#allocation2 + $0xc8] ss:$100 sps:$4 sm:$0xff]   ;;  %v17111_v4 = vld [vmem:[#allocation2 + $0xd8] ss:$100 sps:$4 sm:$0xff]   ;;  %v17114_v7 = vld [vmem:[#allocation2] ss:$100 sps:$4 sm:$0xff]  }
  0x90   :  { %16939 = vmatpush3.msra.mxu1 %v208_v8  ;;  %16905 = vmatprep.subr.mxu0 %v191_v9  ;;  %v17117_v8 = vld [vmem:[#allocation2 + $0x10] ss:$100 sps:$4 sm:$0xff]   ;;  %v824_v9 = vld [vmem:[#allocation2 + $0x4b8] sm:$0x33] }
  0x91   :  { %16940 = vmatprep.subr.mxu1 %v223_v10  ;;  %16906 = vmatpush3.msra.mxu0 %v175_v11  ;;  %v827_v10 = vld [vmem:[#allocation2 + $0x4d0] sm:$0x33]  ;;  %v15095_v11 = vcombine.high %v824_v9, %v824_v9 }
  0x92   :  { %520 = vmatprep.mubr.f32.mxu0 %v290_v13  ;;  %16907 = vmatprep.subr.mxu0 %v190_v12  ;;  %v15101_v12 = vcombine.high %v827_v10, %v827_v10  ;;  %v17558_v13 = vmov 0  }
  0x93   :  { %16941 = vmatpush3.msra.mxu1 %v207_v14  ;;  %16908 = vmatpush3.msra.mxu0 %v174_v16 }
  0x94   :  { %16942 = vmatprep.subr.mxu1 %v222_v17  ;;  %521 = vmatmul.mubr.f32.vlgmr.msra.gmra.mxu0 %v282_v5  ;;  %v17116_v5 = vld [vmem:[#allocation2 + $0x4] ss:$100 sps:$4 sm:$0xff]  }
  0x95   :  { %596 = vmatprep.subr.mxu0 %v17557_v23  ;;  %16943 = vmatpush3.msra.mxu1 %v206_v51 }
  0x96   :  { %590 = vmatprep.mubr.f32.mxu1 %v291_v19  ;;  %597 = vmatpush1.msra.mxu0 %v253_v20 }
  0x97   :  { %591 = vmatmul.mubr.f32.vlgmr.msra.gmra.mxu1 %v289_v15  ;;  %598 = vmatprep.subr.mxu0 %v17557_v23 }
  0x98   :  { %14940 = vmatprep.mubr.msk.f32.mxu0 %vm309_vm0, %v299_v22  ;;  %599 = vmatpush1.msra.mxu0 %v252_v21 }
  0x99   :  { %600 = vmatprep.subr.mxu0 %v17557_v23  ;;  %15117 = vmatprep.subr.msk.bf16.mxu1 %vm1792_vm2, %v15093_v41  ;;  %v17132_v41 = vld [vmem:[#allocation2 + $0x32c] ss:$100 sps:$4 sm:$0xff]  }
  0x9a   :  { %601 = vmatpush1.msra.mxu0 %v251_v24  ;;  %1871 = vmatpush1.bf16.msra.mxu1 %v1794_v48  ;;  %v17136_v48 = vld [vmem:[#allocation2 + $0x260] ss:$100 sps:$4 sm:$0xff]  }
  0x9b   :  { %602 = vmatprep.subr.mxu0 %v17557_v23  ;;  %1872 = vmatprep.subr.bf16.mxu1 %v17086_v46  ;;  %v17138_v46 = vld [vmem:[#allocation2 + $0x264] ss:$100 sps:$4 sm:$0xff]  }
  0x9c   :  { %603 = vmatpush1.msra.mxu0 %v250_v25  ;;  %1900 = vmatprep.mubr.bf16.mxu1 %v17558_v13 }
  0x9d   :  { %604 = vmatprep.subr.mxu0 %v17557_v23 }
  0x9e   :  { %605 = vmatpush1.msra.mxu0 %v249_v26  ;;  %1873 = vmatpush1.bf16.msra.mxu1 %v17084_v50  ;;  %v17144_v50 = vld [vmem:[#allocation2 + $0x19c] ss:$100 sps:$4 sm:$0xff]  }
  0x9f   :  { %606 = vmatprep.subr.mxu0 %v17557_v23  ;;  %1874 = vmatprep.subr.bf16.mxu1 %v17092_v53  ;;  %v17142_v53 = vld [vmem:[#allocation2 + $0x198] ss:$100 sps:$4 sm:$0xff]  }
  0xa0   :  { %607 = vmatpush1.msra.mxu0 %v248_v27 }
  0xa1   :  { %608 = vmatprep.subr.mxu0 %v17557_v23 }
  0xa2   :  { %609 = vmatpush1.msra.mxu0 %v247_v28  ;;  %1875 = vmatpush1.bf16.msra.mxu1 %v17090_v55  ;;  %v17150_v55 = vld [vmem:[#allocation2 + $0xd4] ss:$100 sps:$4 sm:$0xff]  }
  0xa3   :  { %610 = vmatprep.subr.mxu0 %v17557_v23  ;;  %1876 = vmatprep.subr.bf16.mxu1 %v17098_v57  ;;  %v17148_v57 = vld [vmem:[#allocation2 + $0xd0] ss:$100 sps:$4 sm:$0xff]  }
  0xa4   :  { %611 = vmatpush1.msra.mxu0 %v246_v29  ;;  %v15094_v29 = vcombine.low %v824_v9, %v824_v9  ;;  %v17164_v9 = vld [vmem:[#allocation2 + $0x400] ss:$100 sps:$4 sm:$0xff]  }
  0xa5   :  { %612 = vmatprep.subr.mxu0 %v17557_v23 }
  0xa6   :  { %613 = vmatpush1.msra.mxu0 %v245_v30  ;;  %1877 = vmatpush1.bf16.msra.mxu1 %v17096_v59  ;;  %v15100_v30 = vcombine.low %v827_v10, %v827_v10  ;;  %v17156_v59 = vld [vmem:[#allocation2 + $0xc] ss:$100 sps:$4 sm:$0xff]   ;;  %v17167_v10 = vld [vmem:[#allocation2 + $0x418] ss:$100 sps:$4 sm:$0xff]  }
  0xa7   :  { %614 = vmatprep.subr.mxu0 %v17557_v23  ;;  %1878 = vmatprep.subr.bf16.mxu1 %v17104_v61  ;;  %v826_v61 = vld [vmem:[#allocation2 + $0x4c8] sm:$0x33] }
  0xa8   :  { %615 = vmatpush1.msra.mxu0 %v244_v31 }
  0xa9   :  { %616 = vmatprep.subr.mxu0 %v17557_v23 }
  0xaa   :  { %617 = vmatpush1.msra.mxu0 %v243_v32  ;;  %1879 = vmatpush1.bf16.msra.mxu1 %v17102_v63  ;;  %v17154_v63 = vld [vmem:[#allocation2 + $0x8] ss:$100 sps:$4 sm:$0xff]  }
  0xab   :  { %618 = vmatprep.subr.mxu0 %v17557_v23  ;;  %1880 = vmatprep.subr.bf16.mxu1 %v17110_v1  ;;  %v15099_v1 = vcombine.high %v826_v61, %v826_v61 }
  0xac   :  { %619 = vmatpush1.msra.mxu0 %v242_v33 }
  0xad   :  { %620 = vmatprep.subr.mxu0 %v17557_v23 }
  0xae   :  { %621 = vmatpush1.msra.mxu0 %v241_v34  ;;  %1881 = vmatpush1.bf16.msra.mxu1 %v17108_v3  ;;  %v15098_v3 = vcombine.low %v826_v61, %v826_v61  ;;  %v17228_v61 = vld [vmem:[#allocation2 + $0xf0] ss:$100 sps:$4 sm:$0xff]  }
  0xaf   :  { %622 = vmatprep.subr.mxu0 %v17557_v23  ;;  %1882 = vmatprep.subr.bf16.mxu1 %v17116_v5 }
  0xb0   :  { %623 = vmatpush1.msra.mxu0 %v240_v35  ;;  %v1800_v35 = vsel %vm1792_vm2, %v15094_v29, 0  ;;  %v1812_v5 = vsel %vm1792_vm2, %v15098_v3, 0  ;;  %v17199_v29 = vld [vmem:[#allocation2 + $0x34] ss:$100 sps:$4 sm:$0xff]   ;;  %v17234_v3 = vld [vmem:[#allocation2 + $0x28] ss:$100 sps:$4 sm:$0xff]  }
  0xb1   :  { %624 = vmatprep.subr.mxu0 %v17557_v23 }
  0xb2   :  { %625 = vmatpush1.msra.mxu0 %v239_v36  ;;  %1883 = vmatpush1.bf16.msra.mxu1 %v17114_v7  ;;  %v1818_v36 = vsel %vm1792_vm2, %v15100_v30, 0  ;;  %v17166_v7 = vld [vmem:[#allocation2 + $0x404] ss:$100 sps:$4 sm:$0xff]   ;;  %v828_v30 = vld [vmem:[#allocation2 + $0x4d8] sm:$0x33] }
  0xb3   :  { %626 = vmatprep.subr.mxu0 %v17557_v23  ;;  %15119 = vmatprep.subr.msk.bf16.mxu1 %vm1792_vm2, %v15095_v11  ;;  %v17172_v11 = vld [vmem:[#allocation2 + $0x33c] ss:$100 sps:$4 sm:$0xff]  }
  0xb4   :  { %627 = vmatpush1.msra.mxu0 %v238_v37  ;;  %v17126_v37 = vld [vmem:[#allocation2 + $0x3f4] ss:$100 sps:$4 sm:$0xff]  }
  0xb5   :  { %658 = vmatprep.subr.mxu0 %v17557_v23 }
  0xb6   :  { %14939 = vmatpush2.msk.msra.mxu0 %vm312_vm1, %v254_v38  ;;  %v17129_v38 = vld [vmem:[#allocation2 + $0x40c] ss:$100 sps:$4 sm:$0xff]  }
  0xb7   :  { %661 = vmatmul.mubr.f32.vlgmr.msra.gmra.mxu0 %v18023_v18  ;;  %15121 = vmatprep.subr.msk.bf16.mxu0 %vm1792_vm2, %v15097_v43  ;;  %v17135_v43 = vld [vmem:[#allocation2 + $0x344] ss:$100 sps:$4 sm:$0xff]  }
  0xb8   :  { %1953 = vmatpush1.bf16.msra.mxu0 %v1806_v49  ;;  %1982 = vmatprep.mubr.bf16.mxu0 %v17558_v13  ;;  %v17139_v49 = vld [vmem:[#allocation2 + $0x278] ss:$100 sps:$4 sm:$0xff]  }
  0xb9   :  { %1954 = vmatprep.subr.bf16.mxu0 %v17089_v47  ;;  %v17141_v47 = vld [vmem:[#allocation2 + $0x27c] ss:$100 sps:$4 sm:$0xff]  }
  0xbc   :  { %1955 = vmatpush1.bf16.msra.mxu0 %v17087_v52  ;;  %v17147_v52 = vld [vmem:[#allocation2 + $0x1b4] ss:$100 sps:$4 sm:$0xff]  }
  0xbd   :  { %1956 = vmatprep.subr.bf16.mxu0 %v17095_v54  ;;  %v17145_v54 = vld [vmem:[#allocation2 + $0x1b0] ss:$100 sps:$4 sm:$0xff]  }
  0xc0   :  { %1957 = vmatpush1.bf16.msra.mxu0 %v17093_v56  ;;  %v17153_v56 = vld [vmem:[#allocation2 + $0xec] ss:$100 sps:$4 sm:$0xff]  }
  0xc1   :  { %1958 = vmatprep.subr.bf16.mxu0 %v17101_v58  ;;  %v17151_v58 = vld [vmem:[#allocation2 + $0xe8] ss:$100 sps:$4 sm:$0xff]  }
  0xc4   :  { %1959 = vmatpush1.bf16.msra.mxu0 %v17099_v60  ;;  %v17159_v60 = vld [vmem:[#allocation2 + $0x24] ss:$100 sps:$4 sm:$0xff]  }
  0xc5   :  { %1960 = vmatprep.subr.bf16.mxu0 %v17107_v62  ;;  %v829_v62 = vld [vmem:[#allocation2 + $0x4e0] sm:$0x33] }
  0xc8   :  { %1961 = vmatpush1.bf16.msra.mxu0 %v17105_v0  ;;  %v17157_v0 = vld [vmem:[#allocation2 + $0x20] ss:$100 sps:$4 sm:$0xff]  }
  0xc9   :  { %1962 = vmatprep.subr.bf16.mxu0 %v17113_v2  ;;  %v15105_v2 = vcombine.high %v829_v62, %v829_v62 }
  0xcc   :  { %1963 = vmatpush1.bf16.msra.mxu0 %v17111_v4  ;;  %v15104_v4 = vcombine.low %v829_v62, %v829_v62  ;;  %v17231_v62 = vld [vmem:[#allocation2 + $0x108] ss:$100 sps:$4 sm:$0xff]  }
  0xcd   :  { %1964 = vmatprep.subr.bf16.mxu0 %v17119_v6 }
  0xce   :  { %v1830_v6 = vsel %vm1792_vm2, %v15104_v4, 0  ;;  %v17237_v4 = vld [vmem:[#allocation2 + $0x40] ss:$100 sps:$4 sm:$0xff]  }
  0xd0   :  { %1965 = vmatpush1.bf16.msra.mxu0 %v17117_v8  ;;  %v17169_v8 = vld [vmem:[#allocation2 + $0x41c] ss:$100 sps:$4 sm:$0xff]  }
  0xd1   :  { %15125 = vmatprep.subr.msk.bf16.mxu0 %vm1792_vm2, %v15101_v12  ;;  %v17175_v12 = vld [vmem:[#allocation2 + $0x354] ss:$100 sps:$4 sm:$0xff]  }
 0x133   :  { %v16839_v14 = vpop.f32.mrf.mxu0 }
 0x134   :  { %v16874_v15 = vpop.f32.mrf.mxu1 }
 0x135   :  { %v16840_v16 = vpop.f32.mrf.mxu0 }
 0x136   :  { %v16875_v18 = vpop.f32.mrf.mxu1  ;;  %v16841_v20 = vadd.f32 %v16840_v16, %v16839_v14  ;;  %v17170_v14 = vld [vmem:[#allocation2 + $0x338] ss:$100 sps:$4 sm:$0xff]  }
 0x137   :  { %v16876_v21 = vadd.f32 %v16875_v18, %v16874_v15  ;;  %v17173_v15 = vld [vmem:[#allocation2 + $0x350] ss:$100 sps:$4 sm:$0xff]  }
 0x138   :  { %v17178_v16 = vld [vmem:[#allocation2 + $0x274] ss:$100 sps:$4 sm:$0xff]  }
 0x139   :  { %v453_v25 = vadd.f32 %v16876_v21, %v16841_v20  ;;  %v17176_v18 = vld [vmem:[#allocation2 + $0x270] ss:$100 sps:$4 sm:$0xff]   ;;  %v17187_v20 = vld [vmem:[#allocation2 + $0x1c4] ss:$100 sps:$4 sm:$0xff]  }
 0x13a   :  { %v17182_v21 = vld [vmem:[#allocation2 + $0x1a8] ss:$100 sps:$4 sm:$0xff]  }
 0x154   :  { %v16909_v17 = vpop.f32.mrf.mxu0 }
 0x156   :  { %v16910_v51 = vpop.f32.mrf.mxu0 }
 0x157   :  { %v16944_v19 = vpop.f32.mrf.mxu1  ;;  %v16911_v22 = vadd.f32 %v16910_v51, %v16909_v17  ;;  %v17181_v17 = vld [vmem:[#allocation2 + $0x28c] ss:$100 sps:$4 sm:$0xff]  }
 0x158   :  { %v17179_v51 = vld [vmem:[#allocation2 + $0x288] ss:$100 sps:$4 sm:$0xff]  }
 0x159   :  { %v16945_v24 = vpop.f32.mrf.mxu1  ;;  %v523_v26 = vadd.f32 %v16911_v22, %v453_v25  ;;  %v17185_v22 = vld [vmem:[#allocation2 + $0x1c0] ss:$100 sps:$4 sm:$0xff]  }
 0x15a   :  { %v16946_v27 = vadd.f32 %v16945_v24, %v16944_v19  ;;  %v17184_v19 = vld [vmem:[#allocation2 + $0x1ac] ss:$100 sps:$4 sm:$0xff]   ;;  %v17190_v24 = vld [vmem:[#allocation2 + $0xe4] ss:$100 sps:$4 sm:$0xff]   ;;  %v17193_v25 = vld [vmem:[#allocation2 + $0xfc] ss:$100 sps:$4 sm:$0xff]  }
 0x15c   :  { %v593_v28 = vadd.f32 %v16946_v27, %v523_v26  ;;  %v17188_v26 = vld [vmem:[#allocation2 + $0xe0] ss:$100 sps:$4 sm:$0xff]   ;;  %v17191_v27 = vld [vmem:[#allocation2 + $0xf8] ss:$100 sps:$4 sm:$0xff]  }
 0x177   :  { %v662_v31 = vpop.f32.mrf.mxu0 }
 0x178   :  { %v663_v32 = vadd.f32 %v662_v31, %v593_v28  ;;  %v17196_v28 = vld [vmem:[#allocation2 + $0x1c] ss:$100 sps:$4 sm:$0xff]   ;;  %v831_v31 = vld [vmem:[#allocation2 + $0x4f0] sm:$0x33] }
 0x179   :  { %v664_v33 = vpop.f32.mrf.mxu0 }
 0x17a   :  { %v18107_v34 = vpack.c.bf16 %v663_v32, %v663_v32  ;;  %v17194_v32 = vld [vmem:[#allocation2 + $0x18] ss:$100 sps:$4 sm:$0xff]   ;;  %v17197_v33 = vld [vmem:[#allocation2 + $0x30] ss:$100 sps:$4 sm:$0xff]  }
 0x17c   :  { %15118 = vmatmul.mubr.msk.bf16.vlgmr.msra.gmra.mxu1 %vm1788_vm3, %v18107_v34  ;;  %15122 = vmatmul.mubr.msk.bf16.vlgmr.msra.gmra.mxu0 %vm1788_vm3, %v18107_v34 }
 0x17d   :  { %1912 = vmatpush1.bf16.msra.mxu1 %v1800_v35  ;;  %2035 = vmatpush1.bf16.msra.mxu0 %v1818_v36  ;;  %v15103_v35 = vcombine.high %v828_v30, %v828_v30  ;;  %v15109_v36 = vcombine.high %v831_v31, %v831_v31 }
 0x17e   :  { %1913 = vmatprep.subr.bf16.mxu1 %v17126_v37  ;;  %2036 = vmatprep.subr.bf16.mxu0 %v17129_v38  ;;  %v15102_v37 = vcombine.low %v828_v30, %v828_v30  ;;  %v15108_v38 = vcombine.low %v831_v31, %v831_v31  ;;  %v17268_v30 = vld [vmem:[#allocation2 + $0x100] ss:$100 sps:$4 sm:$0xff]   ;;  %v17271_v31 = vld [vmem:[#allocation2 + $0x118] ss:$100 sps:$4 sm:$0xff]  }
 0x17f   :  { %1941 = vmatprep.mubr.bf16.mxu1 %v17558_v13  ;;  %2064 = vmatprep.mubr.bf16.mxu0 %v17558_v13 }
 0x181   :  { %1914 = vmatpush1.bf16.msra.mxu1 %v17124_v39  ;;  %2037 = vmatpush1.bf16.msra.mxu0 %v17127_v40  ;;  %v1824_v39 = vsel %vm1792_vm2, %v15102_v37, 0  ;;  %v1842_v40 = vsel %vm1792_vm2, %v15108_v38, 0  ;;  %v17277_v37 = vld [vmem:[#allocation2 + $0x50] ss:$100 sps:$4 sm:$0xff]  }
 0x182   :  { %1915 = vmatprep.subr.bf16.mxu1 %v17132_v41  ;;  %2038 = vmatprep.subr.bf16.mxu0 %v17135_v43  ;;  %v17206_v41 = vld [vmem:[#allocation2 + $0x414] ss:$100 sps:$4 sm:$0xff]   ;;  %v17209_v43 = vld [vmem:[#allocation2 + $0x42c] ss:$100 sps:$4 sm:$0xff]  }
 0x185   :  { %1916 = vmatpush1.bf16.msra.mxu1 %v17130_v44  ;;  %2039 = vmatpush1.bf16.msra.mxu0 %v17133_v45  ;;  %v17204_v44 = vld [vmem:[#allocation2 + $0x410] ss:$100 sps:$4 sm:$0xff]   ;;  %v17207_v45 = vld [vmem:[#allocation2 + $0x428] ss:$100 sps:$4 sm:$0xff]  }
 0x186   :  { %1917 = vmatprep.subr.bf16.mxu1 %v17138_v46  ;;  %2040 = vmatprep.subr.bf16.mxu0 %v17141_v47  ;;  %v17212_v46 = vld [vmem:[#allocation2 + $0x34c] ss:$100 sps:$4 sm:$0xff]   ;;  %v17215_v47 = vld [vmem:[#allocation2 + $0x364] ss:$100 sps:$4 sm:$0xff]  }
 0x189   :  { %1918 = vmatpush1.bf16.msra.mxu1 %v17136_v48  ;;  %2041 = vmatpush1.bf16.msra.mxu0 %v17139_v49  ;;  %v17210_v48 = vld [vmem:[#allocation2 + $0x348] ss:$100 sps:$4 sm:$0xff]   ;;  %v17213_v49 = vld [vmem:[#allocation2 + $0x360] ss:$100 sps:$4 sm:$0xff]  }
 0x18a   :  { %1919 = vmatprep.subr.bf16.mxu1 %v17144_v50  ;;  %2042 = vmatprep.subr.bf16.mxu0 %v17147_v52  ;;  %v17218_v50 = vld [vmem:[#allocation2 + $0x284] ss:$100 sps:$4 sm:$0xff]   ;;  %v17221_v52 = vld [vmem:[#allocation2 + $0x29c] ss:$100 sps:$4 sm:$0xff]  }
 0x18d   :  { %1920 = vmatpush1.bf16.msra.mxu1 %v17142_v53  ;;  %2043 = vmatpush1.bf16.msra.mxu0 %v17145_v54  ;;  %v17216_v53 = vld [vmem:[#allocation2 + $0x280] ss:$100 sps:$4 sm:$0xff]   ;;  %v17219_v54 = vld [vmem:[#allocation2 + $0x298] ss:$100 sps:$4 sm:$0xff]  }
 0x18e   :  { %1921 = vmatprep.subr.bf16.mxu1 %v17150_v55  ;;  %2044 = vmatprep.subr.bf16.mxu0 %v17153_v56  ;;  %v17224_v55 = vld [vmem:[#allocation2 + $0x1bc] ss:$100 sps:$4 sm:$0xff]   ;;  %v17227_v56 = vld [vmem:[#allocation2 + $0x1d4] ss:$100 sps:$4 sm:$0xff]  }
 0x191   :  { %1922 = vmatpush1.bf16.msra.mxu1 %v17148_v57  ;;  %2045 = vmatpush1.bf16.msra.mxu0 %v17151_v58  ;;  %v17222_v57 = vld [vmem:[#allocation2 + $0x1b8] ss:$100 sps:$4 sm:$0xff]   ;;  %v17225_v58 = vld [vmem:[#allocation2 + $0x1d0] ss:$100 sps:$4 sm:$0xff]  }
 0x192   :  { %1923 = vmatprep.subr.bf16.mxu1 %v17156_v59  ;;  %2046 = vmatprep.subr.bf16.mxu0 %v17159_v60  ;;  %v17230_v59 = vld [vmem:[#allocation2 + $0xf4] ss:$100 sps:$4 sm:$0xff]   ;;  %v17233_v60 = vld [vmem:[#allocation2 + $0x10c] ss:$100 sps:$4 sm:$0xff]  }
 0x195   :  { %1924 = vmatpush1.bf16.msra.mxu1 %v17154_v63  ;;  %2047 = vmatpush1.bf16.msra.mxu0 %v17157_v0  ;;  %v17236_v63 = vld [vmem:[#allocation2 + $0x2c] ss:$100 sps:$4 sm:$0xff]   ;;  %v17239_v0 = vld [vmem:[#allocation2 + $0x44] ss:$100 sps:$4 sm:$0xff]  }
 0x196   :  { %15123 = vmatprep.subr.msk.bf16.mxu1 %vm1792_vm2, %v15099_v1  ;;  %15129 = vmatprep.subr.msk.bf16.mxu0 %vm1792_vm2, %v15105_v2  ;;  %v830_v1 = vld [vmem:[#allocation2 + $0x4e8] sm:$0x33]  ;;  %v833_v2 = vld [vmem:[#allocation2 + $0x500] sm:$0x33] }
 0x198   :  { %15120 = vmatmul.mubr.msk.bf16.vlgmr.msra.gmra.mxu1 %vm1788_vm3, %v18107_v34  ;;  %15126 = vmatmul.mubr.msk.bf16.vlgmr.msra.gmra.mxu0 %vm1788_vm3, %v18107_v34 }
 0x199   :  { %1994 = vmatpush1.bf16.msra.mxu1 %v1812_v5  ;;  %2117 = vmatpush1.bf16.msra.mxu0 %v1830_v6  ;;  %v15107_v5 = vcombine.high %v830_v1, %v830_v1  ;;  %v15113_v6 = vcombine.high %v833_v2, %v833_v2 }
 0x19a   :  { %1995 = vmatprep.subr.bf16.mxu1 %v17166_v7  ;;  %2118 = vmatprep.subr.bf16.mxu0 %v17169_v8  ;;  %v15106_v7 = vcombine.low %v830_v1, %v830_v1  ;;  %v15112_v8 = vcombine.low %v833_v2, %v833_v2  ;;  %v17306_v1 = vld [vmem:[#allocation2 + $0x60] ss:$100 sps:$4 sm:$0xff]  }
 0x19b   :  { %2023 = vmatprep.mubr.bf16.mxu1 %v17558_v13  ;;  %2146 = vmatprep.mubr.bf16.mxu0 %v17558_v13 }
 0x19d   :  { %1996 = vmatpush1.bf16.msra.mxu1 %v17164_v9  ;;  %2119 = vmatpush1.bf16.msra.mxu0 %v17167_v10  ;;  %v1836_v9 = vsel %vm1792_vm2, %v15106_v7, 0  ;;  %v1854_v10 = vsel %vm1792_vm2, %v15112_v8, 0 }
 0x19e   :  { %1997 = vmatprep.subr.bf16.mxu1 %v17172_v11  ;;  %2120 = vmatprep.subr.bf16.mxu0 %v17175_v12  ;;  %v17246_v11 = vld [vmem:[#allocation2 + $0x424] ss:$100 sps:$4 sm:$0xff]   ;;  %v17249_v12 = vld [vmem:[#allocation2 + $0x43c] ss:$100 sps:$4 sm:$0xff]  }
 0x1a1   :  { %1998 = vmatpush1.bf16.msra.mxu1 %v17170_v14  ;;  %2121 = vmatpush1.bf16.msra.mxu0 %v17173_v15  ;;  %v17244_v14 = vld [vmem:[#allocation2 + $0x420] ss:$100 sps:$4 sm:$0xff]   ;;  %v17247_v15 = vld [vmem:[#allocation2 + $0x438] ss:$100 sps:$4 sm:$0xff]  }
 0x1a2   :  { %1999 = vmatprep.subr.bf16.mxu1 %v17178_v16  ;;  %2122 = vmatprep.subr.bf16.mxu0 %v17181_v17  ;;  %v17252_v16 = vld [vmem:[#allocation2 + $0x35c] ss:$100 sps:$4 sm:$0xff]   ;;  %v17255_v17 = vld [vmem:[#allocation2 + $0x374] ss:$100 sps:$4 sm:$0xff]  }
 0x1a5   :  { %2000 = vmatpush1.bf16.msra.mxu1 %v17176_v18  ;;  %2123 = vmatpush1.bf16.msra.mxu0 %v17179_v51  ;;  %v17250_v18 = vld [vmem:[#allocation2 + $0x358] ss:$100 sps:$4 sm:$0xff]   ;;  %v17253_v51 = vld [vmem:[#allocation2 + $0x370] ss:$100 sps:$4 sm:$0xff]  }
 0x1a6   :  { %2001 = vmatprep.subr.bf16.mxu1 %v17184_v19  ;;  %2124 = vmatprep.subr.bf16.mxu0 %v17187_v20  ;;  %v17258_v19 = vld [vmem:[#allocation2 + $0x294] ss:$100 sps:$4 sm:$0xff]   ;;  %v17261_v20 = vld [vmem:[#allocation2 + $0x2ac] ss:$100 sps:$4 sm:$0xff]  }
 0x1a9   :  { %2002 = vmatpush1.bf16.msra.mxu1 %v17182_v21  ;;  %2125 = vmatpush1.bf16.msra.mxu0 %v17185_v22  ;;  %v17256_v21 = vld [vmem:[#allocation2 + $0x290] ss:$100 sps:$4 sm:$0xff]   ;;  %v17259_v22 = vld [vmem:[#allocation2 + $0x2a8] ss:$100 sps:$4 sm:$0xff]  }
 0x1aa   :  { %2003 = vmatprep.subr.bf16.mxu1 %v17190_v24  ;;  %2126 = vmatprep.subr.bf16.mxu0 %v17193_v25  ;;  %v17264_v24 = vld [vmem:[#allocation2 + $0x1cc] ss:$100 sps:$4 sm:$0xff]   ;;  %v17267_v25 = vld [vmem:[#allocation2 + $0x1e4] ss:$100 sps:$4 sm:$0xff]  }
 0x1ad   :  { %2004 = vmatpush1.bf16.msra.mxu1 %v17188_v26  ;;  %2127 = vmatpush1.bf16.msra.mxu0 %v17191_v27  ;;  %v17262_v26 = vld [vmem:[#allocation2 + $0x1c8] ss:$100 sps:$4 sm:$0xff]   ;;  %v17265_v27 = vld [vmem:[#allocation2 + $0x1e0] ss:$100 sps:$4 sm:$0xff]  }
 0x1ae   :  { %2005 = vmatprep.subr.bf16.mxu1 %v17196_v28  ;;  %2128 = vmatprep.subr.bf16.mxu0 %v17199_v29  ;;  %v17270_v28 = vld [vmem:[#allocation2 + $0x104] ss:$100 sps:$4 sm:$0xff]   ;;  %v17273_v29 = vld [vmem:[#allocation2 + $0x11c] ss:$100 sps:$4 sm:$0xff]  }
 0x1b1   :  { %2006 = vmatpush1.bf16.msra.mxu1 %v17194_v32  ;;  %2129 = vmatpush1.bf16.msra.mxu0 %v17197_v33  ;;  %v17276_v32 = vld [vmem:[#allocation2 + $0x3c] ss:$100 sps:$4 sm:$0xff]   ;;  %v17279_v33 = vld [vmem:[#allocation2 + $0x54] ss:$100 sps:$4 sm:$0xff]  }
 0x1b2   :  { %15127 = vmatprep.subr.msk.bf16.mxu1 %vm1792_vm2, %v15103_v35  ;;  %15133 = vmatprep.subr.msk.bf16.mxu0 %vm1792_vm2, %v15109_v36  ;;  %v832_v35 = vld [vmem:[#allocation2 + $0x4f8] sm:$0x33] }
 0x1b3   :  { %v17274_v36 = vld [vmem:[#allocation2 + $0x38] ss:$100 sps:$4 sm:$0xff]   ;;  %v15111_v38 = vcombine.high %v832_v35, %v832_v35 }
 0x1b4   :  { %15124 = vmatmul.mubr.msk.bf16.vlgmr.msra.gmra.mxu1 %vm1788_vm3, %v18107_v34  ;;  %15130 = vmatmul.mubr.msk.bf16.vlgmr.msra.gmra.mxu0 %vm1788_vm3, %v18107_v34 }
 0x1b5   :  { %2076 = vmatpush1.bf16.msra.mxu1 %v1824_v39  ;;  %2199 = vmatpush1.bf16.msra.mxu0 %v1842_v40  ;;  %v15110_v39 = vcombine.low %v832_v35, %v832_v35  ;;  %v17282_v40 = vld [vmem:[#allocation2 + $0x510] ss:$0 sps:$4 sm:$0x33]  }
 0x1b6   :  { %2077 = vmatprep.subr.bf16.mxu1 %v17206_v41  ;;  %2200 = vmatprep.subr.bf16.mxu0 %v17209_v43  ;;  %v1866_v43 = vsel %vm1792_vm2, %v17282_v40, 0  ;;  %v17326_v40 = vld [vmem:[#allocation2 + $0x5c] ss:$100 sps:$4 sm:$0xff]  }
 0x1b7   :  { %2105 = vmatprep.mubr.bf16.mxu1 %v17558_v13  ;;  %2228 = vmatprep.mubr.bf16.mxu0 %v17558_v13  ;;  %v1848_v41 = vsel %vm1792_vm2, %v15110_v39, 0 }
 0x1b9   :  { %2078 = vmatpush1.bf16.msra.mxu1 %v17204_v44  ;;  %2201 = vmatpush1.bf16.msra.mxu0 %v17207_v45  ;;  %v17285_v44 = vld [vmem:[#allocation2 + $0x434] ss:$100 sps:$4 sm:$0xff]  }
 0x1ba   :  { %2079 = vmatprep.subr.bf16.mxu1 %v17212_v46  ;;  %2202 = vmatprep.subr.bf16.mxu0 %v17215_v47  ;;  %v17283_v45 = vld [vmem:[#allocation2 + $0x430] ss:$100 sps:$4 sm:$0xff]   ;;  %v17286_v46 = vld [vmem:[#allocation2 + $0x448] ss:$100 sps:$4 sm:$0xff]  }
 0x1bb   :  { %v17289_v47 = vld [vmem:[#allocation2 + $0x36c] ss:$100 sps:$4 sm:$0xff]  }
 0x1bd   :  { %2080 = vmatpush1.bf16.msra.mxu1 %v17210_v48  ;;  %2203 = vmatpush1.bf16.msra.mxu0 %v17213_v49  ;;  %v17287_v48 = vld [vmem:[#allocation2 + $0x368] ss:$100 sps:$4 sm:$0xff]   ;;  %v17290_v49 = vld [vmem:[#allocation2 + $0x380] ss:$100 sps:$4 sm:$0xff]  }
 0x1be   :  { %2081 = vmatprep.subr.bf16.mxu1 %v17218_v50  ;;  %2204 = vmatprep.subr.bf16.mxu0 %v17221_v52  ;;  %v17293_v50 = vld [vmem:[#allocation2 + $0x2a4] ss:$100 sps:$4 sm:$0xff]  }
 0x1bf   :  { %v17291_v52 = vld [vmem:[#allocation2 + $0x2a0] ss:$100 sps:$4 sm:$0xff]  }
 0x1c1   :  { %2082 = vmatpush1.bf16.msra.mxu1 %v17216_v53  ;;  %2205 = vmatpush1.bf16.msra.mxu0 %v17219_v54  ;;  %v17294_v53 = vld [vmem:[#allocation2 + $0x2b8] ss:$100 sps:$4 sm:$0xff]  }
 0x1c2   :  { %2083 = vmatprep.subr.bf16.mxu1 %v17224_v55  ;;  %2206 = vmatprep.subr.bf16.mxu0 %v17227_v56  ;;  %v17297_v54 = vld [vmem:[#allocation2 + $0x1dc] ss:$100 sps:$4 sm:$0xff]   ;;  %v17298_v56 = vld [vmem:[#allocation2 + $0x1f0] ss:$100 sps:$4 sm:$0xff]  }
 0x1c3   :  { %v17295_v55 = vld [vmem:[#allocation2 + $0x1d8] ss:$100 sps:$4 sm:$0xff]  }
 0x1c5   :  { %2084 = vmatpush1.bf16.msra.mxu1 %v17222_v57  ;;  %2207 = vmatpush1.bf16.msra.mxu0 %v17225_v58  ;;  %v17301_v57 = vld [vmem:[#allocation2 + $0x114] ss:$100 sps:$4 sm:$0xff]  }
 0x1c6   :  { %2085 = vmatprep.subr.bf16.mxu1 %v17230_v59  ;;  %2208 = vmatprep.subr.bf16.mxu0 %v17233_v60  ;;  %v17299_v58 = vld [vmem:[#allocation2 + $0x110] ss:$100 sps:$4 sm:$0xff]   ;;  %v17302_v59 = vld [vmem:[#allocation2 + $0x128] ss:$100 sps:$4 sm:$0xff]  }
 0x1c7   :  { %v17305_v60 = vld [vmem:[#allocation2 + $0x4c] ss:$100 sps:$4 sm:$0xff]  }
 0x1c9   :  { %2086 = vmatpush1.bf16.msra.mxu1 %v17228_v61  ;;  %2209 = vmatpush1.bf16.msra.mxu0 %v17231_v62  ;;  %v834_v61 = vld [vmem:[#allocation2 + $0x508] sm:$0x33]  ;;  %v2634_v62 = vld [vmem:[#allocation7 + $0x5c0] sm:$0xff] }
 0x1ca   :  { %2087 = vmatprep.subr.bf16.mxu1 %v17236_v63  ;;  %2210 = vmatprep.subr.bf16.mxu0 %v17239_v0  ;;  %v2638_v63 = vld [vmem:[#allocation7 + $0x5e0] sm:$0xff]  ;;  %v15115_v2 = vcombine.high %v834_v61, %v834_v61 }
 0x1cb   :  { %v17303_v0 = vld [vmem:[#allocation2 + $0x48] ss:$100 sps:$4 sm:$0xff]   ;;  %v15326_v7 = vcombine.low %v2634_v62, %v2638_v63 }
 0x1cd   :  { %2088 = vmatpush1.bf16.msra.mxu1 %v17234_v3  ;;  %2211 = vmatpush1.bf16.msra.mxu0 %v17237_v4  ;;  %v15114_v3 = vcombine.low %v834_v61, %v834_v61  ;;  %v15327_v4 = vcombine.high %v2634_v62, %v2638_v63  ;;  %v2494_v61 = vld [vmem:[#allocation7 + $0x160] sm:$0xff] }
 0x1ce   :  { %15131 = vmatprep.subr.msk.bf16.mxu1 %vm1792_vm2, %v15107_v5  ;;  %15137 = vmatprep.subr.msk.bf16.mxu0 %vm1792_vm2, %v15113_v6  ;;  %v2626_v5 = vld [vmem:[#allocation7 + $0x580] sm:$0xff] }
 0x1cf   :  { %v2630_v6 = vld [vmem:[#allocation7 + $0x5a0] sm:$0xff]  ;;  %v1860_v8 = vsel %vm1792_vm2, %v15114_v3, 0 }
 0x1d0   :  { %15128 = vmatmul.mubr.msk.bf16.vlgmr.msra.gmra.mxu1 %vm1788_vm3, %v18107_v34  ;;  %15134 = vmatmul.mubr.msk.bf16.vlgmr.msra.gmra.mxu0 %vm1788_vm3, %v18107_v34  ;;  %v2690_v62 = vld [vmem:[#allocation7 + $0x780] sm:$0xff] }
 0x1d1   :  { %2158 = vmatpush1.bf16.msra.mxu1 %v1836_v9  ;;  %2281 = vmatpush1.bf16.msra.mxu0 %v1854_v10  ;;  %v17311_v9 = vld [vmem:[#allocation2 + $0x444] ss:$100 sps:$4 sm:$0xff]   ;;  %v15319_v10 = vcombine.high %v2626_v5, %v2630_v6  ;;  %v2694_v63 = vld [vmem:[#allocation7 + $0x7a0] sm:$0xff] }
 0x1d2   :  { %2159 = vmatprep.subr.bf16.mxu1 %v17246_v11  ;;  %2282 = vmatprep.subr.bf16.mxu0 %v17249_v12  ;;  %v2618_v11 = vld [vmem:[#allocation7 + $0x540] sm:$0xff] }
 0x1d3   :  { %2187 = vmatprep.mubr.bf16.mxu1 %v17558_v13  ;;  %2310 = vmatprep.mubr.bf16.mxu0 %v17558_v13  ;;  %v2622_v12 = vld [vmem:[#allocation7 + $0x560] sm:$0xff] }
 0x1d4   :  { %v2482_v3 = vld [vmem:[#allocation7 + $0x100] sm:$0xff] }
 0x1d5   :  { %2160 = vmatpush1.bf16.msra.mxu1 %v17244_v14  ;;  %2283 = vmatpush1.bf16.msra.mxu0 %v17247_v15  ;;  %v15318_v14 = vcombine.low %v2626_v5, %v2630_v6  ;;  %v17314_v15 = vld [vmem:[#allocation2 + $0x37c] ss:$100 sps:$4 sm:$0xff]   ;;  %v2486_v5 = vld [vmem:[#allocation7 + $0x120] sm:$0xff] }
 0x1d6   :  { %2161 = vmatprep.subr.bf16.mxu1 %v17252_v16  ;;  %2284 = vmatprep.subr.bf16.mxu0 %v17255_v17  ;;  %v15311_v16 = vcombine.high %v2618_v11, %v2622_v12  ;;  %v2610_v17 = vld [vmem:[#allocation7 + $0x500] sm:$0xff] }
 0x1d7   :  { %v2682_v6 = vld [vmem:[#allocation7 + $0x740] sm:$0xff] }
 0x1d9   :  { %2162 = vmatpush1.bf16.msra.mxu1 %v17250_v18  ;;  %2285 = vmatpush1.bf16.msra.mxu0 %v17253_v51  ;;  %v2614_v18 = vld [vmem:[#allocation7 + $0x520] sm:$0xff]  ;;  %v17312_v51 = vld [vmem:[#allocation2 + $0x378] ss:$100 sps:$4 sm:$0xff]  }
 0x1da   :  { %2163 = vmatprep.subr.bf16.mxu1 %v17258_v19  ;;  %2286 = vmatprep.subr.bf16.mxu0 %v17261_v20  ;;  %v15310_v19 = vcombine.low %v2618_v11, %v2622_v12  ;;  %v17317_v20 = vld [vmem:[#allocation2 + $0x2b4] ss:$100 sps:$4 sm:$0xff]  }
 0x1db   :  { %v2474_v11 = vld [vmem:[#allocation7 + $0xc0] sm:$0xff] }
 0x1dc   :  { %v2478_v12 = vld [vmem:[#allocation7 + $0xe0] sm:$0xff] }
 0x1dd   :  { %2164 = vmatpush1.bf16.msra.mxu1 %v17256_v21  ;;  %2287 = vmatpush1.bf16.msra.mxu0 %v17259_v22  ;;  %v15303_v21 = vcombine.high %v2610_v17, %v2614_v18  ;;  %v2602_v22 = vld [vmem:[#allocation7 + $0x4c0] sm:$0xff] }
 0x1de   :  { %2165 = vmatprep.subr.bf16.mxu1 %v17264_v24  ;;  %2288 = vmatprep.subr.bf16.mxu0 %v17267_v25  ;;  %v2606_v24 = vld [vmem:[#allocation7 + $0x4e0] sm:$0xff] }
 0x1df   :  { %v17315_v25 = vld [vmem:[#allocation2 + $0x2b0] ss:$100 sps:$4 sm:$0xff]  }
 0x1e1   :  { %2166 = vmatpush1.bf16.msra.mxu1 %v17262_v26  ;;  %2289 = vmatpush1.bf16.msra.mxu0 %v17265_v27  ;;  %v15302_v26 = vcombine.low %v2610_v17, %v2614_v18  ;;  %v17320_v27 = vld [vmem:[#allocation2 + $0x1ec] ss:$100 sps:$4 sm:$0xff]   ;;  %v15167_v17 = vcombine.high %v2474_v11, %v2478_v12 }
 0x1e2   :  { %2167 = vmatprep.subr.bf16.mxu1 %v17270_v28  ;;  %2290 = vmatprep.subr.bf16.mxu0 %v17273_v29  ;;  %v15295_v28 = vcombine.high %v2602_v22, %v2606_v24  ;;  %v2594_v29 = vld [vmem:[#allocation7 + $0x480] sm:$0xff] }
 0x1e3   :  { %v2466_v18 = vld [vmem:[#allocation7 + $0x80] sm:$0xff] }
 0x1e5   :  { %2168 = vmatpush1.bf16.msra.mxu1 %v17268_v30  ;;  %2291 = vmatpush1.bf16.msra.mxu0 %v17271_v31  ;;  %v2598_v30 = vld [vmem:[#allocation7 + $0x4a0] sm:$0xff] }
 0x1e6   :  { %2169 = vmatprep.subr.bf16.mxu1 %v17276_v32  ;;  %2292 = vmatprep.subr.bf16.mxu0 %v17279_v33  ;;  %v17318_v31 = vld [vmem:[#allocation2 + $0x1e8] ss:$100 sps:$4 sm:$0xff]   ;;  %v15294_v32 = vcombine.low %v2602_v22, %v2606_v24  ;;  %v15287_v35 = vcombine.high %v2594_v29, %v2598_v30  ;;  %v15286_v39 = vcombine.low %v2594_v29, %v2598_v30 }
 0x1e7   :  { %v17323_v33 = vld [vmem:[#allocation2 + $0x124] ss:$100 sps:$4 sm:$0xff]   ;;  %v15166_v22 = vcombine.low %v2474_v11, %v2478_v12  ;;  %v2658_v29 = vld [vmem:[#allocation7 + $0x680] sm:$0xff] }
 0x1e8   :  { %v2662_v30 = vld [vmem:[#allocation7 + $0x6a0] sm:$0xff] }
 0x1e9   :  { %2170 = vmatpush1.bf16.msra.mxu1 %v17274_v36  ;;  %2293 = vmatpush1.bf16.msra.mxu0 %v17277_v37  ;;  %v2586_v36 = vld [vmem:[#allocation7 + $0x440] sm:$0xff] }
 0x1ea   :  { %15135 = vmatprep.subr.msk.bf16.mxu1 %vm1792_vm2, %v15111_v38  ;;  %17043 = vmatprep.subr.bf16.mxu0 %v17557_v23  ;;  %v2590_v37 = vld [vmem:[#allocation7 + $0x460] sm:$0xff]  ;;  %v17321_v38 = vld [vmem:[#allocation2 + $0x120] ss:$100 sps:$4 sm:$0xff]  }
 0x1ec   :  { %15132 = vmatmul.mubr.msk.bf16.vlgmr.msra.gmra.mxu1 %vm1788_vm3, %v18107_v34  ;;  %15138 = vmatmul.mubr.msk.bf16.vlgmr.msra.gmra.mxu0 %vm1788_vm3, %v18107_v34 }
 0x1ed   :  { %2240 = vmatpush1.bf16.msra.mxu1 %v1848_v41  ;;  %17044 = vmatpush3.bf16.msra.mxu0 %v1866_v43  ;;  %v2506_v41 = vld [vmem:[#allocation7 + $0x1c0] sm:$0xff]  ;;  %v15279_v43 = vcombine.high %v2586_v36, %v2590_v37 }
 0x1ee   :  { %2241 = vmatprep.subr.bf16.mxu1 %v17285_v44  ;;  %17045 = vmatprep.subr.bf16.mxu0 %v17557_v23  ;;  %v2510_v44 = vld [vmem:[#allocation7 + $0x1e0] sm:$0xff] }
 0x1ef   :  { %2269 = vmatprep.mubr.bf16.mxu1 %v17558_v13  ;;  %17057 = vmatprep.mubr.msk.bf16.mxu0 %vm17559_vm4, %v17557_v23 }
 0x1f1   :  { %2242 = vmatpush1.bf16.msra.mxu1 %v17283_v45  ;;  %17046 = vmatpush3.bf16.msra.mxu0 %v17286_v46  ;;  %v2578_v45 = vld [vmem:[#allocation7 + $0x400] sm:$0xff] }
 0x1f2   :  { %2243 = vmatprep.subr.bf16.mxu1 %v17289_v47  ;;  %17047 = vmatprep.subr.bf16.mxu0 %v17557_v23  ;;  %v2582_v46 = vld [vmem:[#allocation7 + $0x420] sm:$0xff]  ;;  %v17324_v47 = vld [vmem:[#allocation2 + $0x58] ss:$100 sps:$4 sm:$0xff]  }
 0x1f5   :  { %2244 = vmatpush1.bf16.msra.mxu1 %v17287_v48  ;;  %17048 = vmatpush3.bf16.msra.mxu0 %v17290_v49  ;;  %v15278_v48 = vcombine.low %v2586_v36, %v2590_v37  ;;  %v15199_v49 = vcombine.high %v2506_v41, %v2510_v44  ;;  %v18175_v36 = vld [vmem:[#allocation5] sm:$0xff] }
 0x1f6   :  { %2245 = vmatprep.subr.bf16.mxu1 %v17293_v50  ;;  %17049 = vmatprep.subr.bf16.mxu0 %v17557_v23  ;;  %v2498_v50 = vld [vmem:[#allocation7 + $0x180] sm:$0xff] }
 0x1f7   :  { %v2450_v37 = vld [vmem:[#allocation7] sm:$0xff] }
 0x1f9   :  { %2246 = vmatpush1.bf16.msra.mxu1 %v17291_v52  ;;  %17050 = vmatpush3.bf16.msra.mxu0 %v17294_v53  ;;  %v15271_v52 = vcombine.high %v2578_v45, %v2582_v46  ;;  %v2502_v53 = vld [vmem:[#allocation7 + $0x1a0] sm:$0xff] }
 0x1fa   :  { %2247 = vmatprep.subr.bf16.mxu1 %v17297_v54  ;;  %17051 = vmatprep.subr.bf16.mxu0 %v17557_v23  ;;  %v2698_v54 = vld [vmem:[#allocation7 + $0x7c0] sm:$0xff] }
 0x1fd   :  { %2248 = vmatpush1.bf16.msra.mxu1 %v17295_v55  ;;  %17052 = vmatpush3.bf16.msra.mxu0 %v17298_v56  ;;  %v2702_v55 = vld [vmem:[#allocation7 + $0x7e0] sm:$0xff]  ;;  %v15198_v56 = vcombine.low %v2506_v41, %v2510_v44 }
 0x1fe   :  { %2249 = vmatprep.subr.bf16.mxu1 %v17301_v57  ;;  %17053 = vmatprep.subr.bf16.mxu0 %v17557_v23  ;;  %v15270_v57 = vcombine.low %v2578_v45, %v2582_v46  ;;  %v2650_v41 = vld [vmem:[#allocation7 + $0x640] sm:$0xff]  ;;  %v15350_v46 = vcombine.low %v2658_v29, %v2662_v30 }
 0x201   :  { %2250 = vmatpush1.bf16.msra.mxu1 %v17299_v58  ;;  %17054 = vmatpush3.bf16.msra.mxu0 %v17302_v59  ;;  %v15191_v58 = vcombine.high %v2498_v50, %v2502_v53  ;;  %v2490_v59 = vld [vmem:[#allocation7 + $0x140] sm:$0xff] }
 0x202   :  { %2251 = vmatprep.subr.bf16.mxu1 %v17305_v60  ;;  %17055 = vmatprep.subr.bf16.mxu0 %v17557_v23  ;;  %v17309_v23 = vld [vmem:[#allocation2 + $0x440] ss:$100 sps:$4 sm:$0xff]   ;;  %v15391_v60 = vcombine.high %v2698_v54, %v2702_v55 }
 0x205   :  { %2252 = vmatpush1.bf16.msra.mxu1 %v17303_v0  ;;  %17056 = vmatpush3.bf16.msra.mxu0 %v17306_v1  ;;  %v15190_v0 = vcombine.low %v2498_v50, %v2502_v53  ;;  %v15390_v1 = vcombine.low %v2698_v54, %v2702_v55  ;;  %v2642_v53 = vld [vmem:[#allocation7 + $0x600] sm:$0xff] }
 0x206   :  { %15139 = vmatprep.subr.msk.bf16.mxu1 %vm1792_vm2, %v15115_v2  ;;  %12133 = vmatprep.subr.bf16.mxu0 %v15327_v4  ;;  %v15183_v2 = vcombine.high %v2490_v59, %v2494_v61  ;;  %v15383_v4 = vcombine.high %v2690_v62, %v2694_v63  ;;  %v2646_v54 = vld [vmem:[#allocation7 + $0x620] sm:$0xff] }
 0x208   :  { %15136 = vmatmul.mubr.msk.bf16.vlgmr.msra.gmra.mxu1 %vm1788_vm3, %v18107_v34  ;;  %17058 = vmatmul.mubr.msk.bf16.vlgmr.msra.gmra.mxu0 %vm1788_vm3, %v18107_v34 }
 0x209   :  { %2322 = vmatpush1.bf16.msra.mxu1 %v1860_v8  ;;  %12134 = vmatpush1.bf16.msra.mxu0 %v15326_v7  ;;  %v2686_v7 = vld [vmem:[#allocation7 + $0x760] sm:$0xff]  ;;  %v15182_v8 = vcombine.low %v2490_v59, %v2494_v61 }
 0x20a   :  { %2323 = vmatprep.subr.bf16.mxu1 %v17311_v9  ;;  %2351 = vmatprep.mubr.bf16.mxu1 %v17558_v13  ;;  %v15382_v9 = vcombine.low %v2690_v62, %v2694_v63  ;;  %v15335_v63 = vcombine.high %v2642_v53, %v2646_v54 }
 0x20b   :  { %12135 = vmatprep.subr.bf16.mxu0 %v15319_v10  ;;  %v15175_v10 = vcombine.high %v2482_v3, %v2486_v5 }
 0x20d   :  { %2324 = vmatpush1.bf16.msra.mxu1 %v17309_v23  ;;  %12136 = vmatpush1.bf16.msra.mxu0 %v15318_v14  ;;  %v2674_v23 = vld [vmem:[#allocation7 + $0x700] sm:$0xff] }
 0x20e   :  { %2325 = vmatprep.subr.bf16.mxu1 %v17314_v15  ;;  %12137 = vmatprep.subr.bf16.mxu0 %v15311_v16  ;;  %v2678_v14 = vld [vmem:[#allocation7 + $0x720] sm:$0xff]  ;;  %v15174_v15 = vcombine.low %v2482_v3, %v2486_v5  ;;  %v15374_v16 = vcombine.low %v2682_v6, %v2686_v7 }
 0x20f   :  { %v15366_v24 = vcombine.low %v2674_v23, %v2678_v14  ;;  %v18190_v5 = vld [vmem:[#allocation7 + $0xdc0] sm:$0xff] }
 0x211   :  { %2326 = vmatpush1.bf16.msra.mxu1 %v17312_v51  ;;  %12138 = vmatpush1.bf16.msra.mxu0 %v15310_v19  ;;  %v15367_v51 = vcombine.high %v2674_v23, %v2678_v14  ;;  %v2470_v19 = vld [vmem:[#allocation7 + $0xa0] sm:$0xff] }
 0x212   :  { %2327 = vmatprep.subr.bf16.mxu1 %v17317_v20  ;;  %12139 = vmatprep.subr.bf16.mxu0 %v15303_v21  ;;  %v2666_v20 = vld [vmem:[#allocation7 + $0x6c0] sm:$0xff] }
 0x213   :  { %v2670_v21 = vld [vmem:[#allocation7 + $0x6e0] sm:$0xff] }
 0x214   :  { %v2554_v23 = vld [vmem:[#allocation7 + $0x340] sm:$0xff] }
 0x215   :  { %2328 = vmatpush1.bf16.msra.mxu1 %v17315_v25  ;;  %12140 = vmatpush1.bf16.msra.mxu0 %v15302_v26  ;;  %v15159_v25 = vcombine.high %v2466_v18, %v2470_v19  ;;  %v2458_v26 = vld [vmem:[#allocation7 + $0x40] sm:$0xff] }
 0x216   :  { %2329 = vmatprep.subr.bf16.mxu1 %v17320_v27  ;;  %12141 = vmatprep.subr.bf16.mxu0 %v15295_v28  ;;  %v15359_v27 = vcombine.high %v2666_v20, %v2670_v21  ;;  %v2462_v28 = vld [vmem:[#allocation7 + $0x60] sm:$0xff] }
 0x217   :  { %v15150_v44 = vcombine.low %v2458_v26, %v2462_v28  ;;  %v2558_v14 = vld [vmem:[#allocation7 + $0x360] sm:$0xff] }
 0x219   :  { %2330 = vmatpush1.bf16.msra.mxu1 %v17318_v31  ;;  %12142 = vmatpush1.bf16.msra.mxu0 %v15294_v32  ;;  %v15158_v31 = vcombine.low %v2466_v18, %v2470_v19  ;;  %v18173_v32 = vsub.s32 4, %v17738_v42  ;;  %v2546_v18 = vld [vmem:[#allocation7 + $0x300] sm:$0xff]  ;;  %v15246_v19 = vcombine.low %v2554_v23, %v2558_v14 }
 0x21a   :  { %2331 = vmatprep.subr.bf16.mxu1 %v17323_v33  ;;  %12143 = vmatprep.subr.bf16.mxu0 %v15287_v35  ;;  %v15358_v33 = vcombine.low %v2666_v20, %v2670_v21  ;;  %v15151_v35 = vcombine.high %v2458_v26, %v2462_v28  ;;  %v2538_v21 = vld [vmem:[#allocation7 + $0x2c0] sm:$0xff] }
 0x21b   :  { %v863_v45 = vrot.slane %v18175_v36, %v18173_v32  ;;  %v2530_v26 = vld [vmem:[#allocation7 + $0x280] sm:$0xff] }
 0x21d   :  { %2332 = vmatpush1.bf16.msra.mxu1 %v17321_v38  ;;  %12144 = vmatpush1.bf16.msra.mxu0 %v15286_v39  ;;  %v15351_v38 = vcombine.high %v2658_v29, %v2662_v30  ;;  %v18178_v39 = vsub.s32 1, %v17738_v42  ;;  %v18200_v29 = vsub.s32 2, %v17738_v42  ;;  %v18203_v30 = vsub.s32 0, %v17738_v42 }
 0x21e   :  { %2333 = vmatprep.subr.bf16.mxu1 %v17326_v40  ;;  %12145 = vmatprep.subr.bf16.mxu0 %v15279_v43  ;;  %v2454_v40 = vld [vmem:[#allocation7 + $0x20] sm:$0xff] }
 0x21f   :  { %v2654_v43 = vld [vmem:[#allocation7 + $0x660] sm:$0xff]  ;;  %v851_v50 = vrot.slane %v18175_v36, %v18178_v39 }
 0x220   :  { %v15342_v59 = vcombine.low %v2650_v41, %v2654_v43 }
 0x221   :  { %2334 = vmatpush1.bf16.msra.mxu1 %v17324_v47  ;;  %12146 = vmatpush1.bf16.msra.mxu0 %v15278_v48  ;;  %v15143_v47 = vcombine.high %v2450_v37, %v2454_v40  ;;  %v2570_v48 = vld [vmem:[#allocation7 + $0x3c0] sm:$0xff] }
 0x222   :  { %12092 = vmatprep.subr.bf16.mxu1 %v15199_v49  ;;  %12147 = vmatprep.subr.bf16.mxu0 %v15271_v52  ;;  %v15343_v49 = vcombine.high %v2650_v41, %v2654_v43  ;;  %v2574_v52 = vld [vmem:[#allocation7 + $0x3e0] sm:$0xff]  ;;  %v847_v43 = vrot.slane %v18175_v36, %v18203_v30 }
 0x223   :  { %v15263_v62 = vcombine.high %v2570_v48, %v2574_v52 }
 0x224   :  { %15140 = vmatmul.mubr.msk.bf16.vlgmr.msra.gmra.mxu1 %vm1788_vm3, %v18107_v34  ;;  %v15375_v34 = vcombine.high %v2682_v6, %v2686_v7  ;;  %v18192_v6 = vld [vmem:[#allocation7 + $0xde0] sm:$0xff] }
 0x225   :  { %12093 = vmatpush1.bf16.msra.mxu1 %v15198_v56  ;;  %12148 = vmatpush1.bf16.msra.mxu0 %v15270_v57 }
 0x226   :  { %12094 = vmatprep.subr.bf16.mxu1 %v15191_v58  ;;  %12149 = vmatprep.subr.bf16.mxu0 %v15391_v60  ;;  %v15142_v58 = vcombine.low %v2450_v37, %v2454_v40  ;;  %v2522_v37 = vld [vmem:[#allocation7 + $0x240] sm:$0xff]  ;;  %v855_v40 = vrot.slane %v18175_v36, %v18200_v29 }
 0x229   :  { %12095 = vmatpush1.bf16.msra.mxu1 %v15190_v0  ;;  %12150 = vmatpush2.bf16.msra.mxu0 %v15390_v1  ;;  %v2562_v1 = vld [vmem:[#allocation7 + $0x380] sm:$0xff] }
 0x22a   :  { %12096 = vmatprep.subr.bf16.mxu1 %v15183_v2  ;;  %12151 = vmatprep.subr.bf16.mxu0 %v15383_v4  ;;  %v2566_v2 = vld [vmem:[#allocation7 + $0x3a0] sm:$0xff] }
 0x22b   :  { %v15255_v11 = vcombine.high %v2562_v1, %v2566_v2 }
 0x22d   :  { %12097 = vmatpush1.bf16.msra.mxu1 %v15182_v8  ;;  %12152 = vmatpush2.bf16.msra.mxu0 %v15382_v9  ;;  %v15262_v8 = vcombine.low %v2570_v48, %v2574_v52  ;;  %v2518_v48 = vld [vmem:[#allocation7 + $0x220] sm:$0xff] }
 0x22e   :  { %12098 = vmatprep.subr.bf16.mxu1 %v15175_v10  ;;  %12153 = vmatprep.subr.bf16.mxu0 %v15375_v34  ;;  %v15334_v34 = vcombine.low %v2642_v53, %v2646_v54 }
 0x231   :  { %12099 = vmatpush1.bf16.msra.mxu1 %v15174_v15  ;;  %12154 = vmatpush2.bf16.msra.mxu0 %v15374_v16  ;;  %v15583_v15 = vcombine.high %v18190_v5, %v18192_v6  ;;  %v15254_v16 = vcombine.low %v2562_v1, %v2566_v2 }
 0x232   :  { %12100 = vmatprep.subr.bf16.mxu1 %v15167_v17  ;;  %12155 = vmatprep.subr.bf16.mxu0 %v15367_v51  ;;  %v15247_v17 = vcombine.high %v2554_v23, %v2558_v14  ;;  %v2550_v51 = vld [vmem:[#allocation7 + $0x320] sm:$0xff] }
 0x233   :  { %v15239_v20 = vcombine.high %v2546_v18, %v2550_v51 }
 0x235   :  { %12101 = vmatpush1.bf16.msra.mxu1 %v15166_v22  ;;  %12156 = vmatpush2.bf16.msra.mxu0 %v15366_v24  ;;  %v2542_v22 = vld [vmem:[#allocation7 + $0x2e0] sm:$0xff]  ;;  %v15238_v24 = vcombine.low %v2546_v18, %v2550_v51 }
 0x236   :  { %12102 = vmatprep.subr.bf16.mxu1 %v15159_v25  ;;  %12157 = vmatprep.subr.bf16.mxu0 %v15359_v27  ;;  %v15231_v25 = vcombine.high %v2538_v21, %v2542_v22  ;;  %v2534_v27 = vld [vmem:[#allocation7 + $0x2a0] sm:$0xff]  ;;  %v15230_v28 = vcombine.low %v2538_v21, %v2542_v22 }
 0x237   :  { %v15222_v41 = vcombine.low %v2530_v26, %v2534_v27 }
 0x239   :  { %12103 = vmatpush1.bf16.msra.mxu1 %v15158_v31  ;;  %12158 = vmatpush2.bf16.msra.mxu0 %v15358_v33  ;;  %v15223_v31 = vcombine.high %v2530_v26, %v2534_v27  ;;  %v18206_v33 = vsub.s32 5, %v17738_v42 }
 0x23a   :  { %12104 = vmatprep.subr.bf16.mxu1 %v15151_v35  ;;  %12159 = vmatprep.subr.bf16.mxu0 %v15351_v38  ;;  %v18209_v35 = vsub.s32 3, %v17738_v42  ;;  %v2526_v38 = vld [vmem:[#allocation7 + $0x260] sm:$0xff] }
 0x23b   :  { %v15214_v53 = vcombine.low %v2522_v37, %v2526_v38 }
 0x23c   :  { %v18184_v55 = vpop.f32.mrf.mxu1  ;;  %v1984_v56 = vpop.f32.mrf.mxu0 }
 0x23d   :  { %v18186_v57 = vadd.f32 %v1984_v56, %v863_v45  ;;  %12105 = vmatpush1.bf16.msra.mxu1 %v15150_v44  ;;  %12160 = vmatpush2.bf16.msra.mxu0 %v15350_v46  ;;  %v15215_v44 = vcombine.high %v2522_v37, %v2526_v38  ;;  %v867_v45 = vrot.slane %v18175_v36, %v18206_v33 }
 0x23e   :  { %v1904_v60 = vpop.f32.mrf.mxu1  ;;  %v18188_v61 = vpop.f32.mrf.mxu0  ;;  %12106 = vmatprep.subr.bf16.mxu1 %v15143_v47  ;;  %12161 = vmatprep.subr.bf16.mxu0 %v15343_v49  ;;  %v859_v46 = vrot.slane %v18175_v36, %v18209_v35  ;;  %v2514_v47 = vld [vmem:[#allocation7 + $0x200] sm:$0xff]  ;;  %v1903_v54 = vadd.f32 %v18184_v55, %v847_v43 }
 0x23f   :  { %v1905_v0 = vadd.f32 %v1904_v60, %v851_v50  ;;  %v1987_v60 = vadd.f32 %v18188_v61, %v867_v45  ;;  %v15582_v61 = vcombine.low %v18190_v5, %v18192_v6  ;;  %v2746_v6 = vld [vmem:[#allocation7 + $0x940] sm:$0xff] }
 0x240   :  { %v1906_v3 = vpop.f32.mrf.mxu1  ;;  %v1988_v4 = vpop.f32.mrf.mxu0  ;;  %v2858_v45 = vld [vmem:[#allocation7 + $0xcc0] sm:$0xff] }
 0x241   :  { %v2401_v7 = vmax.f32 %v1905_v0, 0.0  ;;  %12107 = vmatpush1.bf16.msra.mxu1 %v15142_v58  ;;  %12162 = vmatpush2.bf16.msra.mxu0 %v15342_v59  ;;  %v15207_v59 = vcombine.high %v2514_v47, %v2518_v48  ;;  %v2766_v0 = vld [vmem:[#allocation7 + $0x9e0] sm:$0xff]  ;;  %v2405_v23 = vmax.f32 %v1987_v60, 0.0 }
 0x242   :  { %v1907_v9 = vpop.f32.mrf.mxu1  ;;  %v1989_v10 = vpop.f32.mrf.mxu0  ;;  %12108 = vmatprep.subr.bf16.mxu1 %v15263_v62  ;;  %12163 = vmatprep.subr.bf16.mxu0 %v15335_v63  ;;  %v2762_v63 = vld [vmem:[#allocation7 + $0x9c0] sm:$0xff] }
 0x243   :  { %v18194_v12 = vpack.c.bf16 %v2401_v7, %v2401_v7  ;;  %v15206_v7 = vcombine.low %v2514_v47, %v2518_v48  ;;  %v2886_v9 = vld [vmem:[#allocation7 + $0xda0] sm:$0xff]  ;;  %v2400_v10 = vmax.f32 %v1903_v54, 0.0  ;;  %v15454_v51 = vcombine.low %v2762_v63, %v2766_v0 }
 0x245   :  { %12109 = vmatpush2.bf16.msra.mxu1 %v15262_v8  ;;  %12124 = vmatprep.mubr.bf16.mxu1 %v18194_v12  ;;  %v2882_v8 = vld [vmem:[#allocation7 + $0xd80] sm:$0xff]  ;;  %v18232_v21 = vpack.c.bf16 %v2400_v10, %v2400_v10 }
 0x246   :  { %12110 = vmatprep.subr.bf16.mxu1 %v15255_v11  ;;  %12164 = vmatpush2.bf16.msra.mxu0 %v15334_v34  ;;  %v15455_v34 = vcombine.high %v2762_v63, %v2766_v0  ;;  %v15575_v18 = vcombine.high %v2882_v8, %v2886_v9  ;;  %v15574_v5 = vcombine.low %v2882_v8, %v2886_v9  ;;  %v18240_v63 = vsub.s32 7, %v17738_v42  ;;  %v2722_v0 = vld [vmem:[#allocation7 + $0x880] sm:$0xff] }
 0x247   :  { %12215 = vmatprep.subr.bf16.mxu0 %v15583_v15  ;;  %v2754_v15 = vld [vmem:[#allocation7 + $0x980] sm:$0xff] }
 0x248   :  { %v875_v10 = vrot.slane %v18175_v36, %v18240_v63 }
 0x249   :  { %12111 = vmatpush2.bf16.msra.mxu1 %v15254_v16  ;;  %v2758_v16 = vld [vmem:[#allocation7 + $0x9a0] sm:$0xff] }
 0x24a   :  { %12112 = vmatprep.subr.bf16.mxu1 %v15247_v17  ;;  %v15447_v22 = vcombine.high %v2754_v15, %v2758_v16  ;;  %v15446_v27 = vcombine.low %v2754_v15, %v2758_v16  ;;  %v2834_v16 = vld [vmem:[#allocation7 + $0xc00] sm:$0xff] }
 0x24d   :  { %12113 = vmatpush2.bf16.msra.mxu1 %v15246_v19  ;;  %v2874_v19 = vld [vmem:[#allocation7 + $0xd40] sm:$0xff] }
 0x24e   :  { %12114 = vmatprep.subr.bf16.mxu1 %v15239_v20  ;;  %v2878_v20 = vld [vmem:[#allocation7 + $0xd60] sm:$0xff] }
 0x24f   :  { %v15567_v26 = vcombine.high %v2874_v19, %v2878_v20  ;;  %v15566_v38 = vcombine.low %v2874_v19, %v2878_v20 }
 0x251   :  { %12115 = vmatpush2.bf16.msra.mxu1 %v15238_v24  ;;  %v18235_v24 = vpack.c.bf16 %v2405_v23, %v2405_v23 }
 0x252   :  { %12116 = vmatprep.subr.bf16.mxu1 %v15231_v25  ;;  %v2750_v25 = vld [vmem:[#allocation7 + $0x960] sm:$0xff] }
 0x253   :  { %v15439_v37 = vcombine.high %v2746_v6, %v2750_v25 }
 0x255   :  { %12117 = vmatpush2.bf16.msra.mxu1 %v15230_v28  ;;  %v2866_v28 = vld [vmem:[#allocation7 + $0xd00] sm:$0xff] }
 0x256   :  { %12118 = vmatprep.subr.bf16.mxu1 %v15223_v31  ;;  %v2870_v31 = vld [vmem:[#allocation7 + $0xd20] sm:$0xff] }
 0x257   :  { %v15559_v43 = vcombine.high %v2866_v28, %v2870_v31  ;;  %v15558_v48 = vcombine.low %v2866_v28, %v2870_v31 }
 0x258   :  { %v1943_v49 = vpop.f32.mrf.mxu1  ;;  %v18219_v50 = vpop.f32.mrf.mxu0 }
 0x259   :  { %v1944_v52 = vadd.f32 %v1943_v49, %v855_v40  ;;  %12119 = vmatpush2.bf16.msra.mxu1 %v15222_v41  ;;  %v2738_v40 = vld [vmem:[#allocation7 + $0x900] sm:$0xff] }
 0x25a   :  { %v1945_v56 = vpop.f32.mrf.mxu1  ;;  %v18222_v58 = vpop.f32.mrf.mxu0  ;;  %12120 = vmatprep.subr.bf16.mxu1 %v15215_v44  ;;  %v2742_v41 = vld [vmem:[#allocation7 + $0x920] sm:$0xff]  ;;  %v15438_v44 = vcombine.low %v2746_v6, %v2750_v25 }
 0x25b   :  { %v1946_v62 = vadd.f32 %v1945_v56, %v859_v46  ;;  %v2402_v1 = vmax.f32 %v1944_v52, 0.0  ;;  %v2862_v46 = vld [vmem:[#allocation7 + $0xce0] sm:$0xff]  ;;  %v15431_v47 = vcombine.high %v2738_v40, %v2742_v41  ;;  %v15430_v54 = vcombine.low %v2738_v40, %v2742_v41 }
 0x25c   :  { %v1947_v2 = vpop.f32.mrf.mxu1  ;;  %v2070_v3 = vpop.f32.mrf.mxu0  ;;  %v2730_v49 = vld [vmem:[#allocation7 + $0x8c0] sm:$0xff] }
 0x25d   :  { %v2403_v4 = vmax.f32 %v1946_v62, 0.0  ;;  %12121 = vmatpush2.bf16.msra.mxu1 %v15214_v53  ;;  %v18229_v17 = vpack.c.bf16 %v2402_v1, %v2402_v1  ;;  %v2734_v52 = vld [vmem:[#allocation7 + $0x8e0] sm:$0xff]  ;;  %v15551_v53 = vcombine.high %v2858_v45, %v2862_v46  ;;  %v15550_v62 = vcombine.low %v2858_v45, %v2862_v46 }
 0x25e   :  { %v1948_v55 = vpop.f32.mrf.mxu1  ;;  %v2071_v11 = vpop.f32.mrf.mxu0  ;;  %12122 = vmatprep.subr.bf16.mxu1 %v15207_v59  ;;  %v2850_v56 = vld [vmem:[#allocation7 + $0xc80] sm:$0xff]  ;;  %v15423_v60 = vcombine.high %v2730_v49, %v2734_v52  ;;  %v15422_v3 = vcombine.low %v2730_v49, %v2734_v52 }
 0x25f   :  { %v18225_v14 = vpack.c.bf16 %v2403_v4, %v2403_v4  ;;  %v2854_v59 = vld [vmem:[#allocation7 + $0xca0] sm:$0xff] }
 0x260   :  { %v2726_v1 = vld [vmem:[#allocation7 + $0x8a0] sm:$0xff]  ;;  %v15543_v2 = vcombine.high %v2850_v56, %v2854_v59  ;;  %v15542_v9 = vcombine.low %v2850_v56, %v2854_v59 }
 0x261   :  { %12123 = vmatpush2.bf16.msra.mxu1 %v15206_v7  ;;  %12165 = vmatprep.mubr.bf16.mxu0 %v18225_v14  ;;  %v2842_v4 = vld [vmem:[#allocation7 + $0xc40] sm:$0xff]  ;;  %v15415_v8 = vcombine.high %v2722_v0, %v2726_v1  ;;  %v15414_v15 = vcombine.low %v2722_v0, %v2726_v1 }
 0x262   :  { %12166 = vmatmul.mubr.bf16.vlgmr.msra.gmra.mxu0 %v18229_v17  ;;  %12174 = vmatprep.subr.bf16.mxu1 %v15455_v34  ;;  %v2846_v7 = vld [vmem:[#allocation7 + $0xc60] sm:$0xff] }
 0x263   :  { %12216 = vmatpush1.bf16.msra.mxu0 %v15582_v61  ;;  %v2714_v55 = vld [vmem:[#allocation7 + $0x840] sm:$0xff]  ;;  %v15535_v61 = vcombine.high %v2842_v4, %v2846_v7 }
 0x264   :  { %12125 = vmatmul.mubr.bf16.vlgmr.msra.gmra.mxu1 %v18232_v21  ;;  %12217 = vmatprep.subr.bf16.mxu0 %v15575_v18  ;;  %v2718_v11 = vld [vmem:[#allocation7 + $0x860] sm:$0xff] }
 0x265   :  { %12175 = vmatpush1.bf16.msra.mxu1 %v15454_v51  ;;  %12206 = vmatprep.mubr.bf16.mxu1 %v18235_v24  ;;  %v2838_v18 = vld [vmem:[#allocation7 + $0xc20] sm:$0xff]  ;;  %v15407_v20 = vcombine.high %v2714_v55, %v2718_v11 }
 0x266   :  { %12176 = vmatprep.subr.bf16.mxu1 %v15447_v22  ;;  %v2706_v6 = vld [vmem:[#allocation7 + $0x800] sm:$0xff]  ;;  %v15527_v28 = vcombine.high %v2834_v16, %v2838_v18  ;;  %v15526_v46 = vcombine.low %v2834_v16, %v2838_v18 }
 0x267   :  { %12218 = vmatpush1.bf16.msra.mxu0 %v15574_v5  ;;  %v15534_v5 = vcombine.low %v2842_v4, %v2846_v7  ;;  %v2710_v25 = vld [vmem:[#allocation7 + $0x820] sm:$0xff] }
 0x268   :  { %12219 = vmatprep.subr.bf16.mxu0 %v15567_v26  ;;  %v2958_v40 = vld [vmem:[#allocation7 + $0xfe0] sm:$0xff]  ;;  %v15398_v52 = vcombine.low %v2706_v6, %v2710_v25 }
 0x269   :  { %12177 = vmatpush1.bf16.msra.mxu1 %v15446_v27  ;;  %v2802_v18 = vld [vmem:[#allocation7 + $0xb00] sm:$0xff] }
 0x26a   :  { %12178 = vmatprep.subr.bf16.mxu1 %v15439_v37  ;;  %v15406_v37 = vcombine.low %v2714_v55, %v2718_v11  ;;  %v2930_v11 = vld [vmem:[#allocation7 + $0xf00] sm:$0xff] }
 0x26b   :  { %12220 = vmatpush1.bf16.msra.mxu0 %v15566_v38  ;;  %v2954_v38 = vld [vmem:[#allocation7 + $0xfc0] sm:$0xff] }
 0x26c   :  { %12221 = vmatprep.subr.bf16.mxu0 %v15559_v43  ;;  %v15647_v49 = vcombine.high %v2954_v38, %v2958_v40  ;;  %v15646_v59 = vcombine.low %v2954_v38, %v2958_v40  ;;  %v2914_v38 = vld [vmem:[#allocation7 + $0xe80] sm:$0xff] }
 0x26d   :  { %12179 = vmatpush1.bf16.msra.mxu1 %v15438_v44  ;;  %v15399_v44 = vcombine.high %v2706_v6, %v2710_v25  ;;  %v2926_v6 = vld [vmem:[#allocation7 + $0xee0] sm:$0xff] }
 0x26e   :  { %12180 = vmatprep.subr.bf16.mxu1 %v15431_v47  ;;  %v2826_v47 = vld [vmem:[#allocation7 + $0xbc0] sm:$0xff] }
 0x26f   :  { %12222 = vmatpush1.bf16.msra.mxu0 %v15558_v48  ;;  %v2830_v48 = vld [vmem:[#allocation7 + $0xbe0] sm:$0xff] }
 0x270   :  { %12223 = vmatprep.subr.bf16.mxu0 %v15551_v53  ;;  %v2946_v53 = vld [vmem:[#allocation7 + $0xf80] sm:$0xff]  ;;  %v15519_v56 = vcombine.high %v2826_v47, %v2830_v48  ;;  %v15518_v1 = vcombine.low %v2826_v47, %v2830_v48  ;;  %v18254_v47 = vsub.s32 6, %v17738_v42 }
 0x271   :  { %12181 = vmatpush1.bf16.msra.mxu1 %v15430_v54  ;;  %v2950_v54 = vld [vmem:[#allocation7 + $0xfa0] sm:$0xff] }
 0x272   :  { %12182 = vmatprep.subr.bf16.mxu1 %v15423_v60  ;;  %v2818_v60 = vld [vmem:[#allocation7 + $0xb80] sm:$0xff]  ;;  %v15639_v0 = vcombine.high %v2946_v53, %v2950_v54  ;;  %v15638_v7 = vcombine.low %v2946_v53, %v2950_v54 }
 0x273   :  { %12224 = vmatpush1.bf16.msra.mxu0 %v15550_v62  ;;  %v2822_v62 = vld [vmem:[#allocation7 + $0xba0] sm:$0xff] }
 0x274   :  { %v18244_v34 = vpop.f32.mrf.mxu1  ;;  %v18246_v23 = vpop.f32.mrf.mxu0  ;;  %12225 = vmatprep.subr.bf16.mxu0 %v15543_v2  ;;  %v2938_v2 = vld [vmem:[#allocation7 + $0xf40] sm:$0xff]  ;;  %v15511_v4 = vcombine.high %v2818_v60, %v2822_v62  ;;  %v15510_v55 = vcombine.low %v2818_v60, %v2822_v62 }
 0x275   :  { %12183 = vmatpush1.bf16.msra.mxu1 %v15422_v3  ;;  %v2942_v3 = vld [vmem:[#allocation7 + $0xf60] sm:$0xff] }
 0x276   :  { %v2027_v51 = vpop.f32.mrf.mxu1  ;;  %v18248_v19 = vpop.f32.mrf.mxu0  ;;  %12184 = vmatprep.subr.bf16.mxu1 %v15415_v8  ;;  %v2810_v8 = vld [vmem:[#allocation7 + $0xb40] sm:$0xff]  ;;  %v15630_v16 = vcombine.low %v2938_v2, %v2942_v3 }
 0x277   :  { %v2028_v22 = vadd.f32 %v2027_v51, %v875_v10  ;;  %12226 = vmatpush1.bf16.msra.mxu0 %v15542_v9  ;;  %v2814_v9 = vld [vmem:[#allocation7 + $0xb60] sm:$0xff]  ;;  %v15631_v10 = vcombine.high %v2938_v2, %v2942_v3  ;;  %v18262_v2 = vld [vmem:[#allocation5 + $0x8] sm:$0xff]  ;;  %v871_v3 = vrot.slane %v18175_v36, %v18254_v47 }
 0x278   :  { %v2029_v26 = vpop.f32.mrf.mxu1  ;;  %v2152_v27 = vpop.f32.mrf.mxu0  ;;  %12227 = vmatprep.subr.bf16.mxu0 %v15535_v61  ;;  %v2934_v61 = vld [vmem:[#allocation7 + $0xf20] sm:$0xff] }
 0x279   :  { %v2407_v31 = vmax.f32 %v2028_v22, 0.0  ;;  %12185 = vmatpush1.bf16.msra.mxu1 %v15414_v15  ;;  %v15503_v15 = vcombine.high %v2810_v8, %v2814_v9  ;;  %v2806_v51 = vld [vmem:[#allocation7 + $0xb20] sm:$0xff]  ;;  %v15502_v22 = vcombine.low %v2810_v8, %v2814_v9  ;;  %v15622_v26 = vcombine.low %v2930_v11, %v2934_v61 }
 0x27a   :  { %v2030_v41 = vpop.f32.mrf.mxu1  ;;  %v2153_v43 = vpop.f32.mrf.mxu0  ;;  %12186 = vmatprep.subr.bf16.mxu1 %v15407_v20  ;;  %v15623_v20 = vcombine.high %v2930_v11, %v2934_v61  ;;  %v15495_v25 = vcombine.high %v2802_v18, %v2806_v51  ;;  %v2794_v27 = vld [vmem:[#allocation7 + $0xac0] sm:$0xff]  ;;  %v891_v9 = vrot.slane %v18262_v2, %v18209_v35 }
 0x27b   :  { %v18250_v45 = vpack.c.bf16 %v2407_v31, %v2407_v31  ;;  %12228 = vmatpush1.bf16.msra.mxu0 %v15534_v5  ;;  %v2922_v5 = vld [vmem:[#allocation7 + $0xec0] sm:$0xff] }
 0x27c   :  { %12229 = vmatprep.subr.bf16.mxu0 %v15527_v28  ;;  %v2798_v28 = vld [vmem:[#allocation7 + $0xae0] sm:$0xff]  ;;  %v15615_v31 = vcombine.high %v2922_v5, %v2926_v6  ;;  %v15614_v43 = vcombine.low %v2922_v5, %v2926_v6 }
 0x27d   :  { %12187 = vmatpush1.bf16.msra.mxu1 %v15406_v37  ;;  %12247 = vmatprep.mubr.bf16.mxu0 %v18250_v45  ;;  %v15494_v37 = vcombine.low %v2802_v18, %v2806_v51  ;;  %v2918_v40 = vld [vmem:[#allocation7 + $0xea0] sm:$0xff]  ;;  %v15487_v41 = vcombine.high %v2794_v27, %v2798_v28  ;;  %v15486_v53 = vcombine.low %v2794_v27, %v2798_v28 }
 0x27e   :  { %12188 = vmatprep.subr.bf16.mxu1 %v15399_v44  ;;  %v2786_v44 = vld [vmem:[#allocation7 + $0xa80] sm:$0xff]  ;;  %v883_v18 = vrot.slane %v18262_v2, %v18178_v39 }
 0x27f   :  { %12230 = vmatpush1.bf16.msra.mxu0 %v15526_v46  ;;  %v2790_v46 = vld [vmem:[#allocation7 + $0xaa0] sm:$0xff] }
 0x280   :  { %12231 = vmatprep.subr.bf16.mxu0 %v15647_v49  ;;  %v2906_v54 = vld [vmem:[#allocation7 + $0xe40] sm:$0xff]  ;;  %v15479_v62 = vcombine.high %v2786_v44, %v2790_v46 }
 0x281   :  { %12189 = vmatpush1.bf16.msra.mxu1 %v15398_v52  ;;  %v15607_v52 = vcombine.high %v2914_v38, %v2918_v40  ;;  %v2782_v42 = vld [vmem:[#allocation7 + $0xa60] sm:$0xff] }
 0x282   :  { %12190 = vmatprep.subr.bf16.mxu1 %v15519_v56  ;;  %v2910_v56 = vld [vmem:[#allocation7 + $0xe60] sm:$0xff] }
 0x283   :  { %12232 = vmatpush2.bf16.msra.mxu0 %v15646_v59  ;;  %v15599_v8 = vcombine.high %v2906_v54, %v2910_v56  ;;  %v2902_v11 = vld [vmem:[#allocation7 + $0xe20] sm:$0xff]  ;;  %v15598_v36 = vcombine.low %v2906_v54, %v2910_v56 }
 0x284   :  { %12233 = vmatprep.subr.bf16.mxu0 %v15639_v0  ;;  %v15606_v0 = vcombine.low %v2914_v38, %v2918_v40  ;;  %v2770_v51 = vld [vmem:[#allocation7 + $0xa00] sm:$0xff] }
 0x285   :  { %12191 = vmatpush2.bf16.msra.mxu1 %v15518_v1  ;;  %v2778_v1 = vld [vmem:[#allocation7 + $0xa40] sm:$0xff] }
 0x286   :  { %12192 = vmatprep.subr.bf16.mxu1 %v15511_v4  ;;  %v3150_v27 = vld [vmem:[#allocation7 + $0x15e0] sm:$0xff] }
 0x287   :  { %12234 = vmatpush2.bf16.msra.mxu0 %v15638_v7  ;;  %v3018_v38 = vld [vmem:[#allocation7 + $0x11c0] sm:$0xff] }
 0x288   :  { %12235 = vmatprep.subr.bf16.mxu0 %v15631_v10  ;;  %v15478_v10 = vcombine.low %v2786_v44, %v2790_v46  ;;  %v3022_v40 = vld [vmem:[#allocation7 + $0x11e0] sm:$0xff] }
 0x289   :  { %12193 = vmatpush2.bf16.msra.mxu1 %v15510_v55  ;;  %v2898_v55 = vld [vmem:[#allocation7 + $0xe00] sm:$0xff]  ;;  %v15711_v54 = vcombine.high %v3018_v38, %v3022_v40 }
 0x28a   :  { %12194 = vmatprep.subr.bf16.mxu1 %v15503_v15  ;;  %v15591_v5 = vcombine.high %v2898_v55, %v2902_v11  ;;  %v3138_v46 = vld [vmem:[#allocation7 + $0x1580] sm:$0xff] }
 0x28b   :  { %12236 = vmatpush2.bf16.msra.mxu0 %v15630_v16  ;;  %v15471_v16 = vcombine.high %v2778_v1, %v2782_v42 }
 0x28c   :  { %12237 = vmatprep.subr.bf16.mxu0 %v15623_v20  ;;  %v2774_v20 = vld [vmem:[#allocation7 + $0xa20] sm:$0xff] }
 0x28d   :  { %12195 = vmatpush2.bf16.msra.mxu1 %v15502_v22  ;;  %v2026_v22 = vadd.f32 %v18244_v34, %v871_v3  ;;  %v15463_v28 = vcombine.high %v2770_v51, %v2774_v20  ;;  %v15462_v34 = vcombine.low %v2770_v51, %v2774_v20  ;;  %v15710_v3 = vcombine.low %v3018_v38, %v3022_v40  ;;  %v2994_v20 = vld [vmem:[#allocation7 + $0x1100] sm:$0xff] }
 0x28e   :  { %12196 = vmatprep.subr.bf16.mxu1 %v15495_v25  ;;  %v15470_v25 = vcombine.low %v2778_v1, %v2782_v42 }
 0x28f   :  { %12238 = vmatpush2.bf16.msra.mxu0 %v15622_v26  ;;  %v3146_v26 = vld [vmem:[#allocation7 + $0x15c0] sm:$0xff] }
 0x290   :  { %v18256_v48 = vpop.f32.mrf.mxu1  ;;  %v18258_v49 = vpop.f32.mrf.mxu0  ;;  %12239 = vmatprep.subr.bf16.mxu0 %v15615_v31  ;;  %v2069_v31 = vadd.f32 %v18222_v58, %v883_v18  ;;  %v3010_v58 = vld [vmem:[#allocation7 + $0x1180] sm:$0xff] }
 0x291   :  { %12197 = vmatpush2.bf16.msra.mxu1 %v15494_v37  ;;  %v15590_v37 = vcombine.low %v2898_v55, %v2902_v11  ;;  %v3002_v55 = vld [vmem:[#allocation7 + $0x1140] sm:$0xff] }
 0x292   :  { %v2109_v59 = vpop.f32.mrf.mxu1  ;;  %v18260_v60 = vpop.f32.mrf.mxu0  ;;  %12198 = vmatprep.subr.bf16.mxu1 %v15487_v41  ;;  %v2406_v41 = vmax.f32 %v2026_v22, 0.0  ;;  %v2409_v56 = vmax.f32 %v2069_v31, 0.0  ;;  %v3006_v11 = vld [vmem:[#allocation7 + $0x1160] sm:$0xff] }
 0x293   :  { %12240 = vmatpush2.bf16.msra.mxu0 %v15614_v43  ;;  %v2110_v6 = vadd.f32 %v2109_v59, %v891_v9  ;;  %v15839_v43 = vcombine.high %v3146_v26, %v3150_v27  ;;  %v15838_v59 = vcombine.low %v3146_v26, %v3150_v27  ;;  %v3126_v18 = vld [vmem:[#allocation7 + $0x1520] sm:$0xff] }
 0x294   :  { %v2111_v4 = vpop.f32.mrf.mxu1  ;;  %v2234_v7 = vpop.f32.mrf.mxu0  ;;  %12241 = vmatprep.subr.bf16.mxu0 %v15607_v52  ;;  %v3142_v52 = vld [vmem:[#allocation7 + $0x15a0] sm:$0xff]  ;;  %v18280_v9 = vpack.c.bf16 %v2409_v56, %v2409_v56 }
 0x295   :  { %12199 = vmatpush2.bf16.msra.mxu1 %v15486_v53  ;;  %v2411_v44 = vmax.f32 %v2110_v6, 0.0  ;;  %v2404_v53 = vmax.f32 %v18186_v57, 0.0  ;;  %v15831_v1 = vcombine.high %v3138_v46, %v3142_v52  ;;  %v3130_v4 = vld [vmem:[#allocation7 + $0x1540] sm:$0xff]  ;;  %v15694_v6 = vcombine.low %v3002_v55, %v3006_v11 }
 0x296   :  { %v2112_v61 = vpop.f32.mrf.mxu1  ;;  %v2235_v15 = vpop.f32.mrf.mxu0  ;;  %12200 = vmatprep.subr.bf16.mxu1 %v15479_v62  ;;  %v3014_v62 = vld [vmem:[#allocation7 + $0x11a0] sm:$0xff] }
 0x297   :  { %12242 = vmatpush2.bf16.msra.mxu0 %v15606_v0  ;;  %v18273_v0 = vpack.c.bf16 %v2406_v41, %v2406_v41  ;;  %v18275_v42 = vpack.c.bf16 %v2411_v44, %v2411_v44  ;;  %v3134_v7 = vld [vmem:[#allocation7 + $0x1560] sm:$0xff]  ;;  %v15703_v57 = vcombine.high %v3010_v58, %v3014_v62  ;;  %v15702_v15 = vcombine.low %v3010_v58, %v3014_v62 }
 0x298   :  { %12243 = vmatprep.subr.bf16.mxu0 %v15599_v8  ;;  %v18277_v8 = vpack.c.bf16 %v2404_v53, %v2404_v53  ;;  %v15823_v61 = vcombine.high %v3130_v4, %v3134_v7  ;;  %v15822_v51 = vcombine.low %v3130_v4, %v3134_v7  ;;  %v2998_v22 = vld [vmem:[#allocation7 + $0x1120] sm:$0xff] }
 0x299   :  { %12201 = vmatpush2.bf16.msra.mxu1 %v15478_v10  ;;  %v15830_v10 = vcombine.low %v3138_v46, %v3142_v52  ;;  %v3118_v26 = vld [vmem:[#allocation7 + $0x14e0] sm:$0xff]  ;;  %v15687_v27 = vcombine.high %v2994_v20, %v2998_v22 }
 0x29a   :  { %12202 = vmatprep.subr.bf16.mxu1 %v15471_v16  ;;  %v3122_v16 = vld [vmem:[#allocation7 + $0x1500] sm:$0xff] }
 0x29b   :  { %12244 = vmatpush2.bf16.msra.mxu0 %v15598_v36  ;;  %v15695_v36 = vcombine.high %v3002_v55, %v3006_v11  ;;  %v2986_v31 = vld [vmem:[#allocation7 + $0x10c0] sm:$0xff] }
 0x29c   :  { %12245 = vmatprep.subr.bf16.mxu0 %v15591_v5  ;;  %v15815_v5 = vcombine.high %v3122_v16, %v3126_v18  ;;  %v3106_v44 = vld [vmem:[#allocation7 + $0x1480] sm:$0xff] }
 0x29d   :  { %12203 = vmatpush2.bf16.msra.mxu1 %v15470_v25  ;;  %v3114_v25 = vld [vmem:[#allocation7 + $0x14c0] sm:$0xff] }
 0x29e   :  { %12204 = vmatprep.subr.bf16.mxu1 %v15463_v28  ;;  %v15814_v28 = vcombine.low %v3122_v16, %v3126_v18  ;;  %v15807_v41 = vcombine.high %v3114_v25, %v3118_v26  ;;  %v2978_v56 = vld [vmem:[#allocation7 + $0x1080] sm:$0xff] }
 0x29f   :  { %12246 = vmatpush2.bf16.msra.mxu0 %v15590_v37  ;;  %v2990_v37 = vld [vmem:[#allocation7 + $0x10e0] sm:$0xff] }
 0x2a0   :  { %12297 = vmatprep.subr.bf16.mxu0 %v15839_v43  ;;  %v15686_v43 = vcombine.low %v2994_v20, %v2998_v22  ;;  %v15679_v53 = vcombine.high %v2986_v31, %v2990_v37  ;;  %v3098_v4 = vld [vmem:[#allocation7 + $0x1440] sm:$0xff] }
 0x2a1   :  { %12205 = vmatpush2.bf16.msra.mxu1 %v15462_v34  ;;  %v3110_v34 = vld [vmem:[#allocation7 + $0x14a0] sm:$0xff] }
 0x2a2   :  { %12248 = vmatmul.mubr.bf16.vlgmr.msra.gmra.mxu0 %v18273_v0  ;;  %12256 = vmatprep.subr.bf16.mxu1 %v15711_v54  ;;  %v15806_v54 = vcombine.low %v3114_v25, %v3118_v26  ;;  %v3102_v7 = vld [vmem:[#allocation7 + $0x1460] sm:$0xff]  ;;  %v15798_v11 = vcombine.low %v3106_v44, %v3110_v34 }
 0x2a3   :  { %12298 = vmatpush1.bf16.msra.mxu0 %v15838_v59  ;;  %12329 = vmatprep.mubr.bf16.mxu0 %v18275_v42  ;;  %v2982_v59 = vld [vmem:[#allocation7 + $0x10a0] sm:$0xff]  ;;  %v15791_v16 = vcombine.high %v3098_v4, %v3102_v7  ;;  %v15790_v22 = vcombine.low %v3098_v4, %v3102_v7 }
 0x2a4   :  { %12207 = vmatmul.mubr.bf16.vlgmr.msra.gmra.mxu1 %v18277_v8  ;;  %12299 = vmatprep.subr.bf16.mxu0 %v15831_v1  ;;  %v15799_v1 = vcombine.high %v3106_v44, %v3110_v34  ;;  %v15671_v55 = vcombine.high %v2978_v56, %v2982_v59  ;;  %v15670_v18 = vcombine.low %v2978_v56, %v2982_v59  ;;  %v3194_v4 = vld [vmem:[#allocation7 + $0x1740] sm:$0xff] }
 0x2a5   :  { %12257 = vmatpush1.bf16.msra.mxu1 %v15710_v3  ;;  %12288 = vmatprep.mubr.bf16.mxu1 %v18280_v9  ;;  %v15678_v3 = vcombine.low %v2986_v31, %v2990_v37  ;;  %v3198_v7 = vld [vmem:[#allocation7 + $0x1760] sm:$0xff] }
 0x2a6   :  { %12258 = vmatprep.subr.bf16.mxu1 %v15703_v57 }
 0x2a7   :  { %12300 = vmatpush1.bf16.msra.mxu0 %v15830_v10 }
 0x2a8   :  { %12301 = vmatprep.subr.bf16.mxu0 %v15823_v61  ;;  %v2970_v61 = vld [vmem:[#allocation7 + $0x1040] sm:$0xff] }
 0x2a9   :  { %12259 = vmatpush1.bf16.msra.mxu1 %v15702_v15  ;;  %v2974_v15 = vld [vmem:[#allocation7 + $0x1060] sm:$0xff] }
 0x2aa   :  { %12260 = vmatprep.subr.bf16.mxu1 %v15695_v36  ;;  %v3090_v36 = vld [vmem:[#allocation7 + $0x1400] sm:$0xff]  ;;  %v15663_v20 = vcombine.high %v2970_v61, %v2974_v15  ;;  %v15662_v26 = vcombine.low %v2970_v61, %v2974_v15  ;;  %v15887_v61 = vcombine.high %v3194_v4, %v3198_v7 }
 0x2ab   :  { %12302 = vmatpush1.bf16.msra.mxu0 %v15822_v51  ;;  %v3094_v51 = vld [vmem:[#allocation7 + $0x1420] sm:$0xff] }
 0x2ac   :  { %v18285_v38 = vpop.f32.mrf.mxu1  ;;  %v18287_v40 = vpop.f32.mrf.mxu0  ;;  %12303 = vmatprep.subr.bf16.mxu0 %v15815_v5  ;;  %v2962_v5 = vld [vmem:[#allocation7 + $0x1000] sm:$0xff]  ;;  %v15783_v25 = vcombine.high %v3090_v36, %v3094_v51  ;;  %v15782_v37 = vcombine.low %v3090_v36, %v3094_v51  ;;  %v15886_v51 = vcombine.low %v3194_v4, %v3198_v7 }
 0x2ad   :  { %12261 = vmatpush1.bf16.msra.mxu1 %v15694_v6  ;;  %v2966_v6 = vld [vmem:[#allocation7 + $0x1020] sm:$0xff] }
 0x2ae   :  { %v18289_v46 = vpop.f32.mrf.mxu1  ;;  %v18291_v52 = vpop.f32.mrf.mxu0  ;;  %12262 = vmatprep.subr.bf16.mxu1 %v15687_v27  ;;  %v3210_v27 = vld [vmem:[#allocation7 + $0x17c0] sm:$0xff]  ;;  %v15655_v31 = vcombine.high %v2962_v5, %v2966_v6  ;;  %v15654_v34 = vcombine.low %v2962_v5, %v2966_v6 }
 0x2af   :  { %12304 = vmatpush1.bf16.msra.mxu0 %v15814_v28  ;;  %v3214_v28 = vld [vmem:[#allocation7 + $0x17e0] sm:$0xff] }
 0x2b0   :  { %v2193_v58 = vpop.f32.mrf.mxu1  ;;  %v2316_v62 = vpop.f32.mrf.mxu0  ;;  %12305 = vmatprep.subr.bf16.mxu0 %v15807_v41  ;;  %v3082_v41 = vld [vmem:[#allocation7 + $0x13c0] sm:$0xff]  ;;  %v15903_v44 = vcombine.high %v3210_v27, %v3214_v28  ;;  %v15902_v59 = vcombine.low %v3210_v27, %v3214_v28 }
 0x2b1   :  { %12263 = vmatpush1.bf16.msra.mxu1 %v15686_v43  ;;  %v3086_v43 = vld [vmem:[#allocation7 + $0x13e0] sm:$0xff] }
 0x2b2   :  { %v2194_v57 = vpop.f32.mrf.mxu1  ;;  %v2317_v10 = vpop.f32.mrf.mxu0  ;;  %12264 = vmatprep.subr.bf16.mxu1 %v15679_v53  ;;  %v3202_v53 = vld [vmem:[#allocation7 + $0x1780] sm:$0xff]  ;;  %v15775_v56 = vcombine.high %v3082_v41, %v3086_v43 }
 0x2b3   :  { %12306 = vmatpush1.bf16.msra.mxu0 %v15806_v54  ;;  %v3206_v54 = vld [vmem:[#allocation7 + $0x17a0] sm:$0xff] }
 0x2b4   :  { %12307 = vmatprep.subr.bf16.mxu0 %v15799_v1  ;;  %v3074_v58 = vld [vmem:[#allocation7 + $0x1380] sm:$0xff]  ;;  %v15895_v1 = vcombine.high %v3202_v53, %v3206_v54  ;;  %v15894_v10 = vcombine.low %v3202_v53, %v3206_v54 }
 0x2b5   :  { %12265 = vmatpush1.bf16.msra.mxu1 %v15678_v3  ;;  %v3078_v62 = vld [vmem:[#allocation7 + $0x13a0] sm:$0xff]  ;;  %v15774_v3 = vcombine.low %v3082_v41, %v3086_v43 }
 0x2b6   :  { %12266 = vmatprep.subr.bf16.mxu1 %v15671_v55  ;;  %v15767_v57 = vcombine.high %v3074_v58, %v3078_v62  ;;  %v3066_v55 = vld [vmem:[#allocation7 + $0x1340] sm:$0xff]  ;;  %v15766_v15 = vcombine.low %v3074_v58, %v3078_v62 }
 0x2b7   :  { %12308 = vmatpush1.bf16.msra.mxu0 %v15798_v11  ;;  %v3070_v11 = vld [vmem:[#allocation7 + $0x1360] sm:$0xff] }
 0x2b8   :  { %12309 = vmatprep.subr.bf16.mxu0 %v15791_v16  ;;  %v3186_v16 = vld [vmem:[#allocation7 + $0x1700] sm:$0xff]  ;;  %v15759_v36 = vcombine.high %v3066_v55, %v3070_v11 }
 0x2b9   :  { %12267 = vmatpush1.bf16.msra.mxu1 %v15670_v18  ;;  %v3190_v18 = vld [vmem:[#allocation7 + $0x1720] sm:$0xff] }
 0x2ba   :  { %12268 = vmatprep.subr.bf16.mxu1 %v15663_v20  ;;  %v3058_v20 = vld [vmem:[#allocation7 + $0x1300] sm:$0xff]  ;;  %v15878_v43 = vcombine.low %v3186_v16, %v3190_v18 }
 0x2bb   :  { %12310 = vmatpush1.bf16.msra.mxu0 %v15790_v22  ;;  %v3062_v22 = vld [vmem:[#allocation7 + $0x1320] sm:$0xff] }
 0x2bc   :  { %12311 = vmatprep.subr.bf16.mxu0 %v15783_v25  ;;  %v15879_v25 = vcombine.high %v3186_v16, %v3190_v18  ;;  %v3178_v27 = vld [vmem:[#allocation7 + $0x16c0] sm:$0xff]  ;;  %v15751_v41 = vcombine.high %v3058_v20, %v3062_v22 }
 0x2bd   :  { %12269 = vmatpush1.bf16.msra.mxu1 %v15662_v26  ;;  %v15758_v26 = vcombine.low %v3066_v55, %v3070_v11  ;;  %v3182_v28 = vld [vmem:[#allocation7 + $0x16e0] sm:$0xff] }
 0x2be   :  { %12270 = vmatprep.subr.bf16.mxu1 %v15655_v31  ;;  %v3170_v58 = vld [vmem:[#allocation7 + $0x1680] sm:$0xff]  ;;  %v15870_v7 = vcombine.low %v3178_v27, %v3182_v28 }
 0x2bf   :  { %12312 = vmatpush1.bf16.msra.mxu0 %v15782_v37  ;;  %v3174_v62 = vld [vmem:[#allocation7 + $0x16a0] sm:$0xff] }
 0x2c0   :  { %12313 = vmatprep.subr.bf16.mxu0 %v15903_v44  ;;  %v3050_v44 = vld [vmem:[#allocation7 + $0x12c0] sm:$0xff]  ;;  %v15863_v55 = vcombine.high %v3170_v58, %v3174_v62  ;;  %v15862_v18 = vcombine.low %v3170_v58, %v3174_v62 }
 0x2c1   :  { %12271 = vmatpush1.bf16.msra.mxu1 %v15654_v34  ;;  %v3054_v34 = vld [vmem:[#allocation7 + $0x12e0] sm:$0xff] }
 0x2c2   :  { %12272 = vmatprep.subr.bf16.mxu1 %v15775_v56  ;;  %v15871_v56 = vcombine.high %v3178_v27, %v3182_v28  ;;  %v15743_v4 = vcombine.high %v3050_v44, %v3054_v34  ;;  %v15742_v11 = vcombine.low %v3050_v44, %v3054_v34  ;;  %v3154_v27 = vld [vmem:[#allocation7 + $0x1600] sm:$0xff] }
 0x2c3   :  { %12314 = vmatpush2.bf16.msra.mxu0 %v15902_v59  ;;  %v15750_v59 = vcombine.low %v3058_v20, %v3062_v22  ;;  %v887_v20 = vrot.slane %v18262_v2, %v18200_v29  ;;  %v3158_v28 = vld [vmem:[#allocation7 + $0x1620] sm:$0xff] }
 0x2c4   :  { %12315 = vmatprep.subr.bf16.mxu0 %v15895_v1  ;;  %v3026_v34 = vld [vmem:[#allocation7 + $0x1200] sm:$0xff] }
 0x2c5   :  { %12273 = vmatpush2.bf16.msra.mxu1 %v15774_v3  ;;  %v3402_v62 = vld [vmem:[#allocation7 + $0x1dc0] sm:$0xff] }
 0x2c6   :  { %12274 = vmatprep.subr.bf16.mxu1 %v15767_v57  ;;  %v3042_v57 = vld [vmem:[#allocation7 + $0x1280] sm:$0xff] }
 0x2c7   :  { %12316 = vmatpush2.bf16.msra.mxu0 %v15894_v10  ;;  %v3046_v10 = vld [vmem:[#allocation7 + $0x12a0] sm:$0xff] }
 0x2c8   :  { %v18293_v5 = vpop.f32.mrf.mxu1  ;;  %v18295_v6 = vpop.f32.mrf.mxu0  ;;  %12317 = vmatprep.subr.bf16.mxu0 %v15887_v61  ;;  %v3162_v61 = vld [vmem:[#allocation7 + $0x1640] sm:$0xff]  ;;  %v15735_v16 = vcombine.high %v3042_v57, %v3046_v10 }
 0x2c9   :  { %12275 = vmatpush2.bf16.msra.mxu1 %v15766_v15  ;;  %v3166_v15 = vld [vmem:[#allocation7 + $0x1660] sm:$0xff] }
 0x2ca   :  { %v18297_v31 = vpop.f32.mrf.mxu1  ;;  %v17059_v37 = vpop.f32.mrf.mxu0  ;;  %12276 = vmatprep.subr.bf16.mxu1 %v15759_v36  ;;  %v3034_v36 = vld [vmem:[#allocation7 + $0x1240] sm:$0xff]  ;;  %v15855_v22 = vcombine.high %v3162_v61, %v3166_v15  ;;  %v15854_v44 = vcombine.low %v3162_v61, %v3166_v15 }
 0x2cb   :  { %12318 = vmatpush2.bf16.msra.mxu0 %v15886_v51  ;;  %v3038_v51 = vld [vmem:[#allocation7 + $0x1260] sm:$0xff]  ;;  %v879_v37 = vrot.slane %v18262_v2, %v18203_v30 }
 0x2cc   :  { %v2275_v53 = vpop.f32.mrf.mxu1  ;;  %v2397_v54 = vpop.f32.mrf.mxu0  ;;  %12319 = vmatprep.subr.bf16.mxu0 %v15879_v25  ;;  %v907_v25 = vrot.slane %v18262_v2, %v18240_v63  ;;  %v15726_v58 = vcombine.low %v3034_v36, %v3038_v51  ;;  %v3394_v15 = vld [vmem:[#allocation7 + $0x1d80] sm:$0xff] }
 0x2cd   :  { %12277 = vmatpush2.bf16.msra.mxu1 %v15758_v26  ;;  %v15734_v26 = vcombine.low %v3042_v57, %v3046_v10  ;;  %v3030_v53 = vld [vmem:[#allocation7 + $0x1220] sm:$0xff]  ;;  %v2108_v54 = vadd.f32 %v18256_v48, %v887_v20  ;;  %v15846_v57 = vcombine.low %v3154_v27, %v3158_v28 }
 0x2ce   :  { %v2276_v1 = vpop.f32.mrf.mxu1  ;;  %v17060_v3 = vpop.f32.mrf.mxu0  ;;  %12278 = vmatprep.subr.bf16.mxu1 %v15751_v41  ;;  %v15727_v41 = vcombine.high %v3034_v36, %v3038_v51  ;;  %v3274_v10 = vld [vmem:[#allocation7 + $0x19c0] sm:$0xff] }
 0x2cf   :  { %12320 = vmatpush2.bf16.msra.mxu0 %v15878_v43  ;;  %v899_v43 = vrot.slane %v18262_v2, %v18206_v33  ;;  %v3406_v1 = vld [vmem:[#allocation7 + $0x1de0] sm:$0xff]  ;;  %v2067_v3 = vadd.f32 %v18219_v50, %v879_v37 }
 0x2d0   :  { %12321 = vmatprep.subr.bf16.mxu0 %v15871_v56  ;;  %v15847_v56 = vcombine.high %v3154_v27, %v3158_v28  ;;  %v16095_v48 = vcombine.high %v3402_v62, %v3406_v1  ;;  %v16094_v51 = vcombine.low %v3402_v62, %v3406_v1  ;;  %v3266_v20 = vld [vmem:[#allocation7 + $0x1980] sm:$0xff] }
 0x2d1   :  { %12279 = vmatpush2.bf16.msra.mxu1 %v15750_v59  ;;  %v2192_v59 = vadd.f32 %v18289_v46, %v907_v25  ;;  %v15718_v46 = vcombine.low %v3026_v34, %v3030_v53  ;;  %v3386_v28 = vld [vmem:[#allocation7 + $0x1d40] sm:$0xff] }
 0x2d2   :  { %12280 = vmatprep.subr.bf16.mxu1 %v15743_v4  ;;  %v15719_v4 = vcombine.high %v3026_v34, %v3030_v53  ;;  %v3390_v37 = vld [vmem:[#allocation7 + $0x1d60] sm:$0xff] }
 0x2d3   :  { %12322 = vmatpush2.bf16.msra.mxu0 %v15870_v7  ;;  %v2151_v7 = vadd.f32 %v18248_v19, %v899_v43  ;;  %v2415_v61 = vmax.f32 %v2192_v59, 0.0  ;;  %v3270_v19 = vld [vmem:[#allocation7 + $0x19a0] sm:$0xff]  ;;  %v16079_v59 = vcombine.high %v3386_v28, %v3390_v37 }
 0x2d4   :  { %12323 = vmatprep.subr.bf16.mxu0 %v15863_v55  ;;  %v3278_v55 = vld [vmem:[#allocation7 + $0x19e0] sm:$0xff]  ;;  %v15959_v43 = vcombine.high %v3266_v20, %v3270_v19 }
 0x2d5   :  { %12281 = vmatpush2.bf16.msra.mxu1 %v15742_v11  ;;  %v2410_v11 = vmax.f32 %v2108_v54, 0.0  ;;  %v15967_v36 = vcombine.high %v3274_v10, %v3278_v55  ;;  %v2413_v50 = vmax.f32 %v2151_v7, 0.0  ;;  %v15966_v27 = vcombine.low %v3274_v10, %v3278_v55  ;;  %v3258_v53 = vld [vmem:[#allocation7 + $0x1940] sm:$0xff] }
 0x2d6   :  { %12282 = vmatprep.subr.bf16.mxu1 %v15735_v16  ;;  %v3398_v16 = vld [vmem:[#allocation7 + $0x1da0] sm:$0xff]  ;;  %v16078_v7 = vcombine.low %v3386_v28, %v3390_v37 }
 0x2d7   :  { %12324 = vmatpush2.bf16.msra.mxu0 %v15862_v18  ;;  %v2408_v18 = vmax.f32 %v2067_v3, 0.0  ;;  %v16087_v25 = vcombine.high %v3394_v15, %v3398_v16  ;;  %v16086_v34 = vcombine.low %v3394_v15, %v3398_v16  ;;  %v3262_v54 = vld [vmem:[#allocation7 + $0x1960] sm:$0xff] }
 0x2d8   :  { %12325 = vmatprep.subr.bf16.mxu0 %v15855_v22  ;;  %v18311_v22 = vpack.c.bf16 %v2410_v11, %v2410_v11  ;;  %v3378_v62 = vld [vmem:[#allocation7 + $0x1d00] sm:$0xff] }
 0x2d9   :  { %12283 = vmatpush2.bf16.msra.mxu1 %v15734_v26  ;;  %v18313_v26 = vpack.c.bf16 %v2415_v61, %v2415_v61  ;;  %v3382_v1 = vld [vmem:[#allocation7 + $0x1d20] sm:$0xff] }
 0x2da   :  { %12284 = vmatprep.subr.bf16.mxu1 %v15727_v41  ;;  %v18315_v41 = vpack.c.bf16 %v2408_v18, %v2408_v18  ;;  %v3254_v10 = vld [vmem:[#allocation7 + $0x1920] sm:$0xff]  ;;  %v16071_v11 = vcombine.high %v3378_v62, %v3382_v1  ;;  %v16070_v18 = vcombine.low %v3378_v62, %v3382_v1 }
 0x2db   :  { %12326 = vmatpush2.bf16.msra.mxu0 %v15854_v44  ;;  %v18318_v44 = vpack.c.bf16 %v2413_v50, %v2413_v50  ;;  %v3370_v61 = vld [vmem:[#allocation7 + $0x1cc0] sm:$0xff] }
 0x2dc   :  { %12327 = vmatprep.subr.bf16.mxu0 %v15847_v56  ;;  %v3246_v50 = vld [vmem:[#allocation7 + $0x18e0] sm:$0xff] }
 0x2dd   :  { %12285 = vmatpush2.bf16.msra.mxu1 %v15726_v58  ;;  %v15958_v58 = vcombine.low %v3266_v20, %v3270_v19  ;;  %v3362_v19 = vld [vmem:[#allocation7 + $0x1c80] sm:$0xff] }
 0x2de   :  { %12286 = vmatprep.subr.bf16.mxu1 %v15719_v4  ;;  %v15951_v4 = vcombine.high %v3258_v53, %v3262_v54  ;;  %v3234_v37 = vld [vmem:[#allocation7 + $0x1880] sm:$0xff] }
 0x2df   :  { %12328 = vmatpush2.bf16.msra.mxu0 %v15846_v57  ;;  %v3250_v57 = vld [vmem:[#allocation7 + $0x1900] sm:$0xff] }
 0x2e0   :  { %12379 = vmatprep.subr.bf16.mxu0 %v16095_v48  ;;  %v15950_v48 = vcombine.low %v3258_v53, %v3262_v54  ;;  %v15943_v16 = vcombine.high %v3250_v57, %v3254_v10  ;;  %v15942_v20 = vcombine.low %v3250_v57, %v3254_v10  ;;  %v3354_v54 = vld [vmem:[#allocation7 + $0x1c40] sm:$0xff] }
 0x2e1   :  { %12287 = vmatpush2.bf16.msra.mxu1 %v15718_v46  ;;  %v3374_v46 = vld [vmem:[#allocation7 + $0x1ce0] sm:$0xff] }
 0x2e2   :  { %12330 = vmatmul.mubr.bf16.vlgmr.msra.gmra.mxu0 %v18311_v22  ;;  %12338 = vmatprep.subr.bf16.mxu1 %v15967_v36  ;;  %v3242_v36 = vld [vmem:[#allocation7 + $0x18c0] sm:$0xff]  ;;  %v16062_v28 = vcombine.low %v3370_v61, %v3374_v46 }
 0x2e3   :  { %12380 = vmatpush1.bf16.msra.mxu0 %v16094_v51  ;;  %12411 = vmatprep.mubr.bf16.mxu0 %v18313_v26  ;;  %v16063_v51 = vcombine.high %v3370_v61, %v3374_v46  ;;  %v15934_v53 = vcombine.low %v3242_v36, %v3246_v50  ;;  %v3226_v1 = vld [vmem:[#allocation7 + $0x1840] sm:$0xff] }
 0x2e4   :  { %v18321_v56 = vpop.f32.mrf.mxu1  ;;  %12289 = vmatmul.mubr.bf16.vlgmr.msra.gmra.mxu1 %v18315_v41  ;;  %12381 = vmatprep.subr.bf16.mxu0 %v16087_v25  ;;  %v3366_v25 = vld [vmem:[#allocation7 + $0x1ca0] sm:$0xff] }
 0x2e5   :  { %12339 = vmatpush1.bf16.msra.mxu1 %v15966_v27  ;;  %12370 = vmatprep.mubr.bf16.mxu1 %v18318_v44  ;;  %v15935_v27 = vcombine.high %v3242_v36, %v3246_v50  ;;  %v16054_v62 = vcombine.low %v3362_v19, %v3366_v25  ;;  %v3346_v10 = vld [vmem:[#allocation7 + $0x1c00] sm:$0xff] }
 0x2e6   :  { %v18325_v3 = vpop.f32.mrf.mxu1  ;;  %12340 = vmatprep.subr.bf16.mxu1 %v15959_v43  ;;  %v3238_v43 = vld [vmem:[#allocation7 + $0x18a0] sm:$0xff] }
 0x2e7   :  { %12382 = vmatpush1.bf16.msra.mxu0 %v16086_v34  ;;  %v16055_v34 = vcombine.high %v3362_v19, %v3366_v25  ;;  %v15926_v57 = vcombine.low %v3234_v37, %v3238_v43  ;;  %v3218_v61 = vld [vmem:[#allocation7 + $0x1800] sm:$0xff] }
 0x2e8   :  { %v2357_v55 = vpop.f32.mrf.mxu1  ;;  %12383 = vmatprep.subr.bf16.mxu0 %v16079_v59  ;;  %v3358_v59 = vld [vmem:[#allocation7 + $0x1c60] sm:$0xff] }
 0x2e9   :  { %12341 = vmatpush1.bf16.msra.mxu1 %v15958_v58  ;;  %v15927_v58 = vcombine.high %v3234_v37, %v3238_v43  ;;  %v3350_v55 = vld [vmem:[#allocation7 + $0x1c20] sm:$0xff] }
 0x2ea   :  { %v2358_v15 = vpop.f32.mrf.mxu1  ;;  %12342 = vmatprep.subr.bf16.mxu1 %v15951_v4  ;;  %v3230_v4 = vld [vmem:[#allocation7 + $0x1860] sm:$0xff] }
 0x2eb   :  { %12384 = vmatpush1.bf16.msra.mxu0 %v16078_v7  ;;  %v16047_v7 = vcombine.high %v3354_v54, %v3358_v59  ;;  %v3222_v46 = vld [vmem:[#allocation7 + $0x1820] sm:$0xff]  ;;  %v16039_v15 = vcombine.high %v3346_v10, %v3350_v55 }
 0x2ec   :  { %12385 = vmatprep.subr.bf16.mxu0 %v16071_v11  ;;  %v15919_v11 = vcombine.high %v3226_v1, %v3230_v4  ;;  %v3470_v36 = vld [vmem:[#allocation7 + $0x1fe0] sm:$0xff]  ;;  %v15911_v50 = vcombine.high %v3218_v61, %v3222_v46 }
 0x2ed   :  { %12343 = vmatpush1.bf16.msra.mxu1 %v15950_v48  ;;  %v16046_v48 = vcombine.low %v3354_v54, %v3358_v59  ;;  %v3342_v19 = vld [vmem:[#allocation7 + $0x1be0] sm:$0xff] }
 0x2ee   :  { %12344 = vmatprep.subr.bf16.mxu1 %v15943_v16  ;;  %v15918_v16 = vcombine.low %v3226_v1, %v3230_v4  ;;  %v3462_v37 = vld [vmem:[#allocation7 + $0x1fa0] sm:$0xff] }
 0x2ef   :  { %12386 = vmatpush1.bf16.msra.mxu0 %v16070_v18  ;;  %v3466_v18 = vld [vmem:[#allocation7 + $0x1fc0] sm:$0xff] }
 0x2f0   :  { %12387 = vmatprep.subr.bf16.mxu0 %v16063_v51  ;;  %v16038_v51 = vcombine.low %v3346_v10, %v3350_v55  ;;  %v16159_v25 = vcombine.high %v3466_v18, %v3470_v36  ;;  %v3334_v54 = vld [vmem:[#allocation7 + $0x1ba0] sm:$0xff] }
 0x2f1   :  { %12345 = vmatpush1.bf16.msra.mxu1 %v15942_v20  ;;  %v3338_v20 = vld [vmem:[#allocation7 + $0x1bc0] sm:$0xff] }
 0x2f2   :  { %12346 = vmatprep.subr.bf16.mxu1 %v15935_v27  ;;  %v15910_v27 = vcombine.low %v3218_v61, %v3222_v46  ;;  %v16031_v43 = vcombine.high %v3338_v20, %v3342_v19  ;;  %v3454_v1 = vld [vmem:[#allocation7 + $0x1f60] sm:$0xff] }
 0x2f3   :  { %12388 = vmatpush1.bf16.msra.mxu0 %v16062_v28  ;;  %v3458_v28 = vld [vmem:[#allocation7 + $0x1f80] sm:$0xff] }
 0x2f4   :  { %12389 = vmatprep.subr.bf16.mxu0 %v16055_v34  ;;  %v16158_v34 = vcombine.low %v3466_v18, %v3470_v36  ;;  %v16151_v59 = vcombine.high %v3458_v28, %v3462_v37  ;;  %v3326_v10 = vld [vmem:[#allocation7 + $0x1b60] sm:$0xff] }
 0x2f5   :  { %12347 = vmatpush1.bf16.msra.mxu1 %v15934_v53  ;;  %v3330_v53 = vld [vmem:[#allocation7 + $0x1b80] sm:$0xff] }
 0x2f6   :  { %12348 = vmatprep.subr.bf16.mxu1 %v15927_v58  ;;  %v16030_v58 = vcombine.low %v3338_v20, %v3342_v19  ;;  %v16023_v4 = vcombine.high %v3330_v53, %v3334_v54  ;;  %v3446_v61 = vld [vmem:[#allocation7 + $0x1f20] sm:$0xff] }
 0x2f7   :  { %12390 = vmatpush1.bf16.msra.mxu0 %v16054_v62  ;;  %v3450_v62 = vld [vmem:[#allocation7 + $0x1f40] sm:$0xff] }
 0x2f8   :  { %12391 = vmatprep.subr.bf16.mxu0 %v16047_v7  ;;  %v16150_v7 = vcombine.low %v3458_v28, %v3462_v37  ;;  %v16143_v55 = vcombine.high %v3450_v62, %v3454_v1  ;;  %v3318_v18 = vld [vmem:[#allocation7 + $0x1b20] sm:$0xff] }
 0x2f9   :  { %12349 = vmatpush1.bf16.msra.mxu1 %v15926_v57  ;;  %v3322_v57 = vld [vmem:[#allocation7 + $0x1b40] sm:$0xff] }
 0x2fa   :  { %12350 = vmatprep.subr.bf16.mxu1 %v15919_v11  ;;  %v16022_v11 = vcombine.low %v3330_v53, %v3334_v54  ;;  %v16015_v46 = vcombine.high %v3322_v57, %v3326_v10  ;;  %v3438_v20 = vld [vmem:[#allocation7 + $0x1ee0] sm:$0xff] }
 0x2fb   :  { %12392 = vmatpush1.bf16.msra.mxu0 %v16046_v48  ;;  %v3442_v48 = vld [vmem:[#allocation7 + $0x1f00] sm:$0xff] }
 0x2fc   :  { %12393 = vmatprep.subr.bf16.mxu0 %v16039_v15  ;;  %v16142_v15 = vcombine.low %v3450_v62, %v3454_v1  ;;  %v16135_v36 = vcombine.high %v3442_v48, %v3446_v61  ;;  %v3310_v28 = vld [vmem:[#allocation7 + $0x1ae0] sm:$0xff] }
 0x2fd   :  { %12351 = vmatpush1.bf16.msra.mxu1 %v15918_v16  ;;  %v3314_v16 = vld [vmem:[#allocation7 + $0x1b00] sm:$0xff] }
 0x2fe   :  { %12352 = vmatprep.subr.bf16.mxu1 %v15911_v50  ;;  %v16014_v50 = vcombine.low %v3322_v57, %v3326_v10  ;;  %v16007_v19 = vcombine.high %v3314_v16, %v3318_v18  ;;  %v3430_v53 = vld [vmem:[#allocation7 + $0x1ea0] sm:$0xff] }
 0x2ff   :  { %12394 = vmatpush1.bf16.msra.mxu0 %v16038_v51  ;;  %v3434_v51 = vld [vmem:[#allocation7 + $0x1ec0] sm:$0xff] }
 0x300   :  { %12395 = vmatprep.subr.bf16.mxu0 %v16159_v25  ;;  %v16134_v25 = vcombine.low %v3442_v48, %v3446_v61  ;;  %v16127_v37 = vcombine.high %v3434_v51, %v3438_v20  ;;  %v3302_v62 = vld [vmem:[#allocation7 + $0x1aa0] sm:$0xff]  ;;  %v18327_v61 = vld [vmem:[#allocation5 + $0x10] sm:$0xff] }
 0x301   :  { %12353 = vmatpush1.bf16.msra.mxu1 %v15910_v27  ;;  %v3306_v27 = vld [vmem:[#allocation7 + $0x1ac0] sm:$0xff] }
 0x302   :  { %12354 = vmatprep.subr.bf16.mxu1 %v16031_v43  ;;  %v16006_v43 = vcombine.low %v3314_v16, %v3318_v18  ;;  %v15999_v54 = vcombine.high %v3306_v27, %v3310_v28  ;;  %v3422_v57 = vld [vmem:[#allocation7 + $0x1e60] sm:$0xff]  ;;  %v923_v16 = vrot.slane %v18327_v61, %v18209_v35 }
 0x303   :  { %12396 = vmatpush2.bf16.msra.mxu0 %v16158_v34  ;;  %v3426_v34 = vld [vmem:[#allocation7 + $0x1e80] sm:$0xff] }
 0x304   :  { %12397 = vmatprep.subr.bf16.mxu0 %v16151_v59  ;;  %v16126_v59 = vcombine.low %v3434_v51, %v3438_v20  ;;  %v16119_v1 = vcombine.high %v3426_v34, %v3430_v53  ;;  %v3294_v48 = vld [vmem:[#allocation7 + $0x1a60] sm:$0xff]  ;;  %v895_v51 = vrot.slane %v18262_v2, %v18173_v32 }
 0x305   :  { %12355 = vmatpush2.bf16.msra.mxu1 %v16030_v58  ;;  %v3298_v58 = vld [vmem:[#allocation7 + $0x1a80] sm:$0xff] }
 0x306   :  { %12356 = vmatprep.subr.bf16.mxu1 %v16023_v4  ;;  %v15998_v4 = vcombine.low %v3306_v27, %v3310_v28  ;;  %v15991_v10 = vcombine.high %v3298_v58, %v3302_v62  ;;  %v15990_v18 = vcombine.low %v3298_v58, %v3302_v62  ;;  %v3282_v27 = vld [vmem:[#allocation7 + $0x1a00] sm:$0xff] }
 0x307   :  { %12398 = vmatpush2.bf16.msra.mxu0 %v16150_v7  ;;  %v3418_v7 = vld [vmem:[#allocation7 + $0x1e40] sm:$0xff] }
 0x308   :  { %12399 = vmatprep.subr.bf16.mxu0 %v16143_v55  ;;  %v16118_v55 = vcombine.low %v3426_v34, %v3430_v53  ;;  %v3286_v28 = vld [vmem:[#allocation7 + $0x1a20] sm:$0xff]  ;;  %v2274_v34 = vadd.f32 %v18297_v31, %v923_v16 }
 0x309   :  { %12357 = vmatpush2.bf16.msra.mxu1 %v16022_v11  ;;  %v3290_v11 = vld [vmem:[#allocation7 + $0x1a40] sm:$0xff]  ;;  %v15975_v58 = vcombine.high %v3282_v27, %v3286_v28  ;;  %v15974_v31 = vcombine.low %v3282_v27, %v3286_v28 }
 0x30a   :  { %12358 = vmatprep.subr.bf16.mxu1 %v16015_v46  ;;  %v903_v46 = vrot.slane %v18262_v2, %v18254_v47  ;;  %v15983_v20 = vcombine.high %v3290_v11, %v3294_v48  ;;  %v15982_v53 = vcombine.low %v3290_v11, %v3294_v48  ;;  %v2149_v2 = vadd.f32 %v18246_v23, %v895_v51  ;;  %v3654_v11 = vld [vmem:[#allocation7 + $0x25a0] sm:$0xff] }
 0x30b   :  { %12400 = vmatpush2.bf16.msra.mxu0 %v16142_v15  ;;  %v16111_v15 = vcombine.high %v3418_v7, %v3422_v57  ;;  %v3646_v27 = vld [vmem:[#allocation7 + $0x2560] sm:$0xff] }
 0x30c   :  { %12401 = vmatprep.subr.bf16.mxu0 %v16135_v36  ;;  %v3410_v36 = vld [vmem:[#allocation7 + $0x1e00] sm:$0xff]  ;;  %v2412_v48 = vmax.f32 %v2149_v2, 0.0 }
 0x30d   :  { %12359 = vmatpush2.bf16.msra.mxu1 %v16014_v50  ;;  %v3414_v50 = vld [vmem:[#allocation7 + $0x1e20] sm:$0xff] }
 0x30e   :  { %12360 = vmatprep.subr.bf16.mxu1 %v16007_v19  ;;  %v915_v19 = vrot.slane %v18327_v61, %v18178_v39  ;;  %v18346_v28 = vpack.c.bf16 %v2412_v48, %v2412_v48  ;;  %v3518_v2 = vld [vmem:[#allocation7 + $0x2160] sm:$0xff] }
 0x30f   :  { %12402 = vmatpush2.bf16.msra.mxu0 %v16134_v25  ;;  %v16110_v25 = vcombine.low %v3418_v7, %v3422_v57  ;;  %v3534_v7 = vld [vmem:[#allocation7 + $0x21e0] sm:$0xff] }
 0x310   :  { %12403 = vmatprep.subr.bf16.mxu0 %v16127_v37  ;;  %v2190_v37 = vadd.f32 %v18285_v38, %v903_v46  ;;  %v2233_v62 = vadd.f32 %v18260_v60, %v915_v19  ;;  %v4050_v46 = vld [vmem:[#allocation8] sm:$0xff] }
 0x311   :  { %12361 = vmatpush2.bf16.msra.mxu1 %v16006_v43  ;;  %v16103_v43 = vcombine.high %v3410_v36, %v3414_v50  ;;  %v3522_v60 = vld [vmem:[#allocation7 + $0x2180] sm:$0xff] }
 0x312   :  { %12362 = vmatprep.subr.bf16.mxu1 %v15999_v54  ;;  %v3658_v54 = vld [vmem:[#allocation7 + $0x25c0] sm:$0xff]  ;;  %v2414_v57 = vmax.f32 %v2190_v37, 0.0 }
 0x313   :  { %12404 = vmatpush2.bf16.msra.mxu0 %v16126_v59  ;;  %v3662_v59 = vld [vmem:[#allocation7 + $0x25e0] sm:$0xff] }
 0x314   :  { %12405 = vmatprep.subr.bf16.mxu0 %v16119_v1  ;;  %v16102_v1 = vcombine.low %v3410_v36, %v3414_v50  ;;  %v16351_v38 = vcombine.high %v3658_v54, %v3662_v59  ;;  %v16350_v16 = vcombine.low %v3658_v54, %v3662_v59  ;;  %v18341_v36 = vpack.c.bf16 %v2414_v57, %v2414_v57  ;;  %v3514_v59 = vld [vmem:[#allocation7 + $0x2140] sm:$0xff] }
 0x315   :  { %12363 = vmatpush2.bf16.msra.mxu1 %v15998_v4  ;;  %v3530_v4 = vld [vmem:[#allocation7 + $0x21c0] sm:$0xff]  ;;  %v4059_v54 = vrot.slane %v4050_v46, %v18178_v39 }
 0x316   :  { %12364 = vmatprep.subr.bf16.mxu1 %v15991_v10  ;;  %v2419_v10 = vmax.f32 %v2274_v34, 0.0  ;;  %v16223_v23 = vcombine.high %v3530_v4, %v3534_v7  ;;  %v16222_v19 = vcombine.low %v3530_v4, %v3534_v7  ;;  %v3634_v57 = vld [vmem:[#allocation7 + $0x2500] sm:$0xff] }
 0x317   :  { %12406 = vmatpush2.bf16.msra.mxu0 %v16118_v55  ;;  %v3650_v55 = vld [vmem:[#allocation7 + $0x2580] sm:$0xff] }
 0x318   :  { %12407 = vmatprep.subr.bf16.mxu0 %v16111_v15  ;;  %v2417_v15 = vmax.f32 %v2233_v62, 0.0  ;;  %v16343_v50 = vcombine.high %v3650_v55, %v3654_v11  ;;  %v18343_v51 = vpack.c.bf16 %v2419_v10, %v2419_v10  ;;  %v3506_v48 = vld [vmem:[#allocation7 + $0x2100] sm:$0xff] }
 0x319   :  { %12365 = vmatpush2.bf16.msra.mxu1 %v15990_v18  ;;  %v3526_v18 = vld [vmem:[#allocation7 + $0x21a0] sm:$0xff] }
 0x31a   :  { %12366 = vmatprep.subr.bf16.mxu1 %v15983_v20  ;;  %v4055_v20 = vrot.slane %v4050_v46, %v18203_v30  ;;  %v18349_v34 = vpack.c.bf16 %v2417_v15, %v2417_v15  ;;  %v16214_v7 = vcombine.low %v3522_v60, %v3526_v18  ;;  %v3510_v46 = vld [vmem:[#allocation7 + $0x2120] sm:$0xff] }
 0x31b   :  { %12408 = vmatpush2.bf16.msra.mxu0 %v16110_v25  ;;  %v3642_v25 = vld [vmem:[#allocation7 + $0x2540] sm:$0xff] }
 0x31c   :  { %12409 = vmatprep.subr.bf16.mxu0 %v16103_v43  ;;  %v16215_v43 = vcombine.high %v3522_v60, %v3526_v18  ;;  %v3626_v60 = vld [vmem:[#allocation7 + $0x24c0] sm:$0xff] }
 0x31d   :  { %12367 = vmatpush2.bf16.msra.mxu1 %v15982_v53  ;;  %v16342_v53 = vcombine.low %v3650_v55, %v3654_v11  ;;  %v16207_v55 = vcombine.high %v3514_v59, %v3518_v2  ;;  %v16334_v11 = vcombine.low %v3642_v25, %v3646_v27  ;;  %v3630_v18 = vld [vmem:[#allocation7 + $0x24e0] sm:$0xff] }
 0x31e   :  { %12368 = vmatprep.subr.bf16.mxu1 %v15975_v58 }
 0x31f   :  { %12410 = vmatpush2.bf16.msra.mxu0 %v16102_v1  ;;  %v16335_v1 = vcombine.high %v3642_v25, %v3646_v27  ;;  %v3498_v25 = vld [vmem:[#allocation7 + $0x20c0] sm:$0xff] }
 0x320   :  { %12461 = vmatprep.subr.bf16.mxu0 %v16351_v38  ;;  %v3638_v38 = vld [vmem:[#allocation7 + $0x2520] sm:$0xff] }
 0x321   :  { %12369 = vmatpush2.bf16.msra.mxu1 %v15974_v31  ;;  %v3502_v27 = vld [vmem:[#allocation7 + $0x20e0] sm:$0xff] }
 0x322   :  { %12412 = vmatmul.mubr.bf16.vlgmr.msra.gmra.mxu0 %v18341_v36  ;;  %v12167_v37 = vpop.f32.mrf.mxu0  ;;  %12420 = vmatprep.subr.bf16.mxu1 %v16223_v23 }
 0x323   :  { %12462 = vmatpush1.bf16.msra.mxu0 %v16350_v16  ;;  %12493 = vmatprep.mubr.bf16.mxu0 %v18343_v51 }
 0x324   :  { %v12126_v58 = vpop.f32.mrf.mxu1  ;;  %v12169_v62 = vpop.f32.mrf.mxu0  ;;  %12371 = vmatmul.mubr.bf16.vlgmr.msra.gmra.mxu1 %v18346_v28  ;;  %12463 = vmatprep.subr.bf16.mxu0 %v16343_v50  ;;  %v16327_v50 = vcombine.high %v3634_v57, %v3638_v38 }
 0x325   :  { %v12127_v4 = vadd.f32 %v12126_v58, %v4055_v20  ;;  %12421 = vmatpush1.bf16.msra.mxu1 %v16222_v19  ;;  %12452 = vmatprep.mubr.bf16.mxu1 %v18349_v34  ;;  %v16206_v20 = vcombine.low %v3514_v59, %v3518_v2  ;;  %v16318_v59 = vcombine.low %v3626_v60, %v3630_v18  ;;  %v3490_v2 = vld [vmem:[#allocation7 + $0x2080] sm:$0xff] }
 0x326   :  { %v12128_v10 = vpop.f32.mrf.mxu1  ;;  %v12171_v31 = vpop.f32.mrf.mxu0  ;;  %12422 = vmatprep.subr.bf16.mxu1 %v16215_v43  ;;  %v16199_v43 = vcombine.high %v3506_v48, %v3510_v46 }
 0x327   :  { %v12129_v39 = vadd.f32 %v12128_v10, %v4059_v54  ;;  %12464 = vmatpush1.bf16.msra.mxu0 %v16342_v53  ;;  %v18355_v23 = vadd.f32 %v12167_v37, %v12127_v4  ;;  %v16326_v53 = vcombine.low %v3634_v57, %v3638_v38  ;;  %v16319_v37 = vcombine.high %v3626_v60, %v3630_v18  ;;  %v3618_v4 = vld [vmem:[#allocation7 + $0x2480] sm:$0xff] }
 0x328   :  { %v12130_v15 = vpop.f32.mrf.mxu1  ;;  %v12172_v16 = vpop.f32.mrf.mxu0  ;;  %12465 = vmatprep.subr.bf16.mxu0 %v16335_v1  ;;  %v16198_v54 = vcombine.low %v3506_v48, %v3510_v46  ;;  %v3622_v1 = vld [vmem:[#allocation7 + $0x24a0] sm:$0xff]  ;;  %v16190_v31 = vcombine.low %v3498_v25, %v3502_v27 }
 0x329   :  { %12423 = vmatpush1.bf16.msra.mxu1 %v16214_v7  ;;  %v18357_v19 = vadd.f32 %v12169_v62, %v12129_v39  ;;  %v16191_v7 = vcombine.high %v3498_v25, %v3502_v27  ;;  %v3494_v62 = vld [vmem:[#allocation7 + $0x20a0] sm:$0xff]  ;;  %v16311_v10 = vcombine.high %v3618_v4, %v3622_v1  ;;  %v16310_v39 = vcombine.low %v3618_v4, %v3622_v1 }
 0x32a   :  { %v12131_v58 = vpop.f32.mrf.mxu1  ;;  %12424 = vmatprep.subr.bf16.mxu1 %v16207_v55  ;;  %v3610_v55 = vld [vmem:[#allocation7 + $0x2440] sm:$0xff]  ;;  %v16183_v38 = vcombine.high %v3490_v2, %v3494_v62  ;;  %v16182_v15 = vcombine.low %v3490_v2, %v3494_v62 }
 0x32b   :  { %12466 = vmatpush1.bf16.msra.mxu0 %v16334_v11  ;;  %v3614_v57 = vld [vmem:[#allocation7 + $0x2460] sm:$0xff] }
 0x32c   :  { %12467 = vmatprep.subr.bf16.mxu0 %v16327_v50  ;;  %v3482_v11 = vld [vmem:[#allocation7 + $0x2040] sm:$0xff]  ;;  %v16303_v46 = vcombine.high %v3610_v55, %v3614_v57  ;;  %v16302_v60 = vcombine.low %v3610_v55, %v3614_v57 }
 0x32d   :  { %12425 = vmatpush1.bf16.msra.mxu1 %v16206_v20  ;;  %v3486_v48 = vld [vmem:[#allocation7 + $0x2060] sm:$0xff] }
 0x32e   :  { %12426 = vmatprep.subr.bf16.mxu1 %v16199_v43  ;;  %v3602_v16 = vld [vmem:[#allocation7 + $0x2400] sm:$0xff]  ;;  %v16175_v20 = vcombine.high %v3482_v11, %v3486_v48 }
 0x32f   :  { %12468 = vmatpush1.bf16.msra.mxu0 %v16326_v53  ;;  %v3606_v50 = vld [vmem:[#allocation7 + $0x2420] sm:$0xff]  ;;  %v16174_v53 = vcombine.low %v3482_v11, %v3486_v48 }
 0x330   :  { %12469 = vmatprep.subr.bf16.mxu0 %v16319_v37  ;;  %v3474_v18 = vld [vmem:[#allocation7 + $0x2000] sm:$0xff]  ;;  %v16295_v43 = vcombine.high %v3602_v16, %v3606_v50 }
 0x331   :  { %12427 = vmatpush1.bf16.msra.mxu1 %v16198_v54  ;;  %v3478_v58 = vld [vmem:[#allocation7 + $0x2020] sm:$0xff]  ;;  %v16294_v54 = vcombine.low %v3602_v16, %v3606_v50 }
 0x332   :  { %12428 = vmatprep.subr.bf16.mxu1 %v16191_v7  ;;  %v3722_v25 = vld [vmem:[#allocation7 + $0x27c0] sm:$0xff]  ;;  %v16167_v37 = vcombine.high %v3474_v18, %v3478_v58 }
 0x333   :  { %12470 = vmatpush1.bf16.msra.mxu0 %v16318_v59  ;;  %v3726_v27 = vld [vmem:[#allocation7 + $0x27e0] sm:$0xff]  ;;  %v16166_v59 = vcombine.low %v3474_v18, %v3478_v58 }
 0x334   :  { %12471 = vmatprep.subr.bf16.mxu0 %v16311_v10  ;;  %v3594_v4 = vld [vmem:[#allocation7 + $0x23c0] sm:$0xff]  ;;  %v16415_v7 = vcombine.high %v3722_v25, %v3726_v27 }
 0x335   :  { %12429 = vmatpush1.bf16.msra.mxu1 %v16190_v31  ;;  %v3598_v1 = vld [vmem:[#allocation7 + $0x23e0] sm:$0xff]  ;;  %v16414_v31 = vcombine.low %v3722_v25, %v3726_v27 }
 0x336   :  { %12430 = vmatprep.subr.bf16.mxu1 %v16183_v38  ;;  %v3714_v2 = vld [vmem:[#allocation7 + $0x2780] sm:$0xff]  ;;  %v16287_v10 = vcombine.high %v3594_v4, %v3598_v1 }
 0x337   :  { %12472 = vmatpush1.bf16.msra.mxu0 %v16310_v39  ;;  %v3718_v62 = vld [vmem:[#allocation7 + $0x27a0] sm:$0xff]  ;;  %v16286_v39 = vcombine.low %v3594_v4, %v3598_v1 }
 0x338   :  { %12473 = vmatprep.subr.bf16.mxu0 %v16303_v46  ;;  %v3586_v55 = vld [vmem:[#allocation7 + $0x2380] sm:$0xff]  ;;  %v16407_v38 = vcombine.high %v3714_v2, %v3718_v62 }
 0x339   :  { %12431 = vmatpush1.bf16.msra.mxu1 %v16182_v15  ;;  %v3590_v57 = vld [vmem:[#allocation7 + $0x23a0] sm:$0xff]  ;;  %v16406_v15 = vcombine.low %v3714_v2, %v3718_v62 }
 0x33a   :  { %12432 = vmatprep.subr.bf16.mxu1 %v16175_v20  ;;  %v3706_v11 = vld [vmem:[#allocation7 + $0x2740] sm:$0xff]  ;;  %v16279_v46 = vcombine.high %v3586_v55, %v3590_v57 }
 0x33b   :  { %12474 = vmatpush1.bf16.msra.mxu0 %v16302_v60  ;;  %v3710_v48 = vld [vmem:[#allocation7 + $0x2760] sm:$0xff]  ;;  %v16278_v60 = vcombine.low %v3586_v55, %v3590_v57 }
 0x33c   :  { %12475 = vmatprep.subr.bf16.mxu0 %v16295_v43  ;;  %v3578_v16 = vld [vmem:[#allocation7 + $0x2340] sm:$0xff]  ;;  %v16399_v20 = vcombine.high %v3706_v11, %v3710_v48 }
 0x33d   :  { %12433 = vmatpush1.bf16.msra.mxu1 %v16174_v53  ;;  %v3582_v50 = vld [vmem:[#allocation7 + $0x2360] sm:$0xff]  ;;  %v16398_v53 = vcombine.low %v3706_v11, %v3710_v48 }
 0x33e   :  { %12434 = vmatprep.subr.bf16.mxu1 %v16167_v37  ;;  %v3698_v18 = vld [vmem:[#allocation7 + $0x2700] sm:$0xff]  ;;  %v16271_v43 = vcombine.high %v3578_v16, %v3582_v50 }
 0x33f   :  { %12476 = vmatpush1.bf16.msra.mxu0 %v16294_v54  ;;  %v3702_v58 = vld [vmem:[#allocation7 + $0x2720] sm:$0xff]  ;;  %v16270_v54 = vcombine.low %v3578_v16, %v3582_v50 }
 0x340   :  { %12477 = vmatprep.subr.bf16.mxu0 %v16415_v7  ;;  %v3570_v25 = vld [vmem:[#allocation7 + $0x2300] sm:$0xff]  ;;  %v16391_v37 = vcombine.high %v3698_v18, %v3702_v58 }
 0x341   :  { %12435 = vmatpush1.bf16.msra.mxu1 %v16166_v59  ;;  %v3574_v27 = vld [vmem:[#allocation7 + $0x2320] sm:$0xff]  ;;  %v16390_v59 = vcombine.low %v3698_v18, %v3702_v58 }
 0x342   :  { %12436 = vmatprep.subr.bf16.mxu1 %v16287_v10  ;;  %v3690_v4 = vld [vmem:[#allocation7 + $0x26c0] sm:$0xff]  ;;  %v16263_v7 = vcombine.high %v3570_v25, %v3574_v27 }
 0x343   :  { %12478 = vmatpush2.bf16.msra.mxu0 %v16414_v31  ;;  %v3694_v1 = vld [vmem:[#allocation7 + $0x26e0] sm:$0xff]  ;;  %v16262_v31 = vcombine.low %v3570_v25, %v3574_v27  ;;  %v939_v25 = vrot.slane %v18327_v61, %v18240_v63 }
 0x344   :  { %12479 = vmatprep.subr.bf16.mxu0 %v16407_v38  ;;  %v3562_v2 = vld [vmem:[#allocation7 + $0x22c0] sm:$0xff]  ;;  %v16383_v10 = vcombine.high %v3690_v4, %v3694_v1 }
 0x345   :  { %12437 = vmatpush2.bf16.msra.mxu1 %v16286_v39  ;;  %v3566_v62 = vld [vmem:[#allocation7 + $0x22e0] sm:$0xff]  ;;  %v16382_v39 = vcombine.low %v3690_v4, %v3694_v1  ;;  %v911_v4 = vrot.slane %v18327_v61, %v18203_v30 }
 0x346   :  { %12438 = vmatprep.subr.bf16.mxu1 %v16279_v46  ;;  %v3682_v55 = vld [vmem:[#allocation7 + $0x2680] sm:$0xff]  ;;  %v16255_v38 = vcombine.high %v3562_v2, %v3566_v62 }
 0x347   :  { %12480 = vmatpush2.bf16.msra.mxu0 %v16406_v15  ;;  %v3686_v57 = vld [vmem:[#allocation7 + $0x26a0] sm:$0xff]  ;;  %v16254_v15 = vcombine.low %v3562_v2, %v3566_v62  ;;  %v2231_v30 = vadd.f32 %v18258_v49, %v911_v4 }
 0x348   :  { %12481 = vmatprep.subr.bf16.mxu0 %v16399_v20  ;;  %v3554_v11 = vld [vmem:[#allocation7 + $0x2280] sm:$0xff]  ;;  %v16375_v46 = vcombine.high %v3682_v55, %v3686_v57 }
 0x349   :  { %12439 = vmatpush2.bf16.msra.mxu1 %v16278_v60  ;;  %v3558_v48 = vld [vmem:[#allocation7 + $0x22a0] sm:$0xff]  ;;  %v16374_v60 = vcombine.low %v3682_v55, %v3686_v57  ;;  %v2356_v55 = vadd.f32 %v18325_v3, %v939_v25 }
 0x34a   :  { %12440 = vmatprep.subr.bf16.mxu1 %v16271_v43  ;;  %v3674_v16 = vld [vmem:[#allocation7 + $0x2640] sm:$0xff]  ;;  %v16247_v20 = vcombine.high %v3554_v11, %v3558_v48  ;;  %v919_v43 = vrot.slane %v18327_v61, %v18200_v29  ;;  %v16246_v27 = vcombine.low %v3554_v11, %v3558_v48 }
 0x34b   :  { %12482 = vmatpush2.bf16.msra.mxu0 %v16398_v53  ;;  %v3678_v50 = vld [vmem:[#allocation7 + $0x2660] sm:$0xff] }
 0x34c   :  { %12483 = vmatprep.subr.bf16.mxu0 %v16391_v37  ;;  %v3546_v18 = vld [vmem:[#allocation7 + $0x2240] sm:$0xff]  ;;  %v16367_v53 = vcombine.high %v3674_v16, %v3678_v50 }
 0x34d   :  { %12441 = vmatpush2.bf16.msra.mxu1 %v16270_v54  ;;  %v3550_v58 = vld [vmem:[#allocation7 + $0x2260] sm:$0xff] }
 0x34e   :  { %12442 = vmatprep.subr.bf16.mxu1 %v16263_v7  ;;  %v3666_v37 = vld [vmem:[#allocation7 + $0x2600] sm:$0xff]  ;;  %v16239_v1 = vcombine.high %v3546_v18, %v3550_v58  ;;  %v931_v7 = vrot.slane %v18327_v61, %v18206_v33  ;;  %v16238_v57 = vcombine.low %v3546_v18, %v3550_v58  ;;  %v2416_v58 = vmax.f32 %v2231_v30, 0.0 }
 0x34f   :  { %12484 = vmatpush2.bf16.msra.mxu0 %v16390_v59  ;;  %v3670_v54 = vld [vmem:[#allocation7 + $0x2620] sm:$0xff]  ;;  %v16366_v59 = vcombine.low %v3674_v16, %v3678_v50 }
 0x350   :  { %12485 = vmatprep.subr.bf16.mxu0 %v16383_v10  ;;  %v3538_v2 = vld [vmem:[#allocation7 + $0x2200] sm:$0xff]  ;;  %v2272_v10 = vadd.f32 %v18293_v5, %v919_v43  ;;  %v2315_v48 = vadd.f32 %v18291_v52, %v931_v7 }
 0x351   :  { %12443 = vmatpush2.bf16.msra.mxu1 %v16262_v31  ;;  %v3542_v62 = vld [vmem:[#allocation7 + $0x2220] sm:$0xff]  ;;  %v16359_v31 = vcombine.high %v3666_v37, %v3670_v54 }
 0x352   :  { %12444 = vmatprep.subr.bf16.mxu1 %v16255_v38  ;;  %v3914_v38 = vld [vmem:[#allocation7 + $0x2dc0] sm:$0xff]  ;;  %v16231_v11 = vcombine.high %v3538_v2, %v3542_v62  ;;  %v2418_v50 = vmax.f32 %v2272_v10, 0.0  ;;  %v16230_v3 = vcombine.low %v3538_v2, %v3542_v62  ;;  %v2421_v49 = vmax.f32 %v2315_v48, 0.0 }
 0x353   :  { %12486 = vmatpush2.bf16.msra.mxu0 %v16382_v39  ;;  %v3918_v39 = vld [vmem:[#allocation7 + $0x2de0] sm:$0xff] }
 0x354   :  { %12487 = vmatprep.subr.bf16.mxu0 %v16375_v46  ;;  %v16358_v46 = vcombine.low %v3666_v37, %v3670_v54  ;;  %v3790_v16 = vld [vmem:[#allocation7 + $0x29e0] sm:$0xff]  ;;  %v16607_v5 = vcombine.high %v3914_v38, %v3918_v39  ;;  %v18378_v10 = vpack.c.bf16 %v2421_v49, %v2421_v49 }
 0x355   :  { %12445 = vmatpush2.bf16.msra.mxu1 %v16254_v15  ;;  %v3786_v15 = vld [vmem:[#allocation7 + $0x29c0] sm:$0xff] }
 0x356   :  { %12446 = vmatprep.subr.bf16.mxu1 %v16247_v20  ;;  %v2423_v20 = vmax.f32 %v2356_v55, 0.0  ;;  %v3910_v18 = vld [vmem:[#allocation7 + $0x2da0] sm:$0xff]  ;;  %v16479_v43 = vcombine.high %v3786_v15, %v3790_v16  ;;  %v16478_v4 = vcombine.low %v3786_v15, %v3790_v16 }
 0x357   :  { %12488 = vmatpush2.bf16.msra.mxu0 %v16374_v60  ;;  %v3906_v60 = vld [vmem:[#allocation7 + $0x2d80] sm:$0xff] }
 0x358   :  { %12489 = vmatprep.subr.bf16.mxu0 %v16367_v53  ;;  %v16606_v53 = vcombine.low %v3914_v38, %v3918_v39  ;;  %v3778_v25 = vld [vmem:[#allocation7 + $0x2980] sm:$0xff]  ;;  %v16599_v37 = vcombine.high %v3906_v60, %v3910_v18  ;;  %v18373_v54 = vpack.c.bf16 %v2423_v20, %v2423_v20 }
 0x359   :  { %12447 = vmatpush2.bf16.msra.mxu1 %v16246_v27  ;;  %v3782_v52 = vld [vmem:[#allocation7 + $0x29a0] sm:$0xff]  ;;  %v18371_v27 = vpack.c.bf16 %v2418_v50, %v2418_v50 }
 0x35a   :  { %12448 = vmatprep.subr.bf16.mxu1 %v16239_v1  ;;  %v3898_v1 = vld [vmem:[#allocation7 + $0x2d40] sm:$0xff]  ;;  %v16471_v62 = vcombine.high %v3778_v25, %v3782_v52  ;;  %v16470_v48 = vcombine.low %v3778_v25, %v3782_v52 }
 0x35b   :  { %12490 = vmatpush2.bf16.msra.mxu0 %v16366_v59  ;;  %v3902_v7 = vld [vmem:[#allocation7 + $0x2d60] sm:$0xff]  ;;  %v18375_v59 = vpack.c.bf16 %v2416_v58, %v2416_v58 }
 0x35c   :  { %12491 = vmatprep.subr.bf16.mxu0 %v16359_v31  ;;  %v16598_v31 = vcombine.low %v3906_v60, %v3910_v18  ;;  %v3770_v55 = vld [vmem:[#allocation7 + $0x2940] sm:$0xff]  ;;  %v16591_v30 = vcombine.high %v3898_v1, %v3902_v7 }
 0x35d   :  { %12449 = vmatpush2.bf16.msra.mxu1 %v16238_v57  ;;  %v3774_v57 = vld [vmem:[#allocation7 + $0x2960] sm:$0xff] }
 0x35e   :  { %12450 = vmatprep.subr.bf16.mxu1 %v16231_v11  ;;  %v3894_v15 = vld [vmem:[#allocation7 + $0x2d20] sm:$0xff] }
 0x35f   :  { %12492 = vmatpush2.bf16.msra.mxu0 %v16358_v46  ;;  %v3890_v46 = vld [vmem:[#allocation7 + $0x2d00] sm:$0xff] }
 0x360   :  { %12543 = vmatprep.subr.bf16.mxu0 %v16607_v5  ;;  %v16463_v5 = vcombine.high %v3770_v55, %v3774_v57  ;;  %v3762_v60 = vld [vmem:[#allocation7 + $0x2900] sm:$0xff]  ;;  %v16583_v49 = vcombine.high %v3890_v46, %v3894_v15 }
 0x361   :  { %12451 = vmatpush2.bf16.msra.mxu1 %v16230_v3  ;;  %v16590_v3 = vcombine.low %v3898_v1, %v3902_v7  ;;  %v3766_v18 = vld [vmem:[#allocation7 + $0x2920] sm:$0xff] }
 0x362   :  { %v12249_v2 = vpop.f32.mrf.mxu0  ;;  %12494 = vmatmul.mubr.bf16.vlgmr.msra.gmra.mxu0 %v18371_v27  ;;  %12502 = vmatprep.subr.bf16.mxu1 %v16479_v43  ;;  %v3882_v25 = vld [vmem:[#allocation7 + $0x2cc0] sm:$0xff] }
 0x363   :  { %12544 = vmatpush1.bf16.msra.mxu0 %v16606_v53  ;;  %12575 = vmatprep.mubr.bf16.mxu0 %v18373_v54  ;;  %v16462_v53 = vcombine.low %v3770_v55, %v3774_v57  ;;  %v3886_v52 = vld [vmem:[#allocation7 + $0x2ce0] sm:$0xff] }
 0x364   :  { %v12251_v38 = vpop.f32.mrf.mxu0  ;;  %v12208_v39 = vpop.f32.mrf.mxu1  ;;  %12453 = vmatmul.mubr.bf16.vlgmr.msra.gmra.mxu1 %v18375_v59  ;;  %12545 = vmatprep.subr.bf16.mxu0 %v16599_v37  ;;  %v3754_v1 = vld [vmem:[#allocation7 + $0x28c0] sm:$0xff]  ;;  %v16574_v55 = vcombine.low %v3882_v25, %v3886_v52 }
 0x365   :  { %v12209_v11 = vadd.f32 %v12208_v39, %v18355_v23  ;;  %12503 = vmatpush1.bf16.msra.mxu1 %v16478_v4  ;;  %12534 = vmatprep.mubr.bf16.mxu1 %v18378_v10  ;;  %v3758_v7 = vld [vmem:[#allocation7 + $0x28e0] sm:$0xff] }
 0x366   :  { %v12253_v16 = vpop.f32.mrf.mxu0  ;;  %v12210_v50 = vpop.f32.mrf.mxu1  ;;  %12504 = vmatprep.subr.bf16.mxu1 %v16471_v62  ;;  %v16455_v62 = vcombine.high %v3762_v60, %v3766_v18  ;;  %v3874_v39 = vld [vmem:[#allocation7 + $0x2c80] sm:$0xff] }
 0x367   :  { %v12211_v20 = vadd.f32 %v12210_v50, %v18357_v19  ;;  %12546 = vmatpush1.bf16.msra.mxu0 %v16598_v31  ;;  %v18385_v58 = vadd.f32 %v12249_v2, %v12209_v11  ;;  %v16582_v19 = vcombine.low %v3890_v46, %v3894_v15  ;;  %v16575_v2 = vcombine.high %v3882_v25, %v3886_v52  ;;  %v3746_v57 = vld [vmem:[#allocation7 + $0x2880] sm:$0xff] }
 0x368   :  { %v12254_v43 = vpop.f32.mrf.mxu0  ;;  %v12212_v23 = vpop.f32.mrf.mxu1  ;;  %12547 = vmatprep.subr.bf16.mxu0 %v16591_v30  ;;  %v16454_v31 = vcombine.low %v3762_v60, %v3766_v18  ;;  %v3878_v30 = vld [vmem:[#allocation7 + $0x2ca0] sm:$0xff]  ;;  %v16447_v11 = vcombine.high %v3754_v1, %v3758_v7  ;;  %v16446_v16 = vcombine.low %v3754_v1, %v3758_v7 }
 0x369   :  { %12505 = vmatpush1.bf16.msra.mxu1 %v16470_v48  ;;  %v18387_v37 = vadd.f32 %v12251_v38, %v12211_v20  ;;  %v3750_v38 = vld [vmem:[#allocation7 + $0x28a0] sm:$0xff]  ;;  %v16567_v48 = vcombine.high %v3874_v39, %v3878_v30 }
 0x36a   :  { %v12213_v4 = vpop.f32.mrf.mxu1  ;;  %12506 = vmatprep.subr.bf16.mxu1 %v16463_v5  ;;  %v3866_v50 = vld [vmem:[#allocation7 + $0x2c40] sm:$0xff]  ;;  %v16439_v15 = vcombine.high %v3746_v57, %v3750_v38  ;;  %v16566_v5 = vcombine.low %v3874_v39, %v3878_v30  ;;  %v16438_v18 = vcombine.low %v3746_v57, %v3750_v38 }
 0x36b   :  { %12548 = vmatpush1.bf16.msra.mxu0 %v16590_v3  ;;  %v3870_v46 = vld [vmem:[#allocation7 + $0x2c60] sm:$0xff] }
 0x36c   :  { %12549 = vmatprep.subr.bf16.mxu0 %v16583_v49  ;;  %v3738_v20 = vld [vmem:[#allocation7 + $0x2840] sm:$0xff]  ;;  %v16559_v60 = vcombine.high %v3866_v50, %v3870_v46 }
 0x36d   :  { %12507 = vmatpush1.bf16.msra.mxu1 %v16462_v53  ;;  %v3742_v3 = vld [vmem:[#allocation7 + $0x2860] sm:$0xff]  ;;  %v16558_v53 = vcombine.low %v3866_v50, %v3870_v46 }
 0x36e   :  { %12508 = vmatprep.subr.bf16.mxu1 %v16455_v62  ;;  %v3858_v43 = vld [vmem:[#allocation7 + $0x2c00] sm:$0xff]  ;;  %v16431_v49 = vcombine.high %v3738_v20, %v3742_v3  ;;  %v16430_v62 = vcombine.low %v3738_v20, %v3742_v3 }
 0x36f   :  { %12550 = vmatpush1.bf16.msra.mxu0 %v16582_v19  ;;  %v3862_v23 = vld [vmem:[#allocation7 + $0x2c20] sm:$0xff] }
 0x370   :  { %12551 = vmatprep.subr.bf16.mxu0 %v16575_v2  ;;  %v3730_v25 = vld [vmem:[#allocation7 + $0x2800] sm:$0xff]  ;;  %v16551_v4 = vcombine.high %v3858_v43, %v3862_v23  ;;  %v16550_v2 = vcombine.low %v3858_v43, %v3862_v23 }
 0x371   :  { %12509 = vmatpush1.bf16.msra.mxu1 %v16454_v31  ;;  %v3734_v52 = vld [vmem:[#allocation7 + $0x2820] sm:$0xff] }
 0x372   :  { %12510 = vmatprep.subr.bf16.mxu1 %v16447_v11  ;;  %v3978_v19 = vld [vmem:[#allocation7 + $0x2fc0] sm:$0xff]  ;;  %v16423_v7 = vcombine.high %v3730_v25, %v3734_v52  ;;  %v16422_v11 = vcombine.low %v3730_v25, %v3734_v52 }
 0x373   :  { %12552 = vmatpush1.bf16.msra.mxu0 %v16574_v55  ;;  %v3982_v1 = vld [vmem:[#allocation7 + $0x2fe0] sm:$0xff] }
 0x374   :  { %12553 = vmatprep.subr.bf16.mxu0 %v16567_v48  ;;  %v3850_v31 = vld [vmem:[#allocation7 + $0x2bc0] sm:$0xff]  ;;  %v16671_v30 = vcombine.high %v3978_v19, %v3982_v1  ;;  %v16670_v48 = vcombine.low %v3978_v19, %v3982_v1 }
 0x375   :  { %12511 = vmatpush1.bf16.msra.mxu1 %v16446_v16  ;;  %v3854_v39 = vld [vmem:[#allocation7 + $0x2be0] sm:$0xff] }
 0x376   :  { %12512 = vmatprep.subr.bf16.mxu1 %v16439_v15  ;;  %v3970_v55 = vld [vmem:[#allocation7 + $0x2f80] sm:$0xff]  ;;  %v16543_v38 = vcombine.high %v3850_v31, %v3854_v39  ;;  %v16542_v15 = vcombine.low %v3850_v31, %v3854_v39 }
 0x377   :  { %12554 = vmatpush1.bf16.msra.mxu0 %v16566_v5  ;;  %v3974_v57 = vld [vmem:[#allocation7 + $0x2fa0] sm:$0xff] }
 0x378   :  { %12555 = vmatprep.subr.bf16.mxu0 %v16559_v60  ;;  %v3842_v16 = vld [vmem:[#allocation7 + $0x2b80] sm:$0xff]  ;;  %v16663_v46 = vcombine.high %v3970_v55, %v3974_v57  ;;  %v16662_v60 = vcombine.low %v3970_v55, %v3974_v57 }
 0x379   :  { %12513 = vmatpush1.bf16.msra.mxu1 %v16438_v18  ;;  %v3846_v50 = vld [vmem:[#allocation7 + $0x2ba0] sm:$0xff] }
 0x37a   :  { %12514 = vmatprep.subr.bf16.mxu1 %v16431_v49  ;;  %v3962_v5 = vld [vmem:[#allocation7 + $0x2f40] sm:$0xff]  ;;  %v16535_v3 = vcombine.high %v3842_v16, %v3846_v50  ;;  %v16534_v49 = vcombine.low %v3842_v16, %v3846_v50 }
 0x37b   :  { %12556 = vmatpush1.bf16.msra.mxu0 %v16558_v53  ;;  %v3966_v20 = vld [vmem:[#allocation7 + $0x2f60] sm:$0xff] }
 0x37c   :  { %12557 = vmatprep.subr.bf16.mxu0 %v16551_v4  ;;  %v3834_v18 = vld [vmem:[#allocation7 + $0x2b40] sm:$0xff]  ;;  %v16655_v23 = vcombine.high %v3962_v5, %v3966_v20  ;;  %v16654_v4 = vcombine.low %v3962_v5, %v3966_v20 }
 0x37d   :  { %12515 = vmatpush1.bf16.msra.mxu1 %v16430_v62  ;;  %v3838_v43 = vld [vmem:[#allocation7 + $0x2b60] sm:$0xff] }
 0x37e   :  { %12516 = vmatprep.subr.bf16.mxu1 %v16423_v7  ;;  %v3954_v53 = vld [vmem:[#allocation7 + $0x2f00] sm:$0xff]  ;;  %v16527_v52 = vcombine.high %v3834_v18, %v3838_v43  ;;  %v16526_v7 = vcombine.low %v3834_v18, %v3838_v43 }
 0x37f   :  { %12558 = vmatpush1.bf16.msra.mxu0 %v16550_v2  ;;  %v3958_v25 = vld [vmem:[#allocation7 + $0x2f20] sm:$0xff] }
 0x380   :  { %12559 = vmatprep.subr.bf16.mxu0 %v16671_v30  ;;  %v3826_v62 = vld [vmem:[#allocation7 + $0x2b00] sm:$0xff]  ;;  %v16647_v1 = vcombine.high %v3954_v53, %v3958_v25  ;;  %v16646_v30 = vcombine.low %v3954_v53, %v3958_v25  ;;  %v935_v25 = vrot.slane %v18327_v61, %v18254_v47 }
 0x381   :  { %12517 = vmatpush1.bf16.msra.mxu1 %v16422_v11  ;;  %v3830_v19 = vld [vmem:[#allocation7 + $0x2b20] sm:$0xff] }
 0x382   :  { %12518 = vmatprep.subr.bf16.mxu1 %v16543_v38  ;;  %v3946_v2 = vld [vmem:[#allocation7 + $0x2ec0] sm:$0xff]  ;;  %v16519_v39 = vcombine.high %v3826_v62, %v3830_v19  ;;  %v16518_v38 = vcombine.low %v3826_v62, %v3830_v19 }
 0x383   :  { %12560 = vmatpush2.bf16.msra.mxu0 %v16670_v48  ;;  %v3950_v31 = vld [vmem:[#allocation7 + $0x2ee0] sm:$0xff] }
 0x384   :  { %12561 = vmatprep.subr.bf16.mxu0 %v16663_v46  ;;  %v3818_v11 = vld [vmem:[#allocation7 + $0x2ac0] sm:$0xff]  ;;  %v16639_v57 = vcombine.high %v3946_v2, %v3950_v31  ;;  %v16638_v46 = vcombine.low %v3946_v2, %v3950_v31 }
 0x385   :  { %12519 = vmatpush2.bf16.msra.mxu1 %v16542_v15  ;;  %v3822_v55 = vld [vmem:[#allocation7 + $0x2ae0] sm:$0xff] }
 0x386   :  { %12520 = vmatprep.subr.bf16.mxu1 %v16535_v3  ;;  %v3938_v48 = vld [vmem:[#allocation7 + $0x2e80] sm:$0xff]  ;;  %v16511_v50 = vcombine.high %v3818_v11, %v3822_v55  ;;  %v16510_v3 = vcombine.low %v3818_v11, %v3822_v55 }
 0x387   :  { %12562 = vmatpush2.bf16.msra.mxu0 %v16662_v60  ;;  %v3942_v16 = vld [vmem:[#allocation7 + $0x2ea0] sm:$0xff] }
 0x388   :  { %12563 = vmatprep.subr.bf16.mxu0 %v16655_v23  ;;  %v3810_v15 = vld [vmem:[#allocation7 + $0x2a80] sm:$0xff]  ;;  %v16631_v20 = vcombine.high %v3938_v48, %v3942_v16  ;;  %v16630_v23 = vcombine.low %v3938_v48, %v3942_v16 }
 0x389   :  { %12521 = vmatpush2.bf16.msra.mxu1 %v16534_v49  ;;  %v3814_v5 = vld [vmem:[#allocation7 + $0x2aa0] sm:$0xff] }
 0x38a   :  { %12522 = vmatprep.subr.bf16.mxu1 %v16527_v52  ;;  %v3930_v60 = vld [vmem:[#allocation7 + $0x2e40] sm:$0xff]  ;;  %v16503_v43 = vcombine.high %v3810_v15, %v3814_v5 }
 0x38b   :  { %12564 = vmatpush2.bf16.msra.mxu0 %v16654_v4  ;;  %v3934_v18 = vld [vmem:[#allocation7 + $0x2e60] sm:$0xff]  ;;  %v16502_v4 = vcombine.low %v3810_v15, %v3814_v5 }
 0x38c   :  { %12565 = vmatprep.subr.bf16.mxu0 %v16647_v1  ;;  %v3802_v49 = vld [vmem:[#allocation7 + $0x2a40] sm:$0xff]  ;;  %v16623_v52 = vcombine.high %v3930_v60, %v3934_v18  ;;  %v927_v1 = vrot.slane %v18327_v61, %v18173_v32  ;;  %v16622_v2 = vcombine.low %v3930_v60, %v3934_v18 }
 0x38d   :  { %12523 = vmatpush2.bf16.msra.mxu1 %v16526_v7  ;;  %v3806_v53 = vld [vmem:[#allocation7 + $0x2a60] sm:$0xff] }
 0x38e   :  { %12524 = vmatprep.subr.bf16.mxu1 %v16519_v39  ;;  %v3922_v62 = vld [vmem:[#allocation7 + $0x2e00] sm:$0xff]  ;;  %v16495_v7 = vcombine.high %v3802_v49, %v3806_v53  ;;  %v16494_v55 = vcombine.low %v3802_v49, %v3806_v53  ;;  %v2313_v48 = vadd.f32 %v18287_v40, %v927_v1 }
 0x38f   :  { %12566 = vmatpush2.bf16.msra.mxu0 %v16646_v30  ;;  %v3926_v19 = vld [vmem:[#allocation7 + $0x2e20] sm:$0xff]  ;;  %v2354_v30 = vadd.f32 %v18321_v56, %v935_v25  ;;  %v2499_v56 = vld [vmem:[#allocation7 + $0x188] sm:$0xff] }
 0x390   :  { %12567 = vmatprep.subr.bf16.mxu0 %v16639_v57  ;;  %v3794_v31 = vld [vmem:[#allocation7 + $0x2a00] sm:$0xff]  ;;  %v16615_v11 = vcombine.high %v3922_v62, %v3926_v19  ;;  %v2507_v57 = vld [vmem:[#allocation7 + $0x1c8] sm:$0xff]  ;;  %v16614_v61 = vcombine.low %v3922_v62, %v3926_v19  ;;  %v2420_v60 = vmax.f32 %v2313_v48, 0.0 }
 0x391   :  { %12525 = vmatpush2.bf16.msra.mxu1 %v16518_v38  ;;  %v3798_v39 = vld [vmem:[#allocation7 + $0x2a20] sm:$0xff]  ;;  %v2511_v38 = vld [vmem:[#allocation7 + $0x1e8] sm:$0xff]  ;;  %v2422_v15 = vmax.f32 %v2354_v30, 0.0 }
 0x392   :  { %12526 = vmatprep.subr.bf16.mxu1 %v16511_v50  ;;  %v16487_v16 = vcombine.high %v3794_v31, %v3798_v39  ;;  %v4042_v50 = vld [vmem:[#allocation7 + $0x31c0] sm:$0xff]  ;;  %v15201_v5 = vcombine.high %v2507_v57, %v2511_v38  ;;  %v18397_v62 = vpack.c.bf16 %v2420_v60, %v2420_v60  ;;  %v2487_v48 = vld [vmem:[#allocation7 + $0x128] sm:$0xff] }
 0x393   :  { %12568 = vmatpush2.bf16.msra.mxu0 %v16638_v46  ;;  %v4046_v46 = vld [vmem:[#allocation7 + $0x31e0] sm:$0xff]  ;;  %v18395_v49 = vpack.c.bf16 %v2422_v15, %v2422_v15 }
 0x394   :  { %12569 = vmatprep.subr.bf16.mxu0 %v16631_v20  ;;  %v16486_v20 = vcombine.low %v3794_v31, %v3798_v39  ;;  %v16735_v18 = vcombine.high %v4042_v50, %v4046_v46  ;;  %v4038_v40 = vld [vmem:[#allocation7 + $0x31a0] sm:$0xff]  ;;  %v16734_v25 = vcombine.low %v4042_v50, %v4046_v46 }
 0x395   :  { %12527 = vmatpush2.bf16.msra.mxu1 %v16510_v3  ;;  %v2503_v3 = vld [vmem:[#allocation7 + $0x1a8] sm:$0xff]  ;;  %v4030_v31 = vld [vmem:[#allocation7 + $0x3160] sm:$0xff] }
 0x396   :  { %12528 = vmatprep.subr.bf16.mxu1 %v16503_v43  ;;  %v15200_v43 = vcombine.low %v2507_v57, %v2511_v38  ;;  %v15193_v53 = vcombine.high %v2499_v56, %v2503_v3  ;;  %v2483_v38 = vld [vmem:[#allocation7 + $0x108] sm:$0xff] }
 0x397   :  { %12570 = vmatpush2.bf16.msra.mxu0 %v16630_v23  ;;  %v4034_v23 = vld [vmem:[#allocation7 + $0x3180] sm:$0xff]  ;;  %v15177_v60 = vcombine.high %v2483_v38, %v2487_v48 }
 0x398   :  { %12571 = vmatprep.subr.bf16.mxu0 %v16623_v52  ;;  %v2491_v52 = vld [vmem:[#allocation7 + $0x148] sm:$0xff]  ;;  %v16727_v1 = vcombine.high %v4034_v23, %v4038_v40  ;;  %v16726_v57 = vcombine.low %v4034_v23, %v4038_v40 }
 0x399   :  { %12529 = vmatpush2.bf16.msra.mxu1 %v16502_v4  ;;  %v2495_v4 = vld [vmem:[#allocation7 + $0x168] sm:$0xff] }
 0x39a   :  { %12530 = vmatprep.subr.bf16.mxu1 %v16495_v7  ;;  %v15192_v7 = vcombine.low %v2499_v56, %v2503_v3  ;;  %v15184_v15 = vcombine.low %v2491_v52, %v2495_v4  ;;  %v2479_v23 = vld [vmem:[#allocation7 + $0xe8] sm:$0xff] }
 0x39b   :  { %12572 = vmatpush2.bf16.msra.mxu0 %v16622_v2  ;;  %v4026_v2 = vld [vmem:[#allocation7 + $0x3140] sm:$0xff] }
 0x39c   :  { %12573 = vmatprep.subr.bf16.mxu0 %v16615_v11  ;;  %v15185_v11 = vcombine.high %v2491_v52, %v2495_v4  ;;  %v16719_v50 = vcombine.high %v4026_v2, %v4030_v31  ;;  %v4010_v52 = vld [vmem:[#allocation7 + $0x30c0] sm:$0xff] }
 0x39d   :  { %12531 = vmatpush2.bf16.msra.mxu1 %v16494_v55  ;;  %v4014_v4 = vld [vmem:[#allocation7 + $0x30e0] sm:$0xff] }
 0x39e   :  { %12532 = vmatprep.subr.bf16.mxu1 %v16487_v16 }
 0x39f   :  { %12574 = vmatpush2.bf16.msra.mxu0 %v16614_v61 }
 0x3a0   :  { %12625 = vmatprep.subr.bf16.mxu0 %v15201_v5  ;;  %v4018_v5 = vld [vmem:[#allocation7 + $0x3100] sm:$0xff] }
 0x3a1   :  { %12533 = vmatpush2.bf16.msra.mxu1 %v16486_v20  ;;  %v4022_v20 = vld [vmem:[#allocation7 + $0x3120] sm:$0xff] }
 0x3a2   :  { %v12331_v19 = vpop.f32.mrf.mxu0  ;;  %12576 = vmatmul.mubr.bf16.vlgmr.msra.gmra.mxu0 %v18395_v49  ;;  %12584 = vmatprep.subr.bf16.mxu1 %v16735_v18  ;;  %v16718_v18 = vcombine.low %v4026_v2, %v4030_v31  ;;  %v4002_v31 = vld [vmem:[#allocation7 + $0x3080] sm:$0xff] }
 0x3a3   :  { %12626 = vmatpush1.bf16.msra.mxu0 %v15200_v43  ;;  %12657 = vmatprep.mubr.bf16.mxu0 %v18194_v12  ;;  %v2475_v43 = vld [vmem:[#allocation7 + $0xc8] sm:$0xff] }
 0x3a4   :  { %v12333_v39 = vpop.f32.mrf.mxu0  ;;  %v12290_v30 = vpop.f32.mrf.mxu1  ;;  %12535 = vmatmul.mubr.bf16.vlgmr.msra.gmra.mxu1 %v18397_v62  ;;  %12627 = vmatprep.subr.bf16.mxu0 %v15193_v53  ;;  %v15168_v2 = vcombine.low %v2475_v43, %v2479_v23 }
 0x3a5   :  { %v12291_v55 = vadd.f32 %v12290_v30, %v18385_v58  ;;  %12585 = vmatpush1.bf16.msra.mxu1 %v16734_v25  ;;  %12616 = vmatprep.mubr.bf16.mxu1 %v17558_v13  ;;  %v16711_v25 = vcombine.high %v4018_v5, %v4022_v20  ;;  %v2471_v30 = vld [vmem:[#allocation7 + $0xa8] sm:$0xff] }
 0x3a6   :  { %v12335_v16 = vpop.f32.mrf.mxu0  ;;  %v12292_v61 = vpop.f32.mrf.mxu1  ;;  %12586 = vmatprep.subr.bf16.mxu1 %v16727_v1  ;;  %v16710_v1 = vcombine.low %v4018_v5, %v4022_v20  ;;  %v2451_v20 = vld [vmem:[#allocation7 + $0x8] sm:$0xff] }
 0x3a7   :  { %v12293_v46 = vadd.f32 %v12292_v61, %v18387_v37  ;;  %12628 = vmatpush1.bf16.msra.mxu0 %v15192_v7  ;;  %v18405_v56 = vadd.f32 %v12331_v19, %v12291_v55  ;;  %v15176_v37 = vcombine.low %v2483_v38, %v2487_v48  ;;  %v15169_v19 = vcombine.high %v2475_v43, %v2479_v23  ;;  %v2467_v7 = vld [vmem:[#allocation7 + $0x88] sm:$0xff]  ;;  %v3986_v43 = vld [vmem:[#allocation7 + $0x3000] sm:$0xff] }
 0x3a8   :  { %v12336_v3 = vpop.f32.mrf.mxu0  ;;  %v12294_v58 = vpop.f32.mrf.mxu1  ;;  %12629 = vmatprep.subr.bf16.mxu0 %v15185_v11  ;;  %v16703_v11 = vcombine.high %v4010_v52, %v4014_v4  ;;  %v15161_v55 = vcombine.high %v2467_v7, %v2471_v30  ;;  %v2459_v16 = vld [vmem:[#allocation7 + $0x48] sm:$0xff]  ;;  %v15160_v61 = vcombine.low %v2467_v7, %v2471_v30  ;;  %v3990_v23 = vld [vmem:[#allocation7 + $0x3020] sm:$0xff] }
 0x3a9   :  { %12587 = vmatpush1.bf16.msra.mxu1 %v16726_v57  ;;  %v18407_v40 = vadd.f32 %v12333_v39, %v12293_v46  ;;  %v4006_v39 = vld [vmem:[#allocation7 + $0x30a0] sm:$0xff]  ;;  %v16702_v57 = vcombine.low %v4010_v52, %v4014_v4  ;;  %v2463_v38 = vld [vmem:[#allocation7 + $0x68] sm:$0xff] }
 0x3aa   :  { %v12295_v53 = vpop.f32.mrf.mxu1  ;;  %12588 = vmatprep.subr.bf16.mxu1 %v16719_v50  ;;  %v16695_v48 = vcombine.high %v4002_v31, %v4006_v39  ;;  %v3994_v50 = vld [vmem:[#allocation7 + $0x3040] sm:$0xff]  ;;  %v16694_v5 = vcombine.low %v4002_v31, %v4006_v39  ;;  %v2455_v3 = vld [vmem:[#allocation7 + $0x28] sm:$0xff] }
 0x3ab   :  { %12630 = vmatpush1.bf16.msra.mxu0 %v15184_v15  ;;  %v3998_v46 = vld [vmem:[#allocation7 + $0x3060] sm:$0xff]  ;;  %v15153_v15 = vcombine.high %v2459_v16, %v2463_v38  ;;  %v15145_v53 = vcombine.high %v2451_v20, %v2455_v3  ;;  %v2575_v52 = vld [vmem:[#allocation7 + $0x3e8] sm:$0xff] }
 0x3ac   :  { %12631 = vmatprep.subr.bf16.mxu0 %v15177_v60  ;;  %v16687_v58 = vcombine.high %v3994_v50, %v3998_v46  ;;  %v14941_v60 = vld [vmem:[#allocation5 + $0x18] ss:$0 sm:$0xff]  ;;  %v2635_v7 = vld [vmem:[#allocation7 + $0x5c8] sm:$0xff] }
 0x3ad   :  { %12589 = vmatpush1.bf16.msra.mxu1 %v16718_v18  ;;  %v15152_v18 = vcombine.low %v2459_v16, %v2463_v38  ;;  %v2395_v4 = vadd.f32 %v14941_v60, %v18295_v6  ;;  %v2639_v30 = vld [vmem:[#allocation7 + $0x5e8] sm:$0xff] }
 0x3ae   :  { %12590 = vmatprep.subr.bf16.mxu1 %v16711_v25  ;;  %v16686_v25 = vcombine.low %v3994_v50, %v3998_v46  ;;  %v2563_v31 = vld [vmem:[#allocation7 + $0x388] sm:$0xff] }
 0x3af   :  { %12632 = vmatpush1.bf16.msra.mxu0 %v15176_v37  ;;  %v2571_v37 = vld [vmem:[#allocation7 + $0x3c8] sm:$0xff] }
 0x3b0   :  { %12633 = vmatprep.subr.bf16.mxu0 %v15169_v19  ;;  %v16679_v19 = vcombine.high %v3986_v43, %v3990_v23  ;;  %v2567_v39 = vld [vmem:[#allocation7 + $0x3a8] sm:$0xff]  ;;  %v15264_v16 = vcombine.low %v2571_v37, %v2575_v52 }
 0x3b1   :  { %12591 = vmatpush1.bf16.msra.mxu1 %v16710_v1  ;;  %v15144_v1 = vcombine.low %v2451_v20, %v2455_v3  ;;  %v2627_v38 = vld [vmem:[#allocation7 + $0x588] sm:$0xff]  ;;  %v15257_v6 = vcombine.high %v2563_v31, %v2567_v39  ;;  %v15256_v20 = vcombine.low %v2563_v31, %v2567_v39 }
 0x3b2   :  { %12592 = vmatprep.subr.bf16.mxu1 %v16703_v11  ;;  %v15265_v11 = vcombine.high %v2571_v37, %v2575_v52  ;;  %v2555_v50 = vld [vmem:[#allocation7 + $0x348] sm:$0xff] }
 0x3b3   :  { %12634 = vmatpush1.bf16.msra.mxu0 %v15168_v2  ;;  %v16678_v2 = vcombine.low %v3986_v43, %v3990_v23  ;;  %v2559_v46 = vld [vmem:[#allocation7 + $0x368] sm:$0xff] }
 0x3b4   :  { %12635 = vmatprep.subr.bf16.mxu0 %v15161_v55  ;;  %v2424_v55 = vmax.f32 %v2395_v4, 0.0  ;;  %v2619_v3 = vld [vmem:[#allocation7 + $0x548] sm:$0xff]  ;;  %v15249_v60 = vcombine.high %v2555_v50, %v2559_v46 }
 0x3b5   :  { %12593 = vmatpush1.bf16.msra.mxu1 %v16702_v57  ;;  %v15329_v57 = vcombine.high %v2635_v7, %v2639_v30  ;;  %v2547_v43 = vld [vmem:[#allocation7 + $0x308] sm:$0xff] }
 0x3b6   :  { %12594 = vmatprep.subr.bf16.mxu1 %v16695_v48  ;;  %v2631_v48 = vld [vmem:[#allocation7 + $0x5a8] sm:$0xff] }
 0x3b7   :  { %12636 = vmatpush1.bf16.msra.mxu0 %v15160_v61  ;;  %v15328_v61 = vcombine.low %v2635_v7, %v2639_v30  ;;  %v2551_v23 = vld [vmem:[#allocation7 + $0x328] sm:$0xff] }
 0x3b8   :  { %12637 = vmatprep.subr.bf16.mxu0 %v15153_v15  ;;  %v18410_v15 = vpack.c.bf16 %v2424_v55, %v2424_v55  ;;  %v2611_v37 = vld [vmem:[#allocation7 + $0x508] sm:$0xff]  ;;  %v15241_v4 = vcombine.high %v2547_v43, %v2551_v23 }
 0x3b9   :  { %12595 = vmatpush1.bf16.msra.mxu1 %v16694_v5  ;;  %v15321_v5 = vcombine.high %v2627_v38, %v2631_v48  ;;  %v2615_v52 = vld [vmem:[#allocation7 + $0x528] sm:$0xff] }
 0x3ba   :  { %12596 = vmatprep.subr.bf16.mxu1 %v16687_v58  ;;  %v2623_v58 = vld [vmem:[#allocation7 + $0x568] sm:$0xff]  ;;  %v15305_v30 = vcombine.high %v2611_v37, %v2615_v52  ;;  %v15304_v55 = vcombine.low %v2611_v37, %v2615_v52 }
 0x3bb   :  { %12638 = vmatpush1.bf16.msra.mxu0 %v15152_v18  ;;  %v15320_v18 = vcombine.low %v2627_v38, %v2631_v48  ;;  %v2543_v7 = vld [vmem:[#allocation7 + $0x2e8] sm:$0xff] }
 0x3bc   :  { %12639 = vmatprep.subr.bf16.mxu0 %v15145_v53  ;;  %v15313_v53 = vcombine.high %v2619_v3, %v2623_v58  ;;  %v2607_v31 = vld [vmem:[#allocation7 + $0x4e8] sm:$0xff] }
 0x3bd   :  { %12597 = vmatpush1.bf16.msra.mxu1 %v16686_v25  ;;  %v15248_v25 = vcombine.low %v2555_v50, %v2559_v46 }
 0x3be   :  { %12598 = vmatprep.subr.bf16.mxu1 %v16679_v19  ;;  %v15312_v19 = vcombine.low %v2619_v3, %v2623_v58 }
 0x3bf   :  { %12640 = vmatpush1.bf16.msra.mxu0 %v15144_v1  ;;  %v2539_v1 = vld [vmem:[#allocation7 + $0x2c8] sm:$0xff] }
 0x3c0   :  { %12641 = vmatprep.subr.bf16.mxu0 %v15265_v11  ;;  %v15240_v11 = vcombine.low %v2547_v43, %v2551_v23  ;;  %v15233_v39 = vcombine.high %v2539_v1, %v2543_v7  ;;  %v15232_v48 = vcombine.low %v2539_v1, %v2543_v7 }
 0x3c1   :  { %12599 = vmatpush1.bf16.msra.mxu1 %v16678_v2  ;;  %v2603_v2 = vld [vmem:[#allocation7 + $0x4c8] sm:$0xff] }
 0x3c2   :  { %12666 = vmatprep.subr.bf16.mxu1 %v15329_v57  ;;  %v2531_v57 = vld [vmem:[#allocation7 + $0x288] sm:$0xff]  ;;  %v15297_v38 = vcombine.high %v2603_v2, %v2607_v31  ;;  %v15296_v46 = vcombine.low %v2603_v2, %v2607_v31 }
 0x3c3   :  { %12642 = vmatpush2.bf16.msra.mxu0 %v15264_v16  ;;  %v2535_v16 = vld [vmem:[#allocation7 + $0x2a8] sm:$0xff] }
 0x3c4   :  { %12617 = vmatmul.mubr.bf16.vlgmr.msra.gmra.mxu1 %v18410_v15  ;;  %12643 = vmatprep.subr.bf16.mxu0 %v15257_v6  ;;  %v2595_v6 = vld [vmem:[#allocation7 + $0x488] sm:$0xff]  ;;  %v15225_v50 = vcombine.high %v2531_v57, %v2535_v16  ;;  %v15224_v58 = vcombine.low %v2531_v57, %v2535_v16 }
 0x3c5   :  { %12667 = vmatpush1.bf16.msra.mxu1 %v15328_v61  ;;  %12698 = vmatprep.mubr.bf16.mxu1 %v18225_v14  ;;  %v2599_v61 = vld [vmem:[#allocation7 + $0x4a8] sm:$0xff] }
 0x3c6   :  { %12668 = vmatprep.subr.bf16.mxu1 %v15321_v5  ;;  %v2523_v5 = vld [vmem:[#allocation7 + $0x248] sm:$0xff]  ;;  %v15289_v3 = vcombine.high %v2595_v6, %v2599_v61  ;;  %v15288_v23 = vcombine.low %v2595_v6, %v2599_v61 }
 0x3c7   :  { %12644 = vmatpush2.bf16.msra.mxu0 %v15256_v20  ;;  %v2527_v20 = vld [vmem:[#allocation7 + $0x268] sm:$0xff] }
 0x3c8   :  { %12645 = vmatprep.subr.bf16.mxu0 %v15249_v60  ;;  %v2587_v60 = vld [vmem:[#allocation7 + $0x448] sm:$0xff]  ;;  %v15217_v43 = vcombine.high %v2523_v5, %v2527_v20  ;;  %v15216_v52 = vcombine.low %v2523_v5, %v2527_v20 }
 0x3c9   :  { %12669 = vmatpush1.bf16.msra.mxu1 %v15320_v18  ;;  %v2591_v18 = vld [vmem:[#allocation7 + $0x468] sm:$0xff] }
 0x3ca   :  { %12670 = vmatprep.subr.bf16.mxu1 %v15313_v53  ;;  %v2515_v53 = vld [vmem:[#allocation7 + $0x208] sm:$0xff]  ;;  %v15281_v37 = vcombine.high %v2587_v60, %v2591_v18  ;;  %v15280_v7 = vcombine.low %v2587_v60, %v2591_v18 }
 0x3cb   :  { %12646 = vmatpush2.bf16.msra.mxu0 %v15248_v25  ;;  %v2519_v25 = vld [vmem:[#allocation7 + $0x228] sm:$0xff] }
 0x3cc   :  { %12647 = vmatprep.subr.bf16.mxu0 %v15241_v4  ;;  %v2579_v4 = vld [vmem:[#allocation7 + $0x408] sm:$0xff]  ;;  %v15209_v1 = vcombine.high %v2515_v53, %v2519_v25  ;;  %v15208_v31 = vcombine.low %v2515_v53, %v2519_v25 }
 0x3cd   :  { %12671 = vmatpush1.bf16.msra.mxu1 %v15312_v19  ;;  %v2583_v19 = vld [vmem:[#allocation7 + $0x428] sm:$0xff] }
 0x3ce   :  { %12672 = vmatprep.subr.bf16.mxu1 %v15305_v30  ;;  %v2763_v30 = vld [vmem:[#allocation7 + $0x9c8] sm:$0xff]  ;;  %v15273_v2 = vcombine.high %v2579_v4, %v2583_v19  ;;  %v15272_v16 = vcombine.low %v2579_v4, %v2583_v19 }
 0x3cf   :  { %12648 = vmatpush2.bf16.msra.mxu0 %v15240_v11  ;;  %v2767_v11 = vld [vmem:[#allocation7 + $0x9e8] sm:$0xff] }
 0x3d0   :  { %12649 = vmatprep.subr.bf16.mxu0 %v15233_v39  ;;  %v2699_v39 = vld [vmem:[#allocation7 + $0x7c8] sm:$0xff]  ;;  %v15457_v57 = vcombine.high %v2763_v30, %v2767_v11  ;;  %v15456_v61 = vcombine.low %v2763_v30, %v2767_v11 }
 0x3d1   :  { %12673 = vmatpush1.bf16.msra.mxu1 %v15304_v55  ;;  %v2703_v55 = vld [vmem:[#allocation7 + $0x7e8] sm:$0xff] }
 0x3d2   :  { %12674 = vmatprep.subr.bf16.mxu1 %v15297_v38  ;;  %v2755_v38 = vld [vmem:[#allocation7 + $0x988] sm:$0xff]  ;;  %v15393_v6 = vcombine.high %v2699_v39, %v2703_v55  ;;  %v15392_v20 = vcombine.low %v2699_v39, %v2703_v55 }
 0x3d3   :  { %12650 = vmatpush2.bf16.msra.mxu0 %v15232_v48  ;;  %v2759_v48 = vld [vmem:[#allocation7 + $0x9a8] sm:$0xff] }
 0x3d4   :  { %12651 = vmatprep.subr.bf16.mxu0 %v15225_v50  ;;  %v2691_v50 = vld [vmem:[#allocation7 + $0x788] sm:$0xff]  ;;  %v15449_v5 = vcombine.high %v2755_v38, %v2759_v48 }
 0x3d5   :  { %12675 = vmatpush1.bf16.msra.mxu1 %v15296_v46  ;;  %v2695_v46 = vld [vmem:[#allocation7 + $0x7a8] sm:$0xff] }
 0x3d6   :  { %12676 = vmatprep.subr.bf16.mxu1 %v15289_v3  ;;  %v2747_v3 = vld [vmem:[#allocation7 + $0x948] sm:$0xff]  ;;  %v15385_v18 = vcombine.high %v2691_v50, %v2695_v46  ;;  %v15384_v19 = vcombine.low %v2691_v50, %v2695_v46 }
 0x3d7   :  { %12652 = vmatpush2.bf16.msra.mxu0 %v15224_v58  ;;  %v2751_v58 = vld [vmem:[#allocation7 + $0x968] sm:$0xff] }
 0x3d8   :  { %12653 = vmatprep.subr.bf16.mxu0 %v15217_v43  ;;  %v15448_v43 = vcombine.low %v2755_v38, %v2759_v48  ;;  %v2687_v53 = vld [vmem:[#allocation7 + $0x768] sm:$0xff]  ;;  %v15440_v39 = vcombine.low %v2747_v3, %v2751_v58 }
 0x3d9   :  { %12677 = vmatpush1.bf16.msra.mxu1 %v15288_v23  ;;  %v2683_v23 = vld [vmem:[#allocation7 + $0x748] sm:$0xff] }
 0x3da   :  { %12678 = vmatprep.subr.bf16.mxu1 %v15281_v37  ;;  %v2675_v55 = vld [vmem:[#allocation7 + $0x708] sm:$0xff] }
 0x3db   :  { %12654 = vmatpush2.bf16.msra.mxu0 %v15216_v52  ;;  %v15441_v52 = vcombine.high %v2747_v3, %v2751_v58  ;;  %v2735_v50 = vld [vmem:[#allocation7 + $0x8e8] sm:$0xff] }
 0x3dc   :  { %12655 = vmatprep.subr.bf16.mxu0 %v15209_v1  ;;  %v2739_v1 = vld [vmem:[#allocation7 + $0x908] sm:$0xff] }
 0x3dd   :  { %12679 = vmatpush1.bf16.msra.mxu1 %v15280_v7  ;;  %v2743_v7 = vld [vmem:[#allocation7 + $0x928] sm:$0xff] }
 0x3de   :  { %12680 = vmatprep.subr.bf16.mxu1 %v15273_v2  ;;  %v15377_v2 = vcombine.high %v2683_v23, %v2687_v53  ;;  %v2667_v3 = vld [vmem:[#allocation7 + $0x6c8] sm:$0xff] }
 0x3df   :  { %12656 = vmatpush2.bf16.msra.mxu0 %v15208_v31  ;;  %v2671_v58 = vld [vmem:[#allocation7 + $0x6e8] sm:$0xff] }
 0x3e0   :  { %12707 = vmatprep.subr.bf16.mxu0 %v15457_v57  ;;  %v2679_v57 = vld [vmem:[#allocation7 + $0x728] sm:$0xff] }
 0x3e1   :  { %12681 = vmatpush1.bf16.msra.mxu1 %v15272_v16 }
 0x3e2   :  { %v12413_v60 = vpop.f32.mrf.mxu0  ;;  %12658 = vmatmul.mubr.bf16.vlgmr.msra.gmra.mxu0 %v18232_v21  ;;  %12682 = vmatprep.subr.bf16.mxu1 %v15393_v6  ;;  %v15376_v6 = vcombine.low %v2683_v23, %v2687_v53  ;;  %v2659_v53 = vld [vmem:[#allocation7 + $0x688] sm:$0xff] }
 0x3e3   :  { %12708 = vmatpush1.bf16.msra.mxu0 %v15456_v61  ;;  %12739 = vmatprep.mubr.bf16.mxu0 %v18235_v24  ;;  %v2731_v61 = vld [vmem:[#allocation7 + $0x8c8] sm:$0xff] }
 0x3e4   :  { %v12415_v25 = vpop.f32.mrf.mxu0  ;;  %v12372_v37 = vpop.f32.mrf.mxu1  ;;  %12709 = vmatprep.subr.bf16.mxu0 %v15449_v5  ;;  %v15424_v23 = vcombine.low %v2731_v61, %v2735_v50 }
 0x3e5   :  { %v12373_v4 = vadd.f32 %v12372_v37, %v18405_v56  ;;  %12683 = vmatpush2.bf16.msra.mxu1 %v15392_v20  ;;  %v15433_v56 = vcombine.high %v2739_v1, %v2743_v7  ;;  %v15369_v20 = vcombine.high %v2675_v55, %v2679_v57  ;;  %v2727_v37 = vld [vmem:[#allocation7 + $0x8a8] sm:$0xff] }
 0x3e6   :  { %v12417_v30 = vpop.f32.mrf.mxu0  ;;  %v12374_v11 = vpop.f32.mrf.mxu1  ;;  %12684 = vmatprep.subr.bf16.mxu1 %v15385_v18  ;;  %v15368_v18 = vcombine.low %v2675_v55, %v2679_v57  ;;  %v2707_v57 = vld [vmem:[#allocation7 + $0x808] sm:$0xff] }
 0x3e7   :  { %v12375_v31 = vadd.f32 %v12374_v11, %v18407_v40  ;;  %12710 = vmatpush1.bf16.msra.mxu0 %v15448_v43  ;;  %v18418_v16 = vadd.f32 %v12413_v60, %v12373_v4  ;;  %v15432_v40 = vcombine.low %v2739_v1, %v2743_v7  ;;  %v15425_v60 = vcombine.high %v2731_v61, %v2735_v50  ;;  %v2723_v43 = vld [vmem:[#allocation7 + $0x888] sm:$0xff] }
 0x3e8   :  { %v12418_v38 = vpop.f32.mrf.mxu0  ;;  %v12376_v48 = vpop.f32.mrf.mxu1  ;;  %12711 = vmatprep.subr.bf16.mxu0 %v15441_v52  ;;  %v15361_v52 = vcombine.high %v2667_v3, %v2671_v58  ;;  %v15417_v4 = vcombine.high %v2723_v43, %v2727_v37  ;;  %v2715_v30 = vld [vmem:[#allocation7 + $0x848] sm:$0xff]  ;;  %v15416_v11 = vcombine.low %v2723_v43, %v2727_v37 }
 0x3e9   :  { %12685 = vmatpush2.bf16.msra.mxu1 %v15384_v19  ;;  %v18420_v46 = vadd.f32 %v12415_v25, %v12375_v31  ;;  %v2663_v25 = vld [vmem:[#allocation7 + $0x6a8] sm:$0xff]  ;;  %v15360_v19 = vcombine.low %v2667_v3, %v2671_v58 }
 0x3ea   :  { %v12377_v5 = vpop.f32.mrf.mxu1  ;;  %12686 = vmatprep.subr.bf16.mxu1 %v15377_v2  ;;  %v2719_v1 = vld [vmem:[#allocation7 + $0x868] sm:$0xff]  ;;  %v15353_v7 = vcombine.high %v2659_v53, %v2663_v25  ;;  %v15352_v55 = vcombine.low %v2659_v53, %v2663_v25 }
 0x3eb   :  { %12712 = vmatpush1.bf16.msra.mxu0 %v15440_v39  ;;  %v2651_v2 = vld [vmem:[#allocation7 + $0x648] sm:$0xff]  ;;  %v15409_v39 = vcombine.high %v2715_v30, %v2719_v1 }
 0x3ec   :  { %12713 = vmatprep.subr.bf16.mxu0 %v15433_v56  ;;  %v2655_v31 = vld [vmem:[#allocation7 + $0x668] sm:$0xff]  ;;  %v15408_v56 = vcombine.low %v2715_v30, %v2719_v1 }
 0x3ed   :  { %12687 = vmatpush2.bf16.msra.mxu1 %v15376_v6  ;;  %v2711_v38 = vld [vmem:[#allocation7 + $0x828] sm:$0xff]  ;;  %v15345_v48 = vcombine.high %v2651_v2, %v2655_v31  ;;  %v15344_v5 = vcombine.low %v2651_v2, %v2655_v31 }
 0x3ee   :  { %12688 = vmatprep.subr.bf16.mxu1 %v15369_v20  ;;  %v2643_v6 = vld [vmem:[#allocation7 + $0x608] sm:$0xff]  ;;  %v15401_v50 = vcombine.high %v2707_v57, %v2711_v38  ;;  %v15400_v58 = vcombine.low %v2707_v57, %v2711_v38 }
 0x3ef   :  { %12714 = vmatpush1.bf16.msra.mxu0 %v15432_v40  ;;  %v2647_v61 = vld [vmem:[#allocation7 + $0x628] sm:$0xff] }
 0x3f0   :  { %12715 = vmatprep.subr.bf16.mxu0 %v15425_v60  ;;  %v2827_v20 = vld [vmem:[#allocation7 + $0xbc8] sm:$0xff]  ;;  %v15337_v3 = vcombine.high %v2643_v6, %v2647_v61  ;;  %v15336_v37 = vcombine.low %v2643_v6, %v2647_v61 }
 0x3f1   :  { %12689 = vmatpush2.bf16.msra.mxu1 %v15368_v18  ;;  %v2831_v40 = vld [vmem:[#allocation7 + $0xbe8] sm:$0xff] }
 0x3f2   :  { %12690 = vmatprep.subr.bf16.mxu1 %v15361_v52  ;;  %v2891_v60 = vld [vmem:[#allocation7 + $0xdc8] sm:$0xff]  ;;  %v15521_v43 = vcombine.high %v2827_v20, %v2831_v40  ;;  %v15520_v25 = vcombine.low %v2827_v20, %v2831_v40 }
 0x3f3   :  { %12716 = vmatpush1.bf16.msra.mxu0 %v15424_v23  ;;  %v2895_v18 = vld [vmem:[#allocation7 + $0xde8] sm:$0xff] }
 0x3f4   :  { %12717 = vmatprep.subr.bf16.mxu0 %v15417_v4  ;;  %v2819_v52 = vld [vmem:[#allocation7 + $0xb88] sm:$0xff]  ;;  %v15585_v53 = vcombine.high %v2891_v60, %v2895_v18  ;;  %v15584_v1 = vcombine.low %v2891_v60, %v2895_v18 }
 0x3f5   :  { %12691 = vmatpush2.bf16.msra.mxu1 %v15360_v19  ;;  %v2823_v23 = vld [vmem:[#allocation7 + $0xba8] sm:$0xff] }
 0x3f6   :  { %12692 = vmatprep.subr.bf16.mxu1 %v15353_v7  ;;  %v2883_v4 = vld [vmem:[#allocation7 + $0xd88] sm:$0xff]  ;;  %v15513_v30 = vcombine.high %v2819_v52, %v2823_v23  ;;  %v15512_v31 = vcombine.low %v2819_v52, %v2823_v23 }
 0x3f7   :  { %12718 = vmatpush1.bf16.msra.mxu0 %v15416_v11  ;;  %v2887_v19 = vld [vmem:[#allocation7 + $0xda8] sm:$0xff] }
 0x3f8   :  { %12719 = vmatprep.subr.bf16.mxu0 %v15409_v39  ;;  %v2811_v7 = vld [vmem:[#allocation7 + $0xb48] sm:$0xff]  ;;  %v15577_v2 = vcombine.high %v2883_v4, %v2887_v19  ;;  %v15576_v38 = vcombine.low %v2883_v4, %v2887_v19 }
 0x3f9   :  { %12693 = vmatpush2.bf16.msra.mxu1 %v15352_v55  ;;  %v2815_v11 = vld [vmem:[#allocation7 + $0xb68] sm:$0xff] }
 0x3fa   :  { %12694 = vmatprep.subr.bf16.mxu1 %v15345_v48  ;;  %v2875_v39 = vld [vmem:[#allocation7 + $0xd48] sm:$0xff]  ;;  %v15505_v57 = vcombine.high %v2811_v7, %v2815_v11  ;;  %v15504_v61 = vcombine.low %v2811_v7, %v2815_v11 }
 0x3fb   :  { %12720 = vmatpush1.bf16.msra.mxu0 %v15408_v56  ;;  %v2879_v55 = vld [vmem:[#allocation7 + $0xd68] sm:$0xff] }
 0x3fc   :  { %12721 = vmatprep.subr.bf16.mxu0 %v15401_v50  ;;  %v2803_v48 = vld [vmem:[#allocation7 + $0xb08] sm:$0xff]  ;;  %v15569_v6 = vcombine.high %v2875_v39, %v2879_v55  ;;  %v15568_v40 = vcombine.low %v2875_v39, %v2879_v55 }
 0x3fd   :  { %12695 = vmatpush2.bf16.msra.mxu1 %v15344_v5  ;;  %v2807_v56 = vld [vmem:[#allocation7 + $0xb28] sm:$0xff] }
 0x3fe   :  { %12696 = vmatprep.subr.bf16.mxu1 %v15337_v3  ;;  %v2867_v50 = vld [vmem:[#allocation7 + $0xd08] sm:$0xff]  ;;  %v15497_v20 = vcombine.high %v2803_v48, %v2807_v56  ;;  %v15496_v18 = vcombine.low %v2803_v48, %v2807_v56 }
 0x3ff   :  { %12722 = vmatpush1.bf16.msra.mxu0 %v15400_v58  ;;  %v2871_v5 = vld [vmem:[#allocation7 + $0xd28] sm:$0xff] }
 0x400   :  { %12723 = vmatprep.subr.bf16.mxu0 %v15521_v43  ;;  %v2795_v3 = vld [vmem:[#allocation7 + $0xac8] sm:$0xff]  ;;  %v15561_v60 = vcombine.high %v2867_v50, %v2871_v5  ;;  %v15560_v23 = vcombine.low %v2867_v50, %v2871_v5 }
 0x401   :  { %12697 = vmatpush2.bf16.msra.mxu1 %v15336_v37  ;;  %v2799_v58 = vld [vmem:[#allocation7 + $0xae8] sm:$0xff] }
 0x402   :  { %12748 = vmatprep.subr.bf16.mxu1 %v15585_v53  ;;  %v2859_v43 = vld [vmem:[#allocation7 + $0xcc8] sm:$0xff]  ;;  %v15489_v52 = vcombine.high %v2795_v3, %v2799_v58  ;;  %v15488_v19 = vcombine.low %v2795_v3, %v2799_v58 }
 0x403   :  { %12724 = vmatpush2.bf16.msra.mxu0 %v15520_v25  ;;  %v2863_v37 = vld [vmem:[#allocation7 + $0xce8] sm:$0xff] }
 0x404   :  { %12699 = vmatmul.mubr.bf16.vlgmr.msra.gmra.mxu1 %v18229_v17  ;;  %12725 = vmatprep.subr.bf16.mxu0 %v15513_v30  ;;  %v2787_v53 = vld [vmem:[#allocation7 + $0xa88] sm:$0xff]  ;;  %v15553_v4 = vcombine.high %v2859_v43, %v2863_v37  ;;  %v15552_v11 = vcombine.low %v2859_v43, %v2863_v37 }
 0x405   :  { %12749 = vmatpush1.bf16.msra.mxu1 %v15584_v1  ;;  %12780 = vmatprep.mubr.bf16.mxu1 %v18250_v45  ;;  %v2791_v25 = vld [vmem:[#allocation7 + $0xaa8] sm:$0xff] }
 0x406   :  { %12750 = vmatprep.subr.bf16.mxu1 %v15577_v2  ;;  %v2851_v30 = vld [vmem:[#allocation7 + $0xc88] sm:$0xff]  ;;  %v15481_v7 = vcombine.high %v2787_v53, %v2791_v25  ;;  %v15480_v55 = vcombine.low %v2787_v53, %v2791_v25 }
 0x407   :  { %12726 = vmatpush2.bf16.msra.mxu0 %v15512_v31  ;;  %v2855_v1 = vld [vmem:[#allocation7 + $0xca8] sm:$0xff] }
 0x408   :  { %12727 = vmatprep.subr.bf16.mxu0 %v15505_v57  ;;  %v2779_v2 = vld [vmem:[#allocation7 + $0xa48] sm:$0xff]  ;;  %v15545_v39 = vcombine.high %v2851_v30, %v2855_v1  ;;  %v15544_v56 = vcombine.low %v2851_v30, %v2855_v1 }
 0x409   :  { %12751 = vmatpush1.bf16.msra.mxu1 %v15576_v38  ;;  %v2783_v31 = vld [vmem:[#allocation7 + $0xa68] sm:$0xff] }
 0x40a   :  { %12752 = vmatprep.subr.bf16.mxu1 %v15569_v6  ;;  %v2843_v57 = vld [vmem:[#allocation7 + $0xc48] sm:$0xff]  ;;  %v15473_v48 = vcombine.high %v2779_v2, %v2783_v31  ;;  %v15472_v5 = vcombine.low %v2779_v2, %v2783_v31 }
 0x40b   :  { %12728 = vmatpush2.bf16.msra.mxu0 %v15504_v61  ;;  %v2847_v38 = vld [vmem:[#allocation7 + $0xc68] sm:$0xff] }
 0x40c   :  { %12729 = vmatprep.subr.bf16.mxu0 %v15497_v20  ;;  %v2771_v6 = vld [vmem:[#allocation7 + $0xa08] sm:$0xff]  ;;  %v15537_v50 = vcombine.high %v2843_v57, %v2847_v38  ;;  %v15536_v58 = vcombine.low %v2843_v57, %v2847_v38 }
 0x40d   :  { %12753 = vmatpush1.bf16.msra.mxu1 %v15568_v40  ;;  %v2775_v61 = vld [vmem:[#allocation7 + $0xa28] sm:$0xff] }
 0x40e   :  { %12754 = vmatprep.subr.bf16.mxu1 %v15561_v60  ;;  %v2835_v20 = vld [vmem:[#allocation7 + $0xc08] sm:$0xff]  ;;  %v15465_v3 = vcombine.high %v2771_v6, %v2775_v61  ;;  %v15464_v37 = vcombine.low %v2771_v6, %v2775_v61 }
 0x40f   :  { %12730 = vmatpush2.bf16.msra.mxu0 %v15496_v18  ;;  %v2839_v40 = vld [vmem:[#allocation7 + $0xc28] sm:$0xff] }
 0x410   :  { %12731 = vmatprep.subr.bf16.mxu0 %v15489_v52  ;;  %v3019_v60 = vld [vmem:[#allocation7 + $0x11c8] sm:$0xff]  ;;  %v15529_v43 = vcombine.high %v2835_v20, %v2839_v40  ;;  %v15528_v25 = vcombine.low %v2835_v20, %v2839_v40 }
 0x411   :  { %12755 = vmatpush1.bf16.msra.mxu1 %v15560_v23  ;;  %v3023_v18 = vld [vmem:[#allocation7 + $0x11e8] sm:$0xff] }
 0x412   :  { %12756 = vmatprep.subr.bf16.mxu1 %v15553_v4  ;;  %v2955_v52 = vld [vmem:[#allocation7 + $0xfc8] sm:$0xff]  ;;  %v15713_v53 = vcombine.high %v3019_v60, %v3023_v18  ;;  %v15712_v1 = vcombine.low %v3019_v60, %v3023_v18 }
 0x413   :  { %12732 = vmatpush2.bf16.msra.mxu0 %v15488_v19  ;;  %v2959_v23 = vld [vmem:[#allocation7 + $0xfe8] sm:$0xff] }
 0x414   :  { %12733 = vmatprep.subr.bf16.mxu0 %v15481_v7  ;;  %v3011_v4 = vld [vmem:[#allocation7 + $0x1188] sm:$0xff]  ;;  %v15649_v30 = vcombine.high %v2955_v52, %v2959_v23  ;;  %v15648_v31 = vcombine.low %v2955_v52, %v2959_v23 }
 0x415   :  { %12757 = vmatpush1.bf16.msra.mxu1 %v15552_v11  ;;  %v3015_v19 = vld [vmem:[#allocation7 + $0x11a8] sm:$0xff] }
 0x416   :  { %12758 = vmatprep.subr.bf16.mxu1 %v15545_v39  ;;  %v2947_v7 = vld [vmem:[#allocation7 + $0xf88] sm:$0xff]  ;;  %v15705_v2 = vcombine.high %v3011_v4, %v3015_v19 }
 0x417   :  { %12734 = vmatpush2.bf16.msra.mxu0 %v15480_v55  ;;  %v2951_v11 = vld [vmem:[#allocation7 + $0xfa8] sm:$0xff] }
 0x418   :  { %12735 = vmatprep.subr.bf16.mxu0 %v15473_v48  ;;  %v3003_v39 = vld [vmem:[#allocation7 + $0x1148] sm:$0xff]  ;;  %v15641_v38 = vcombine.high %v2947_v7, %v2951_v11  ;;  %v15704_v48 = vcombine.low %v3011_v4, %v3015_v19  ;;  %v15640_v40 = vcombine.low %v2947_v7, %v2951_v11 }
 0x419   :  { %12759 = vmatpush1.bf16.msra.mxu1 %v15544_v56  ;;  %v3007_v55 = vld [vmem:[#allocation7 + $0x1168] sm:$0xff] }
 0x41a   :  { %12760 = vmatprep.subr.bf16.mxu1 %v15537_v50  ;;  %v2939_v56 = vld [vmem:[#allocation7 + $0xf48] sm:$0xff]  ;;  %v15696_v52 = vcombine.low %v3003_v39, %v3007_v55 }
 0x41b   :  { %12736 = vmatpush2.bf16.msra.mxu0 %v15472_v5  ;;  %v2943_v6 = vld [vmem:[#allocation7 + $0xf68] sm:$0xff]  ;;  %v15697_v5 = vcombine.high %v3003_v39, %v3007_v55 }
 0x41c   :  { %12737 = vmatprep.subr.bf16.mxu0 %v15465_v3  ;;  %v2995_v3 = vld [vmem:[#allocation7 + $0x1108] sm:$0xff] }
 0x41d   :  { %12761 = vmatpush1.bf16.msra.mxu1 %v15536_v58  ;;  %v2999_v58 = vld [vmem:[#allocation7 + $0x1128] sm:$0xff] }
 0x41e   :  { %12762 = vmatprep.subr.bf16.mxu1 %v15529_v43  ;;  %v15633_v43 = vcombine.high %v2939_v56, %v2943_v6  ;;  %v2931_v23 = vld [vmem:[#allocation7 + $0xf08] sm:$0xff] }
 0x41f   :  { %12738 = vmatpush2.bf16.msra.mxu0 %v15464_v37  ;;  %v2991_v7 = vld [vmem:[#allocation7 + $0x10e8] sm:$0xff] }
 0x420   :  { %12789 = vmatprep.subr.bf16.mxu0 %v15713_v53  ;;  %v2935_v53 = vld [vmem:[#allocation7 + $0xf28] sm:$0xff] }
 0x421   :  { %12763 = vmatpush1.bf16.msra.mxu1 %v15528_v25  ;;  %v2923_v39 = vld [vmem:[#allocation7 + $0xec8] sm:$0xff] }
 0x422   :  { %v12495_v57 = vpop.f32.mrf.mxu0  ;;  %12740 = vmatmul.mubr.bf16.vlgmr.msra.gmra.mxu0 %v18277_v8  ;;  %12764 = vmatprep.subr.bf16.mxu1 %v15649_v30  ;;  %v15632_v30 = vcombine.low %v2939_v56, %v2943_v6  ;;  %v2927_v55 = vld [vmem:[#allocation7 + $0xee8] sm:$0xff] }
 0x423   :  { %12790 = vmatpush1.bf16.msra.mxu0 %v15712_v1  ;;  %12821 = vmatprep.mubr.bf16.mxu0 %v18280_v9  ;;  %v2987_v1 = vld [vmem:[#allocation7 + $0x10c8] sm:$0xff] }
 0x424   :  { %v12497_v61 = vpop.f32.mrf.mxu0  ;;  %v12454_v50 = vpop.f32.mrf.mxu1  ;;  %12791 = vmatprep.subr.bf16.mxu0 %v15705_v2  ;;  %v15680_v56 = vcombine.low %v2987_v1, %v2991_v7  ;;  %v2915_v6 = vld [vmem:[#allocation7 + $0xe88] sm:$0xff] }
 0x425   :  { %v12455_v20 = vadd.f32 %v12454_v50, %v18418_v16  ;;  %12765 = vmatpush2.bf16.msra.mxu1 %v15648_v31  ;;  %v15689_v16 = vcombine.high %v2995_v3, %v2999_v58  ;;  %v15625_v31 = vcombine.high %v2931_v23, %v2935_v53  ;;  %v2983_v50 = vld [vmem:[#allocation7 + $0x10a8] sm:$0xff] }
 0x426   :  { %v12499_v60 = vpop.f32.mrf.mxu0  ;;  %v12456_v18 = vpop.f32.mrf.mxu1  ;;  %12766 = vmatprep.subr.bf16.mxu1 %v15641_v38  ;;  %v15624_v38 = vcombine.low %v2931_v23, %v2935_v53  ;;  %v2963_v53 = vld [vmem:[#allocation7 + $0x1008] sm:$0xff] }
 0x427   :  { %v12457_v37 = vadd.f32 %v12456_v18, %v18420_v46  ;;  %12792 = vmatpush1.bf16.msra.mxu0 %v15704_v48  ;;  %v18428_v25 = vadd.f32 %v12495_v57, %v12455_v20  ;;  %v15688_v46 = vcombine.low %v2995_v3, %v2999_v58  ;;  %v15681_v57 = vcombine.high %v2987_v1, %v2991_v7  ;;  %v2979_v48 = vld [vmem:[#allocation7 + $0x1088] sm:$0xff] }
 0x428   :  { %v12500_v4 = vpop.f32.mrf.mxu0  ;;  %v12458_v19 = vpop.f32.mrf.mxu1  ;;  %12793 = vmatprep.subr.bf16.mxu0 %v15697_v5  ;;  %v15617_v5 = vcombine.high %v2923_v39, %v2927_v55  ;;  %v15673_v20 = vcombine.high %v2979_v48, %v2983_v50  ;;  %v2971_v60 = vld [vmem:[#allocation7 + $0x1048] sm:$0xff]  ;;  %v15672_v18 = vcombine.low %v2979_v48, %v2983_v50 }
 0x429   :  { %12767 = vmatpush2.bf16.msra.mxu1 %v15640_v40  ;;  %v18430_v11 = vadd.f32 %v12497_v61, %v12457_v37  ;;  %v2919_v61 = vld [vmem:[#allocation7 + $0xea8] sm:$0xff]  ;;  %v15616_v40 = vcombine.low %v2923_v39, %v2927_v55 }
 0x42a   :  { %v12459_v2 = vpop.f32.mrf.mxu1  ;;  %12768 = vmatprep.subr.bf16.mxu1 %v15633_v43  ;;  %v2975_v3 = vld [vmem:[#allocation7 + $0x1068] sm:$0xff]  ;;  %v15609_v58 = vcombine.high %v2915_v6, %v2919_v61  ;;  %v15608_v23 = vcombine.low %v2915_v6, %v2919_v61 }
 0x42b   :  { %12794 = vmatpush1.bf16.msra.mxu0 %v15696_v52  ;;  %v2907_v43 = vld [vmem:[#allocation7 + $0xe48] sm:$0xff]  ;;  %v15665_v52 = vcombine.high %v2971_v60, %v2975_v3 }
 0x42c   :  { %12795 = vmatprep.subr.bf16.mxu0 %v15689_v16  ;;  %v2911_v37 = vld [vmem:[#allocation7 + $0xe68] sm:$0xff]  ;;  %v15664_v16 = vcombine.low %v2971_v60, %v2975_v3 }
 0x42d   :  { %12769 = vmatpush2.bf16.msra.mxu1 %v15632_v30  ;;  %v2967_v4 = vld [vmem:[#allocation7 + $0x1028] sm:$0xff]  ;;  %v15601_v19 = vcombine.high %v2907_v43, %v2911_v37  ;;  %v15600_v2 = vcombine.low %v2907_v43, %v2911_v37 }
 0x42e   :  { %12770 = vmatprep.subr.bf16.mxu1 %v15625_v31  ;;  %v2899_v30 = vld [vmem:[#allocation7 + $0xe08] sm:$0xff]  ;;  %v15657_v7 = vcombine.high %v2963_v53, %v2967_v4  ;;  %v15656_v55 = vcombine.low %v2963_v53, %v2967_v4 }
 0x42f   :  { %12796 = vmatpush1.bf16.msra.mxu0 %v15688_v46  ;;  %v2903_v1 = vld [vmem:[#allocation7 + $0xe28] sm:$0xff] }
 0x430   :  { %12797 = vmatprep.subr.bf16.mxu0 %v15681_v57  ;;  %v3083_v31 = vld [vmem:[#allocation7 + $0x13c8] sm:$0xff]  ;;  %v15593_v39 = vcombine.high %v2899_v30, %v2903_v1  ;;  %v15592_v50 = vcombine.low %v2899_v30, %v2903_v1 }
 0x431   :  { %12771 = vmatpush2.bf16.msra.mxu1 %v15624_v38  ;;  %v3087_v46 = vld [vmem:[#allocation7 + $0x13e8] sm:$0xff] }
 0x432   :  { %12772 = vmatprep.subr.bf16.mxu1 %v15617_v5  ;;  %v3147_v57 = vld [vmem:[#allocation7 + $0x15c8] sm:$0xff]  ;;  %v15777_v48 = vcombine.high %v3083_v31, %v3087_v46  ;;  %v15776_v61 = vcombine.low %v3083_v31, %v3087_v46 }
 0x433   :  { %12798 = vmatpush1.bf16.msra.mxu0 %v15680_v56  ;;  %v3151_v38 = vld [vmem:[#allocation7 + $0x15e8] sm:$0xff] }
 0x434   :  { %12799 = vmatprep.subr.bf16.mxu0 %v15673_v20  ;;  %v3075_v5 = vld [vmem:[#allocation7 + $0x1388] sm:$0xff]  ;;  %v15841_v6 = vcombine.high %v3147_v57, %v3151_v38  ;;  %v15840_v3 = vcombine.low %v3147_v57, %v3151_v38 }
 0x435   :  { %12773 = vmatpush2.bf16.msra.mxu1 %v15616_v40  ;;  %v3079_v56 = vld [vmem:[#allocation7 + $0x13a8] sm:$0xff] }
 0x436   :  { %12774 = vmatprep.subr.bf16.mxu1 %v15609_v58  ;;  %v3139_v20 = vld [vmem:[#allocation7 + $0x1588] sm:$0xff]  ;;  %v15769_v60 = vcombine.high %v3075_v5, %v3079_v56  ;;  %v15768_v37 = vcombine.low %v3075_v5, %v3079_v56 }
 0x437   :  { %12800 = vmatpush1.bf16.msra.mxu0 %v15672_v18  ;;  %v3143_v40 = vld [vmem:[#allocation7 + $0x15a8] sm:$0xff] }
 0x438   :  { %12801 = vmatprep.subr.bf16.mxu0 %v15665_v52  ;;  %v3067_v58 = vld [vmem:[#allocation7 + $0x1348] sm:$0xff]  ;;  %v15833_v43 = vcombine.high %v3139_v20, %v3143_v40  ;;  %v15832_v4 = vcombine.low %v3139_v20, %v3143_v40 }
 0x439   :  { %12775 = vmatpush2.bf16.msra.mxu1 %v15608_v23  ;;  %v3071_v18 = vld [vmem:[#allocation7 + $0x1368] sm:$0xff] }
 0x43a   :  { %12776 = vmatprep.subr.bf16.mxu1 %v15601_v19  ;;  %v3131_v52 = vld [vmem:[#allocation7 + $0x1548] sm:$0xff]  ;;  %v15761_v53 = vcombine.high %v3067_v58, %v3071_v18  ;;  %v15760_v1 = vcombine.low %v3067_v58, %v3071_v18 }
 0x43b   :  { %12802 = vmatpush1.bf16.msra.mxu0 %v15664_v16  ;;  %v3135_v23 = vld [vmem:[#allocation7 + $0x1568] sm:$0xff] }
 0x43c   :  { %12803 = vmatprep.subr.bf16.mxu0 %v15657_v7  ;;  %v3059_v19 = vld [vmem:[#allocation7 + $0x1308] sm:$0xff]  ;;  %v15825_v30 = vcombine.high %v3131_v52, %v3135_v23  ;;  %v15824_v46 = vcombine.low %v3131_v52, %v3135_v23 }
 0x43d   :  { %12777 = vmatpush2.bf16.msra.mxu1 %v15600_v2  ;;  %v3063_v16 = vld [vmem:[#allocation7 + $0x1328] sm:$0xff] }
 0x43e   :  { %12778 = vmatprep.subr.bf16.mxu1 %v15593_v39  ;;  %v3123_v7 = vld [vmem:[#allocation7 + $0x1508] sm:$0xff]  ;;  %v15753_v31 = vcombine.high %v3059_v19, %v3063_v16  ;;  %v15752_v38 = vcombine.low %v3059_v19, %v3063_v16 }
 0x43f   :  { %12804 = vmatpush1.bf16.msra.mxu0 %v15656_v55  ;;  %v3127_v2 = vld [vmem:[#allocation7 + $0x1528] sm:$0xff] }
 0x440   :  { %12805 = vmatprep.subr.bf16.mxu0 %v15777_v48  ;;  %v3051_v39 = vld [vmem:[#allocation7 + $0x12c8] sm:$0xff]  ;;  %v15817_v57 = vcombine.high %v3123_v7, %v3127_v2  ;;  %v15816_v56 = vcombine.low %v3123_v7, %v3127_v2 }
 0x441   :  { %12779 = vmatpush2.bf16.msra.mxu1 %v15592_v50  ;;  %v3055_v55 = vld [vmem:[#allocation7 + $0x12e8] sm:$0xff] }
 0x442   :  { %12830 = vmatprep.subr.bf16.mxu1 %v15841_v6  ;;  %v3115_v48 = vld [vmem:[#allocation7 + $0x14c8] sm:$0xff]  ;;  %v15745_v5 = vcombine.high %v3051_v39, %v3055_v55  ;;  %v15744_v40 = vcombine.low %v3051_v39, %v3055_v55 }
 0x443   :  { %12806 = vmatpush2.bf16.msra.mxu0 %v15776_v61  ;;  %v3119_v50 = vld [vmem:[#allocation7 + $0x14e8] sm:$0xff] }
 0x444   :  { %12781 = vmatmul.mubr.bf16.vlgmr.msra.gmra.mxu1 %v18273_v0  ;;  %12807 = vmatprep.subr.bf16.mxu0 %v15769_v60  ;;  %v3043_v6 = vld [vmem:[#allocation7 + $0x1288] sm:$0xff]  ;;  %v15809_v20 = vcombine.high %v3115_v48, %v3119_v50  ;;  %v15808_v18 = vcombine.low %v3115_v48, %v3119_v50 }
 0x445   :  { %12831 = vmatpush1.bf16.msra.mxu1 %v15840_v3  ;;  %12862 = vmatprep.mubr.bf16.mxu1 %v18275_v42  ;;  %v3047_v61 = vld [vmem:[#allocation7 + $0x12a8] sm:$0xff] }
 0x446   :  { %12832 = vmatprep.subr.bf16.mxu1 %v15833_v43  ;;  %v3107_v60 = vld [vmem:[#allocation7 + $0x1488] sm:$0xff]  ;;  %v15737_v58 = vcombine.high %v3043_v6, %v3047_v61  ;;  %v15736_v23 = vcombine.low %v3043_v6, %v3047_v61 }
 0x447   :  { %12808 = vmatpush2.bf16.msra.mxu0 %v15768_v37  ;;  %v3111_v3 = vld [vmem:[#allocation7 + $0x14a8] sm:$0xff] }
 0x448   :  { %12809 = vmatprep.subr.bf16.mxu0 %v15761_v53  ;;  %v3035_v43 = vld [vmem:[#allocation7 + $0x1248] sm:$0xff]  ;;  %v15801_v52 = vcombine.high %v3107_v60, %v3111_v3  ;;  %v15800_v16 = vcombine.low %v3107_v60, %v3111_v3 }
 0x449   :  { %12833 = vmatpush1.bf16.msra.mxu1 %v15832_v4  ;;  %v3039_v37 = vld [vmem:[#allocation7 + $0x1268] sm:$0xff] }
 0x44a   :  { %12834 = vmatprep.subr.bf16.mxu1 %v15825_v30  ;;  %v3099_v53 = vld [vmem:[#allocation7 + $0x1448] sm:$0xff]  ;;  %v15729_v19 = vcombine.high %v3035_v43, %v3039_v37  ;;  %v15728_v2 = vcombine.low %v3035_v43, %v3039_v37 }
 0x44b   :  { %12810 = vmatpush2.bf16.msra.mxu0 %v15760_v1  ;;  %v3103_v4 = vld [vmem:[#allocation7 + $0x1468] sm:$0xff] }
 0x44c   :  { %12811 = vmatprep.subr.bf16.mxu0 %v15753_v31  ;;  %v3027_v30 = vld [vmem:[#allocation7 + $0x1208] sm:$0xff]  ;;  %v15793_v7 = vcombine.high %v3099_v53, %v3103_v4  ;;  %v15792_v55 = vcombine.low %v3099_v53, %v3103_v4 }
 0x44d   :  { %12835 = vmatpush1.bf16.msra.mxu1 %v15824_v46  ;;  %v3031_v1 = vld [vmem:[#allocation7 + $0x1228] sm:$0xff] }
 0x44e   :  { %12836 = vmatprep.subr.bf16.mxu1 %v15817_v57  ;;  %v3091_v31 = vld [vmem:[#allocation7 + $0x1408] sm:$0xff]  ;;  %v15721_v39 = vcombine.high %v3027_v30, %v3031_v1  ;;  %v15720_v50 = vcombine.low %v3027_v30, %v3031_v1 }
 0x44f   :  { %12812 = vmatpush2.bf16.msra.mxu0 %v15752_v38  ;;  %v3095_v46 = vld [vmem:[#allocation7 + $0x1428] sm:$0xff] }
 0x450   :  { %12813 = vmatprep.subr.bf16.mxu0 %v15745_v5  ;;  %v3275_v57 = vld [vmem:[#allocation7 + $0x19c8] sm:$0xff]  ;;  %v15785_v48 = vcombine.high %v3091_v31, %v3095_v46  ;;  %v15784_v61 = vcombine.low %v3091_v31, %v3095_v46 }
 0x451   :  { %12837 = vmatpush1.bf16.msra.mxu1 %v15816_v56  ;;  %v3279_v38 = vld [vmem:[#allocation7 + $0x19e8] sm:$0xff] }
 0x452   :  { %12838 = vmatprep.subr.bf16.mxu1 %v15809_v20  ;;  %v3211_v5 = vld [vmem:[#allocation7 + $0x17c8] sm:$0xff]  ;;  %v15969_v6 = vcombine.high %v3275_v57, %v3279_v38  ;;  %v15968_v3 = vcombine.low %v3275_v57, %v3279_v38 }
 0x453   :  { %12814 = vmatpush2.bf16.msra.mxu0 %v15744_v40  ;;  %v3215_v56 = vld [vmem:[#allocation7 + $0x17e8] sm:$0xff] }
 0x454   :  { %12815 = vmatprep.subr.bf16.mxu0 %v15737_v58  ;;  %v3267_v20 = vld [vmem:[#allocation7 + $0x1988] sm:$0xff]  ;;  %v15905_v60 = vcombine.high %v3211_v5, %v3215_v56  ;;  %v15904_v37 = vcombine.low %v3211_v5, %v3215_v56 }
 0x455   :  { %12839 = vmatpush1.bf16.msra.mxu1 %v15808_v18  ;;  %v3271_v40 = vld [vmem:[#allocation7 + $0x19a8] sm:$0xff] }
 0x456   :  { %12840 = vmatprep.subr.bf16.mxu1 %v15801_v52  ;;  %v3203_v58 = vld [vmem:[#allocation7 + $0x1788] sm:$0xff]  ;;  %v15961_v43 = vcombine.high %v3267_v20, %v3271_v40 }
 0x457   :  { %12816 = vmatpush2.bf16.msra.mxu0 %v15736_v23  ;;  %v3207_v18 = vld [vmem:[#allocation7 + $0x17a8] sm:$0xff] }
 0x458   :  { %12817 = vmatprep.subr.bf16.mxu0 %v15729_v19  ;;  %v3259_v52 = vld [vmem:[#allocation7 + $0x1948] sm:$0xff]  ;;  %v15897_v4 = vcombine.high %v3203_v58, %v3207_v18  ;;  %v15960_v19 = vcombine.low %v3267_v20, %v3271_v40  ;;  %v15896_v46 = vcombine.low %v3203_v58, %v3207_v18 }
 0x459   :  { %12841 = vmatpush1.bf16.msra.mxu1 %v15800_v16  ;;  %v3263_v23 = vld [vmem:[#allocation7 + $0x1968] sm:$0xff] }
 0x45a   :  { %12842 = vmatprep.subr.bf16.mxu1 %v15793_v7  ;;  %v3195_v16 = vld [vmem:[#allocation7 + $0x1748] sm:$0xff]  ;;  %v15952_v5 = vcombine.low %v3259_v52, %v3263_v23 }
 0x45b   :  { %12818 = vmatpush2.bf16.msra.mxu0 %v15728_v2  ;;  %v3199_v30 = vld [vmem:[#allocation7 + $0x1768] sm:$0xff]  ;;  %v15953_v2 = vcombine.high %v3259_v52, %v3263_v23 }
 0x45c   :  { %12819 = vmatprep.subr.bf16.mxu0 %v15721_v39  ;;  %v3251_v39 = vld [vmem:[#allocation7 + $0x1908] sm:$0xff] }
 0x45d   :  { %12843 = vmatpush1.bf16.msra.mxu1 %v15792_v55  ;;  %v3255_v55 = vld [vmem:[#allocation7 + $0x1928] sm:$0xff] }
 0x45e   :  { %12844 = vmatprep.subr.bf16.mxu1 %v15785_v48  ;;  %v15889_v48 = vcombine.high %v3195_v16, %v3199_v30  ;;  %v3187_v56 = vld [vmem:[#allocation7 + $0x1708] sm:$0xff] }
 0x45f   :  { %12820 = vmatpush2.bf16.msra.mxu0 %v15720_v50  ;;  %v3247_v58 = vld [vmem:[#allocation7 + $0x18e8] sm:$0xff] }
 0x460   :  { %12871 = vmatprep.subr.bf16.mxu0 %v15969_v6  ;;  %v3191_v6 = vld [vmem:[#allocation7 + $0x1728] sm:$0xff] }
 0x461   :  { %12845 = vmatpush1.bf16.msra.mxu1 %v15784_v61  ;;  %v3179_v52 = vld [vmem:[#allocation7 + $0x16c8] sm:$0xff] }
 0x462   :  { %v12577_v53 = vpop.f32.mrf.mxu0  ;;  %12822 = vmatmul.mubr.bf16.vlgmr.msra.gmra.mxu0 %v18315_v41  ;;  %12846 = vmatprep.subr.bf16.mxu1 %v15905_v60  ;;  %v15888_v60 = vcombine.low %v3195_v16, %v3199_v30  ;;  %v3183_v23 = vld [vmem:[#allocation7 + $0x16e8] sm:$0xff] }
 0x463   :  { %12872 = vmatpush1.bf16.msra.mxu0 %v15968_v3  ;;  %12903 = vmatprep.mubr.bf16.mxu0 %v18318_v44  ;;  %v3243_v3 = vld [vmem:[#allocation7 + $0x18c8] sm:$0xff] }
 0x464   :  { %v12579_v1 = vpop.f32.mrf.mxu0  ;;  %v12536_v7 = vpop.f32.mrf.mxu1  ;;  %12873 = vmatprep.subr.bf16.mxu0 %v15961_v43  ;;  %v15936_v16 = vcombine.low %v3243_v3, %v3247_v58  ;;  %v3171_v30 = vld [vmem:[#allocation7 + $0x1688] sm:$0xff] }
 0x465   :  { %v12537_v31 = vadd.f32 %v12536_v7, %v18428_v25  ;;  %12847 = vmatpush2.bf16.msra.mxu1 %v15904_v37  ;;  %v15945_v25 = vcombine.high %v3251_v39, %v3255_v55  ;;  %v15881_v37 = vcombine.high %v3187_v56, %v3191_v6  ;;  %v3239_v7 = vld [vmem:[#allocation7 + $0x18a8] sm:$0xff] }
 0x466   :  { %v12581_v57 = vpop.f32.mrf.mxu0  ;;  %v12538_v38 = vpop.f32.mrf.mxu1  ;;  %12848 = vmatprep.subr.bf16.mxu1 %v15897_v4  ;;  %v15880_v4 = vcombine.low %v3187_v56, %v3191_v6  ;;  %v3219_v6 = vld [vmem:[#allocation7 + $0x1808] sm:$0xff] }
 0x467   :  { %v12539_v50 = vadd.f32 %v12538_v38, %v18430_v11  ;;  %12874 = vmatpush1.bf16.msra.mxu0 %v15960_v19  ;;  %v18438_v61 = vadd.f32 %v12577_v53, %v12537_v31  ;;  %v15944_v11 = vcombine.low %v3251_v39, %v3255_v55  ;;  %v15937_v53 = vcombine.high %v3243_v3, %v3247_v58  ;;  %v3235_v19 = vld [vmem:[#allocation7 + $0x1888] sm:$0xff] }
 0x468   :  { %v12582_v20 = vpop.f32.mrf.mxu0  ;;  %v12540_v40 = vpop.f32.mrf.mxu1  ;;  %12875 = vmatprep.subr.bf16.mxu0 %v15953_v2  ;;  %v15873_v2 = vcombine.high %v3179_v52, %v3183_v23  ;;  %v15929_v31 = vcombine.high %v3235_v19, %v3239_v7  ;;  %v3227_v57 = vld [vmem:[#allocation7 + $0x1848] sm:$0xff]  ;;  %v15928_v38 = vcombine.low %v3235_v19, %v3239_v7 }
 0x469   :  { %12849 = vmatpush2.bf16.msra.mxu1 %v15896_v46  ;;  %v18440_v18 = vadd.f32 %v12579_v1, %v12539_v50  ;;  %v3175_v1 = vld [vmem:[#allocation7 + $0x16a8] sm:$0xff]  ;;  %v15872_v46 = vcombine.low %v3179_v52, %v3183_v23 }
 0x46a   :  { %v12541_v43 = vpop.f32.mrf.mxu1  ;;  %12850 = vmatprep.subr.bf16.mxu1 %v15889_v48  ;;  %v3231_v39 = vld [vmem:[#allocation7 + $0x1868] sm:$0xff]  ;;  %v15865_v55 = vcombine.high %v3171_v30, %v3175_v1  ;;  %v15864_v56 = vcombine.low %v3171_v30, %v3175_v1 }
 0x46b   :  { %12876 = vmatpush1.bf16.msra.mxu0 %v15952_v5  ;;  %v3163_v48 = vld [vmem:[#allocation7 + $0x1648] sm:$0xff]  ;;  %v15921_v5 = vcombine.high %v3227_v57, %v3231_v39 }
 0x46c   :  { %12877 = vmatprep.subr.bf16.mxu0 %v15945_v25  ;;  %v3167_v50 = vld [vmem:[#allocation7 + $0x1668] sm:$0xff]  ;;  %v15920_v25 = vcombine.low %v3227_v57, %v3231_v39 }
 0x46d   :  { %12851 = vmatpush2.bf16.msra.mxu1 %v15888_v60  ;;  %v3223_v20 = vld [vmem:[#allocation7 + $0x1828] sm:$0xff]  ;;  %v15857_v40 = vcombine.high %v3163_v48, %v3167_v50  ;;  %v15856_v43 = vcombine.low %v3163_v48, %v3167_v50 }
 0x46e   :  { %12852 = vmatprep.subr.bf16.mxu1 %v15881_v37  ;;  %v3155_v60 = vld [vmem:[#allocation7 + $0x1608] sm:$0xff]  ;;  %v15913_v58 = vcombine.high %v3219_v6, %v3223_v20  ;;  %v15912_v23 = vcombine.low %v3219_v6, %v3223_v20 }
 0x46f   :  { %12878 = vmatpush1.bf16.msra.mxu0 %v15944_v11  ;;  %v3159_v3 = vld [vmem:[#allocation7 + $0x1628] sm:$0xff] }
 0x470   :  { %12879 = vmatprep.subr.bf16.mxu0 %v15937_v53  ;;  %v3339_v37 = vld [vmem:[#allocation7 + $0x1bc8] sm:$0xff]  ;;  %v15849_v52 = vcombine.high %v3155_v60, %v3159_v3  ;;  %v15848_v7 = vcombine.low %v3155_v60, %v3159_v3 }
 0x471   :  { %12853 = vmatpush2.bf16.msra.mxu1 %v15880_v4  ;;  %v3343_v11 = vld [vmem:[#allocation7 + $0x1be8] sm:$0xff] }
 0x472   :  { %12854 = vmatprep.subr.bf16.mxu1 %v15873_v2  ;;  %v3403_v53 = vld [vmem:[#allocation7 + $0x1dc8] sm:$0xff]  ;;  %v16033_v19 = vcombine.high %v3339_v37, %v3343_v11  ;;  %v16032_v1 = vcombine.low %v3339_v37, %v3343_v11 }
 0x473   :  { %12880 = vmatpush1.bf16.msra.mxu0 %v15936_v16  ;;  %v3407_v4 = vld [vmem:[#allocation7 + $0x1de8] sm:$0xff] }
 0x474   :  { %12881 = vmatprep.subr.bf16.mxu0 %v15929_v31  ;;  %v3331_v2 = vld [vmem:[#allocation7 + $0x1b88] sm:$0xff]  ;;  %v16097_v30 = vcombine.high %v3403_v53, %v3407_v4  ;;  %v16096_v39 = vcombine.low %v3403_v53, %v3407_v4 }
 0x475   :  { %12855 = vmatpush2.bf16.msra.mxu1 %v15872_v46  ;;  %v3335_v16 = vld [vmem:[#allocation7 + $0x1ba8] sm:$0xff] }
 0x476   :  { %12856 = vmatprep.subr.bf16.mxu1 %v15865_v55  ;;  %v3395_v31 = vld [vmem:[#allocation7 + $0x1d88] sm:$0xff]  ;;  %v16025_v57 = vcombine.high %v3331_v2, %v3335_v16  ;;  %v16024_v50 = vcombine.low %v3331_v2, %v3335_v16 }
 0x477   :  { %12882 = vmatpush1.bf16.msra.mxu0 %v15928_v38  ;;  %v3399_v46 = vld [vmem:[#allocation7 + $0x1da8] sm:$0xff] }
 0x478   :  { %12883 = vmatprep.subr.bf16.mxu0 %v15921_v5  ;;  %v3323_v55 = vld [vmem:[#allocation7 + $0x1b48] sm:$0xff]  ;;  %v16089_v48 = vcombine.high %v3395_v31, %v3399_v46 }
 0x479   :  { %12857 = vmatpush2.bf16.msra.mxu1 %v15864_v56  ;;  %v3327_v38 = vld [vmem:[#allocation7 + $0x1b68] sm:$0xff] }
 0x47a   :  { %12858 = vmatprep.subr.bf16.mxu1 %v15857_v40  ;;  %v3387_v5 = vld [vmem:[#allocation7 + $0x1d48] sm:$0xff]  ;;  %v16017_v20 = vcombine.high %v3323_v55, %v3327_v38  ;;  %v16016_v11 = vcombine.low %v3323_v55, %v3327_v38 }
 0x47b   :  { %12884 = vmatpush1.bf16.msra.mxu0 %v15920_v25  ;;  %v3391_v56 = vld [vmem:[#allocation7 + $0x1d68] sm:$0xff]  ;;  %v16088_v25 = vcombine.low %v3395_v31, %v3399_v46 }
 0x47c   :  { %12885 = vmatprep.subr.bf16.mxu0 %v15913_v58  ;;  %v3315_v60 = vld [vmem:[#allocation7 + $0x1b08] sm:$0xff]  ;;  %v16080_v4 = vcombine.low %v3387_v5, %v3391_v56 }
 0x47d   :  { %12859 = vmatpush2.bf16.msra.mxu1 %v15856_v43  ;;  %v3319_v3 = vld [vmem:[#allocation7 + $0x1b28] sm:$0xff]  ;;  %v16081_v43 = vcombine.high %v3387_v5, %v3391_v56 }
 0x47e   :  { %12860 = vmatprep.subr.bf16.mxu1 %v15849_v52  ;;  %v3379_v52 = vld [vmem:[#allocation7 + $0x1d08] sm:$0xff] }
 0x47f   :  { %12886 = vmatpush1.bf16.msra.mxu0 %v15912_v23  ;;  %v3383_v23 = vld [vmem:[#allocation7 + $0x1d28] sm:$0xff] }
 0x480   :  { %12887 = vmatprep.subr.bf16.mxu0 %v16033_v19  ;;  %v3307_v19 = vld [vmem:[#allocation7 + $0x1ac8] sm:$0xff]  ;;  %v16073_v16 = vcombine.high %v3379_v52, %v3383_v23  ;;  %v16072_v46 = vcombine.low %v3379_v52, %v3383_v23 }
 0x481   :  { %12861 = vmatpush2.bf16.msra.mxu1 %v15848_v7  ;;  %v3311_v7 = vld [vmem:[#allocation7 + $0x1ae8] sm:$0xff] }
 0x482   :  { %12912 = vmatprep.subr.bf16.mxu1 %v16097_v30  ;;  %v16008_v30 = vcombine.low %v3315_v60, %v3319_v3  ;;  %v3375_v31 = vld [vmem:[#allocation7 + $0x1ce8] sm:$0xff]  ;;  %v16000_v38 = vcombine.low %v3307_v19, %v3311_v7 }
 0x483   :  { %12888 = vmatpush2.bf16.msra.mxu0 %v16032_v1  ;;  %v3371_v1 = vld [vmem:[#allocation7 + $0x1cc8] sm:$0xff] }
 0x484   :  { %v12618_v6 = vpop.f32.mrf.mxu1  ;;  %12863 = vmatmul.mubr.bf16.vlgmr.msra.gmra.mxu1 %v18311_v22  ;;  %12889 = vmatprep.subr.bf16.mxu0 %v16025_v57  ;;  %v3299_v57 = vld [vmem:[#allocation7 + $0x1a88] sm:$0xff]  ;;  %v16065_v55 = vcombine.high %v3371_v1, %v3375_v31  ;;  %v16064_v56 = vcombine.low %v3371_v1, %v3375_v31 }
 0x485   :  { %v18444_v40 = vadd.f32 %v12618_v6, %v18438_v61  ;;  %12913 = vmatpush1.bf16.msra.mxu1 %v16096_v39  ;;  %12944 = vmatprep.mubr.bf16.mxu1 %v18313_v26  ;;  %v16009_v61 = vcombine.high %v3315_v60, %v3319_v3  ;;  %v3303_v39 = vld [vmem:[#allocation7 + $0x1aa8] sm:$0xff] }
 0x486   :  { %v12620_v58 = vpop.f32.mrf.mxu1  ;;  %12914 = vmatprep.subr.bf16.mxu1 %v16089_v48  ;;  %v3363_v48 = vld [vmem:[#allocation7 + $0x1c88] sm:$0xff]  ;;  %v15993_v5 = vcombine.high %v3299_v57, %v3303_v39  ;;  %v15992_v60 = vcombine.low %v3299_v57, %v3303_v39 }
 0x487   :  { %v18448_v37 = vadd.f32 %v12620_v58, %v18440_v18  ;;  %12890 = vmatpush2.bf16.msra.mxu0 %v16024_v50  ;;  %v16001_v18 = vcombine.high %v3307_v19, %v3311_v7  ;;  %v3367_v50 = vld [vmem:[#allocation7 + $0x1ca8] sm:$0xff] }
 0x488   :  { %v12622_v53 = vpop.f32.mrf.mxu1  ;;  %12891 = vmatprep.subr.bf16.mxu0 %v16017_v20  ;;  %v3291_v6 = vld [vmem:[#allocation7 + $0x1a48] sm:$0xff] }
 0x489   :  { %12915 = vmatpush1.bf16.msra.mxu1 %v16088_v25  ;;  %v3295_v20 = vld [vmem:[#allocation7 + $0x1a68] sm:$0xff]  ;;  %v16057_v25 = vcombine.high %v3363_v48, %v3367_v50 }
 0x48a   :  { %v12623_v2 = vpop.f32.mrf.mxu1  ;;  %12916 = vmatprep.subr.bf16.mxu1 %v16081_v43  ;;  %v3355_v3 = vld [vmem:[#allocation7 + $0x1c48] sm:$0xff]  ;;  %v15985_v43 = vcombine.high %v3291_v6, %v3295_v20 }
 0x48b   :  { %12892 = vmatpush2.bf16.msra.mxu0 %v16016_v11  ;;  %v3359_v58 = vld [vmem:[#allocation7 + $0x1c68] sm:$0xff]  ;;  %v16056_v11 = vcombine.low %v3363_v48, %v3367_v50 }
 0x48c   :  { %12893 = vmatprep.subr.bf16.mxu0 %v16009_v61  ;;  %v3283_v52 = vld [vmem:[#allocation7 + $0x1a08] sm:$0xff]  ;;  %v16049_v53 = vcombine.high %v3355_v3, %v3359_v58  ;;  %v15984_v61 = vcombine.low %v3291_v6, %v3295_v20  ;;  %v16048_v2 = vcombine.low %v3355_v3, %v3359_v58 }
 0x48d   :  { %12917 = vmatpush1.bf16.msra.mxu1 %v16080_v4  ;;  %v3287_v23 = vld [vmem:[#allocation7 + $0x1a28] sm:$0xff] }
 0x48e   :  { %12918 = vmatprep.subr.bf16.mxu1 %v16073_v16  ;;  %v3347_v4 = vld [vmem:[#allocation7 + $0x1c08] sm:$0xff]  ;;  %v15977_v7 = vcombine.high %v3283_v52, %v3287_v23  ;;  %v15976_v31 = vcombine.low %v3283_v52, %v3287_v23 }
 0x48f   :  { %12894 = vmatpush2.bf16.msra.mxu0 %v16008_v30  ;;  %v3351_v19 = vld [vmem:[#allocation7 + $0x1c28] sm:$0xff] }
 0x490   :  { %12895 = vmatprep.subr.bf16.mxu0 %v16001_v18  ;;  %v3531_v16 = vld [vmem:[#allocation7 + $0x21c8] sm:$0xff]  ;;  %v16041_v1 = vcombine.high %v3347_v4, %v3351_v19  ;;  %v16040_v39 = vcombine.low %v3347_v4, %v3351_v19 }
 0x491   :  { %12919 = vmatpush1.bf16.msra.mxu1 %v16072_v46  ;;  %v3535_v30 = vld [vmem:[#allocation7 + $0x21e8] sm:$0xff] }
 0x492   :  { %12920 = vmatprep.subr.bf16.mxu1 %v16065_v55  ;;  %v3467_v18 = vld [vmem:[#allocation7 + $0x1fc8] sm:$0xff]  ;;  %v16225_v57 = vcombine.high %v3531_v16, %v3535_v30  ;;  %v16224_v50 = vcombine.low %v3531_v16, %v3535_v30 }
 0x493   :  { %12896 = vmatpush2.bf16.msra.mxu0 %v16000_v38  ;;  %v3471_v46 = vld [vmem:[#allocation7 + $0x1fe8] sm:$0xff] }
 0x494   :  { %12897 = vmatprep.subr.bf16.mxu0 %v15993_v5  ;;  %v3523_v55 = vld [vmem:[#allocation7 + $0x2188] sm:$0xff]  ;;  %v16161_v48 = vcombine.high %v3467_v18, %v3471_v46  ;;  %v16160_v20 = vcombine.low %v3467_v18, %v3471_v46 }
 0x495   :  { %12921 = vmatpush1.bf16.msra.mxu1 %v16064_v56  ;;  %v3527_v38 = vld [vmem:[#allocation7 + $0x21a8] sm:$0xff] }
 0x496   :  { %12922 = vmatprep.subr.bf16.mxu1 %v16057_v25  ;;  %v3459_v5 = vld [vmem:[#allocation7 + $0x1f88] sm:$0xff]  ;;  %v16217_v6 = vcombine.high %v3523_v55, %v3527_v38 }
 0x497   :  { %12898 = vmatpush2.bf16.msra.mxu0 %v15992_v60  ;;  %v3463_v56 = vld [vmem:[#allocation7 + $0x1fa8] sm:$0xff] }
 0x498   :  { %12899 = vmatprep.subr.bf16.mxu0 %v15985_v43  ;;  %v3515_v25 = vld [vmem:[#allocation7 + $0x2148] sm:$0xff]  ;;  %v16153_v58 = vcombine.high %v3459_v5, %v3463_v56  ;;  %v16216_v43 = vcombine.low %v3523_v55, %v3527_v38 }
 0x499   :  { %12923 = vmatpush1.bf16.msra.mxu1 %v16056_v11  ;;  %v3519_v60 = vld [vmem:[#allocation7 + $0x2168] sm:$0xff] }
 0x49a   :  { %12924 = vmatprep.subr.bf16.mxu1 %v16049_v53  ;;  %v3451_v11 = vld [vmem:[#allocation7 + $0x1f48] sm:$0xff]  ;;  %v16209_v53 = vcombine.high %v3515_v25, %v3519_v60  ;;  %v16208_v16 = vcombine.low %v3515_v25, %v3519_v60 }
 0x49b   :  { %12900 = vmatpush2.bf16.msra.mxu0 %v15984_v61  ;;  %v3455_v52 = vld [vmem:[#allocation7 + $0x1f68] sm:$0xff]  ;;  %v16152_v61 = vcombine.low %v3459_v5, %v3463_v56 }
 0x49c   :  { %12901 = vmatprep.subr.bf16.mxu0 %v15977_v7  ;;  %v3507_v4 = vld [vmem:[#allocation7 + $0x2108] sm:$0xff]  ;;  %v16144_v46 = vcombine.low %v3451_v11, %v3455_v52 }
 0x49d   :  { %12925 = vmatpush1.bf16.msra.mxu1 %v16048_v2  ;;  %v3511_v19 = vld [vmem:[#allocation7 + $0x2128] sm:$0xff]  ;;  %v16145_v2 = vcombine.high %v3451_v11, %v3455_v52 }
 0x49e   :  { %12926 = vmatprep.subr.bf16.mxu1 %v16041_v1  ;;  %v3443_v30 = vld [vmem:[#allocation7 + $0x1f08] sm:$0xff]  ;;  %v16201_v18 = vcombine.high %v3507_v4, %v3511_v19  ;;  %v16200_v38 = vcombine.low %v3507_v4, %v3511_v19 }
 0x49f   :  { %12902 = vmatpush2.bf16.msra.mxu0 %v15976_v31  ;;  %v3447_v1 = vld [vmem:[#allocation7 + $0x1f28] sm:$0xff] }
 0x4a0   :  { %12953 = vmatprep.subr.bf16.mxu0 %v16225_v57  ;;  %v3499_v57 = vld [vmem:[#allocation7 + $0x20c8] sm:$0xff]  ;;  %v16137_v55 = vcombine.high %v3443_v30, %v3447_v1  ;;  %v16136_v56 = vcombine.low %v3443_v30, %v3447_v1 }
 0x4a1   :  { %12927 = vmatpush1.bf16.msra.mxu1 %v16040_v39  ;;  %v3503_v39 = vld [vmem:[#allocation7 + $0x20e8] sm:$0xff] }
 0x4a2   :  { %v18450_v3 = vpop.f32.mrf.mxu0  ;;  %12904 = vmatmul.mubr.bf16.vlgmr.msra.gmra.mxu0 %v18346_v28  ;;  %12928 = vmatprep.subr.bf16.mxu1 %v16161_v48  ;;  %v3435_v48 = vld [vmem:[#allocation7 + $0x1ec8] sm:$0xff]  ;;  %v16193_v5 = vcombine.high %v3499_v57, %v3503_v39  ;;  %v16192_v60 = vcombine.low %v3499_v57, %v3503_v39 }
 0x4a3   :  { %12954 = vmatpush1.bf16.msra.mxu0 %v16224_v50  ;;  %12985 = vmatprep.mubr.bf16.mxu0 %v18349_v34  ;;  %v3439_v50 = vld [vmem:[#allocation7 + $0x1ee8] sm:$0xff] }
 0x4a4   :  { %v18454_v23 = vpop.f32.mrf.mxu0  ;;  %12955 = vmatprep.subr.bf16.mxu0 %v16217_v6  ;;  %v3491_v6 = vld [vmem:[#allocation7 + $0x2088] sm:$0xff]  ;;  %v16129_v25 = vcombine.high %v3435_v48, %v3439_v50  ;;  %v16128_v52 = vcombine.low %v3435_v48, %v3439_v50 }
 0x4a5   :  { %12929 = vmatpush2.bf16.msra.mxu1 %v16160_v20  ;;  %v3495_v20 = vld [vmem:[#allocation7 + $0x20a8] sm:$0xff] }
 0x4a6   :  { %v12663_v7 = vpop.f32.mrf.mxu0  ;;  %12930 = vmatprep.subr.bf16.mxu1 %v16153_v58  ;;  %v3427_v58 = vld [vmem:[#allocation7 + $0x1e88] sm:$0xff]  ;;  %v16185_v11 = vcombine.high %v3491_v6, %v3495_v20  ;;  %v16184_v19 = vcombine.low %v3491_v6, %v3495_v20 }
 0x4a7   :  { %12956 = vmatpush1.bf16.msra.mxu0 %v16216_v43  ;;  %v3431_v43 = vld [vmem:[#allocation7 + $0x1ea8] sm:$0xff] }
 0x4a8   :  { %v12664_v31 = vpop.f32.mrf.mxu0  ;;  %12957 = vmatprep.subr.bf16.mxu0 %v16209_v53  ;;  %v3483_v53 = vld [vmem:[#allocation7 + $0x2048] sm:$0xff]  ;;  %v16121_v4 = vcombine.high %v3427_v58, %v3431_v43  ;;  %v16120_v30 = vcombine.low %v3427_v58, %v3431_v43 }
 0x4a9   :  { %12931 = vmatpush2.bf16.msra.mxu1 %v16152_v61  ;;  %v3487_v61 = vld [vmem:[#allocation7 + $0x2068] sm:$0xff] }
 0x4aa   :  { %12932 = vmatprep.subr.bf16.mxu1 %v16145_v2  ;;  %v3419_v7 = vld [vmem:[#allocation7 + $0x1e48] sm:$0xff] }
 0x4ab   :  { %12958 = vmatpush1.bf16.msra.mxu0 %v16208_v16  ;;  %v3423_v2 = vld [vmem:[#allocation7 + $0x1e68] sm:$0xff]  ;;  %v16177_v16 = vcombine.high %v3483_v53, %v3487_v61 }
 0x4ac   :  { %12959 = vmatprep.subr.bf16.mxu0 %v16201_v18  ;;  %v3475_v1 = vld [vmem:[#allocation7 + $0x2008] sm:$0xff]  ;;  %v16113_v18 = vcombine.high %v3419_v7, %v3423_v2 }
 0x4ad   :  { %12933 = vmatpush2.bf16.msra.mxu1 %v16144_v46  ;;  %v3479_v31 = vld [vmem:[#allocation7 + $0x2028] sm:$0xff]  ;;  %v16176_v46 = vcombine.low %v3483_v53, %v3487_v61 }
 0x4ae   :  { %12934 = vmatprep.subr.bf16.mxu1 %v16137_v55  ;;  %v3411_v57 = vld [vmem:[#allocation7 + $0x1e08] sm:$0xff]  ;;  %v16169_v55 = vcombine.high %v3475_v1, %v3479_v31 }
 0x4af   :  { %12960 = vmatpush1.bf16.msra.mxu0 %v16200_v38  ;;  %v3415_v39 = vld [vmem:[#allocation7 + $0x1e28] sm:$0xff]  ;;  %v16112_v38 = vcombine.low %v3419_v7, %v3423_v2 }
 0x4b0   :  { %12961 = vmatprep.subr.bf16.mxu0 %v16193_v5  ;;  %v3595_v48 = vld [vmem:[#allocation7 + $0x23c8] sm:$0xff]  ;;  %v16105_v5 = vcombine.high %v3411_v57, %v3415_v39 }
 0x4b1   :  { %12935 = vmatpush2.bf16.msra.mxu1 %v16136_v56  ;;  %v3599_v50 = vld [vmem:[#allocation7 + $0x23e8] sm:$0xff]  ;;  %v16168_v56 = vcombine.low %v3475_v1, %v3479_v31 }
 0x4b2   :  { %12936 = vmatprep.subr.bf16.mxu1 %v16129_v25  ;;  %v3659_v6 = vld [vmem:[#allocation7 + $0x25c8] sm:$0xff]  ;;  %v16289_v25 = vcombine.high %v3595_v48, %v3599_v50  ;;  %v16288_v61 = vcombine.low %v3595_v48, %v3599_v50 }
 0x4b3   :  { %12962 = vmatpush1.bf16.msra.mxu0 %v16192_v60  ;;  %v3663_v20 = vld [vmem:[#allocation7 + $0x25e8] sm:$0xff]  ;;  %v16104_v60 = vcombine.low %v3411_v57, %v3415_v39 }
 0x4b4   :  { %12963 = vmatprep.subr.bf16.mxu0 %v16185_v11  ;;  %v3587_v58 = vld [vmem:[#allocation7 + $0x2388] sm:$0xff]  ;;  %v16353_v11 = vcombine.high %v3659_v6, %v3663_v20 }
 0x4b5   :  { %12937 = vmatpush2.bf16.msra.mxu1 %v16128_v52  ;;  %v3591_v43 = vld [vmem:[#allocation7 + $0x23a8] sm:$0xff]  ;;  %v17391_v52 = vld [vmem:[#allocation8] sm:$0xff] }
 0x4b6   :  { %12938 = vmatprep.subr.bf16.mxu1 %v16121_v4  ;;  %v4063_v53 = vrot.slane %v17391_v52, %v18200_v29  ;;  %v3651_v4 = vld [vmem:[#allocation7 + $0x2588] sm:$0xff]  ;;  %v16281_v7 = vcombine.high %v3587_v58, %v3591_v43  ;;  %v4067_v2 = vrot.slane %v17391_v52, %v18209_v35 }
 0x4b7   :  { %12964 = vmatpush1.bf16.msra.mxu0 %v16184_v19  ;;  %v3655_v19 = vld [vmem:[#allocation7 + $0x25a8] sm:$0xff] }
 0x4b8   :  { %12965 = vmatprep.subr.bf16.mxu0 %v16177_v16  ;;  %v16352_v16 = vcombine.low %v3659_v6, %v3663_v20  ;;  %v3583_v1 = vld [vmem:[#allocation7 + $0x2368] sm:$0xff]  ;;  %v16345_v31 = vcombine.high %v3651_v4, %v3655_v19  ;;  %v16344_v48 = vcombine.low %v3651_v4, %v3655_v19 }
 0x4b9   :  { %12939 = vmatpush2.bf16.msra.mxu1 %v16120_v30  ;;  %v3579_v30 = vld [vmem:[#allocation7 + $0x2348] sm:$0xff] }
 0x4ba   :  { %12940 = vmatprep.subr.bf16.mxu1 %v16113_v18  ;;  %v12660_v18 = vadd.f32 %v18450_v3, %v4063_v53  ;;  %v3643_v57 = vld [vmem:[#allocation7 + $0x2548] sm:$0xff]  ;;  %v16272_v20 = vcombine.low %v3579_v30, %v3583_v1 }
 0x4bb   :  { %12966 = vmatpush1.bf16.msra.mxu0 %v16176_v46  ;;  %v16280_v46 = vcombine.low %v3587_v58, %v3591_v43  ;;  %v3647_v29 = vld [vmem:[#allocation7 + $0x2568] sm:$0xff] }
 0x4bc   :  { %12967 = vmatprep.subr.bf16.mxu0 %v16169_v55  ;;  %v16273_v55 = vcombine.high %v3579_v30, %v3583_v1  ;;  %v3571_v50 = vld [vmem:[#allocation7 + $0x2308] sm:$0xff]  ;;  %v16336_v43 = vcombine.low %v3643_v57, %v3647_v29 }
 0x4bd   :  { %12941 = vmatpush2.bf16.msra.mxu1 %v16112_v38  ;;  %v12662_v38 = vadd.f32 %v18454_v23, %v4067_v2  ;;  %v3567_v52 = vld [vmem:[#allocation7 + $0x22e8] sm:$0xff] }
 0x4be   :  { %12942 = vmatprep.subr.bf16.mxu1 %v16105_v5  ;;  %v3575_v5 = vld [vmem:[#allocation7 + $0x2328] sm:$0xff] }
 0x4bf   :  { %12968 = vmatpush1.bf16.msra.mxu0 %v16168_v56  ;;  %v16337_v56 = vcombine.high %v3643_v57, %v3647_v29  ;;  %v16265_v23 = vcombine.high %v3571_v50, %v3575_v5  ;;  %v16264_v4 = vcombine.low %v3571_v50, %v3575_v5  ;;  %v3627_v19 = vld [vmem:[#allocation7 + $0x24c8] sm:$0xff] }
 0x4c0   :  { %12969 = vmatprep.subr.bf16.mxu0 %v16289_v25  ;;  %v3635_v25 = vld [vmem:[#allocation7 + $0x2508] sm:$0xff] }
 0x4c1   :  { %12943 = vmatpush2.bf16.msra.mxu1 %v16104_v60  ;;  %v3639_v60 = vld [vmem:[#allocation7 + $0x2528] sm:$0xff] }
 0x4c2   :  { %12994 = vmatprep.subr.bf16.mxu1 %v16353_v11  ;;  %v3563_v11 = vld [vmem:[#allocation7 + $0x22c8] sm:$0xff] }
 0x4c3   :  { %12970 = vmatpush2.bf16.msra.mxu0 %v16288_v61  ;;  %v16329_v61 = vcombine.high %v3635_v25, %v3639_v60  ;;  %v16257_v2 = vcombine.high %v3563_v11, %v3567_v52  ;;  %v3555_v30 = vld [vmem:[#allocation7 + $0x2288] sm:$0xff] }
 0x4c4   :  { %v12700_v39 = vpop.f32.mrf.mxu1  ;;  %12945 = vmatmul.mubr.bf16.vlgmr.msra.gmra.mxu1 %v18341_v36  ;;  %12971 = vmatprep.subr.bf16.mxu0 %v16281_v7  ;;  %v3631_v7 = vld [vmem:[#allocation7 + $0x24e8] sm:$0xff] }
 0x4c5   :  { %v18461_v35 = vadd.f32 %v12700_v39, %v12660_v18  ;;  %12995 = vmatpush1.bf16.msra.mxu1 %v16352_v16  ;;  %13026 = vmatprep.mubr.bf16.mxu1 %v18343_v51  ;;  %v16328_v16 = vcombine.low %v3635_v25, %v3639_v60  ;;  %v3559_v1 = vld [vmem:[#allocation7 + $0x22a8] sm:$0xff]  ;;  %v16256_v18 = vcombine.low %v3563_v11, %v3567_v52 }
 0x4c6   :  { %v12702_v3 = vpop.f32.mrf.mxu1  ;;  %12996 = vmatprep.subr.bf16.mxu1 %v16345_v31  ;;  %v16321_v31 = vcombine.high %v3627_v19, %v3631_v7  ;;  %v3623_v57 = vld [vmem:[#allocation7 + $0x24a8] sm:$0xff]  ;;  %v16249_v29 = vcombine.high %v3555_v30, %v3559_v1  ;;  %v16320_v39 = vcombine.low %v3627_v19, %v3631_v7  ;;  %v16248_v50 = vcombine.low %v3555_v30, %v3559_v1 }
 0x4c7   :  { %v18464_v6 = vadd.f32 %v12702_v3, %v12662_v38  ;;  %12972 = vmatpush2.bf16.msra.mxu0 %v16280_v46  ;;  %v3619_v46 = vld [vmem:[#allocation7 + $0x2488] sm:$0xff] }
 0x4c8   :  { %v12704_v58 = vpop.f32.mrf.mxu1  ;;  %12973 = vmatprep.subr.bf16.mxu0 %v16273_v55  ;;  %v3547_v55 = vld [vmem:[#allocation7 + $0x2248] sm:$0xff] }
 0x4c9   :  { %12997 = vmatpush1.bf16.msra.mxu1 %v16344_v48  ;;  %v3551_v38 = vld [vmem:[#allocation7 + $0x2268] sm:$0xff]  ;;  %v16313_v48 = vcombine.high %v3619_v46, %v3623_v57 }
 0x4ca   :  { %v12705_v53 = vpop.f32.mrf.mxu1  ;;  %12998 = vmatprep.subr.bf16.mxu1 %v16337_v56  ;;  %v3611_v5 = vld [vmem:[#allocation7 + $0x2448] sm:$0xff]  ;;  %v16241_v56 = vcombine.high %v3547_v55, %v3551_v38 }
 0x4cb   :  { %12974 = vmatpush2.bf16.msra.mxu0 %v16272_v20  ;;  %v3615_v3 = vld [vmem:[#allocation7 + $0x2468] sm:$0xff]  ;;  %v16312_v20 = vcombine.low %v3619_v46, %v3623_v57 }
 0x4cc   :  { %12975 = vmatprep.subr.bf16.mxu0 %v16265_v23  ;;  %v3539_v25 = vld [vmem:[#allocation7 + $0x2208] sm:$0xff]  ;;  %v16305_v58 = vcombine.high %v3611_v5, %v3615_v3  ;;  %v16240_v23 = vcombine.low %v3547_v55, %v3551_v38  ;;  %v16304_v53 = vcombine.low %v3611_v5, %v3615_v3 }
 0x4cd   :  { %12999 = vmatpush1.bf16.msra.mxu1 %v16336_v43  ;;  %v3543_v60 = vld [vmem:[#allocation7 + $0x2228] sm:$0xff] }
 0x4ce   :  { %13000 = vmatprep.subr.bf16.mxu1 %v16329_v61  ;;  %v3603_v43 = vld [vmem:[#allocation7 + $0x2408] sm:$0xff]  ;;  %v16233_v52 = vcombine.high %v3539_v25, %v3543_v60  ;;  %v16232_v7 = vcombine.low %v3539_v25, %v3543_v60 }
 0x4cf   :  { %12976 = vmatpush2.bf16.msra.mxu0 %v16264_v4  ;;  %v3607_v11 = vld [vmem:[#allocation7 + $0x2428] sm:$0xff] }
 0x4d0   :  { %12977 = vmatprep.subr.bf16.mxu0 %v16257_v2  ;;  %v3787_v61 = vld [vmem:[#allocation7 + $0x29c8] sm:$0xff]  ;;  %v16297_v19 = vcombine.high %v3603_v43, %v3607_v11  ;;  %v16296_v1 = vcombine.low %v3603_v43, %v3607_v11 }
 0x4d1   :  { %13001 = vmatpush1.bf16.msra.mxu1 %v16328_v16  ;;  %v3791_v4 = vld [vmem:[#allocation7 + $0x29e8] sm:$0xff] }
 0x4d2   :  { %13002 = vmatprep.subr.bf16.mxu1 %v16321_v31  ;;  %v3723_v2 = vld [vmem:[#allocation7 + $0x27c8] sm:$0xff]  ;;  %v16481_v30 = vcombine.high %v3787_v61, %v3791_v4  ;;  %v16480_v57 = vcombine.low %v3787_v61, %v3791_v4 }
 0x4d3   :  { %12978 = vmatpush2.bf16.msra.mxu0 %v16256_v18  ;;  %v3727_v16 = vld [vmem:[#allocation7 + $0x27e8] sm:$0xff] }
 0x4d4   :  { %12979 = vmatprep.subr.bf16.mxu0 %v16249_v29  ;;  %v3779_v31 = vld [vmem:[#allocation7 + $0x2988] sm:$0xff]  ;;  %v16417_v46 = vcombine.high %v3723_v2, %v3727_v16  ;;  %v16416_v38 = vcombine.low %v3723_v2, %v3727_v16 }
 0x4d5   :  { %13003 = vmatpush1.bf16.msra.mxu1 %v16320_v39  ;;  %v3783_v18 = vld [vmem:[#allocation7 + $0x29a8] sm:$0xff] }
 0x4d6   :  { %13004 = vmatprep.subr.bf16.mxu1 %v16313_v48  ;;  %v3715_v29 = vld [vmem:[#allocation7 + $0x2788] sm:$0xff]  ;;  %v16473_v55 = vcombine.high %v3779_v31, %v3783_v18 }
 0x4d7   :  { %12980 = vmatpush2.bf16.msra.mxu0 %v16248_v50  ;;  %v3719_v39 = vld [vmem:[#allocation7 + $0x27a8] sm:$0xff] }
 0x4d8   :  { %12981 = vmatprep.subr.bf16.mxu0 %v16241_v56  ;;  %v3771_v48 = vld [vmem:[#allocation7 + $0x2948] sm:$0xff]  ;;  %v16409_v3 = vcombine.high %v3715_v29, %v3719_v39  ;;  %v16408_v11 = vcombine.low %v3715_v29, %v3719_v39 }
 0x4d9   :  { %13005 = vmatpush1.bf16.msra.mxu1 %v16312_v20  ;;  %v3775_v50 = vld [vmem:[#allocation7 + $0x2968] sm:$0xff]  ;;  %v16472_v20 = vcombine.low %v3779_v31, %v3783_v18 }
 0x4da   :  { %13006 = vmatprep.subr.bf16.mxu1 %v16305_v58  ;;  %v3707_v25 = vld [vmem:[#allocation7 + $0x2748] sm:$0xff]  ;;  %v16464_v4 = vcombine.low %v3771_v48, %v3775_v50 }
 0x4db   :  { %12982 = vmatpush2.bf16.msra.mxu0 %v16240_v23  ;;  %v3711_v60 = vld [vmem:[#allocation7 + $0x2768] sm:$0xff]  ;;  %v16465_v23 = vcombine.high %v3771_v48, %v3775_v50 }
 0x4dc   :  { %12983 = vmatprep.subr.bf16.mxu0 %v16233_v52  ;;  %v3763_v52 = vld [vmem:[#allocation7 + $0x2908] sm:$0xff] }
 0x4dd   :  { %13007 = vmatpush1.bf16.msra.mxu1 %v16304_v53  ;;  %v3767_v53 = vld [vmem:[#allocation7 + $0x2928] sm:$0xff] }
 0x4de   :  { %13008 = vmatprep.subr.bf16.mxu1 %v16297_v19  ;;  %v3699_v19 = vld [vmem:[#allocation7 + $0x2708] sm:$0xff]  ;;  %v16457_v16 = vcombine.high %v3763_v52, %v3767_v53  ;;  %v16456_v18 = vcombine.low %v3763_v52, %v3767_v53 }
 0x4df   :  { %12984 = vmatpush2.bf16.msra.mxu0 %v16232_v7  ;;  %v3703_v7 = vld [vmem:[#allocation7 + $0x2728] sm:$0xff] }
 0x4e0   :  { %13035 = vmatprep.subr.bf16.mxu0 %v16481_v30  ;;  %v16400_v30 = vcombine.low %v3707_v25, %v3711_v60  ;;  %v3759_v31 = vld [vmem:[#allocation7 + $0x28e8] sm:$0xff]  ;;  %v16392_v39 = vcombine.low %v3699_v19, %v3703_v7 }
 0x4e1   :  { %13009 = vmatpush1.bf16.msra.mxu1 %v16296_v1  ;;  %v3755_v1 = vld [vmem:[#allocation7 + $0x28c8] sm:$0xff] }
 0x4e2   :  { %v12741_v5 = vpop.f32.mrf.mxu0  ;;  %12986 = vmatmul.mubr.bf16.vlgmr.msra.gmra.mxu0 %v18375_v59  ;;  %13010 = vmatprep.subr.bf16.mxu1 %v16417_v46  ;;  %v3691_v46 = vld [vmem:[#allocation7 + $0x26c8] sm:$0xff]  ;;  %v16449_v29 = vcombine.high %v3755_v1, %v3759_v31  ;;  %v16448_v50 = vcombine.low %v3755_v1, %v3759_v31 }
 0x4e3   :  { %v18468_v56 = vadd.f32 %v12741_v5, %v18461_v35  ;;  %13036 = vmatpush1.bf16.msra.mxu0 %v16480_v57  ;;  %13067 = vmatprep.mubr.bf16.mxu0 %v18378_v10  ;;  %v16401_v35 = vcombine.high %v3707_v25, %v3711_v60  ;;  %v3695_v57 = vld [vmem:[#allocation7 + $0x26e8] sm:$0xff] }
 0x4e4   :  { %v12743_v58 = vpop.f32.mrf.mxu0  ;;  %13037 = vmatprep.subr.bf16.mxu0 %v16473_v55  ;;  %v3747_v55 = vld [vmem:[#allocation7 + $0x2888] sm:$0xff]  ;;  %v16385_v48 = vcombine.high %v3691_v46, %v3695_v57  ;;  %v16384_v25 = vcombine.low %v3691_v46, %v3695_v57 }
 0x4e5   :  { %v18472_v43 = vadd.f32 %v12743_v58, %v18464_v6  ;;  %13011 = vmatpush2.bf16.msra.mxu1 %v16416_v38  ;;  %v16393_v6 = vcombine.high %v3699_v19, %v3703_v7  ;;  %v3751_v38 = vld [vmem:[#allocation7 + $0x28a8] sm:$0xff] }
 0x4e6   :  { %v12745_v61 = vpop.f32.mrf.mxu0  ;;  %13012 = vmatprep.subr.bf16.mxu1 %v16409_v3  ;;  %v3683_v5 = vld [vmem:[#allocation7 + $0x2688] sm:$0xff] }
 0x4e7   :  { %13038 = vmatpush1.bf16.msra.mxu0 %v16472_v20  ;;  %v3687_v3 = vld [vmem:[#allocation7 + $0x26a8] sm:$0xff]  ;;  %v16441_v20 = vcombine.high %v3747_v55, %v3751_v38 }
 0x4e8   :  { %v12746_v2 = vpop.f32.mrf.mxu0  ;;  %13039 = vmatprep.subr.bf16.mxu0 %v16465_v23  ;;  %v3739_v60 = vld [vmem:[#allocation7 + $0x2848] sm:$0xff]  ;;  %v16377_v23 = vcombine.high %v3683_v5, %v3687_v3 }
 0x4e9   :  { %13013 = vmatpush2.bf16.msra.mxu1 %v16408_v11  ;;  %v3743_v58 = vld [vmem:[#allocation7 + $0x2868] sm:$0xff]  ;;  %v16440_v11 = vcombine.low %v3747_v55, %v3751_v38 }
 0x4ea   :  { %13014 = vmatprep.subr.bf16.mxu1 %v16401_v35  ;;  %v3675_v52 = vld [vmem:[#allocation7 + $0x2648] sm:$0xff]  ;;  %v16433_v61 = vcombine.high %v3739_v60, %v3743_v58  ;;  %v16376_v35 = vcombine.low %v3683_v5, %v3687_v3  ;;  %v16432_v2 = vcombine.low %v3739_v60, %v3743_v58 }
 0x4eb   :  { %13040 = vmatpush1.bf16.msra.mxu0 %v16464_v4  ;;  %v3679_v53 = vld [vmem:[#allocation7 + $0x2668] sm:$0xff] }
 0x4ec   :  { %13041 = vmatprep.subr.bf16.mxu0 %v16457_v16  ;;  %v3731_v4 = vld [vmem:[#allocation7 + $0x2808] sm:$0xff]  ;;  %v16369_v7 = vcombine.high %v3675_v52, %v3679_v53  ;;  %v16368_v31 = vcombine.low %v3675_v52, %v3679_v53 }
 0x4ed   :  { %13015 = vmatpush2.bf16.msra.mxu1 %v16400_v30  ;;  %v3735_v19 = vld [vmem:[#allocation7 + $0x2828] sm:$0xff] }
 0x4ee   :  { %13016 = vmatprep.subr.bf16.mxu1 %v16393_v6  ;;  %v3667_v16 = vld [vmem:[#allocation7 + $0x2608] sm:$0xff]  ;;  %v16425_v1 = vcombine.high %v3731_v4, %v3735_v19  ;;  %v16424_v57 = vcombine.low %v3731_v4, %v3735_v19 }
 0x4ef   :  { %13042 = vmatpush1.bf16.msra.mxu0 %v16456_v18  ;;  %v3671_v30 = vld [vmem:[#allocation7 + $0x2628] sm:$0xff] }
 0x4f0   :  { %13043 = vmatprep.subr.bf16.mxu0 %v16449_v29  ;;  %v3851_v6 = vld [vmem:[#allocation7 + $0x2bc8] sm:$0xff]  ;;  %v16361_v46 = vcombine.high %v3667_v16, %v3671_v30  ;;  %v16360_v38 = vcombine.low %v3667_v16, %v3671_v30 }
 0x4f1   :  { %13017 = vmatpush2.bf16.msra.mxu1 %v16392_v39  ;;  %v3855_v18 = vld [vmem:[#allocation7 + $0x2be8] sm:$0xff] }
 0x4f2   :  { %13018 = vmatprep.subr.bf16.mxu1 %v16385_v48  ;;  %v3915_v29 = vld [vmem:[#allocation7 + $0x2dc8] sm:$0xff]  ;;  %v16545_v55 = vcombine.high %v3851_v6, %v3855_v18  ;;  %v16544_v3 = vcombine.low %v3851_v6, %v3855_v18 }
 0x4f3   :  { %13044 = vmatpush1.bf16.msra.mxu0 %v16448_v50  ;;  %v3919_v39 = vld [vmem:[#allocation7 + $0x2de8] sm:$0xff] }
 0x4f4   :  { %13045 = vmatprep.subr.bf16.mxu0 %v16441_v20  ;;  %v3843_v48 = vld [vmem:[#allocation7 + $0x2b88] sm:$0xff]  ;;  %v16609_v5 = vcombine.high %v3915_v29, %v3919_v39  ;;  %v16608_v58 = vcombine.low %v3915_v29, %v3919_v39 }
 0x4f5   :  { %13019 = vmatpush2.bf16.msra.mxu1 %v16384_v25  ;;  %v3847_v50 = vld [vmem:[#allocation7 + $0x2ba8] sm:$0xff] }
 0x4f6   :  { %13020 = vmatprep.subr.bf16.mxu1 %v16377_v23  ;;  %v3907_v20 = vld [vmem:[#allocation7 + $0x2d88] sm:$0xff]  ;;  %v16537_v60 = vcombine.high %v3843_v48, %v3847_v50  ;;  %v16536_v53 = vcombine.low %v3843_v48, %v3847_v50 }
 0x4f7   :  { %13046 = vmatpush1.bf16.msra.mxu0 %v16440_v11  ;;  %v3911_v25 = vld [vmem:[#allocation7 + $0x2da8] sm:$0xff] }
 0x4f8   :  { %13047 = vmatprep.subr.bf16.mxu0 %v16433_v61  ;;  %v3835_v23 = vld [vmem:[#allocation7 + $0x2b48] sm:$0xff]  ;;  %v16601_v52 = vcombine.high %v3907_v20, %v3911_v25 }
 0x4f9   :  { %13021 = vmatpush2.bf16.msra.mxu1 %v16376_v35  ;;  %v3839_v11 = vld [vmem:[#allocation7 + $0x2b68] sm:$0xff] }
 0x4fa   :  { %13022 = vmatprep.subr.bf16.mxu1 %v16369_v7  ;;  %v3899_v61 = vld [vmem:[#allocation7 + $0x2d48] sm:$0xff]  ;;  %v16529_v19 = vcombine.high %v3835_v23, %v3839_v11  ;;  %v16528_v18 = vcombine.low %v3835_v23, %v3839_v11 }
 0x4fb   :  { %13048 = vmatpush1.bf16.msra.mxu0 %v16432_v2  ;;  %v3903_v35 = vld [vmem:[#allocation7 + $0x2d68] sm:$0xff]  ;;  %v16600_v2 = vcombine.low %v3907_v20, %v3911_v25 }
 0x4fc   :  { %13049 = vmatprep.subr.bf16.mxu0 %v16425_v1  ;;  %v3827_v16 = vld [vmem:[#allocation7 + $0x2b08] sm:$0xff]  ;;  %v16592_v39 = vcombine.low %v3899_v61, %v3903_v35 }
 0x4fd   :  { %13023 = vmatpush2.bf16.msra.mxu1 %v16368_v31  ;;  %v3831_v30 = vld [vmem:[#allocation7 + $0x2b28] sm:$0xff]  ;;  %v16593_v31 = vcombine.high %v3899_v61, %v3903_v35 }
 0x4fe   :  { %13024 = vmatprep.subr.bf16.mxu1 %v16361_v46  ;;  %v3891_v46 = vld [vmem:[#allocation7 + $0x2d08] sm:$0xff] }
 0x4ff   :  { %13050 = vmatpush1.bf16.msra.mxu0 %v16424_v57  ;;  %v3895_v57 = vld [vmem:[#allocation7 + $0x2d28] sm:$0xff] }
 0x500   :  { %13051 = vmatprep.subr.bf16.mxu0 %v16545_v55  ;;  %v3819_v55 = vld [vmem:[#allocation7 + $0x2ac8] sm:$0xff]  ;;  %v16585_v50 = vcombine.high %v3891_v46, %v3895_v57  ;;  %v16584_v25 = vcombine.low %v3891_v46, %v3895_v57 }
 0x501   :  { %13025 = vmatpush2.bf16.msra.mxu1 %v16360_v38  ;;  %v3823_v38 = vld [vmem:[#allocation7 + $0x2ae8] sm:$0xff] }
 0x502   :  { %13076 = vmatprep.subr.bf16.mxu1 %v16609_v5  ;;  %v16520_v5 = vcombine.low %v3827_v16, %v3831_v30  ;;  %v3887_v20 = vld [vmem:[#allocation7 + $0x2ce8] sm:$0xff]  ;;  %v16512_v11 = vcombine.low %v3819_v55, %v3823_v38 }
 0x503   :  { %13052 = vmatpush2.bf16.msra.mxu0 %v16544_v3  ;;  %v3883_v3 = vld [vmem:[#allocation7 + $0x2cc8] sm:$0xff] }
 0x504   :  { %v12782_v4 = vpop.f32.mrf.mxu1  ;;  %13027 = vmatmul.mubr.bf16.vlgmr.msra.gmra.mxu1 %v18371_v27  ;;  %13053 = vmatprep.subr.bf16.mxu0 %v16537_v60  ;;  %v3811_v60 = vld [vmem:[#allocation7 + $0x2a88] sm:$0xff]  ;;  %v16577_v23 = vcombine.high %v3883_v3, %v3887_v20  ;;  %v16576_v35 = vcombine.low %v3883_v3, %v3887_v20 }
 0x505   :  { %v18476_v7 = vadd.f32 %v12782_v4, %v18468_v56  ;;  %13077 = vmatpush1.bf16.msra.mxu1 %v16608_v58  ;;  %13108 = vmatprep.mubr.bf16.mxu1 %v18373_v54  ;;  %v16521_v56 = vcombine.high %v3827_v16, %v3831_v30  ;;  %v3815_v58 = vld [vmem:[#allocation7 + $0x2aa8] sm:$0xff] }
 0x506   :  { %v12784_v1 = vpop.f32.mrf.mxu1  ;;  %13078 = vmatprep.subr.bf16.mxu1 %v16601_v52  ;;  %v3875_v52 = vld [vmem:[#allocation7 + $0x2c88] sm:$0xff]  ;;  %v16505_v61 = vcombine.high %v3811_v60, %v3815_v58  ;;  %v16504_v16 = vcombine.low %v3811_v60, %v3815_v58 }
 0x507   :  { %v18480_v6 = vadd.f32 %v12784_v1, %v18472_v43  ;;  %13054 = vmatpush2.bf16.msra.mxu0 %v16536_v53  ;;  %v16513_v43 = vcombine.high %v3819_v55, %v3823_v38  ;;  %v3879_v53 = vld [vmem:[#allocation7 + $0x2ca8] sm:$0xff] }
 0x508   :  { %v12786_v29 = vpop.f32.mrf.mxu1  ;;  %13055 = vmatprep.subr.bf16.mxu0 %v16529_v19  ;;  %v3803_v4 = vld [vmem:[#allocation7 + $0x2a48] sm:$0xff] }
 0x509   :  { %13079 = vmatpush1.bf16.msra.mxu1 %v16600_v2  ;;  %v3807_v19 = vld [vmem:[#allocation7 + $0x2a68] sm:$0xff]  ;;  %v16569_v2 = vcombine.high %v3875_v52, %v3879_v53 }
 0x50a   :  { %v12787_v48 = vpop.f32.mrf.mxu1  ;;  %13080 = vmatprep.subr.bf16.mxu1 %v16593_v31  ;;  %v3867_v30 = vld [vmem:[#allocation7 + $0x2c48] sm:$0xff]  ;;  %v16497_v31 = vcombine.high %v3803_v4, %v3807_v19 }
 0x50b   :  { %13056 = vmatpush2.bf16.msra.mxu0 %v16528_v18  ;;  %v3871_v1 = vld [vmem:[#allocation7 + $0x2c68] sm:$0xff]  ;;  %v16568_v18 = vcombine.low %v3875_v52, %v3879_v53 }
 0x50c   :  { %13057 = vmatprep.subr.bf16.mxu0 %v16521_v56  ;;  %v3795_v46 = vld [vmem:[#allocation7 + $0x2a08] sm:$0xff]  ;;  %v16561_v29 = vcombine.high %v3867_v30, %v3871_v1  ;;  %v16496_v56 = vcombine.low %v3803_v4, %v3807_v19  ;;  %v16560_v48 = vcombine.low %v3867_v30, %v3871_v1 }
 0x50d   :  { %13081 = vmatpush1.bf16.msra.mxu1 %v16592_v39  ;;  %v3799_v57 = vld [vmem:[#allocation7 + $0x2a28] sm:$0xff] }
 0x50e   :  { %13082 = vmatprep.subr.bf16.mxu1 %v16585_v50  ;;  %v3859_v39 = vld [vmem:[#allocation7 + $0x2c08] sm:$0xff]  ;;  %v16489_v38 = vcombine.high %v3795_v46, %v3799_v57  ;;  %v16488_v20 = vcombine.low %v3795_v46, %v3799_v57 }
 0x50f   :  { %13058 = vmatpush2.bf16.msra.mxu0 %v16520_v5  ;;  %v3863_v55 = vld [vmem:[#allocation7 + $0x2c28] sm:$0xff] }
 0x510   :  { %13059 = vmatprep.subr.bf16.mxu0 %v16513_v43  ;;  %v4043_v50 = vld [vmem:[#allocation7 + $0x31c8] sm:$0xff]  ;;  %v16553_v3 = vcombine.high %v3859_v39, %v3863_v55  ;;  %v16552_v58 = vcombine.low %v3859_v39, %v3863_v55 }
 0x511   :  { %13083 = vmatpush1.bf16.msra.mxu1 %v16584_v25  ;;  %v4047_v5 = vld [vmem:[#allocation7 + $0x31e8] sm:$0xff] }
 0x512   :  { %13084 = vmatprep.subr.bf16.mxu1 %v16577_v23  ;;  %v3979_v43 = vld [vmem:[#allocation7 + $0x2fc8] sm:$0xff]  ;;  %v16737_v60 = vcombine.high %v4043_v50, %v4047_v5  ;;  %v16736_v53 = vcombine.low %v4043_v50, %v4047_v5 }
 0x513   :  { %13060 = vmatpush2.bf16.msra.mxu0 %v16512_v11  ;;  %v3983_v25 = vld [vmem:[#allocation7 + $0x2fe8] sm:$0xff] }
 0x514   :  { %13061 = vmatprep.subr.bf16.mxu0 %v16505_v61  ;;  %v4035_v23 = vld [vmem:[#allocation7 + $0x3188] sm:$0xff]  ;;  %v16673_v52 = vcombine.high %v3979_v43, %v3983_v25  ;;  %v16672_v19 = vcombine.low %v3979_v43, %v3983_v25 }
 0x515   :  { %13085 = vmatpush1.bf16.msra.mxu1 %v16576_v35  ;;  %v4039_v11 = vld [vmem:[#allocation7 + $0x31a8] sm:$0xff] }
 0x516   :  { %13086 = vmatprep.subr.bf16.mxu1 %v16569_v2  ;;  %v3971_v61 = vld [vmem:[#allocation7 + $0x2f88] sm:$0xff]  ;;  %v16729_v4 = vcombine.high %v4035_v23, %v4039_v11 }
 0x517   :  { %13062 = vmatpush2.bf16.msra.mxu0 %v16504_v16  ;;  %v3975_v35 = vld [vmem:[#allocation7 + $0x2fa8] sm:$0xff] }
 0x518   :  { %13063 = vmatprep.subr.bf16.mxu0 %v16497_v31  ;;  %v4027_v2 = vld [vmem:[#allocation7 + $0x3148] sm:$0xff]  ;;  %v16665_v1 = vcombine.high %v3971_v61, %v3975_v35  ;;  %v16664_v55 = vcombine.low %v3971_v61, %v3975_v35 }
 0x519   :  { %13087 = vmatpush1.bf16.msra.mxu1 %v16568_v18  ;;  %v4031_v16 = vld [vmem:[#allocation7 + $0x3168] sm:$0xff]  ;;  %v16728_v18 = vcombine.low %v4035_v23, %v4039_v11 }
 0x51a   :  { %13088 = vmatprep.subr.bf16.mxu1 %v16561_v29  ;;  %v3963_v46 = vld [vmem:[#allocation7 + $0x2f48] sm:$0xff]  ;;  %v16720_v5 = vcombine.low %v4027_v2, %v4031_v16 }
 0x51b   :  { %13064 = vmatpush2.bf16.msra.mxu0 %v16496_v56  ;;  %v3967_v57 = vld [vmem:[#allocation7 + $0x2f68] sm:$0xff]  ;;  %v16721_v56 = vcombine.high %v4027_v2, %v4031_v16 }
 0x51c   :  { %13065 = vmatprep.subr.bf16.mxu0 %v16489_v38  ;;  %v4019_v38 = vld [vmem:[#allocation7 + $0x3108] sm:$0xff] }
 0x51d   :  { %13089 = vmatpush1.bf16.msra.mxu1 %v16560_v48  ;;  %v4023_v48 = vld [vmem:[#allocation7 + $0x3128] sm:$0xff] }
 0x51e   :  { %13090 = vmatprep.subr.bf16.mxu1 %v16553_v3  ;;  %v3955_v3 = vld [vmem:[#allocation7 + $0x2f08] sm:$0xff]  ;;  %v16713_v25 = vcombine.high %v4019_v38, %v4023_v48  ;;  %v16712_v11 = vcombine.low %v4019_v38, %v4023_v48 }
 0x51f   :  { %13066 = vmatpush2.bf16.msra.mxu0 %v16488_v20  ;;  %v3959_v20 = vld [vmem:[#allocation7 + $0x2f28] sm:$0xff] }
 0x520   :  { %13117 = vmatprep.subr.bf16.mxu0 %v16737_v60  ;;  %v16656_v60 = vcombine.low %v3963_v46, %v3967_v57  ;;  %v4015_v23 = vld [vmem:[#allocation7 + $0x30e8] sm:$0xff]  ;;  %v16648_v35 = vcombine.low %v3955_v3, %v3959_v20 }
 0x521   :  { %13091 = vmatpush1.bf16.msra.mxu1 %v16552_v58  ;;  %v4011_v58 = vld [vmem:[#allocation7 + $0x30c8] sm:$0xff] }
 0x522   :  { %v12823_v30 = vpop.f32.mrf.mxu0  ;;  %13068 = vmatmul.mubr.bf16.vlgmr.msra.gmra.mxu0 %v18397_v62  ;;  %13092 = vmatprep.subr.bf16.mxu1 %v16673_v52  ;;  %v3947_v52 = vld [vmem:[#allocation7 + $0x2ec8] sm:$0xff]  ;;  %v16705_v61 = vcombine.high %v4011_v58, %v4015_v23  ;;  %v16704_v16 = vcombine.low %v4011_v58, %v4015_v23 }
 0x523   :  { %v18484_v31 = vadd.f32 %v12823_v30, %v18476_v7  ;;  %13118 = vmatpush1.bf16.msra.mxu0 %v16736_v53  ;;  %13149 = vmatprep.mubr.bf16.mxu0 %v17558_v13  ;;  %v16657_v7 = vcombine.high %v3963_v46, %v3967_v57  ;;  %v3951_v53 = vld [vmem:[#allocation7 + $0x2ee8] sm:$0xff] }
 0x524   :  { %v12825_v29 = vpop.f32.mrf.mxu0  ;;  %13119 = vmatprep.subr.bf16.mxu0 %v16729_v4  ;;  %v4003_v4 = vld [vmem:[#allocation7 + $0x3088] sm:$0xff]  ;;  %v16641_v2 = vcombine.high %v3947_v52, %v3951_v53  ;;  %v16640_v46 = vcombine.low %v3947_v52, %v3951_v53 }
 0x525   :  { %v18488_v39 = vadd.f32 %v12825_v29, %v18480_v6  ;;  %13093 = vmatpush2.bf16.msra.mxu1 %v16672_v19  ;;  %v16649_v6 = vcombine.high %v3955_v3, %v3959_v20  ;;  %v4007_v19 = vld [vmem:[#allocation7 + $0x30a8] sm:$0xff] }
 0x526   :  { %v12827_v50 = vpop.f32.mrf.mxu0  ;;  %13094 = vmatprep.subr.bf16.mxu1 %v16665_v1  ;;  %v3939_v30 = vld [vmem:[#allocation7 + $0x2e88] sm:$0xff] }
 0x527   :  { %13120 = vmatpush1.bf16.msra.mxu0 %v16728_v18  ;;  %v3943_v1 = vld [vmem:[#allocation7 + $0x2ea8] sm:$0xff]  ;;  %v16697_v18 = vcombine.high %v4003_v4, %v4007_v19 }
 0x528   :  { %v12828_v43 = vpop.f32.mrf.mxu0  ;;  %13121 = vmatprep.subr.bf16.mxu0 %v16721_v56  ;;  %v3995_v57 = vld [vmem:[#allocation7 + $0x3048] sm:$0xff]  ;;  %v16633_v56 = vcombine.high %v3939_v30, %v3943_v1 }
 0x529   :  { %13095 = vmatpush2.bf16.msra.mxu1 %v16664_v55  ;;  %v3999_v29 = vld [vmem:[#allocation7 + $0x3068] sm:$0xff]  ;;  %v16696_v55 = vcombine.low %v4003_v4, %v4007_v19 }
 0x52a   :  { %13096 = vmatprep.subr.bf16.mxu1 %v16657_v7  ;;  %v3931_v38 = vld [vmem:[#allocation7 + $0x2e48] sm:$0xff]  ;;  %v16689_v50 = vcombine.high %v3995_v57, %v3999_v29  ;;  %v16632_v7 = vcombine.low %v3939_v30, %v3943_v1  ;;  %v16688_v43 = vcombine.low %v3995_v57, %v3999_v29 }
 0x52b   :  { %13122 = vmatpush1.bf16.msra.mxu0 %v16720_v5  ;;  %v3935_v48 = vld [vmem:[#allocation7 + $0x2e68] sm:$0xff] }
 0x52c   :  { %13123 = vmatprep.subr.bf16.mxu0 %v16713_v25  ;;  %v3987_v5 = vld [vmem:[#allocation7 + $0x3008] sm:$0xff]  ;;  %v16625_v20 = vcombine.high %v3931_v38, %v3935_v48  ;;  %v16624_v23 = vcombine.low %v3931_v38, %v3935_v48 }
 0x52d   :  { %13097 = vmatpush2.bf16.msra.mxu1 %v16656_v60  ;;  %v3991_v3 = vld [vmem:[#allocation7 + $0x3028] sm:$0xff] }
 0x52e   :  { %13098 = vmatprep.subr.bf16.mxu1 %v16649_v6  ;;  %v3923_v25 = vld [vmem:[#allocation7 + $0x2e08] sm:$0xff]  ;;  %v16681_v58 = vcombine.high %v3987_v5, %v3991_v3  ;;  %v2636_v6 = vld [vmem:[#allocation7 + $0x5d0] sm:$0xff]  ;;  %v16680_v53 = vcombine.low %v3987_v5, %v3991_v3 }
 0x52f   :  { %13124 = vmatpush1.bf16.msra.mxu0 %v16712_v11  ;;  %v3927_v60 = vld [vmem:[#allocation7 + $0x2e28] sm:$0xff]  ;;  %v2640_v11 = vld [vmem:[#allocation7 + $0x5f0] sm:$0xff] }
 0x530   :  { %13125 = vmatprep.subr.bf16.mxu0 %v16705_v61  ;;  %v16617_v52 = vcombine.high %v3923_v25, %v3927_v60  ;;  %v2508_v61 = vld [vmem:[#allocation7 + $0x1d0] sm:$0xff]  ;;  %v15331_v4 = vcombine.high %v2636_v6, %v2640_v11  ;;  %v16616_v19 = vcombine.low %v3923_v25, %v3927_v60  ;;  %v15330_v1 = vcombine.low %v2636_v6, %v2640_v11 }
 0x531   :  { %13099 = vmatpush2.bf16.msra.mxu1 %v16648_v35  ;;  %v2512_v35 = vld [vmem:[#allocation7 + $0x1f0] sm:$0xff] }
 0x532   :  { %13100 = vmatprep.subr.bf16.mxu1 %v16641_v2  ;;  %v2628_v2 = vld [vmem:[#allocation7 + $0x590] sm:$0xff]  ;;  %v15203_v30 = vcombine.high %v2508_v61, %v2512_v35  ;;  %v15202_v29 = vcombine.low %v2508_v61, %v2512_v35 }
 0x533   :  { %13126 = vmatpush1.bf16.msra.mxu0 %v16704_v16  ;;  %v2632_v16 = vld [vmem:[#allocation7 + $0x5b0] sm:$0xff] }
 0x534   :  { %13127 = vmatprep.subr.bf16.mxu0 %v16697_v18  ;;  %v2500_v18 = vld [vmem:[#allocation7 + $0x190] sm:$0xff]  ;;  %v15323_v57 = vcombine.high %v2628_v2, %v2632_v16  ;;  %v15322_v48 = vcombine.low %v2628_v2, %v2632_v16 }
 0x535   :  { %13101 = vmatpush2.bf16.msra.mxu1 %v16640_v46  ;;  %v2504_v46 = vld [vmem:[#allocation7 + $0x1b0] sm:$0xff] }
 0x536   :  { %13102 = vmatprep.subr.bf16.mxu1 %v16633_v56  ;;  %v2620_v56 = vld [vmem:[#allocation7 + $0x550] sm:$0xff]  ;;  %v15195_v38 = vcombine.high %v2500_v18, %v2504_v46 }
 0x537   :  { %13128 = vmatpush1.bf16.msra.mxu0 %v16696_v55  ;;  %v2624_v55 = vld [vmem:[#allocation7 + $0x570] sm:$0xff] }
 0x538   :  { %13129 = vmatprep.subr.bf16.mxu0 %v16689_v50  ;;  %v2492_v50 = vld [vmem:[#allocation7 + $0x150] sm:$0xff]  ;;  %v15315_v3 = vcombine.high %v2620_v56, %v2624_v55  ;;  %v15314_v11 = vcombine.low %v2620_v56, %v2624_v55 }
 0x539   :  { %13103 = vmatpush2.bf16.msra.mxu1 %v16632_v7  ;;  %v2496_v7 = vld [vmem:[#allocation7 + $0x170] sm:$0xff] }
 0x53a   :  { %13104 = vmatprep.subr.bf16.mxu1 %v16625_v20  ;;  %v2612_v25 = vld [vmem:[#allocation7 + $0x510] sm:$0xff]  ;;  %v15186_v35 = vcombine.low %v2492_v50, %v2496_v7 }
 0x53b   :  { %13130 = vmatpush1.bf16.msra.mxu0 %v16688_v43  ;;  %v15194_v43 = vcombine.low %v2500_v18, %v2504_v46  ;;  %v2616_v60 = vld [vmem:[#allocation7 + $0x530] sm:$0xff] }
 0x53c   :  { %13131 = vmatprep.subr.bf16.mxu0 %v16681_v58  ;;  %v2480_v18 = vld [vmem:[#allocation7 + $0xf0] sm:$0xff] }
 0x53d   :  { %13105 = vmatpush2.bf16.msra.mxu1 %v16624_v23  ;;  %v15187_v23 = vcombine.high %v2492_v50, %v2496_v7 }
 0x53e   :  { %13106 = vmatprep.subr.bf16.mxu1 %v16617_v52  ;;  %v2484_v52 = vld [vmem:[#allocation7 + $0x110] sm:$0xff] }
 0x53f   :  { %13132 = vmatpush1.bf16.msra.mxu0 %v16680_v53  ;;  %v2488_v53 = vld [vmem:[#allocation7 + $0x130] sm:$0xff] }
 0x540   :  { %13199 = vmatprep.subr.bf16.mxu0 %v15331_v4  ;;  %v2604_v4 = vld [vmem:[#allocation7 + $0x4d0] sm:$0xff]  ;;  %v15179_v16 = vcombine.high %v2484_v52, %v2488_v53  ;;  %v15178_v46 = vcombine.low %v2484_v52, %v2488_v53 }
 0x541   :  { %13107 = vmatpush2.bf16.msra.mxu1 %v16616_v19  ;;  %v2608_v19 = vld [vmem:[#allocation7 + $0x4f0] sm:$0xff] }
 0x542   :  { %13150 = vmatmul.mubr.bf16.vlgmr.msra.gmra.mxu0 %v18410_v15  ;;  %13158 = vmatprep.subr.bf16.mxu1 %v15203_v30  ;;  %v15306_v30 = vcombine.low %v2612_v25, %v2616_v60  ;;  %v15298_v55 = vcombine.low %v2604_v4, %v2608_v19  ;;  %v2580_v52 = vld [vmem:[#allocation7 + $0x410] sm:$0xff] }
 0x543   :  { %13200 = vmatpush1.bf16.msra.mxu0 %v15330_v1  ;;  %13231 = vmatprep.mubr.bf16.mxu0 %v18225_v14  ;;  %v2476_v1 = vld [vmem:[#allocation7 + $0xd0] sm:$0xff] }
 0x544   :  { %v12864_v5 = vpop.f32.mrf.mxu1  ;;  %13109 = vmatmul.mubr.bf16.vlgmr.msra.gmra.mxu1 %v18395_v49  ;;  %13201 = vmatprep.subr.bf16.mxu0 %v15323_v57  ;;  %v2596_v57 = vld [vmem:[#allocation7 + $0x490] sm:$0xff]  ;;  %v15171_v56 = vcombine.high %v2476_v1, %v2480_v18  ;;  %v15170_v7 = vcombine.low %v2476_v1, %v2480_v18 }
 0x545   :  { %v18494_v20 = vadd.f32 %v12864_v5, %v18484_v31  ;;  %13159 = vmatpush1.bf16.msra.mxu1 %v15202_v29  ;;  %13190 = vmatprep.mubr.bf16.mxu1 %v18194_v12  ;;  %v15307_v31 = vcombine.high %v2612_v25, %v2616_v60  ;;  %v2600_v29 = vld [vmem:[#allocation7 + $0x4b0] sm:$0xff] }
 0x546   :  { %v12866_v58 = vpop.f32.mrf.mxu1  ;;  %13160 = vmatprep.subr.bf16.mxu1 %v15195_v38  ;;  %v2468_v38 = vld [vmem:[#allocation7 + $0x90] sm:$0xff]  ;;  %v15291_v50 = vcombine.high %v2596_v57, %v2600_v29  ;;  %v15290_v25 = vcombine.low %v2596_v57, %v2600_v29 }
 0x547   :  { %v18498_v6 = vadd.f32 %v12866_v58, %v18488_v39  ;;  %13202 = vmatpush1.bf16.msra.mxu0 %v15322_v48  ;;  %v15299_v39 = vcombine.high %v2604_v4, %v2608_v19  ;;  %v2472_v48 = vld [vmem:[#allocation7 + $0xb0] sm:$0xff] }
 0x548   :  { %v12868_v61 = vpop.f32.mrf.mxu1  ;;  %13203 = vmatprep.subr.bf16.mxu0 %v15315_v3  ;;  %v2588_v5 = vld [vmem:[#allocation7 + $0x450] sm:$0xff] }
 0x549   :  { %13161 = vmatpush1.bf16.msra.mxu1 %v15194_v43  ;;  %v2592_v3 = vld [vmem:[#allocation7 + $0x470] sm:$0xff]  ;;  %v15163_v43 = vcombine.high %v2468_v38, %v2472_v48 }
 0x54a   :  { %v12869_v2 = vpop.f32.mrf.mxu1  ;;  %13162 = vmatprep.subr.bf16.mxu1 %v15187_v23  ;;  %v2460_v60 = vld [vmem:[#allocation7 + $0x50] sm:$0xff]  ;;  %v15283_v23 = vcombine.high %v2588_v5, %v2592_v3 }
 0x54b   :  { %13204 = vmatpush1.bf16.msra.mxu0 %v15314_v11  ;;  %v2464_v58 = vld [vmem:[#allocation7 + $0x70] sm:$0xff]  ;;  %v15162_v11 = vcombine.low %v2468_v38, %v2472_v48 }
 0x54c   :  { %13205 = vmatprep.subr.bf16.mxu0 %v15307_v31  ;;  %v2584_v53 = vld [vmem:[#allocation7 + $0x430] sm:$0xff]  ;;  %v15155_v61 = vcombine.high %v2460_v60, %v2464_v58  ;;  %v15282_v31 = vcombine.low %v2588_v5, %v2592_v3  ;;  %v15154_v2 = vcombine.low %v2460_v60, %v2464_v58 }
 0x54d   :  { %13163 = vmatpush1.bf16.msra.mxu1 %v15186_v35  ;;  %v2452_v35 = vld [vmem:[#allocation7 + $0x10] sm:$0xff]  ;;  %v15275_v19 = vcombine.high %v2580_v52, %v2584_v53  ;;  %v15274_v18 = vcombine.low %v2580_v52, %v2584_v53 }
 0x54e   :  { %13164 = vmatprep.subr.bf16.mxu1 %v15179_v16  ;;  %v2456_v4 = vld [vmem:[#allocation7 + $0x30] sm:$0xff] }
 0x54f   :  { %13206 = vmatpush1.bf16.msra.mxu0 %v15306_v30  ;;  %v2700_v16 = vld [vmem:[#allocation7 + $0x7d0] sm:$0xff]  ;;  %v15147_v1 = vcombine.high %v2452_v35, %v2456_v4  ;;  %v15146_v29 = vcombine.low %v2452_v35, %v2456_v4 }
 0x550   :  { %13207 = vmatprep.subr.bf16.mxu0 %v15299_v39  ;;  %v2704_v30 = vld [vmem:[#allocation7 + $0x7f0] sm:$0xff] }
 0x551   :  { %13165 = vmatpush1.bf16.msra.mxu1 %v15178_v46  ;;  %v2572_v39 = vld [vmem:[#allocation7 + $0x3d0] sm:$0xff]  ;;  %v15395_v57 = vcombine.high %v2700_v16, %v2704_v30  ;;  %v15394_v48 = vcombine.low %v2700_v16, %v2704_v30 }
 0x552   :  { %13166 = vmatprep.subr.bf16.mxu1 %v15171_v56  ;;  %v2576_v46 = vld [vmem:[#allocation7 + $0x3f0] sm:$0xff] }
 0x553   :  { %13208 = vmatpush1.bf16.msra.mxu0 %v15298_v55  ;;  %v2692_v56 = vld [vmem:[#allocation7 + $0x790] sm:$0xff]  ;;  %v15267_v38 = vcombine.high %v2572_v39, %v2576_v46  ;;  %v15266_v3 = vcombine.low %v2572_v39, %v2576_v46 }
 0x554   :  { %13209 = vmatprep.subr.bf16.mxu0 %v15291_v50  ;;  %v2696_v55 = vld [vmem:[#allocation7 + $0x7b0] sm:$0xff] }
 0x555   :  { %13167 = vmatpush1.bf16.msra.mxu1 %v15170_v7  ;;  %v2564_v50 = vld [vmem:[#allocation7 + $0x390] sm:$0xff]  ;;  %v15387_v5 = vcombine.high %v2692_v56, %v2696_v55 }
 0x556   :  { %13168 = vmatprep.subr.bf16.mxu1 %v15163_v43  ;;  %v2568_v7 = vld [vmem:[#allocation7 + $0x3b0] sm:$0xff] }
 0x557   :  { %13210 = vmatpush1.bf16.msra.mxu0 %v15290_v25  ;;  %v2684_v43 = vld [vmem:[#allocation7 + $0x750] sm:$0xff]  ;;  %v15259_v58 = vcombine.high %v2564_v50, %v2568_v7  ;;  %v15258_v4 = vcombine.low %v2564_v50, %v2568_v7 }
 0x558   :  { %13211 = vmatprep.subr.bf16.mxu0 %v15283_v23  ;;  %v2688_v25 = vld [vmem:[#allocation7 + $0x770] sm:$0xff] }
 0x559   :  { %13169 = vmatpush1.bf16.msra.mxu1 %v15162_v11  ;;  %v15386_v11 = vcombine.low %v2692_v56, %v2696_v55  ;;  %v2556_v52 = vld [vmem:[#allocation7 + $0x350] sm:$0xff] }
 0x55a   :  { %13170 = vmatprep.subr.bf16.mxu1 %v15155_v61  ;;  %v2560_v53 = vld [vmem:[#allocation7 + $0x370] sm:$0xff] }
 0x55b   :  { %13212 = vmatpush1.bf16.msra.mxu0 %v15282_v31  ;;  %v15379_v31 = vcombine.high %v2684_v43, %v2688_v25  ;;  %v15251_v30 = vcombine.high %v2556_v52, %v2560_v53  ;;  %v2672_v56 = vld [vmem:[#allocation7 + $0x6f0] sm:$0xff] }
 0x55c   :  { %13213 = vmatprep.subr.bf16.mxu0 %v15275_v19  ;;  %v2676_v19 = vld [vmem:[#allocation7 + $0x710] sm:$0xff] }
 0x55d   :  { %13171 = vmatpush1.bf16.msra.mxu1 %v15154_v2  ;;  %v2680_v2 = vld [vmem:[#allocation7 + $0x730] sm:$0xff] }
 0x55e   :  { %13172 = vmatprep.subr.bf16.mxu1 %v15147_v1  ;;  %v2548_v1 = vld [vmem:[#allocation7 + $0x310] sm:$0xff]  ;;  %v15371_v46 = vcombine.high %v2676_v19, %v2680_v2  ;;  %v15370_v55 = vcombine.low %v2676_v19, %v2680_v2 }
 0x55f   :  { %13214 = vmatpush1.bf16.msra.mxu0 %v15274_v18  ;;  %v2552_v18 = vld [vmem:[#allocation7 + $0x330] sm:$0xff] }
 0x560   :  { %13215 = vmatprep.subr.bf16.mxu0 %v15395_v57  ;;  %v15250_v57 = vcombine.low %v2556_v52, %v2560_v53  ;;  %v15242_v7 = vcombine.low %v2548_v1, %v2552_v18  ;;  %v2652_v53 = vld [vmem:[#allocation7 + $0x650] sm:$0xff] }
 0x561   :  { %13173 = vmatpush1.bf16.msra.mxu1 %v15146_v29  ;;  %v2668_v29 = vld [vmem:[#allocation7 + $0x6d0] sm:$0xff] }
 0x562   :  { %v12905_v60 = vpop.f32.mrf.mxu0  ;;  %13174 = vmatprep.subr.bf16.mxu1 %v15267_v38  ;;  %v2540_v38 = vld [vmem:[#allocation7 + $0x2d0] sm:$0xff]  ;;  %v15363_v50 = vcombine.high %v2668_v29, %v2672_v56 }
 0x563   :  { %v18501_v23 = vadd.f32 %v12905_v60, %v18494_v20  ;;  %13216 = vmatpush2.bf16.msra.mxu0 %v15394_v48  ;;  %v15378_v20 = vcombine.low %v2684_v43, %v2688_v25  ;;  %v2544_v48 = vld [vmem:[#allocation7 + $0x2f0] sm:$0xff]  ;;  %v15362_v25 = vcombine.low %v2668_v29, %v2672_v56 }
 0x564   :  { %v12907_v61 = vpop.f32.mrf.mxu0  ;;  %13217 = vmatprep.subr.bf16.mxu0 %v15387_v5  ;;  %v2660_v5 = vld [vmem:[#allocation7 + $0x690] sm:$0xff]  ;;  %v15235_v43 = vcombine.high %v2540_v38, %v2544_v48  ;;  %v15234_v52 = vcombine.low %v2540_v38, %v2544_v48 }
 0x565   :  { %v18504_v35 = vadd.f32 %v12907_v61, %v18498_v6  ;;  %13175 = vmatpush2.bf16.msra.mxu1 %v15266_v3  ;;  %v15243_v6 = vcombine.high %v2548_v1, %v2552_v18  ;;  %v2664_v3 = vld [vmem:[#allocation7 + $0x6b0] sm:$0xff] }
 0x566   :  { %v12909_v16 = vpop.f32.mrf.mxu0  ;;  %13176 = vmatprep.subr.bf16.mxu1 %v15259_v58  ;;  %v2532_v60 = vld [vmem:[#allocation7 + $0x290] sm:$0xff] }
 0x567   :  { %13218 = vmatpush2.bf16.msra.mxu0 %v15386_v11  ;;  %v2536_v58 = vld [vmem:[#allocation7 + $0x2b0] sm:$0xff]  ;;  %v15355_v11 = vcombine.high %v2660_v5, %v2664_v3 }
 0x568   :  { %v12910_v39 = vpop.f32.mrf.mxu0  ;;  %13219 = vmatprep.subr.bf16.mxu0 %v15379_v31  ;;  %v2656_v61 = vld [vmem:[#allocation7 + $0x670] sm:$0xff]  ;;  %v15227_v31 = vcombine.high %v2532_v60, %v2536_v58 }
 0x569   :  { %13177 = vmatpush2.bf16.msra.mxu1 %v15258_v4  ;;  %v15354_v4 = vcombine.low %v2660_v5, %v2664_v3  ;;  %v2524_v19 = vld [vmem:[#allocation7 + $0x250] sm:$0xff]  ;;  %v15347_v16 = vcombine.high %v2652_v53, %v2656_v61  ;;  %v15346_v39 = vcombine.low %v2652_v53, %v2656_v61 }
 0x56a   :  { %13178 = vmatprep.subr.bf16.mxu1 %v15251_v30  ;;  %v2528_v2 = vld [vmem:[#allocation7 + $0x270] sm:$0xff]  ;;  %v15226_v30 = vcombine.low %v2532_v60, %v2536_v58 }
 0x56b   :  { %13220 = vmatpush2.bf16.msra.mxu0 %v15378_v20  ;;  %v2644_v20 = vld [vmem:[#allocation7 + $0x610] sm:$0xff]  ;;  %v15219_v18 = vcombine.high %v2524_v19, %v2528_v2  ;;  %v15218_v56 = vcombine.low %v2524_v19, %v2528_v2 }
 0x56c   :  { %13221 = vmatprep.subr.bf16.mxu0 %v15371_v46  ;;  %v2648_v1 = vld [vmem:[#allocation7 + $0x630] sm:$0xff] }
 0x56d   :  { %13179 = vmatpush2.bf16.msra.mxu1 %v15250_v57  ;;  %v2516_v46 = vld [vmem:[#allocation7 + $0x210] sm:$0xff]  ;;  %v15339_v29 = vcombine.high %v2644_v20, %v2648_v1  ;;  %v15338_v48 = vcombine.low %v2644_v20, %v2648_v1 }
 0x56e   :  { %13180 = vmatprep.subr.bf16.mxu1 %v15243_v6  ;;  %v2520_v57 = vld [vmem:[#allocation7 + $0x230] sm:$0xff] }
 0x56f   :  { %13222 = vmatpush2.bf16.msra.mxu0 %v15370_v55  ;;  %v2892_v6 = vld [vmem:[#allocation7 + $0xdd0] sm:$0xff]  ;;  %v15211_v38 = vcombine.high %v2516_v46, %v2520_v57  ;;  %v15210_v3 = vcombine.low %v2516_v46, %v2520_v57 }
 0x570   :  { %13223 = vmatprep.subr.bf16.mxu0 %v15363_v50  ;;  %v2896_v55 = vld [vmem:[#allocation7 + $0xdf0] sm:$0xff] }
 0x571   :  { %13181 = vmatpush2.bf16.msra.mxu1 %v15242_v7  ;;  %v2764_v50 = vld [vmem:[#allocation7 + $0x9d0] sm:$0xff]  ;;  %v15587_v5 = vcombine.high %v2892_v6, %v2896_v55  ;;  %v15586_v58 = vcombine.low %v2892_v6, %v2896_v55 }
 0x572   :  { %13182 = vmatprep.subr.bf16.mxu1 %v15235_v43  ;;  %v2768_v7 = vld [vmem:[#allocation7 + $0x9f0] sm:$0xff] }
 0x573   :  { %13224 = vmatpush2.bf16.msra.mxu0 %v15362_v25  ;;  %v2884_v43 = vld [vmem:[#allocation7 + $0xd90] sm:$0xff]  ;;  %v15459_v60 = vcombine.high %v2764_v50, %v2768_v7  ;;  %v15458_v61 = vcombine.low %v2764_v50, %v2768_v7 }
 0x574   :  { %13225 = vmatprep.subr.bf16.mxu0 %v15355_v11  ;;  %v2888_v25 = vld [vmem:[#allocation7 + $0xdb0] sm:$0xff] }
 0x575   :  { %13183 = vmatpush2.bf16.msra.mxu1 %v15234_v52  ;;  %v2756_v11 = vld [vmem:[#allocation7 + $0x990] sm:$0xff]  ;;  %v15579_v53 = vcombine.high %v2884_v43, %v2888_v25  ;;  %v15578_v2 = vcombine.low %v2884_v43, %v2888_v25 }
 0x576   :  { %13184 = vmatprep.subr.bf16.mxu1 %v15227_v31  ;;  %v2760_v52 = vld [vmem:[#allocation7 + $0x9b0] sm:$0xff] }
 0x577   :  { %13226 = vmatpush2.bf16.msra.mxu0 %v15354_v4  ;;  %v2876_v31 = vld [vmem:[#allocation7 + $0xd50] sm:$0xff]  ;;  %v15451_v19 = vcombine.high %v2756_v11, %v2760_v52 }
 0x578   :  { %13227 = vmatprep.subr.bf16.mxu0 %v15347_v16  ;;  %v2880_v4 = vld [vmem:[#allocation7 + $0xd70] sm:$0xff] }
 0x579   :  { %13185 = vmatpush2.bf16.msra.mxu1 %v15226_v30  ;;  %v2748_v16 = vld [vmem:[#allocation7 + $0x950] sm:$0xff]  ;;  %v15571_v1 = vcombine.high %v2876_v31, %v2880_v4  ;;  %v15570_v55 = vcombine.low %v2876_v31, %v2880_v4 }
 0x57a   :  { %13186 = vmatprep.subr.bf16.mxu1 %v15219_v18  ;;  %v2752_v30 = vld [vmem:[#allocation7 + $0x970] sm:$0xff] }
 0x57b   :  { %13228 = vmatpush2.bf16.msra.mxu0 %v15346_v39  ;;  %v15450_v39 = vcombine.low %v2756_v11, %v2760_v52  ;;  %v2868_v46 = vld [vmem:[#allocation7 + $0xd10] sm:$0xff]  ;;  %v15442_v7 = vcombine.low %v2748_v16, %v2752_v30 }
 0x57c   :  { %13229 = vmatprep.subr.bf16.mxu0 %v15339_v29  ;;  %v2872_v57 = vld [vmem:[#allocation7 + $0xd30] sm:$0xff] }
 0x57d   :  { %13187 = vmatpush2.bf16.msra.mxu1 %v15218_v56  ;;  %v15443_v56 = vcombine.high %v2748_v16, %v2752_v30  ;;  %v2736_v11 = vld [vmem:[#allocation7 + $0x8f0] sm:$0xff] }
 0x57e   :  { %13188 = vmatprep.subr.bf16.mxu1 %v15211_v38  ;;  %v2740_v38 = vld [vmem:[#allocation7 + $0x910] sm:$0xff] }
 0x57f   :  { %13230 = vmatpush2.bf16.msra.mxu0 %v15338_v48  ;;  %v2744_v48 = vld [vmem:[#allocation7 + $0x930] sm:$0xff] }
 0x580   :  { %13281 = vmatprep.subr.bf16.mxu0 %v15587_v5  ;;  %v2860_v5 = vld [vmem:[#allocation7 + $0xcd0] sm:$0xff]  ;;  %v15435_v25 = vcombine.high %v2740_v38, %v2744_v48  ;;  %v15434_v52 = vcombine.low %v2740_v38, %v2744_v48 }
 0x581   :  { %13189 = vmatpush2.bf16.msra.mxu1 %v15210_v3  ;;  %v2864_v3 = vld [vmem:[#allocation7 + $0xcf0] sm:$0xff] }
 0x582   :  { %13232 = vmatmul.mubr.bf16.vlgmr.msra.gmra.mxu0 %v18229_v17  ;;  %13240 = vmatprep.subr.bf16.mxu1 %v15459_v60  ;;  %v15562_v60 = vcombine.low %v2868_v46, %v2872_v57  ;;  %v15554_v4 = vcombine.low %v2860_v5, %v2864_v3  ;;  %v2836_v38 = vld [vmem:[#allocation7 + $0xc10] sm:$0xff] }
 0x583   :  { %13282 = vmatpush1.bf16.msra.mxu0 %v15586_v58  ;;  %13313 = vmatprep.mubr.bf16.mxu0 %v18250_v45  ;;  %v2732_v58 = vld [vmem:[#allocation7 + $0x8d0] sm:$0xff] }
 0x584   :  { %v12946_v20 = vpop.f32.mrf.mxu1  ;;  %13191 = vmatmul.mubr.bf16.vlgmr.msra.gmra.mxu1 %v18232_v21  ;;  %13283 = vmatprep.subr.bf16.mxu0 %v15579_v53  ;;  %v2852_v53 = vld [vmem:[#allocation7 + $0xc90] sm:$0xff]  ;;  %v15427_v31 = vcombine.high %v2732_v58, %v2736_v11  ;;  %v15426_v30 = vcombine.low %v2732_v58, %v2736_v11 }
 0x585   :  { %v18510_v18 = vadd.f32 %v12946_v20, %v18501_v23  ;;  %13241 = vmatpush1.bf16.msra.mxu1 %v15458_v61  ;;  %13272 = vmatprep.mubr.bf16.mxu1 %v18235_v24  ;;  %v15563_v23 = vcombine.high %v2868_v46, %v2872_v57  ;;  %v2856_v61 = vld [vmem:[#allocation7 + $0xcb0] sm:$0xff] }
 0x586   :  { %v12948_v29 = vpop.f32.mrf.mxu1  ;;  %13242 = vmatprep.subr.bf16.mxu1 %v15451_v19  ;;  %v2724_v19 = vld [vmem:[#allocation7 + $0x890] sm:$0xff]  ;;  %v15547_v16 = vcombine.high %v2852_v53, %v2856_v61  ;;  %v15546_v46 = vcombine.low %v2852_v53, %v2856_v61 }
 0x587   :  { %v18514_v6 = vadd.f32 %v12948_v29, %v18504_v35  ;;  %13284 = vmatpush1.bf16.msra.mxu0 %v15578_v2  ;;  %v15555_v35 = vcombine.high %v2860_v5, %v2864_v3  ;;  %v2728_v2 = vld [vmem:[#allocation7 + $0x8b0] sm:$0xff] }
 0x588   :  { %v12950_v50 = vpop.f32.mrf.mxu1  ;;  %13285 = vmatprep.subr.bf16.mxu0 %v15571_v1  ;;  %v2844_v20 = vld [vmem:[#allocation7 + $0xc50] sm:$0xff] }
 0x589   :  { %13243 = vmatpush1.bf16.msra.mxu1 %v15450_v39  ;;  %v2848_v1 = vld [vmem:[#allocation7 + $0xc70] sm:$0xff]  ;;  %v15419_v39 = vcombine.high %v2724_v19, %v2728_v2 }
 0x58a   :  { %v12951_v43 = vpop.f32.mrf.mxu1  ;;  %13244 = vmatprep.subr.bf16.mxu1 %v15443_v56  ;;  %v2716_v57 = vld [vmem:[#allocation7 + $0x850] sm:$0xff]  ;;  %v15539_v56 = vcombine.high %v2844_v20, %v2848_v1 }
 0x58b   :  { %13286 = vmatpush1.bf16.msra.mxu0 %v15570_v55  ;;  %v2720_v29 = vld [vmem:[#allocation7 + $0x870] sm:$0xff]  ;;  %v15418_v55 = vcombine.low %v2724_v19, %v2728_v2 }
 0x58c   :  { %13287 = vmatprep.subr.bf16.mxu0 %v15563_v23  ;;  %v2840_v48 = vld [vmem:[#allocation7 + $0xc30] sm:$0xff]  ;;  %v15411_v50 = vcombine.high %v2716_v57, %v2720_v29  ;;  %v15538_v23 = vcombine.low %v2844_v20, %v2848_v1  ;;  %v15410_v43 = vcombine.low %v2716_v57, %v2720_v29 }
 0x58d   :  { %13245 = vmatpush1.bf16.msra.mxu1 %v15442_v7  ;;  %v2708_v7 = vld [vmem:[#allocation7 + $0x810] sm:$0xff]  ;;  %v15531_v3 = vcombine.high %v2836_v38, %v2840_v48  ;;  %v15530_v11 = vcombine.low %v2836_v38, %v2840_v48 }
 0x58e   :  { %13246 = vmatprep.subr.bf16.mxu1 %v15435_v25  ;;  %v2712_v5 = vld [vmem:[#allocation7 + $0x830] sm:$0xff] }
 0x58f   :  { %13288 = vmatpush1.bf16.msra.mxu0 %v15562_v60  ;;  %v2956_v25 = vld [vmem:[#allocation7 + $0xfd0] sm:$0xff]  ;;  %v15403_v58 = vcombine.high %v2708_v7, %v2712_v5  ;;  %v15402_v61 = vcombine.low %v2708_v7, %v2712_v5 }
 0x590   :  { %13289 = vmatprep.subr.bf16.mxu0 %v15555_v35  ;;  %v2960_v60 = vld [vmem:[#allocation7 + $0xff0] sm:$0xff] }
 0x591   :  { %13247 = vmatpush1.bf16.msra.mxu1 %v15434_v52  ;;  %v2828_v35 = vld [vmem:[#allocation7 + $0xbd0] sm:$0xff]  ;;  %v15651_v53 = vcombine.high %v2956_v25, %v2960_v60  ;;  %v15650_v2 = vcombine.low %v2956_v25, %v2960_v60 }
 0x592   :  { %13248 = vmatprep.subr.bf16.mxu1 %v15427_v31  ;;  %v2832_v52 = vld [vmem:[#allocation7 + $0xbf0] sm:$0xff] }
 0x593   :  { %13290 = vmatpush1.bf16.msra.mxu0 %v15554_v4  ;;  %v2948_v31 = vld [vmem:[#allocation7 + $0xf90] sm:$0xff]  ;;  %v15523_v19 = vcombine.high %v2828_v35, %v2832_v52  ;;  %v15522_v1 = vcombine.low %v2828_v35, %v2832_v52 }
 0x594   :  { %13291 = vmatprep.subr.bf16.mxu0 %v15547_v16  ;;  %v2952_v4 = vld [vmem:[#allocation7 + $0xfb0] sm:$0xff] }
 0x595   :  { %13249 = vmatpush1.bf16.msra.mxu1 %v15426_v30  ;;  %v2820_v16 = vld [vmem:[#allocation7 + $0xb90] sm:$0xff]  ;;  %v15643_v20 = vcombine.high %v2948_v31, %v2952_v4 }
 0x596   :  { %13250 = vmatprep.subr.bf16.mxu1 %v15419_v39  ;;  %v2824_v30 = vld [vmem:[#allocation7 + $0xbb0] sm:$0xff] }
 0x597   :  { %13292 = vmatpush1.bf16.msra.mxu0 %v15546_v46  ;;  %v2940_v39 = vld [vmem:[#allocation7 + $0xf50] sm:$0xff]  ;;  %v15515_v29 = vcombine.high %v2820_v16, %v2824_v30  ;;  %v15514_v5 = vcombine.low %v2820_v16, %v2824_v30 }
 0x598   :  { %13293 = vmatprep.subr.bf16.mxu0 %v15539_v56  ;;  %v2944_v46 = vld [vmem:[#allocation7 + $0xf70] sm:$0xff] }
 0x599   :  { %13251 = vmatpush1.bf16.msra.mxu1 %v15418_v55  ;;  %v15642_v55 = vcombine.low %v2948_v31, %v2952_v4  ;;  %v2812_v38 = vld [vmem:[#allocation7 + $0xb50] sm:$0xff] }
 0x59a   :  { %13252 = vmatprep.subr.bf16.mxu1 %v15411_v50  ;;  %v2816_v48 = vld [vmem:[#allocation7 + $0xb70] sm:$0xff] }
 0x59b   :  { %13294 = vmatpush1.bf16.msra.mxu0 %v15538_v23  ;;  %v15635_v23 = vcombine.high %v2940_v39, %v2944_v46  ;;  %v15507_v60 = vcombine.high %v2812_v38, %v2816_v48  ;;  %v2928_v31 = vld [vmem:[#allocation7 + $0xef0] sm:$0xff] }
 0x59c   :  { %13295 = vmatprep.subr.bf16.mxu0 %v15531_v3  ;;  %v2932_v3 = vld [vmem:[#allocation7 + $0xf10] sm:$0xff] }
 0x59d   :  { %13253 = vmatpush1.bf16.msra.mxu1 %v15410_v43  ;;  %v2936_v43 = vld [vmem:[#allocation7 + $0xf30] sm:$0xff] }
 0x59e   :  { %13254 = vmatprep.subr.bf16.mxu1 %v15403_v58  ;;  %v2804_v58 = vld [vmem:[#allocation7 + $0xb10] sm:$0xff]  ;;  %v15627_v52 = vcombine.high %v2932_v3, %v2936_v43  ;;  %v15626_v4 = vcombine.low %v2932_v3, %v2936_v43 }
 0x59f   :  { %13296 = vmatpush1.bf16.msra.mxu0 %v15530_v11  ;;  %v2808_v11 = vld [vmem:[#allocation7 + $0xb30] sm:$0xff] }
 0x5a0   :  { %13297 = vmatprep.subr.bf16.mxu0 %v15651_v53  ;;  %v15506_v53 = vcombine.low %v2812_v38, %v2816_v48  ;;  %v15498_v30 = vcombine.low %v2804_v58, %v2808_v11  ;;  %v2908_v48 = vld [vmem:[#allocation7 + $0xe50] sm:$0xff] }
 0x5a1   :  { %13255 = vmatpush1.bf16.msra.mxu1 %v15402_v61  ;;  %v2924_v61 = vld [vmem:[#allocation7 + $0xed0] sm:$0xff] }
 0x5a2   :  { %v12987_v57 = vpop.f32.mrf.mxu0  ;;  %13256 = vmatprep.subr.bf16.mxu1 %v15523_v19  ;;  %v2796_v19 = vld [vmem:[#allocation7 + $0xad0] sm:$0xff]  ;;  %v15619_v16 = vcombine.high %v2924_v61, %v2928_v31 }
 0x5a3   :  { %v18517_v56 = vadd.f32 %v12987_v57, %v18510_v18  ;;  %13298 = vmatpush2.bf16.msra.mxu0 %v15650_v2  ;;  %v15634_v18 = vcombine.low %v2940_v39, %v2944_v46  ;;  %v2800_v2 = vld [vmem:[#allocation7 + $0xaf0] sm:$0xff]  ;;  %v15618_v46 = vcombine.low %v2924_v61, %v2928_v31 }
 0x5a4   :  { %v12989_v50 = vpop.f32.mrf.mxu0  ;;  %13299 = vmatprep.subr.bf16.mxu0 %v15643_v20  ;;  %v2916_v20 = vld [vmem:[#allocation7 + $0xe90] sm:$0xff]  ;;  %v15491_v39 = vcombine.high %v2796_v19, %v2800_v2  ;;  %v15490_v38 = vcombine.low %v2796_v19, %v2800_v2 }
 0x5a5   :  { %v18520_v7 = vadd.f32 %v12989_v50, %v18514_v6  ;;  %13257 = vmatpush2.bf16.msra.mxu1 %v15522_v1  ;;  %v15499_v6 = vcombine.high %v2804_v58, %v2808_v11  ;;  %v2920_v1 = vld [vmem:[#allocation7 + $0xeb0] sm:$0xff] }
 0x5a6   :  { %v12991_v25 = vpop.f32.mrf.mxu0  ;;  %13258 = vmatprep.subr.bf16.mxu1 %v15515_v29  ;;  %v2788_v57 = vld [vmem:[#allocation7 + $0xa90] sm:$0xff] }
 0x5a7   :  { %13300 = vmatpush2.bf16.msra.mxu0 %v15642_v55  ;;  %v2792_v29 = vld [vmem:[#allocation7 + $0xab0] sm:$0xff]  ;;  %v15611_v55 = vcombine.high %v2916_v20, %v2920_v1 }
 0x5a8   :  { %v12992_v35 = vpop.f32.mrf.mxu0  ;;  %13301 = vmatprep.subr.bf16.mxu0 %v15635_v23  ;;  %v2912_v50 = vld [vmem:[#allocation7 + $0xe70] sm:$0xff]  ;;  %v15483_v23 = vcombine.high %v2788_v57, %v2792_v29 }
 0x5a9   :  { %13259 = vmatpush2.bf16.msra.mxu1 %v15514_v5  ;;  %v15610_v5 = vcombine.low %v2916_v20, %v2920_v1  ;;  %v2780_v3 = vld [vmem:[#allocation7 + $0xa50] sm:$0xff]  ;;  %v15603_v25 = vcombine.high %v2908_v48, %v2912_v50  ;;  %v15602_v35 = vcombine.low %v2908_v48, %v2912_v50 }
 0x5aa   :  { %13260 = vmatprep.subr.bf16.mxu1 %v15507_v60  ;;  %v2784_v43 = vld [vmem:[#allocation7 + $0xa70] sm:$0xff]  ;;  %v15482_v60 = vcombine.low %v2788_v57, %v2792_v29 }
 0x5ab   :  { %13302 = vmatpush2.bf16.msra.mxu0 %v15634_v18  ;;  %v2900_v18 = vld [vmem:[#allocation7 + $0xe10] sm:$0xff]  ;;  %v15475_v11 = vcombine.high %v2780_v3, %v2784_v43  ;;  %v15474_v31 = vcombine.low %v2780_v3, %v2784_v43 }
 0x5ac   :  { %13303 = vmatprep.subr.bf16.mxu0 %v15627_v52  ;;  %v2904_v58 = vld [vmem:[#allocation7 + $0xe30] sm:$0xff] }
 0x5ad   :  { %13261 = vmatpush2.bf16.msra.mxu1 %v15506_v53  ;;  %v2772_v52 = vld [vmem:[#allocation7 + $0xa10] sm:$0xff]  ;;  %v15595_v61 = vcombine.high %v2900_v18, %v2904_v58  ;;  %v15594_v2 = vcombine.low %v2900_v18, %v2904_v58 }
 0x5ae   :  { %13262 = vmatprep.subr.bf16.mxu1 %v15499_v6  ;;  %v2776_v53 = vld [vmem:[#allocation7 + $0xa30] sm:$0xff] }
 0x5af   :  { %13304 = vmatpush2.bf16.msra.mxu0 %v15626_v4  ;;  %v3148_v6 = vld [vmem:[#allocation7 + $0x15d0] sm:$0xff]  ;;  %v15467_v19 = vcombine.high %v2772_v52, %v2776_v53  ;;  %v15466_v1 = vcombine.low %v2772_v52, %v2776_v53 }
 0x5b0   :  { %13305 = vmatprep.subr.bf16.mxu0 %v15619_v16  ;;  %v3152_v4 = vld [vmem:[#allocation7 + $0x15f0] sm:$0xff] }
 0x5b1   :  { %13263 = vmatpush2.bf16.msra.mxu1 %v15498_v30  ;;  %v3020_v16 = vld [vmem:[#allocation7 + $0x11d0] sm:$0xff]  ;;  %v15843_v20 = vcombine.high %v3148_v6, %v3152_v4  ;;  %v15842_v29 = vcombine.low %v3148_v6, %v3152_v4 }
 0x5b2   :  { %13264 = vmatprep.subr.bf16.mxu1 %v15491_v39  ;;  %v3024_v30 = vld [vmem:[#allocation7 + $0x11f0] sm:$0xff] }
 0x5b3   :  { %13306 = vmatpush2.bf16.msra.mxu0 %v15618_v46  ;;  %v3140_v39 = vld [vmem:[#allocation7 + $0x1590] sm:$0xff]  ;;  %v15715_v57 = vcombine.high %v3020_v16, %v3024_v30  ;;  %v15714_v50 = vcombine.low %v3020_v16, %v3024_v30 }
 0x5b4   :  { %13307 = vmatprep.subr.bf16.mxu0 %v15611_v55  ;;  %v3144_v46 = vld [vmem:[#allocation7 + $0x15b0] sm:$0xff] }
 0x5b5   :  { %13265 = vmatpush2.bf16.msra.mxu1 %v15490_v38  ;;  %v3012_v55 = vld [vmem:[#allocation7 + $0x1190] sm:$0xff]  ;;  %v15835_v48 = vcombine.high %v3140_v39, %v3144_v46  ;;  %v15834_v43 = vcombine.low %v3140_v39, %v3144_v46 }
 0x5b6   :  { %13266 = vmatprep.subr.bf16.mxu1 %v15483_v23  ;;  %v3016_v38 = vld [vmem:[#allocation7 + $0x11b0] sm:$0xff] }
 0x5b7   :  { %13308 = vmatpush2.bf16.msra.mxu0 %v15610_v5  ;;  %v3132_v23 = vld [vmem:[#allocation7 + $0x1550] sm:$0xff]  ;;  %v15707_v3 = vcombine.high %v3012_v55, %v3016_v38 }
 0x5b8   :  { %13309 = vmatprep.subr.bf16.mxu0 %v15603_v25  ;;  %v3136_v5 = vld [vmem:[#allocation7 + $0x1570] sm:$0xff] }
 0x5b9   :  { %13267 = vmatpush2.bf16.msra.mxu1 %v15482_v60  ;;  %v3004_v25 = vld [vmem:[#allocation7 + $0x1150] sm:$0xff]  ;;  %v15827_v58 = vcombine.high %v3132_v23, %v3136_v5  ;;  %v15826_v4 = vcombine.low %v3132_v23, %v3136_v5 }
 0x5ba   :  { %13268 = vmatprep.subr.bf16.mxu1 %v15475_v11  ;;  %v3008_v60 = vld [vmem:[#allocation7 + $0x1170] sm:$0xff] }
 0x5bb   :  { %13310 = vmatpush2.bf16.msra.mxu0 %v15602_v35  ;;  %v15706_v35 = vcombine.low %v3012_v55, %v3016_v38  ;;  %v3124_v52 = vld [vmem:[#allocation7 + $0x1510] sm:$0xff]  ;;  %v15698_v30 = vcombine.low %v3004_v25, %v3008_v60 }
 0x5bc   :  { %13311 = vmatprep.subr.bf16.mxu0 %v15595_v61  ;;  %v3128_v53 = vld [vmem:[#allocation7 + $0x1530] sm:$0xff] }
 0x5bd   :  { %13269 = vmatpush2.bf16.msra.mxu1 %v15474_v31  ;;  %v15699_v31 = vcombine.high %v3004_v25, %v3008_v60  ;;  %v2992_v55 = vld [vmem:[#allocation7 + $0x10f0] sm:$0xff] }
 0x5be   :  { %13270 = vmatprep.subr.bf16.mxu1 %v15467_v19  ;;  %v2996_v19 = vld [vmem:[#allocation7 + $0x1110] sm:$0xff] }
 0x5bf   :  { %13312 = vmatpush2.bf16.msra.mxu0 %v15594_v2  ;;  %v3000_v2 = vld [vmem:[#allocation7 + $0x1130] sm:$0xff] }
 0x5c0   :  { %13363 = vmatprep.subr.bf16.mxu0 %v15843_v20  ;;  %v3116_v20 = vld [vmem:[#allocation7 + $0x14d0] sm:$0xff]  ;;  %v15691_v46 = vcombine.high %v2996_v19, %v3000_v2  ;;  %v15690_v38 = vcombine.low %v2996_v19, %v3000_v2 }
 0x5c1   :  { %13271 = vmatpush2.bf16.msra.mxu1 %v15466_v1  ;;  %v3120_v1 = vld [vmem:[#allocation7 + $0x14f0] sm:$0xff] }
 0x5c2   :  { %13314 = vmatmul.mubr.bf16.vlgmr.msra.gmra.mxu0 %v18273_v0  ;;  %13322 = vmatprep.subr.bf16.mxu1 %v15715_v57  ;;  %v15818_v57 = vcombine.low %v3124_v52, %v3128_v53  ;;  %v15810_v5 = vcombine.low %v3116_v20, %v3120_v1  ;;  %v3092_v19 = vld [vmem:[#allocation7 + $0x1410] sm:$0xff] }
 0x5c3   :  { %13364 = vmatpush1.bf16.msra.mxu0 %v15842_v29  ;;  %13395 = vmatprep.mubr.bf16.mxu0 %v18275_v42  ;;  %v2988_v29 = vld [vmem:[#allocation7 + $0x10d0] sm:$0xff] }
 0x5c4   :  { %v13028_v18 = vpop.f32.mrf.mxu1  ;;  %13273 = vmatmul.mubr.bf16.vlgmr.msra.gmra.mxu1 %v18277_v8  ;;  %13365 = vmatprep.subr.bf16.mxu0 %v15835_v48  ;;  %v3108_v48 = vld [vmem:[#allocation7 + $0x1490] sm:$0xff]  ;;  %v15683_v23 = vcombine.high %v2988_v29, %v2992_v55  ;;  %v15682_v60 = vcombine.low %v2988_v29, %v2992_v55 }
 0x5c5   :  { %v18526_v11 = vadd.f32 %v13028_v18, %v18517_v56  ;;  %13323 = vmatpush1.bf16.msra.mxu1 %v15714_v50  ;;  %13354 = vmatprep.mubr.bf16.mxu1 %v18280_v9  ;;  %v15819_v56 = vcombine.high %v3124_v52, %v3128_v53  ;;  %v3112_v50 = vld [vmem:[#allocation7 + $0x14b0] sm:$0xff] }
 0x5c6   :  { %v13030_v61 = vpop.f32.mrf.mxu1  ;;  %13324 = vmatprep.subr.bf16.mxu1 %v15707_v3  ;;  %v2980_v3 = vld [vmem:[#allocation7 + $0x1090] sm:$0xff]  ;;  %v15803_v25 = vcombine.high %v3108_v48, %v3112_v50  ;;  %v15802_v52 = vcombine.low %v3108_v48, %v3112_v50 }
 0x5c7   :  { %v18530_v6 = vadd.f32 %v13030_v61, %v18520_v7  ;;  %13366 = vmatpush1.bf16.msra.mxu0 %v15834_v43  ;;  %v15811_v7 = vcombine.high %v3116_v20, %v3120_v1  ;;  %v2984_v43 = vld [vmem:[#allocation7 + $0x10b0] sm:$0xff] }
 0x5c8   :  { %v13032_v16 = vpop.f32.mrf.mxu1  ;;  %13367 = vmatprep.subr.bf16.mxu0 %v15827_v58  ;;  %v3100_v18 = vld [vmem:[#allocation7 + $0x1450] sm:$0xff] }
 0x5c9   :  { %13325 = vmatpush1.bf16.msra.mxu1 %v15706_v35  ;;  %v3104_v58 = vld [vmem:[#allocation7 + $0x1470] sm:$0xff]  ;;  %v15675_v35 = vcombine.high %v2980_v3, %v2984_v43 }
 0x5ca   :  { %v13033_v39 = vpop.f32.mrf.mxu1  ;;  %13326 = vmatprep.subr.bf16.mxu1 %v15699_v31  ;;  %v2972_v53 = vld [vmem:[#allocation7 + $0x1050] sm:$0xff]  ;;  %v15795_v31 = vcombine.high %v3100_v18, %v3104_v58 }
 0x5cb   :  { %13368 = vmatpush1.bf16.msra.mxu0 %v15826_v4  ;;  %v2976_v61 = vld [vmem:[#allocation7 + $0x1070] sm:$0xff]  ;;  %v15674_v4 = vcombine.low %v2980_v3, %v2984_v43 }
 0x5cc   :  { %13369 = vmatprep.subr.bf16.mxu0 %v15819_v56  ;;  %v3096_v2 = vld [vmem:[#allocation7 + $0x1430] sm:$0xff]  ;;  %v15667_v16 = vcombine.high %v2972_v53, %v2976_v61  ;;  %v15794_v56 = vcombine.low %v3100_v18, %v3104_v58  ;;  %v15666_v39 = vcombine.low %v2972_v53, %v2976_v61 }
 0x5cd   :  { %13327 = vmatpush1.bf16.msra.mxu1 %v15698_v30  ;;  %v2964_v30 = vld [vmem:[#allocation7 + $0x1010] sm:$0xff]  ;;  %v15787_v1 = vcombine.high %v3092_v19, %v3096_v2  ;;  %v15786_v55 = vcombine.low %v3092_v19, %v3096_v2 }
 0x5ce   :  { %13328 = vmatprep.subr.bf16.mxu1 %v15691_v46  ;;  %v2968_v20 = vld [vmem:[#allocation7 + $0x1030] sm:$0xff] }
 0x5cf   :  { %13370 = vmatpush1.bf16.msra.mxu0 %v15818_v57  ;;  %v3212_v46 = vld [vmem:[#allocation7 + $0x17d0] sm:$0xff]  ;;  %v15659_v29 = vcombine.high %v2964_v30, %v2968_v20  ;;  %v15658_v50 = vcombine.low %v2964_v30, %v2968_v20 }
 0x5d0   :  { %13371 = vmatprep.subr.bf16.mxu0 %v15811_v7  ;;  %v3216_v57 = vld [vmem:[#allocation7 + $0x17f0] sm:$0xff] }
 0x5d1   :  { %13329 = vmatpush1.bf16.msra.mxu1 %v15690_v38  ;;  %v3084_v7 = vld [vmem:[#allocation7 + $0x13d0] sm:$0xff]  ;;  %v15907_v48 = vcombine.high %v3212_v46, %v3216_v57  ;;  %v15906_v43 = vcombine.low %v3212_v46, %v3216_v57 }
 0x5d2   :  { %13330 = vmatprep.subr.bf16.mxu1 %v15683_v23  ;;  %v3088_v38 = vld [vmem:[#allocation7 + $0x13f0] sm:$0xff] }
 0x5d3   :  { %13372 = vmatpush1.bf16.msra.mxu0 %v15810_v5  ;;  %v3204_v23 = vld [vmem:[#allocation7 + $0x1790] sm:$0xff]  ;;  %v15779_v3 = vcombine.high %v3084_v7, %v3088_v38  ;;  %v15778_v58 = vcombine.low %v3084_v7, %v3088_v38 }
 0x5d4   :  { %13373 = vmatprep.subr.bf16.mxu0 %v15803_v25  ;;  %v3208_v5 = vld [vmem:[#allocation7 + $0x17b0] sm:$0xff] }
 0x5d5   :  { %13331 = vmatpush1.bf16.msra.mxu1 %v15682_v60  ;;  %v3076_v25 = vld [vmem:[#allocation7 + $0x1390] sm:$0xff]  ;;  %v15899_v18 = vcombine.high %v3204_v23, %v3208_v5 }
 0x5d6   :  { %13332 = vmatprep.subr.bf16.mxu1 %v15675_v35  ;;  %v3080_v60 = vld [vmem:[#allocation7 + $0x13b0] sm:$0xff] }
 0x5d7   :  { %13374 = vmatpush1.bf16.msra.mxu0 %v15802_v52  ;;  %v3196_v35 = vld [vmem:[#allocation7 + $0x1750] sm:$0xff]  ;;  %v15771_v61 = vcombine.high %v3076_v25, %v3080_v60  ;;  %v15770_v20 = vcombine.low %v3076_v25, %v3080_v60 }
 0x5d8   :  { %13375 = vmatprep.subr.bf16.mxu0 %v15795_v31  ;;  %v3200_v52 = vld [vmem:[#allocation7 + $0x1770] sm:$0xff] }
 0x5d9   :  { %13333 = vmatpush1.bf16.msra.mxu1 %v15674_v4  ;;  %v15898_v4 = vcombine.low %v3204_v23, %v3208_v5  ;;  %v3068_v19 = vld [vmem:[#allocation7 + $0x1350] sm:$0xff] }
 0x5da   :  { %13334 = vmatprep.subr.bf16.mxu1 %v15667_v16  ;;  %v3072_v2 = vld [vmem:[#allocation7 + $0x1370] sm:$0xff] }
 0x5db   :  { %13376 = vmatpush1.bf16.msra.mxu0 %v15794_v56  ;;  %v15891_v56 = vcombine.high %v3196_v35, %v3200_v52  ;;  %v15763_v57 = vcombine.high %v3068_v19, %v3072_v2  ;;  %v3184_v23 = vld [vmem:[#allocation7 + $0x16f0] sm:$0xff] }
 0x5dc   :  { %13377 = vmatprep.subr.bf16.mxu0 %v15787_v1  ;;  %v3188_v1 = vld [vmem:[#allocation7 + $0x1710] sm:$0xff] }
 0x5dd   :  { %13335 = vmatpush1.bf16.msra.mxu1 %v15666_v39  ;;  %v3192_v39 = vld [vmem:[#allocation7 + $0x1730] sm:$0xff] }
 0x5de   :  { %13336 = vmatprep.subr.bf16.mxu1 %v15659_v29  ;;  %v3060_v29 = vld [vmem:[#allocation7 + $0x1310] sm:$0xff]  ;;  %v15883_v38 = vcombine.high %v3188_v1, %v3192_v39  ;;  %v15882_v5 = vcombine.low %v3188_v1, %v3192_v39 }
 0x5df   :  { %13378 = vmatpush1.bf16.msra.mxu0 %v15786_v55  ;;  %v3064_v55 = vld [vmem:[#allocation7 + $0x1330] sm:$0xff] }
 0x5e0   :  { %13379 = vmatprep.subr.bf16.mxu0 %v15907_v48  ;;  %v15762_v48 = vcombine.low %v3068_v19, %v3072_v2  ;;  %v15754_v60 = vcombine.low %v3060_v29, %v3064_v55  ;;  %v3164_v2 = vld [vmem:[#allocation7 + $0x1650] sm:$0xff] }
 0x5e1   :  { %13337 = vmatpush1.bf16.msra.mxu1 %v15658_v50  ;;  %v3180_v50 = vld [vmem:[#allocation7 + $0x16d0] sm:$0xff] }
 0x5e2   :  { %v13069_v53 = vpop.f32.mrf.mxu0  ;;  %13338 = vmatprep.subr.bf16.mxu1 %v15779_v3  ;;  %v3052_v3 = vld [vmem:[#allocation7 + $0x12d0] sm:$0xff]  ;;  %v15875_v25 = vcombine.high %v3180_v50, %v3184_v23 }
 0x5e3   :  { %v18533_v31 = vadd.f32 %v13069_v53, %v18526_v11  ;;  %13380 = vmatpush2.bf16.msra.mxu0 %v15906_v43  ;;  %v15890_v11 = vcombine.low %v3196_v35, %v3200_v52  ;;  %v3056_v43 = vld [vmem:[#allocation7 + $0x12f0] sm:$0xff]  ;;  %v15874_v52 = vcombine.low %v3180_v50, %v3184_v23 }
 0x5e4   :  { %v13071_v16 = vpop.f32.mrf.mxu0  ;;  %13381 = vmatprep.subr.bf16.mxu0 %v15899_v18  ;;  %v3172_v18 = vld [vmem:[#allocation7 + $0x1690] sm:$0xff]  ;;  %v15747_v35 = vcombine.high %v3052_v3, %v3056_v43  ;;  %v15746_v19 = vcombine.low %v3052_v3, %v3056_v43 }
 0x5e5   :  { %v18536_v30 = vadd.f32 %v13071_v16, %v18530_v6  ;;  %13339 = vmatpush2.bf16.msra.mxu1 %v15778_v58  ;;  %v15755_v6 = vcombine.high %v3060_v29, %v3064_v55  ;;  %v3176_v58 = vld [vmem:[#allocation7 + $0x16b0] sm:$0xff] }
 0x5e6   :  { %v13073_v46 = vpop.f32.mrf.mxu0  ;;  %13340 = vmatprep.subr.bf16.mxu1 %v15771_v61  ;;  %v3044_v53 = vld [vmem:[#allocation7 + $0x1290] sm:$0xff] }
 0x5e7   :  { %13382 = vmatpush2.bf16.msra.mxu0 %v15898_v4  ;;  %v3048_v61 = vld [vmem:[#allocation7 + $0x12b0] sm:$0xff]  ;;  %v15867_v4 = vcombine.high %v3172_v18, %v3176_v58 }
 0x5e8   :  { %v13074_v7 = vpop.f32.mrf.mxu0  ;;  %13383 = vmatprep.subr.bf16.mxu0 %v15891_v56  ;;  %v3168_v16 = vld [vmem:[#allocation7 + $0x1670] sm:$0xff]  ;;  %v15739_v56 = vcombine.high %v3044_v53, %v3048_v61 }
 0x5e9   :  { %13341 = vmatpush2.bf16.msra.mxu1 %v15770_v20  ;;  %v15866_v20 = vcombine.low %v3172_v18, %v3176_v58  ;;  %v3036_v1 = vld [vmem:[#allocation7 + $0x1250] sm:$0xff]  ;;  %v15859_v46 = vcombine.high %v3164_v2, %v3168_v16  ;;  %v15858_v7 = vcombine.low %v3164_v2, %v3168_v16 }
 0x5ea   :  { %13342 = vmatprep.subr.bf16.mxu1 %v15763_v57  ;;  %v3040_v39 = vld [vmem:[#allocation7 + $0x1270] sm:$0xff]  ;;  %v15738_v57 = vcombine.low %v3044_v53, %v3048_v61 }
 0x5eb   :  { %13384 = vmatpush2.bf16.msra.mxu0 %v15890_v11  ;;  %v3156_v11 = vld [vmem:[#allocation7 + $0x1610] sm:$0xff]  ;;  %v15731_v55 = vcombine.high %v3036_v1, %v3040_v39  ;;  %v15730_v23 = vcombine.low %v3036_v1, %v3040_v39 }
 0x5ec   :  { %13385 = vmatprep.subr.bf16.mxu0 %v15883_v38  ;;  %v3160_v29 = vld [vmem:[#allocation7 + $0x1630] sm:$0xff] }
 0x5ed   :  { %13343 = vmatpush2.bf16.msra.mxu1 %v15762_v48  ;;  %v3028_v38 = vld [vmem:[#allocation7 + $0x1210] sm:$0xff]  ;;  %v15851_v50 = vcombine.high %v3156_v11, %v3160_v29  ;;  %v15850_v43 = vcombine.low %v3156_v11, %v3160_v29 }
 0x5ee   :  { %13344 = vmatprep.subr.bf16.mxu1 %v15755_v6  ;;  %v3032_v48 = vld [vmem:[#allocation7 + $0x1230] sm:$0xff] }
 0x5ef   :  { %13386 = vmatpush2.bf16.msra.mxu0 %v15882_v5  ;;  %v3404_v6 = vld [vmem:[#allocation7 + $0x1dd0] sm:$0xff]  ;;  %v15723_v3 = vcombine.high %v3028_v38, %v3032_v48  ;;  %v15722_v58 = vcombine.low %v3028_v38, %v3032_v48 }
 0x5f0   :  { %13387 = vmatprep.subr.bf16.mxu0 %v15875_v25  ;;  %v3408_v5 = vld [vmem:[#allocation7 + $0x1df0] sm:$0xff] }
 0x5f1   :  { %13345 = vmatpush2.bf16.msra.mxu1 %v15754_v60  ;;  %v3276_v25 = vld [vmem:[#allocation7 + $0x19d0] sm:$0xff]  ;;  %v16099_v18 = vcombine.high %v3404_v6, %v3408_v5  ;;  %v16098_v61 = vcombine.low %v3404_v6, %v3408_v5 }
 0x5f2   :  { %13346 = vmatprep.subr.bf16.mxu1 %v15747_v35  ;;  %v3280_v60 = vld [vmem:[#allocation7 + $0x19f0] sm:$0xff] }
 0x5f3   :  { %13388 = vmatpush2.bf16.msra.mxu0 %v15874_v52  ;;  %v3396_v35 = vld [vmem:[#allocation7 + $0x1d90] sm:$0xff]  ;;  %v15971_v53 = vcombine.high %v3276_v25, %v3280_v60  ;;  %v15970_v16 = vcombine.low %v3276_v25, %v3280_v60 }
 0x5f4   :  { %13389 = vmatprep.subr.bf16.mxu0 %v15867_v4  ;;  %v3400_v52 = vld [vmem:[#allocation7 + $0x1db0] sm:$0xff] }
 0x5f5   :  { %13347 = vmatpush2.bf16.msra.mxu1 %v15746_v19  ;;  %v3268_v4 = vld [vmem:[#allocation7 + $0x1990] sm:$0xff]  ;;  %v16091_v2 = vcombine.high %v3396_v35, %v3400_v52 }
 0x5f6   :  { %13348 = vmatprep.subr.bf16.mxu1 %v15739_v56  ;;  %v3272_v19 = vld [vmem:[#allocation7 + $0x19b0] sm:$0xff] }
 0x5f7   :  { %13390 = vmatpush2.bf16.msra.mxu0 %v15866_v20  ;;  %v3388_v56 = vld [vmem:[#allocation7 + $0x1d50] sm:$0xff]  ;;  %v15963_v39 = vcombine.high %v3268_v4, %v3272_v19  ;;  %v15962_v48 = vcombine.low %v3268_v4, %v3272_v19 }
 0x5f8   :  { %13391 = vmatprep.subr.bf16.mxu0 %v15859_v46  ;;  %v3392_v20 = vld [vmem:[#allocation7 + $0x1d70] sm:$0xff]  ;;  %v16090_v46 = vcombine.low %v3396_v35, %v3400_v52 }
 0x5f9   :  { %13349 = vmatpush2.bf16.msra.mxu1 %v15738_v57  ;;  %v3260_v57 = vld [vmem:[#allocation7 + $0x1950] sm:$0xff]  ;;  %v16082_v60 = vcombine.low %v3388_v56, %v3392_v20 }
 0x5fa   :  { %13350 = vmatprep.subr.bf16.mxu1 %v15731_v55  ;;  %v3264_v11 = vld [vmem:[#allocation7 + $0x1970] sm:$0xff] }
 0x5fb   :  { %13392 = vmatpush2.bf16.msra.mxu0 %v15858_v7  ;;  %v16083_v7 = vcombine.high %v3388_v56, %v3392_v20  ;;  %v3372_v4 = vld [vmem:[#allocation7 + $0x1cd0] sm:$0xff] }
 0x5fc   :  { %13393 = vmatprep.subr.bf16.mxu0 %v15851_v50  ;;  %v3380_v50 = vld [vmem:[#allocation7 + $0x1d10] sm:$0xff] }
 0x5fd   :  { %13351 = vmatpush2.bf16.msra.mxu1 %v15730_v23  ;;  %v3384_v23 = vld [vmem:[#allocation7 + $0x1d30] sm:$0xff] }
 0x5fe   :  { %13352 = vmatprep.subr.bf16.mxu1 %v15723_v3  ;;  %v15955_v3 = vcombine.high %v3260_v57, %v3264_v11  ;;  %v16075_v52 = vcombine.high %v3380_v50, %v3384_v23  ;;  %v3376_v19 = vld [vmem:[#allocation7 + $0x1cf0] sm:$0xff] }
 0x5ff   :  { %13394 = vmatpush2.bf16.msra.mxu0 %v15850_v43  ;;  %v16067_v56 = vcombine.high %v3372_v4, %v3376_v19 }
 0x600   :  { %13445 = vmatprep.subr.bf16.mxu0 %v16099_v18  ;;  %v3252_v18 = vld [vmem:[#allocation7 + $0x1910] sm:$0xff] }
 0x601   :  { %13353 = vmatpush2.bf16.msra.mxu1 %v15722_v58  ;;  %v3256_v58 = vld [vmem:[#allocation7 + $0x1930] sm:$0xff] }
 0x602   :  { %v13151_v1 = vpop.f32.mrf.mxu0  ;;  %13396 = vmatmul.mubr.bf16.vlgmr.msra.gmra.mxu0 %v18311_v22  ;;  %13404 = vmatprep.subr.bf16.mxu1 %v15971_v53  ;;  %v15946_v20 = vcombine.low %v3252_v18, %v3256_v58 }
 0x603   :  { %13446 = vmatpush1.bf16.msra.mxu0 %v16098_v61  ;;  %13477 = vmatprep.mubr.bf16.mxu0 %v18313_v26  ;;  %v15954_v61 = vcombine.low %v3260_v57, %v3264_v11  ;;  %v3236_v57 = vld [vmem:[#allocation7 + $0x1890] sm:$0xff] }
 0x604   :  { %v13153_v29 = vpop.f32.mrf.mxu0  ;;  %v13110_v55 = vpop.f32.mrf.mxu1  ;;  %13355 = vmatmul.mubr.bf16.vlgmr.msra.gmra.mxu1 %v18315_v41  ;;  %13447 = vmatprep.subr.bf16.mxu0 %v16091_v2  ;;  %v3240_v11 = vld [vmem:[#allocation7 + $0x18b0] sm:$0xff] }
 0x605   :  { %v13111_v38 = vadd.f32 %v13110_v55, %v18533_v31  ;;  %13405 = vmatpush1.bf16.msra.mxu1 %v15970_v16  ;;  %13436 = vmatprep.mubr.bf16.mxu1 %v18318_v44  ;;  %v15947_v16 = vcombine.high %v3252_v18, %v3256_v58  ;;  %v3368_v55 = vld [vmem:[#allocation7 + $0x1cb0] sm:$0xff]  ;;  %v15930_v18 = vcombine.low %v3236_v57, %v3240_v11 }
 0x606   :  { %v13155_v6 = vpop.f32.mrf.mxu0  ;;  %v13112_v5 = vpop.f32.mrf.mxu1  ;;  %13406 = vmatprep.subr.bf16.mxu1 %v15963_v39  ;;  %v3248_v39 = vld [vmem:[#allocation7 + $0x18f0] sm:$0xff] }
 0x607   :  { %v18543_v43 = vadd.f32 %v13151_v1, %v13111_v38  ;;  %v13113_v25 = vadd.f32 %v13112_v5, %v18536_v30  ;;  %13448 = vmatpush1.bf16.msra.mxu0 %v16090_v46  ;;  %v16074_v1 = vcombine.low %v3380_v50, %v3384_v23  ;;  %v3244_v30 = vld [vmem:[#allocation7 + $0x18d0] sm:$0xff]  ;;  %v15931_v23 = vcombine.high %v3236_v57, %v3240_v11 }
 0x608   :  { %v13156_v35 = vpop.f32.mrf.mxu0  ;;  %v13114_v31 = vpop.f32.mrf.mxu1  ;;  %13449 = vmatprep.subr.bf16.mxu0 %v16083_v7  ;;  %v3364_v46 = vld [vmem:[#allocation7 + $0x1c90] sm:$0xff]  ;;  %v16066_v7 = vcombine.low %v3372_v4, %v3376_v19 }
 0x609   :  { %v18546_v53 = vadd.f32 %v13153_v29, %v13113_v25  ;;  %13407 = vmatpush1.bf16.msra.mxu1 %v15962_v48  ;;  %v15939_v29 = vcombine.high %v3244_v30, %v3248_v39  ;;  %v16059_v38 = vcombine.high %v3364_v46, %v3368_v55  ;;  %v15938_v48 = vcombine.low %v3244_v30, %v3248_v39  ;;  %v3356_v6 = vld [vmem:[#allocation7 + $0x1c50] sm:$0xff] }
 0x60a   :  { %v13115_v2 = vpop.f32.mrf.mxu1  ;;  %13408 = vmatprep.subr.bf16.mxu1 %v15955_v3  ;;  %v3360_v50 = vld [vmem:[#allocation7 + $0x1c70] sm:$0xff]  ;;  %v16058_v5 = vcombine.low %v3364_v46, %v3368_v55 }
 0x60b   :  { %13450 = vmatpush1.bf16.msra.mxu0 %v16082_v60  ;;  %v3228_v3 = vld [vmem:[#allocation7 + $0x1850] sm:$0xff]  ;;  %v16051_v60 = vcombine.high %v3356_v6, %v3360_v50 }
 0x60c   :  { %13451 = vmatprep.subr.bf16.mxu0 %v16075_v52  ;;  %v3232_v25 = vld [vmem:[#allocation7 + $0x1870] sm:$0xff]  ;;  %v16050_v52 = vcombine.low %v3356_v6, %v3360_v50 }
 0x60d   :  { %13409 = vmatpush1.bf16.msra.mxu1 %v15954_v61  ;;  %v3348_v58 = vld [vmem:[#allocation7 + $0x1c10] sm:$0xff]  ;;  %v15923_v31 = vcombine.high %v3228_v3, %v3232_v25  ;;  %v15922_v2 = vcombine.low %v3228_v3, %v3232_v25 }
 0x60e   :  { %13410 = vmatprep.subr.bf16.mxu1 %v15947_v16  ;;  %v3352_v35 = vld [vmem:[#allocation7 + $0x1c30] sm:$0xff] }
 0x60f   :  { %13452 = vmatpush1.bf16.msra.mxu0 %v16074_v1  ;;  %v3220_v61 = vld [vmem:[#allocation7 + $0x1810] sm:$0xff]  ;;  %v16043_v19 = vcombine.high %v3348_v58, %v3352_v35  ;;  %v16042_v39 = vcombine.low %v3348_v58, %v3352_v35 }
 0x610   :  { %13453 = vmatprep.subr.bf16.mxu0 %v16067_v56  ;;  %v3224_v4 = vld [vmem:[#allocation7 + $0x1830] sm:$0xff] }
 0x611   :  { %13411 = vmatpush1.bf16.msra.mxu1 %v15946_v20  ;;  %v3468_v16 = vld [vmem:[#allocation7 + $0x1fd0] sm:$0xff]  ;;  %v15915_v30 = vcombine.high %v3220_v61, %v3224_v4  ;;  %v15914_v55 = vcombine.low %v3220_v61, %v3224_v4 }
 0x612   :  { %13412 = vmatprep.subr.bf16.mxu1 %v15939_v29  ;;  %v3472_v1 = vld [vmem:[#allocation7 + $0x1ff0] sm:$0xff] }
 0x613   :  { %13454 = vmatpush1.bf16.msra.mxu0 %v16066_v7  ;;  %v3340_v56 = vld [vmem:[#allocation7 + $0x1bd0] sm:$0xff]  ;;  %v16163_v46 = vcombine.high %v3468_v16, %v3472_v1  ;;  %v16162_v11 = vcombine.low %v3468_v16, %v3472_v1 }
 0x614   :  { %13455 = vmatprep.subr.bf16.mxu0 %v16059_v38  ;;  %v3344_v20 = vld [vmem:[#allocation7 + $0x1bf0] sm:$0xff] }
 0x615   :  { %13413 = vmatpush1.bf16.msra.mxu1 %v15938_v48  ;;  %v3460_v29 = vld [vmem:[#allocation7 + $0x1f90] sm:$0xff]  ;;  %v16035_v57 = vcombine.high %v3340_v56, %v3344_v20  ;;  %v16034_v50 = vcombine.low %v3340_v56, %v3344_v20 }
 0x616   :  { %13414 = vmatprep.subr.bf16.mxu1 %v15931_v23  ;;  %v3464_v7 = vld [vmem:[#allocation7 + $0x1fb0] sm:$0xff] }
 0x617   :  { %13456 = vmatpush1.bf16.msra.mxu0 %v16058_v5  ;;  %v3332_v38 = vld [vmem:[#allocation7 + $0x1b90] sm:$0xff]  ;;  %v16155_v6 = vcombine.high %v3460_v29, %v3464_v7  ;;  %v16154_v25 = vcombine.low %v3460_v29, %v3464_v7 }
 0x618   :  { %13457 = vmatprep.subr.bf16.mxu0 %v16051_v60  ;;  %v3336_v48 = vld [vmem:[#allocation7 + $0x1bb0] sm:$0xff] }
 0x619   :  { %13415 = vmatpush1.bf16.msra.mxu1 %v15930_v18  ;;  %v3452_v23 = vld [vmem:[#allocation7 + $0x1f50] sm:$0xff]  ;;  %v16027_v3 = vcombine.high %v3332_v38, %v3336_v48  ;;  %v16026_v35 = vcombine.low %v3332_v38, %v3336_v48 }
 0x61a   :  { %13416 = vmatprep.subr.bf16.mxu1 %v15923_v31  ;;  %v3456_v5 = vld [vmem:[#allocation7 + $0x1f70] sm:$0xff] }
 0x61b   :  { %13458 = vmatpush1.bf16.msra.mxu0 %v16050_v52  ;;  %v3324_v60 = vld [vmem:[#allocation7 + $0x1b50] sm:$0xff]  ;;  %v16147_v58 = vcombine.high %v3452_v23, %v3456_v5  ;;  %v16146_v4 = vcombine.low %v3452_v23, %v3456_v5 }
 0x61c   :  { %13459 = vmatprep.subr.bf16.mxu0 %v16043_v19  ;;  %v3328_v18 = vld [vmem:[#allocation7 + $0x1b70] sm:$0xff] }
 0x61d   :  { %13417 = vmatpush1.bf16.msra.mxu1 %v15922_v2  ;;  %v3444_v31 = vld [vmem:[#allocation7 + $0x1f10] sm:$0xff]  ;;  %v16019_v61 = vcombine.high %v3324_v60, %v3328_v18  ;;  %v16018_v1 = vcombine.low %v3324_v60, %v3328_v18 }
 0x61e   :  { %13418 = vmatprep.subr.bf16.mxu1 %v15915_v30  ;;  %v3448_v52 = vld [vmem:[#allocation7 + $0x1f30] sm:$0xff] }
 0x61f   :  { %13460 = vmatpush1.bf16.msra.mxu0 %v16042_v39  ;;  %v3316_v19 = vld [vmem:[#allocation7 + $0x1b10] sm:$0xff]  ;;  %v16139_v16 = vcombine.high %v3444_v31, %v3448_v52  ;;  %v16138_v20 = vcombine.low %v3444_v31, %v3448_v52 }
 0x620   :  { %13461 = vmatprep.subr.bf16.mxu0 %v16163_v46  ;;  %v3320_v2 = vld [vmem:[#allocation7 + $0x1b30] sm:$0xff] }
 0x621   :  { %13419 = vmatpush1.bf16.msra.mxu1 %v15914_v55  ;;  %v3436_v30 = vld [vmem:[#allocation7 + $0x1ed0] sm:$0xff]  ;;  %v16011_v56 = vcombine.high %v3316_v19, %v3320_v2  ;;  %v16010_v7 = vcombine.low %v3316_v19, %v3320_v2 }
 0x622   :  { %13420 = vmatprep.subr.bf16.mxu1 %v16035_v57  ;;  %v3440_v39 = vld [vmem:[#allocation7 + $0x1ef0] sm:$0xff] }
 0x623   :  { %13462 = vmatpush2.bf16.msra.mxu0 %v16162_v11  ;;  %v3308_v46 = vld [vmem:[#allocation7 + $0x1ad0] sm:$0xff]  ;;  %v16131_v29 = vcombine.high %v3436_v30, %v3440_v39  ;;  %v16130_v48 = vcombine.low %v3436_v30, %v3440_v39 }
 0x624   :  { %13463 = vmatprep.subr.bf16.mxu0 %v16155_v6  ;;  %v3312_v55 = vld [vmem:[#allocation7 + $0x1af0] sm:$0xff] }
 0x625   :  { %13421 = vmatpush2.bf16.msra.mxu1 %v16034_v50  ;;  %v3428_v57 = vld [vmem:[#allocation7 + $0x1e90] sm:$0xff]  ;;  %v16003_v38 = vcombine.high %v3308_v46, %v3312_v55  ;;  %v16002_v5 = vcombine.low %v3308_v46, %v3312_v55 }
 0x626   :  { %13422 = vmatprep.subr.bf16.mxu1 %v16027_v3  ;;  %v3432_v11 = vld [vmem:[#allocation7 + $0x1eb0] sm:$0xff] }
 0x627   :  { %13464 = vmatpush2.bf16.msra.mxu0 %v16154_v25  ;;  %v3300_v6 = vld [vmem:[#allocation7 + $0x1a90] sm:$0xff]  ;;  %v16123_v23 = vcombine.high %v3428_v57, %v3432_v11  ;;  %v16122_v18 = vcombine.low %v3428_v57, %v3432_v11 }
 0x628   :  { %13465 = vmatprep.subr.bf16.mxu0 %v16147_v58  ;;  %v3304_v50 = vld [vmem:[#allocation7 + $0x1ab0] sm:$0xff] }
 0x629   :  { %13423 = vmatpush2.bf16.msra.mxu1 %v16026_v35  ;;  %v3420_v3 = vld [vmem:[#allocation7 + $0x1e50] sm:$0xff]  ;;  %v15995_v60 = vcombine.high %v3300_v6, %v3304_v50  ;;  %v15994_v52 = vcombine.low %v3300_v6, %v3304_v50 }
 0x62a   :  { %13424 = vmatprep.subr.bf16.mxu1 %v16019_v61  ;;  %v3424_v25 = vld [vmem:[#allocation7 + $0x1e70] sm:$0xff] }
 0x62b   :  { %13466 = vmatpush2.bf16.msra.mxu0 %v16146_v4  ;;  %v3292_v58 = vld [vmem:[#allocation7 + $0x1a50] sm:$0xff]  ;;  %v16115_v31 = vcombine.high %v3420_v3, %v3424_v25  ;;  %v16114_v2 = vcombine.low %v3420_v3, %v3424_v25  ;;  %v17392_v25 = vld [vmem:[#allocation8] sm:$0xff] }
 0x62c   :  { %13467 = vmatprep.subr.bf16.mxu0 %v16139_v16  ;;  %v3296_v35 = vld [vmem:[#allocation7 + $0x1a70] sm:$0xff] }
 0x62d   :  { %13425 = vmatpush2.bf16.msra.mxu1 %v16018_v1  ;;  %v3412_v61 = vld [vmem:[#allocation7 + $0x1e10] sm:$0xff]  ;;  %v15987_v19 = vcombine.high %v3292_v58, %v3296_v35  ;;  %v15986_v39 = vcombine.low %v3292_v58, %v3296_v35 }
 0x62e   :  { %13426 = vmatprep.subr.bf16.mxu1 %v16011_v56  ;;  %v3416_v4 = vld [vmem:[#allocation7 + $0x1e30] sm:$0xff] }
 0x62f   :  { %13468 = vmatpush2.bf16.msra.mxu0 %v16138_v20  ;;  %v3284_v16 = vld [vmem:[#allocation7 + $0x1a10] sm:$0xff]  ;;  %v16107_v30 = vcombine.high %v3412_v61, %v3416_v4  ;;  %v16106_v55 = vcombine.low %v3412_v61, %v3416_v4  ;;  %v4075_v4 = vrot.slane %v17392_v25, %v18206_v33 }
 0x630   :  { %13469 = vmatprep.subr.bf16.mxu0 %v16131_v29  ;;  %v3288_v1 = vld [vmem:[#allocation7 + $0x1a30] sm:$0xff] }
 0x631   :  { %13427 = vmatpush2.bf16.msra.mxu1 %v16010_v7  ;;  %v3660_v56 = vld [vmem:[#allocation7 + $0x25d0] sm:$0xff]  ;;  %v15979_v46 = vcombine.high %v3284_v16, %v3288_v1  ;;  %v15978_v11 = vcombine.low %v3284_v16, %v3288_v1 }
 0x632   :  { %13428 = vmatprep.subr.bf16.mxu1 %v16003_v38  ;;  %v3664_v20 = vld [vmem:[#allocation7 + $0x25f0] sm:$0xff] }
 0x633   :  { %13470 = vmatpush2.bf16.msra.mxu0 %v16130_v48  ;;  %v3532_v29 = vld [vmem:[#allocation7 + $0x21d0] sm:$0xff]  ;;  %v16355_v57 = vcombine.high %v3660_v56, %v3664_v20  ;;  %v16354_v50 = vcombine.low %v3660_v56, %v3664_v20 }
 0x634   :  { %13471 = vmatprep.subr.bf16.mxu0 %v16123_v23  ;;  %v3536_v7 = vld [vmem:[#allocation7 + $0x21f0] sm:$0xff] }
 0x635   :  { %13429 = vmatpush2.bf16.msra.mxu1 %v16002_v5  ;;  %v3652_v38 = vld [vmem:[#allocation7 + $0x2590] sm:$0xff]  ;;  %v16227_v6 = vcombine.high %v3532_v29, %v3536_v7 }
 0x636   :  { %13430 = vmatprep.subr.bf16.mxu1 %v15995_v60  ;;  %v3656_v48 = vld [vmem:[#allocation7 + $0x25b0] sm:$0xff]  ;;  %v4071_v60 = vrot.slane %v17392_v25, %v18173_v32 }
 0x637   :  { %13472 = vmatpush2.bf16.msra.mxu0 %v16122_v18  ;;  %v3524_v23 = vld [vmem:[#allocation7 + $0x2190] sm:$0xff]  ;;  %v16347_v3 = vcombine.high %v3652_v38, %v3656_v48  ;;  %v16226_v18 = vcombine.low %v3532_v29, %v3536_v7  ;;  %v16346_v61 = vcombine.low %v3652_v38, %v3656_v48 }
 0x638   :  { %13473 = vmatprep.subr.bf16.mxu0 %v16115_v31  ;;  %v3528_v5 = vld [vmem:[#allocation7 + $0x21b0] sm:$0xff] }
 0x639   :  { %13431 = vmatpush2.bf16.msra.mxu1 %v15994_v52  ;;  %v3644_v58 = vld [vmem:[#allocation7 + $0x2550] sm:$0xff]  ;;  %v16219_v52 = vcombine.high %v3524_v23, %v3528_v5 }
 0x63a   :  { %13432 = vmatprep.subr.bf16.mxu1 %v15987_v19  ;;  %v3648_v35 = vld [vmem:[#allocation7 + $0x2570] sm:$0xff] }
 0x63b   :  { %13474 = vmatpush2.bf16.msra.mxu0 %v16114_v2  ;;  %v3516_v19 = vld [vmem:[#allocation7 + $0x2150] sm:$0xff]  ;;  %v16339_v32 = vcombine.high %v3644_v58, %v3648_v35  ;;  %v16338_v7 = vcombine.low %v3644_v58, %v3648_v35 }
 0x63c   :  { %13475 = vmatprep.subr.bf16.mxu0 %v16107_v30  ;;  %v3520_v2 = vld [vmem:[#allocation7 + $0x2170] sm:$0xff] }
 0x63d   :  { %13433 = vmatpush2.bf16.msra.mxu1 %v15986_v39  ;;  %v16218_v39 = vcombine.low %v3524_v23, %v3528_v5  ;;  %v3636_v56 = vld [vmem:[#allocation7 + $0x2510] sm:$0xff]  ;;  %v16211_v29 = vcombine.high %v3516_v19, %v3520_v2 }
 0x63e   :  { %13434 = vmatprep.subr.bf16.mxu1 %v15979_v46  ;;  %v3640_v20 = vld [vmem:[#allocation7 + $0x2530] sm:$0xff] }
 0x63f   :  { %13476 = vmatpush2.bf16.msra.mxu0 %v16106_v55  ;;  %v3628_v23 = vld [vmem:[#allocation7 + $0x24d0] sm:$0xff] }
 0x640   :  { %13527 = vmatprep.subr.bf16.mxu0 %v16355_v57  ;;  %v3508_v57 = vld [vmem:[#allocation7 + $0x2110] sm:$0xff] }
 0x641   :  { %13435 = vmatpush2.bf16.msra.mxu1 %v15978_v11  ;;  %v3512_v11 = vld [vmem:[#allocation7 + $0x2130] sm:$0xff] }
 0x642   :  { %v13233_v31 = vpop.f32.mrf.mxu0  ;;  %13478 = vmatmul.mubr.bf16.vlgmr.msra.gmra.mxu0 %v18341_v36  ;;  %13486 = vmatprep.subr.bf16.mxu1 %v16227_v6  ;;  %v3632_v5 = vld [vmem:[#allocation7 + $0x24f0] sm:$0xff] }
 0x643   :  { %13528 = vmatpush1.bf16.msra.mxu0 %v16354_v50  ;;  %13559 = vmatprep.mubr.bf16.mxu0 %v18343_v51  ;;  %v16331_v50 = vcombine.high %v3636_v56, %v3640_v20  ;;  %v3500_v58 = vld [vmem:[#allocation7 + $0x20d0] sm:$0xff] }
 0x644   :  { %v13235_v16 = vpop.f32.mrf.mxu0  ;;  %v13192_v1 = vpop.f32.mrf.mxu1  ;;  %13437 = vmatmul.mubr.bf16.vlgmr.msra.gmra.mxu1 %v18346_v28  ;;  %13529 = vmatprep.subr.bf16.mxu0 %v16347_v3  ;;  %v16210_v3 = vcombine.low %v3516_v19, %v3520_v2  ;;  %v3504_v35 = vld [vmem:[#allocation7 + $0x20f0] sm:$0xff]  ;;  %v16322_v19 = vcombine.low %v3628_v23, %v3632_v5 }
 0x645   :  { %v13193_v30 = vadd.f32 %v13192_v1, %v4071_v60  ;;  %13487 = vmatpush1.bf16.msra.mxu1 %v16226_v18  ;;  %13518 = vmatprep.mubr.bf16.mxu1 %v18349_v34  ;;  %v16203_v18 = vcombine.high %v3508_v57, %v3512_v11  ;;  %v3624_v1 = vld [vmem:[#allocation7 + $0x24b0] sm:$0xff] }
 0x646   :  { %v13237_v46 = vpop.f32.mrf.mxu0  ;;  %v13194_v55 = vpop.f32.mrf.mxu1  ;;  %13488 = vmatprep.subr.bf16.mxu1 %v16219_v52  ;;  %v16330_v52 = vcombine.low %v3636_v56, %v3640_v20  ;;  %v3492_v2 = vld [vmem:[#allocation7 + $0x2090] sm:$0xff] }
 0x647   :  { %v13195_v33 = vadd.f32 %v13194_v55, %v4075_v4  ;;  %13530 = vmatpush1.bf16.msra.mxu0 %v16346_v61  ;;  %v18554_v38 = vadd.f32 %v13233_v31, %v13193_v30  ;;  %v16323_v31 = vcombine.high %v3628_v23, %v3632_v5  ;;  %v16202_v61 = vcombine.low %v3508_v57, %v3512_v11  ;;  %v3620_v4 = vld [vmem:[#allocation7 + $0x2490] sm:$0xff] }
 0x648   :  { %v13238_v48 = vpop.f32.mrf.mxu0  ;;  %v13196_v6 = vpop.f32.mrf.mxu1  ;;  %13531 = vmatprep.subr.bf16.mxu0 %v16339_v32  ;;  %v16195_v32 = vcombine.high %v3500_v58, %v3504_v35  ;;  %v16315_v30 = vcombine.high %v3620_v4, %v3624_v1  ;;  %v3612_v46 = vld [vmem:[#allocation7 + $0x2450] sm:$0xff]  ;;  %v16314_v55 = vcombine.low %v3620_v4, %v3624_v1 }
 0x649   :  { %13489 = vmatpush1.bf16.msra.mxu1 %v16218_v39  ;;  %v18556_v25 = vadd.f32 %v13235_v16, %v13195_v33  ;;  %v3496_v16 = vld [vmem:[#allocation7 + $0x20b0] sm:$0xff]  ;;  %v16194_v39 = vcombine.low %v3500_v58, %v3504_v35 }
 0x64a   :  { %v13197_v60 = vpop.f32.mrf.mxu1  ;;  %13490 = vmatprep.subr.bf16.mxu1 %v16211_v29  ;;  %v3616_v56 = vld [vmem:[#allocation7 + $0x2470] sm:$0xff]  ;;  %v16187_v20 = vcombine.high %v3492_v2, %v3496_v16  ;;  %v16186_v57 = vcombine.low %v3492_v2, %v3496_v16 }
 0x64b   :  { %13532 = vmatpush1.bf16.msra.mxu0 %v16338_v7  ;;  %v3484_v29 = vld [vmem:[#allocation7 + $0x2050] sm:$0xff]  ;;  %v16307_v7 = vcombine.high %v3612_v46, %v3616_v56 }
 0x64c   :  { %13533 = vmatprep.subr.bf16.mxu0 %v16331_v50  ;;  %v3488_v33 = vld [vmem:[#allocation7 + $0x2070] sm:$0xff]  ;;  %v16306_v50 = vcombine.low %v3612_v46, %v3616_v56 }
 0x64d   :  { %13491 = vmatpush1.bf16.msra.mxu1 %v16210_v3  ;;  %v3604_v11 = vld [vmem:[#allocation7 + $0x2410] sm:$0xff]  ;;  %v16179_v6 = vcombine.high %v3484_v29, %v3488_v33  ;;  %v16178_v60 = vcombine.low %v3484_v29, %v3488_v33 }
 0x64e   :  { %13492 = vmatprep.subr.bf16.mxu1 %v16203_v18  ;;  %v3608_v48 = vld [vmem:[#allocation7 + $0x2430] sm:$0xff] }
 0x64f   :  { %13534 = vmatpush1.bf16.msra.mxu0 %v16330_v52  ;;  %v3476_v3 = vld [vmem:[#allocation7 + $0x2010] sm:$0xff]  ;;  %v16299_v5 = vcombine.high %v3604_v11, %v3608_v48  ;;  %v16298_v35 = vcombine.low %v3604_v11, %v3608_v48 }
 0x650   :  { %13535 = vmatprep.subr.bf16.mxu0 %v16323_v31  ;;  %v3480_v23 = vld [vmem:[#allocation7 + $0x2030] sm:$0xff] }
 0x651   :  { %13493 = vmatpush1.bf16.msra.mxu1 %v16202_v61  ;;  %v3724_v18 = vld [vmem:[#allocation7 + $0x27d0] sm:$0xff]  ;;  %v16171_v58 = vcombine.high %v3476_v3, %v3480_v23  ;;  %v16170_v1 = vcombine.low %v3476_v3, %v3480_v23 }
 0x652   :  { %13494 = vmatprep.subr.bf16.mxu1 %v16195_v32  ;;  %v3728_v52 = vld [vmem:[#allocation7 + $0x27f0] sm:$0xff] }
 0x653   :  { %13536 = vmatpush1.bf16.msra.mxu0 %v16322_v19  ;;  %v3596_v31 = vld [vmem:[#allocation7 + $0x23d0] sm:$0xff]  ;;  %v16419_v4 = vcombine.high %v3724_v18, %v3728_v52  ;;  %v16418_v16 = vcombine.low %v3724_v18, %v3728_v52 }
 0x654   :  { %13537 = vmatprep.subr.bf16.mxu0 %v16315_v30  ;;  %v3600_v61 = vld [vmem:[#allocation7 + $0x23f0] sm:$0xff] }
 0x655   :  { %13495 = vmatpush1.bf16.msra.mxu1 %v16194_v39  ;;  %v3716_v32 = vld [vmem:[#allocation7 + $0x2790] sm:$0xff]  ;;  %v16291_v2 = vcombine.high %v3596_v31, %v3600_v61  ;;  %v16290_v56 = vcombine.low %v3596_v31, %v3600_v61 }
 0x656   :  { %13496 = vmatprep.subr.bf16.mxu1 %v16187_v20  ;;  %v3720_v19 = vld [vmem:[#allocation7 + $0x27b0] sm:$0xff] }
 0x657   :  { %13538 = vmatpush1.bf16.msra.mxu0 %v16314_v55  ;;  %v3588_v30 = vld [vmem:[#allocation7 + $0x2390] sm:$0xff]  ;;  %v16411_v46 = vcombine.high %v3716_v32, %v3720_v19  ;;  %v16410_v33 = vcombine.low %v3716_v32, %v3720_v19 }
 0x658   :  { %13539 = vmatprep.subr.bf16.mxu0 %v16307_v7  ;;  %v3592_v39 = vld [vmem:[#allocation7 + $0x23b0] sm:$0xff] }
 0x659   :  { %13497 = vmatpush1.bf16.msra.mxu1 %v16186_v57  ;;  %v3708_v20 = vld [vmem:[#allocation7 + $0x2750] sm:$0xff]  ;;  %v16283_v29 = vcombine.high %v3588_v30, %v3592_v39  ;;  %v16282_v48 = vcombine.low %v3588_v30, %v3592_v39 }
 0x65a   :  { %13498 = vmatprep.subr.bf16.mxu1 %v16179_v6  ;;  %v3712_v55 = vld [vmem:[#allocation7 + $0x2770] sm:$0xff] }
 0x65b   :  { %13540 = vmatpush1.bf16.msra.mxu0 %v16306_v50  ;;  %v3580_v7 = vld [vmem:[#allocation7 + $0x2350] sm:$0xff]  ;;  %v16403_v11 = vcombine.high %v3708_v20, %v3712_v55  ;;  %v16402_v23 = vcombine.low %v3708_v20, %v3712_v55 }
 0x65c   :  { %13541 = vmatprep.subr.bf16.mxu0 %v16299_v5  ;;  %v3584_v57 = vld [vmem:[#allocation7 + $0x2370] sm:$0xff] }
 0x65d   :  { %13499 = vmatpush1.bf16.msra.mxu1 %v16178_v60  ;;  %v3700_v6 = vld [vmem:[#allocation7 + $0x2710] sm:$0xff]  ;;  %v16275_v3 = vcombine.high %v3580_v7, %v3584_v57  ;;  %v16274_v52 = vcombine.low %v3580_v7, %v3584_v57 }
 0x65e   :  { %13500 = vmatprep.subr.bf16.mxu1 %v16171_v58  ;;  %v3704_v50 = vld [vmem:[#allocation7 + $0x2730] sm:$0xff] }
 0x65f   :  { %13542 = vmatpush1.bf16.msra.mxu0 %v16298_v35  ;;  %v3572_v5 = vld [vmem:[#allocation7 + $0x2310] sm:$0xff]  ;;  %v16395_v18 = vcombine.high %v3700_v6, %v3704_v50  ;;  %v16394_v61 = vcombine.low %v3700_v6, %v3704_v50 }
 0x660   :  { %13543 = vmatprep.subr.bf16.mxu0 %v16419_v4  ;;  %v3576_v60 = vld [vmem:[#allocation7 + $0x2330] sm:$0xff] }
 0x661   :  { %13501 = vmatpush1.bf16.msra.mxu1 %v16170_v1  ;;  %v3692_v58 = vld [vmem:[#allocation7 + $0x26d0] sm:$0xff]  ;;  %v16267_v31 = vcombine.high %v3572_v5, %v3576_v60  ;;  %v16266_v19 = vcombine.low %v3572_v5, %v3576_v60 }
 0x662   :  { %13502 = vmatprep.subr.bf16.mxu1 %v16291_v2  ;;  %v3696_v35 = vld [vmem:[#allocation7 + $0x26f0] sm:$0xff] }
 0x663   :  { %13544 = vmatpush2.bf16.msra.mxu0 %v16418_v16  ;;  %v3564_v4 = vld [vmem:[#allocation7 + $0x22d0] sm:$0xff]  ;;  %v16387_v32 = vcombine.high %v3692_v58, %v3696_v35  ;;  %v16386_v39 = vcombine.low %v3692_v58, %v3696_v35 }
 0x664   :  { %13545 = vmatprep.subr.bf16.mxu0 %v16411_v46  ;;  %v3568_v1 = vld [vmem:[#allocation7 + $0x22f0] sm:$0xff] }
 0x665   :  { %13503 = vmatpush2.bf16.msra.mxu1 %v16290_v56  ;;  %v3684_v2 = vld [vmem:[#allocation7 + $0x2690] sm:$0xff]  ;;  %v16259_v30 = vcombine.high %v3564_v4, %v3568_v1  ;;  %v16258_v55 = vcombine.low %v3564_v4, %v3568_v1 }
 0x666   :  { %13504 = vmatprep.subr.bf16.mxu1 %v16283_v29  ;;  %v3688_v16 = vld [vmem:[#allocation7 + $0x26b0] sm:$0xff] }
 0x667   :  { %13546 = vmatpush2.bf16.msra.mxu0 %v16410_v33  ;;  %v3556_v46 = vld [vmem:[#allocation7 + $0x2290] sm:$0xff]  ;;  %v16379_v20 = vcombine.high %v3684_v2, %v3688_v16  ;;  %v16378_v57 = vcombine.low %v3684_v2, %v3688_v16 }
 0x668   :  { %13547 = vmatprep.subr.bf16.mxu0 %v16403_v11  ;;  %v3560_v56 = vld [vmem:[#allocation7 + $0x22b0] sm:$0xff] }
 0x669   :  { %13505 = vmatpush2.bf16.msra.mxu1 %v16282_v48  ;;  %v3676_v29 = vld [vmem:[#allocation7 + $0x2650] sm:$0xff]  ;;  %v16251_v7 = vcombine.high %v3556_v46, %v3560_v56  ;;  %v16250_v50 = vcombine.low %v3556_v46, %v3560_v56 }
 0x66a   :  { %13506 = vmatprep.subr.bf16.mxu1 %v16275_v3  ;;  %v3680_v33 = vld [vmem:[#allocation7 + $0x2670] sm:$0xff] }
 0x66b   :  { %13548 = vmatpush2.bf16.msra.mxu0 %v16402_v23  ;;  %v3548_v11 = vld [vmem:[#allocation7 + $0x2250] sm:$0xff]  ;;  %v16371_v6 = vcombine.high %v3676_v29, %v3680_v33  ;;  %v16370_v60 = vcombine.low %v3676_v29, %v3680_v33 }
 0x66c   :  { %13549 = vmatprep.subr.bf16.mxu0 %v16395_v18  ;;  %v3552_v48 = vld [vmem:[#allocation7 + $0x2270] sm:$0xff] }
 0x66d   :  { %13507 = vmatpush2.bf16.msra.mxu1 %v16274_v52  ;;  %v3668_v3 = vld [vmem:[#allocation7 + $0x2610] sm:$0xff]  ;;  %v16243_v5 = vcombine.high %v3548_v11, %v3552_v48  ;;  %v16242_v35 = vcombine.low %v3548_v11, %v3552_v48 }
 0x66e   :  { %13508 = vmatprep.subr.bf16.mxu1 %v16267_v31  ;;  %v3672_v23 = vld [vmem:[#allocation7 + $0x2630] sm:$0xff] }
 0x66f   :  { %13550 = vmatpush2.bf16.msra.mxu0 %v16394_v61  ;;  %v3540_v18 = vld [vmem:[#allocation7 + $0x2210] sm:$0xff]  ;;  %v16363_v58 = vcombine.high %v3668_v3, %v3672_v23  ;;  %v16362_v1 = vcombine.low %v3668_v3, %v3672_v23 }
 0x670   :  { %13551 = vmatprep.subr.bf16.mxu0 %v16387_v32  ;;  %v3544_v52 = vld [vmem:[#allocation7 + $0x2230] sm:$0xff] }
 0x671   :  { %13509 = vmatpush2.bf16.msra.mxu1 %v16266_v19  ;;  %v3916_v31 = vld [vmem:[#allocation7 + $0x2dd0] sm:$0xff]  ;;  %v16235_v4 = vcombine.high %v3540_v18, %v3544_v52  ;;  %v16234_v16 = vcombine.low %v3540_v18, %v3544_v52 }
 0x672   :  { %13510 = vmatprep.subr.bf16.mxu1 %v16259_v30  ;;  %v3920_v61 = vld [vmem:[#allocation7 + $0x2df0] sm:$0xff] }
 0x673   :  { %13552 = vmatpush2.bf16.msra.mxu0 %v16386_v39  ;;  %v3788_v32 = vld [vmem:[#allocation7 + $0x29d0] sm:$0xff]  ;;  %v16611_v2 = vcombine.high %v3916_v31, %v3920_v61  ;;  %v16610_v56 = vcombine.low %v3916_v31, %v3920_v61 }
 0x674   :  { %13553 = vmatprep.subr.bf16.mxu0 %v16379_v20  ;;  %v3792_v19 = vld [vmem:[#allocation7 + $0x29f0] sm:$0xff] }
 0x675   :  { %13511 = vmatpush2.bf16.msra.mxu1 %v16258_v55  ;;  %v3908_v30 = vld [vmem:[#allocation7 + $0x2d90] sm:$0xff]  ;;  %v16483_v46 = vcombine.high %v3788_v32, %v3792_v19  ;;  %v16482_v33 = vcombine.low %v3788_v32, %v3792_v19 }
 0x676   :  { %13512 = vmatprep.subr.bf16.mxu1 %v16251_v7  ;;  %v3912_v39 = vld [vmem:[#allocation7 + $0x2db0] sm:$0xff] }
 0x677   :  { %13554 = vmatpush2.bf16.msra.mxu0 %v16378_v57  ;;  %v3780_v20 = vld [vmem:[#allocation7 + $0x2990] sm:$0xff]  ;;  %v16603_v29 = vcombine.high %v3908_v30, %v3912_v39 }
 0x678   :  { %13555 = vmatprep.subr.bf16.mxu0 %v16371_v6  ;;  %v3784_v55 = vld [vmem:[#allocation7 + $0x29b0] sm:$0xff]  ;;  %v16602_v6 = vcombine.low %v3908_v30, %v3912_v39 }
 0x679   :  { %13513 = vmatpush2.bf16.msra.mxu1 %v16250_v50  ;;  %v3900_v7 = vld [vmem:[#allocation7 + $0x2d50] sm:$0xff]  ;;  %v16475_v48 = vcombine.high %v3780_v20, %v3784_v55  ;;  %v16474_v52 = vcombine.low %v3780_v20, %v3784_v55 }
 0x67a   :  { %13514 = vmatprep.subr.bf16.mxu1 %v16243_v5  ;;  %v3904_v57 = vld [vmem:[#allocation7 + $0x2d70] sm:$0xff] }
 0x67b   :  { %13556 = vmatpush2.bf16.msra.mxu0 %v16370_v60  ;;  %v3772_v50 = vld [vmem:[#allocation7 + $0x2950] sm:$0xff]  ;;  %v16595_v60 = vcombine.high %v3900_v7, %v3904_v57  ;;  %v16594_v32 = vcombine.low %v3900_v7, %v3904_v57 }
 0x67c   :  { %13557 = vmatprep.subr.bf16.mxu0 %v16363_v58  ;;  %v3776_v3 = vld [vmem:[#allocation7 + $0x2970] sm:$0xff] }
 0x67d   :  { %13515 = vmatpush2.bf16.msra.mxu1 %v16242_v35  ;;  %v3892_v58 = vld [vmem:[#allocation7 + $0x2d10] sm:$0xff] }
 0x67e   :  { %13516 = vmatprep.subr.bf16.mxu1 %v16235_v4  ;;  %v3896_v35 = vld [vmem:[#allocation7 + $0x2d30] sm:$0xff]  ;;  %v16467_v4 = vcombine.high %v3772_v50, %v3776_v3 }
 0x67f   :  { %13558 = vmatpush2.bf16.msra.mxu0 %v16362_v1  ;;  %v3764_v19 = vld [vmem:[#allocation7 + $0x2910] sm:$0xff]  ;;  %v16587_v39 = vcombine.high %v3892_v58, %v3896_v35 }
 0x680   :  { %13609 = vmatprep.subr.bf16.mxu0 %v16611_v2  ;;  %v3768_v2 = vld [vmem:[#allocation7 + $0x2930] sm:$0xff] }
 0x681   :  { %13517 = vmatpush2.bf16.msra.mxu1 %v16234_v16  ;;  %v3888_v20 = vld [vmem:[#allocation7 + $0x2cf0] sm:$0xff] }
 0x682   :  { %v13315_v11 = vpop.f32.mrf.mxu0  ;;  %13560 = vmatmul.mubr.bf16.vlgmr.msra.gmra.mxu0 %v18371_v27  ;;  %13568 = vmatprep.subr.bf16.mxu1 %v16483_v46  ;;  %v16466_v46 = vcombine.low %v3772_v50, %v3776_v3  ;;  %v3756_v7 = vld [vmem:[#allocation7 + $0x28d0] sm:$0xff] }
 0x683   :  { %13610 = vmatpush1.bf16.msra.mxu0 %v16610_v56  ;;  %13641 = vmatprep.mubr.bf16.mxu0 %v18373_v54  ;;  %v3884_v56 = vld [vmem:[#allocation7 + $0x2cd0] sm:$0xff] }
 0x684   :  { %v13317_v23 = vpop.f32.mrf.mxu0  ;;  %v13274_v5 = vpop.f32.mrf.mxu1  ;;  %13519 = vmatmul.mubr.bf16.vlgmr.msra.gmra.mxu1 %v18375_v59  ;;  %13611 = vmatprep.subr.bf16.mxu0 %v16603_v29  ;;  %v3760_v57 = vld [vmem:[#allocation7 + $0x28f0] sm:$0xff]  ;;  %v16578_v50 = vcombine.low %v3884_v56, %v3888_v20 }
 0x685   :  { %v13275_v18 = vadd.f32 %v13274_v5, %v18554_v38  ;;  %13569 = vmatpush1.bf16.msra.mxu1 %v16482_v33  ;;  %13600 = vmatprep.mubr.bf16.mxu1 %v18378_v10  ;;  %v16459_v33 = vcombine.high %v3764_v19, %v3768_v2  ;;  %v3880_v5 = vld [vmem:[#allocation7 + $0x2cb0] sm:$0xff] }
 0x686   :  { %v13319_v31 = vpop.f32.mrf.mxu0  ;;  %v13276_v61 = vpop.f32.mrf.mxu1  ;;  %13570 = vmatprep.subr.bf16.mxu1 %v16475_v48  ;;  %v16458_v48 = vcombine.low %v3764_v19, %v3768_v2  ;;  %v3748_v3 = vld [vmem:[#allocation7 + $0x2890] sm:$0xff] }
 0x687   :  { %v13277_v1 = vadd.f32 %v13276_v61, %v18556_v25  ;;  %13612 = vmatpush1.bf16.msra.mxu0 %v16602_v6  ;;  %v18564_v16 = vadd.f32 %v13315_v11, %v13275_v18  ;;  %v16586_v25 = vcombine.low %v3892_v58, %v3896_v35  ;;  %v16579_v11 = vcombine.high %v3884_v56, %v3888_v20  ;;  %v3876_v6 = vld [vmem:[#allocation7 + $0x2c90] sm:$0xff] }
 0x688   :  { %v13320_v30 = vpop.f32.mrf.mxu0  ;;  %v13278_v38 = vpop.f32.mrf.mxu1  ;;  %13613 = vmatprep.subr.bf16.mxu0 %v16595_v60  ;;  %v16451_v60 = vcombine.high %v3756_v7, %v3760_v57  ;;  %v16571_v18 = vcombine.high %v3876_v6, %v3880_v5  ;;  %v3868_v31 = vld [vmem:[#allocation7 + $0x2c50] sm:$0xff]  ;;  %v16570_v61 = vcombine.low %v3876_v6, %v3880_v5 }
 0x689   :  { %13571 = vmatpush1.bf16.msra.mxu1 %v16474_v52  ;;  %v18566_v55 = vadd.f32 %v13317_v23, %v13277_v1  ;;  %v3752_v23 = vld [vmem:[#allocation7 + $0x28b0] sm:$0xff]  ;;  %v16450_v52 = vcombine.low %v3756_v7, %v3760_v57 }
 0x68a   :  { %v13279_v29 = vpop.f32.mrf.mxu1  ;;  %13572 = vmatprep.subr.bf16.mxu1 %v16467_v4  ;;  %v3872_v58 = vld [vmem:[#allocation7 + $0x2c70] sm:$0xff]  ;;  %v16443_v35 = vcombine.high %v3748_v3, %v3752_v23  ;;  %v16442_v19 = vcombine.low %v3748_v3, %v3752_v23 }
 0x68b   :  { %13614 = vmatpush1.bf16.msra.mxu0 %v16594_v32  ;;  %v3740_v4 = vld [vmem:[#allocation7 + $0x2850] sm:$0xff]  ;;  %v16563_v32 = vcombine.high %v3868_v31, %v3872_v58 }
 0x68c   :  { %13615 = vmatprep.subr.bf16.mxu0 %v16587_v39  ;;  %v3744_v1 = vld [vmem:[#allocation7 + $0x2870] sm:$0xff]  ;;  %v16562_v39 = vcombine.low %v3868_v31, %v3872_v58 }
 0x68d   :  { %13573 = vmatpush1.bf16.msra.mxu1 %v16466_v46  ;;  %v3860_v2 = vld [vmem:[#allocation7 + $0x2c10] sm:$0xff]  ;;  %v16435_v38 = vcombine.high %v3740_v4, %v3744_v1  ;;  %v16434_v29 = vcombine.low %v3740_v4, %v3744_v1 }
 0x68e   :  { %13574 = vmatprep.subr.bf16.mxu1 %v16459_v33  ;;  %v3864_v30 = vld [vmem:[#allocation7 + $0x2c30] sm:$0xff] }
 0x68f   :  { %13616 = vmatpush1.bf16.msra.mxu0 %v16586_v25  ;;  %v3732_v46 = vld [vmem:[#allocation7 + $0x2810] sm:$0xff]  ;;  %v16555_v20 = vcombine.high %v3860_v2, %v3864_v30  ;;  %v16554_v57 = vcombine.low %v3860_v2, %v3864_v30 }
 0x690   :  { %13617 = vmatprep.subr.bf16.mxu0 %v16579_v11  ;;  %v3736_v56 = vld [vmem:[#allocation7 + $0x2830] sm:$0xff] }
 0x691   :  { %13575 = vmatpush1.bf16.msra.mxu1 %v16458_v48  ;;  %v3980_v33 = vld [vmem:[#allocation7 + $0x2fd0] sm:$0xff]  ;;  %v16427_v7 = vcombine.high %v3732_v46, %v3736_v56  ;;  %v16426_v5 = vcombine.low %v3732_v46, %v3736_v56 }
 0x692   :  { %13576 = vmatprep.subr.bf16.mxu1 %v16451_v60  ;;  %v3984_v25 = vld [vmem:[#allocation7 + $0x2ff0] sm:$0xff] }
 0x693   :  { %13618 = vmatpush1.bf16.msra.mxu0 %v16578_v50  ;;  %v3852_v11 = vld [vmem:[#allocation7 + $0x2bd0] sm:$0xff]  ;;  %v16675_v6 = vcombine.high %v3980_v33, %v3984_v25  ;;  %v16674_v23 = vcombine.low %v3980_v33, %v3984_v25 }
 0x694   :  { %13619 = vmatprep.subr.bf16.mxu0 %v16571_v18  ;;  %v3856_v48 = vld [vmem:[#allocation7 + $0x2bf0] sm:$0xff] }
 0x695   :  { %13577 = vmatpush1.bf16.msra.mxu1 %v16450_v52  ;;  %v3972_v60 = vld [vmem:[#allocation7 + $0x2f90] sm:$0xff]  ;;  %v16547_v3 = vcombine.high %v3852_v11, %v3856_v48  ;;  %v16546_v58 = vcombine.low %v3852_v11, %v3856_v48 }
 0x696   :  { %13578 = vmatprep.subr.bf16.mxu1 %v16443_v35  ;;  %v3976_v50 = vld [vmem:[#allocation7 + $0x2fb0] sm:$0xff] }
 0x697   :  { %13620 = vmatpush1.bf16.msra.mxu0 %v16570_v61  ;;  %v3844_v18 = vld [vmem:[#allocation7 + $0x2b90] sm:$0xff]  ;;  %v16667_v31 = vcombine.high %v3972_v60, %v3976_v50  ;;  %v16666_v1 = vcombine.low %v3972_v60, %v3976_v50 }
 0x698   :  { %13621 = vmatprep.subr.bf16.mxu0 %v16563_v32  ;;  %v3848_v52 = vld [vmem:[#allocation7 + $0x2bb0] sm:$0xff] }
 0x699   :  { %13579 = vmatpush1.bf16.msra.mxu1 %v16442_v19  ;;  %v3964_v35 = vld [vmem:[#allocation7 + $0x2f50] sm:$0xff]  ;;  %v16539_v4 = vcombine.high %v3844_v18, %v3848_v52  ;;  %v16538_v30 = vcombine.low %v3844_v18, %v3848_v52 }
 0x69a   :  { %13580 = vmatprep.subr.bf16.mxu1 %v16435_v38  ;;  %v3968_v61 = vld [vmem:[#allocation7 + $0x2f70] sm:$0xff] }
 0x69b   :  { %13622 = vmatpush1.bf16.msra.mxu0 %v16562_v39  ;;  %v3836_v32 = vld [vmem:[#allocation7 + $0x2b50] sm:$0xff]  ;;  %v16659_v2 = vcombine.high %v3964_v35, %v3968_v61  ;;  %v16658_v56 = vcombine.low %v3964_v35, %v3968_v61 }
 0x69c   :  { %13623 = vmatprep.subr.bf16.mxu0 %v16555_v20  ;;  %v3840_v19 = vld [vmem:[#allocation7 + $0x2b70] sm:$0xff] }
 0x69d   :  { %13581 = vmatpush1.bf16.msra.mxu1 %v16434_v29  ;;  %v3956_v38 = vld [vmem:[#allocation7 + $0x2f10] sm:$0xff]  ;;  %v16531_v46 = vcombine.high %v3836_v32, %v3840_v19  ;;  %v16530_v25 = vcombine.low %v3836_v32, %v3840_v19 }
 0x69e   :  { %13582 = vmatprep.subr.bf16.mxu1 %v16427_v7  ;;  %v3960_v39 = vld [vmem:[#allocation7 + $0x2f30] sm:$0xff] }
 0x69f   :  { %13624 = vmatpush1.bf16.msra.mxu0 %v16554_v57  ;;  %v3828_v20 = vld [vmem:[#allocation7 + $0x2b10] sm:$0xff]  ;;  %v16651_v33 = vcombine.high %v3956_v38, %v3960_v39  ;;  %v16650_v48 = vcombine.low %v3956_v38, %v3960_v39 }
 0x6a0   :  { %13625 = vmatprep.subr.bf16.mxu0 %v16675_v6  ;;  %v3832_v29 = vld [vmem:[#allocation7 + $0x2b30] sm:$0xff] }
 0x6a1   :  { %13583 = vmatpush1.bf16.msra.mxu1 %v16426_v5  ;;  %v3948_v7 = vld [vmem:[#allocation7 + $0x2ed0] sm:$0xff]  ;;  %v16523_v11 = vcombine.high %v3828_v20, %v3832_v29  ;;  %v16522_v50 = vcombine.low %v3828_v20, %v3832_v29 }
 0x6a2   :  { %13584 = vmatprep.subr.bf16.mxu1 %v16547_v3  ;;  %v3952_v57 = vld [vmem:[#allocation7 + $0x2ef0] sm:$0xff] }
 0x6a3   :  { %13626 = vmatpush2.bf16.msra.mxu0 %v16674_v23  ;;  %v3820_v6 = vld [vmem:[#allocation7 + $0x2ad0] sm:$0xff]  ;;  %v16643_v60 = vcombine.high %v3948_v7, %v3952_v57  ;;  %v16642_v52 = vcombine.low %v3948_v7, %v3952_v57 }
 0x6a4   :  { %13627 = vmatprep.subr.bf16.mxu0 %v16667_v31  ;;  %v3824_v5 = vld [vmem:[#allocation7 + $0x2af0] sm:$0xff] }
 0x6a5   :  { %13585 = vmatpush2.bf16.msra.mxu1 %v16546_v58  ;;  %v3940_v3 = vld [vmem:[#allocation7 + $0x2e90] sm:$0xff]  ;;  %v16515_v18 = vcombine.high %v3820_v6, %v3824_v5  ;;  %v16514_v61 = vcombine.low %v3820_v6, %v3824_v5 }
 0x6a6   :  { %13586 = vmatprep.subr.bf16.mxu1 %v16539_v4  ;;  %v3944_v23 = vld [vmem:[#allocation7 + $0x2eb0] sm:$0xff] }
 0x6a7   :  { %13628 = vmatpush2.bf16.msra.mxu0 %v16666_v1  ;;  %v3812_v31 = vld [vmem:[#allocation7 + $0x2a90] sm:$0xff]  ;;  %v16635_v35 = vcombine.high %v3940_v3, %v3944_v23  ;;  %v16634_v19 = vcombine.low %v3940_v3, %v3944_v23 }
 0x6a8   :  { %13629 = vmatprep.subr.bf16.mxu0 %v16659_v2  ;;  %v3816_v58 = vld [vmem:[#allocation7 + $0x2ab0] sm:$0xff] }
 0x6a9   :  { %13587 = vmatpush2.bf16.msra.mxu1 %v16538_v30  ;;  %v3932_v4 = vld [vmem:[#allocation7 + $0x2e50] sm:$0xff]  ;;  %v16507_v32 = vcombine.high %v3812_v31, %v3816_v58  ;;  %v16506_v39 = vcombine.low %v3812_v31, %v3816_v58 }
 0x6aa   :  { %13588 = vmatprep.subr.bf16.mxu1 %v16531_v46  ;;  %v3936_v1 = vld [vmem:[#allocation7 + $0x2e70] sm:$0xff] }
 0x6ab   :  { %13630 = vmatpush2.bf16.msra.mxu0 %v16658_v56  ;;  %v3804_v2 = vld [vmem:[#allocation7 + $0x2a50] sm:$0xff]  ;;  %v16627_v38 = vcombine.high %v3932_v4, %v3936_v1  ;;  %v16626_v29 = vcombine.low %v3932_v4, %v3936_v1 }
 0x6ac   :  { %13631 = vmatprep.subr.bf16.mxu0 %v16651_v33  ;;  %v3808_v30 = vld [vmem:[#allocation7 + $0x2a70] sm:$0xff] }
 0x6ad   :  { %13589 = vmatpush2.bf16.msra.mxu1 %v16530_v25  ;;  %v3924_v46 = vld [vmem:[#allocation7 + $0x2e10] sm:$0xff]  ;;  %v16499_v20 = vcombine.high %v3804_v2, %v3808_v30  ;;  %v16498_v57 = vcombine.low %v3804_v2, %v3808_v30 }
 0x6ae   :  { %13590 = vmatprep.subr.bf16.mxu1 %v16523_v11  ;;  %v3928_v56 = vld [vmem:[#allocation7 + $0x2e30] sm:$0xff]  ;;  %v2509_v11 = vld [vmem:[#allocation7 + $0x1d8] sm:$0xff] }
 0x6af   :  { %13632 = vmatpush2.bf16.msra.mxu0 %v16650_v48  ;;  %v3796_v33 = vld [vmem:[#allocation7 + $0x2a10] sm:$0xff]  ;;  %v16619_v7 = vcombine.high %v3924_v46, %v3928_v56  ;;  %v2513_v48 = vld [vmem:[#allocation7 + $0x1f8] sm:$0xff]  ;;  %v16618_v5 = vcombine.low %v3924_v46, %v3928_v56 }
 0x6b0   :  { %13633 = vmatprep.subr.bf16.mxu0 %v16643_v60  ;;  %v3800_v25 = vld [vmem:[#allocation7 + $0x2a30] sm:$0xff]  ;;  %v15205_v3 = vcombine.high %v2509_v11, %v2513_v48  ;;  %v15204_v58 = vcombine.low %v2509_v11, %v2513_v48 }
 0x6b1   :  { %13591 = vmatpush2.bf16.msra.mxu1 %v16522_v50  ;;  %v16491_v6 = vcombine.high %v3796_v33, %v3800_v25  ;;  %v4044_v60 = vld [vmem:[#allocation7 + $0x31d0] sm:$0xff]  ;;  %v16490_v23 = vcombine.low %v3796_v33, %v3800_v25 }
 0x6b2   :  { %13592 = vmatprep.subr.bf16.mxu1 %v16515_v18  ;;  %v4048_v50 = vld [vmem:[#allocation7 + $0x31f0] sm:$0xff]  ;;  %v2501_v18 = vld [vmem:[#allocation7 + $0x198] sm:$0xff] }
 0x6b3   :  { %13634 = vmatpush2.bf16.msra.mxu0 %v16642_v52  ;;  %v2505_v52 = vld [vmem:[#allocation7 + $0x1b8] sm:$0xff]  ;;  %v16739_v31 = vcombine.high %v4044_v60, %v4048_v50  ;;  %v16738_v1 = vcombine.low %v4044_v60, %v4048_v50  ;;  %v4032_v46 = vld [vmem:[#allocation7 + $0x3170] sm:$0xff] }
 0x6b4   :  { %13635 = vmatprep.subr.bf16.mxu0 %v16635_v35  ;;  %v4036_v35 = vld [vmem:[#allocation7 + $0x3190] sm:$0xff]  ;;  %v15197_v4 = vcombine.high %v2501_v18, %v2505_v52 }
 0x6b5   :  { %13593 = vmatpush2.bf16.msra.mxu1 %v16514_v61  ;;  %v4040_v61 = vld [vmem:[#allocation7 + $0x31b0] sm:$0xff] }
 0x6b6   :  { %13594 = vmatprep.subr.bf16.mxu1 %v16507_v32  ;;  %v2493_v32 = vld [vmem:[#allocation7 + $0x158] sm:$0xff]  ;;  %v16731_v30 = vcombine.high %v4036_v35, %v4040_v61  ;;  %v16730_v25 = vcombine.low %v4036_v35, %v4040_v61  ;;  %v4020_v60 = vld [vmem:[#allocation7 + $0x3110] sm:$0xff] }
 0x6b7   :  { %13636 = vmatpush2.bf16.msra.mxu0 %v16634_v19  ;;  %v2497_v19 = vld [vmem:[#allocation7 + $0x178] sm:$0xff]  ;;  %v4024_v50 = vld [vmem:[#allocation7 + $0x3130] sm:$0xff] }
 0x6b8   :  { %13637 = vmatprep.subr.bf16.mxu0 %v16627_v38  ;;  %v15196_v38 = vcombine.low %v2501_v18, %v2505_v52 }
 0x6b9   :  { %13595 = vmatpush2.bf16.msra.mxu1 %v16506_v39  ;;  %v4028_v39 = vld [vmem:[#allocation7 + $0x3150] sm:$0xff] }
 0x6ba   :  { %13596 = vmatprep.subr.bf16.mxu1 %v16499_v20  ;;  %v16722_v52 = vcombine.low %v4028_v39, %v4032_v46 }
 0x6bb   :  { %13638 = vmatpush2.bf16.msra.mxu0 %v16626_v29  ;;  %v15189_v29 = vcombine.high %v2493_v32, %v2497_v19 }
 0x6bc   :  { %13639 = vmatprep.subr.bf16.mxu0 %v16619_v7  ;;  %v2485_v7 = vld [vmem:[#allocation7 + $0x118] sm:$0xff] }
 0x6bd   :  { %13597 = vmatpush2.bf16.msra.mxu1 %v16498_v57  ;;  %v2489_v57 = vld [vmem:[#allocation7 + $0x138] sm:$0xff] }
 0x6be   :  { %13598 = vmatprep.subr.bf16.mxu1 %v16491_v6  ;;  %v15181_v18 = vcombine.high %v2485_v7, %v2489_v57 }
 0x6bf   :  { %13640 = vmatpush2.bf16.msra.mxu0 %v16618_v5  ;;  %v15188_v5 = vcombine.low %v2493_v32, %v2497_v19  ;;  %v4016_v32 = vld [vmem:[#allocation7 + $0x30f0] sm:$0xff] }
 0x6c0   :  { %13691 = vmatprep.subr.bf16.mxu0 %v15205_v3 }
 0x6c1   :  { %13599 = vmatpush2.bf16.msra.mxu1 %v16490_v23 }
 0x6c2   :  { %v13397_v2 = vpop.f32.mrf.mxu0  ;;  %13642 = vmatmul.mubr.bf16.vlgmr.msra.gmra.mxu0 %v18395_v49  ;;  %13650 = vmatprep.subr.bf16.mxu1 %v16739_v31  ;;  %v2477_v31 = vld [vmem:[#allocation7 + $0xd8] sm:$0xff] }
 0x6c3   :  { %13692 = vmatpush1.bf16.msra.mxu0 %v15204_v58  ;;  %13723 = vmatprep.mubr.bf16.mxu0 %v18194_v12  ;;  %v16723_v12 = vcombine.high %v4028_v39, %v4032_v46  ;;  %v2481_v58 = vld [vmem:[#allocation7 + $0xf8] sm:$0xff]  ;;  %v4004_v46 = vld [vmem:[#allocation7 + $0x3090] sm:$0xff] }
 0x6c4   :  { %v13399_v56 = vpop.f32.mrf.mxu0  ;;  %v13356_v20 = vpop.f32.mrf.mxu1  ;;  %13601 = vmatmul.mubr.bf16.vlgmr.msra.gmra.mxu1 %v18397_v62  ;;  %13693 = vmatprep.subr.bf16.mxu0 %v15197_v4  ;;  %v16715_v4 = vcombine.high %v4020_v60, %v4024_v50  ;;  %v15173_v19 = vcombine.high %v2477_v31, %v2481_v58  ;;  %v15172_v39 = vcombine.low %v2477_v31, %v2481_v58 }
 0x6c5   :  { %v13357_v33 = vadd.f32 %v13356_v20, %v18564_v16  ;;  %13651 = vmatpush1.bf16.msra.mxu1 %v16738_v1  ;;  %13682 = vmatprep.mubr.bf16.mxu1 %v17558_v13  ;;  %v4012_v1 = vld [vmem:[#allocation7 + $0x30d0] sm:$0xff] }
 0x6c6   :  { %v13401_v11 = vpop.f32.mrf.mxu0  ;;  %v13358_v48 = vpop.f32.mrf.mxu1  ;;  %13652 = vmatprep.subr.bf16.mxu1 %v16731_v30  ;;  %v2469_v30 = vld [vmem:[#allocation7 + $0x98] sm:$0xff]  ;;  %v16707_v20 = vcombine.high %v4012_v1, %v4016_v32 }
 0x6c7   :  { %v13359_v6 = vadd.f32 %v13358_v48, %v18566_v55  ;;  %13694 = vmatpush1.bf16.msra.mxu0 %v15196_v38  ;;  %v18574_v3 = vadd.f32 %v13397_v2, %v13357_v33  ;;  %v15180_v55 = vcombine.low %v2485_v7, %v2489_v57  ;;  %v16714_v2 = vcombine.low %v4020_v60, %v4024_v50  ;;  %v2473_v38 = vld [vmem:[#allocation7 + $0xb8] sm:$0xff]  ;;  %v3996_v48 = vld [vmem:[#allocation7 + $0x3050] sm:$0xff] }
 0x6c8   :  { %v13402_v23 = vpop.f32.mrf.mxu0  ;;  %v13360_v16 = vpop.f32.mrf.mxu1  ;;  %13695 = vmatprep.subr.bf16.mxu0 %v15189_v29  ;;  %v15165_v29 = vcombine.high %v2469_v30, %v2473_v38  ;;  %v16706_v33 = vcombine.low %v4012_v1, %v4016_v32  ;;  %v2465_v7 = vld [vmem:[#allocation7 + $0x78] sm:$0xff]  ;;  %v15164_v11 = vcombine.low %v2469_v30, %v2473_v38 }
 0x6c9   :  { %13653 = vmatpush1.bf16.msra.mxu1 %v16730_v25  ;;  %v18576_v35 = vadd.f32 %v13399_v56, %v13359_v6  ;;  %v4008_v56 = vld [vmem:[#allocation7 + $0x30b0] sm:$0xff]  ;;  %v2461_v25 = vld [vmem:[#allocation7 + $0x58] sm:$0xff] }
 0x6ca   :  { %v13361_v61 = vpop.f32.mrf.mxu1  ;;  %13654 = vmatprep.subr.bf16.mxu1 %v16723_v12  ;;  %v16699_v57 = vcombine.high %v4004_v46, %v4008_v56  ;;  %v4000_v12 = vld [vmem:[#allocation7 + $0x3070] sm:$0xff]  ;;  %v15157_v6 = vcombine.high %v2461_v25, %v2465_v7  ;;  %v2453_v60 = vld [vmem:[#allocation7 + $0x18] sm:$0xff]  ;;  %v15156_v16 = vcombine.low %v2461_v25, %v2465_v7 }
 0x6cb   :  { %13696 = vmatpush1.bf16.msra.mxu0 %v15188_v5  ;;  %v16698_v5 = vcombine.low %v4004_v46, %v4008_v56  ;;  %v2457_v50 = vld [vmem:[#allocation7 + $0x38] sm:$0xff]  ;;  %v16691_v23 = vcombine.high %v3996_v48, %v4000_v12  ;;  %v16690_v58 = vcombine.low %v3996_v48, %v4000_v12 }
 0x6cc   :  { %13697 = vmatprep.subr.bf16.mxu0 %v15181_v18  ;;  %v3988_v18 = vld [vmem:[#allocation7 + $0x3010] sm:$0xff]  ;;  %v15149_v31 = vcombine.high %v2453_v60, %v2457_v50  ;;  %v2573_v61 = vld [vmem:[#allocation7 + $0x3d8] sm:$0xff]  ;;  %v15148_v1 = vcombine.low %v2453_v60, %v2457_v50 }
 0x6cd   :  { %13655 = vmatpush1.bf16.msra.mxu1 %v16722_v52  ;;  %v3992_v52 = vld [vmem:[#allocation7 + $0x3030] sm:$0xff]  ;;  %v2637_v32 = vld [vmem:[#allocation7 + $0x5d8] sm:$0xff] }
 0x6ce   :  { %13656 = vmatprep.subr.bf16.mxu1 %v16715_v4  ;;  %v2577_v4 = vld [vmem:[#allocation7 + $0x3f8] sm:$0xff]  ;;  %v16682_v30 = vcombine.low %v3988_v18, %v3992_v52 }
 0x6cf   :  { %13698 = vmatpush1.bf16.msra.mxu0 %v15180_v55  ;;  %v16683_v55 = vcombine.high %v3988_v18, %v3992_v52  ;;  %v2565_v38 = vld [vmem:[#allocation7 + $0x398] sm:$0xff]  ;;  %v15268_v46 = vcombine.low %v2573_v61, %v2577_v4 }
 0x6d0   :  { %13699 = vmatprep.subr.bf16.mxu0 %v15173_v19  ;;  %v2641_v19 = vld [vmem:[#allocation7 + $0x5f8] sm:$0xff] }
 0x6d1   :  { %13657 = vmatpush1.bf16.msra.mxu1 %v16714_v2  ;;  %v15269_v2 = vcombine.high %v2573_v61, %v2577_v4  ;;  %v2629_v56 = vld [vmem:[#allocation7 + $0x598] sm:$0xff]  ;;  %v15332_v25 = vcombine.low %v2637_v32, %v2641_v19 }
 0x6d2   :  { %13658 = vmatprep.subr.bf16.mxu1 %v16707_v20  ;;  %v2569_v20 = vld [vmem:[#allocation7 + $0x3b8] sm:$0xff] }
 0x6d3   :  { %13700 = vmatpush1.bf16.msra.mxu0 %v15172_v39  ;;  %v15333_v39 = vcombine.high %v2637_v32, %v2641_v19  ;;  %v2557_v7 = vld [vmem:[#allocation7 + $0x358] sm:$0xff]  ;;  %v15260_v48 = vcombine.low %v2565_v38, %v2569_v20 }
 0x6d4   :  { %13701 = vmatprep.subr.bf16.mxu0 %v15165_v29  ;;  %v2633_v29 = vld [vmem:[#allocation7 + $0x5b8] sm:$0xff] }
 0x6d5   :  { %13659 = vmatpush1.bf16.msra.mxu1 %v16706_v33  ;;  %v15261_v33 = vcombine.high %v2565_v38, %v2569_v20  ;;  %v2621_v12 = vld [vmem:[#allocation7 + $0x558] sm:$0xff]  ;;  %v15324_v60 = vcombine.low %v2629_v56, %v2633_v29 }
 0x6d6   :  { %13660 = vmatprep.subr.bf16.mxu1 %v16699_v57  ;;  %v2561_v57 = vld [vmem:[#allocation7 + $0x378] sm:$0xff] }
 0x6d7   :  { %13702 = vmatpush1.bf16.msra.mxu0 %v15164_v11  ;;  %v15325_v11 = vcombine.high %v2629_v56, %v2633_v29  ;;  %v2549_v50 = vld [vmem:[#allocation7 + $0x318] sm:$0xff]  ;;  %v15252_v18 = vcombine.low %v2557_v7, %v2561_v57 }
 0x6d8   :  { %13703 = vmatprep.subr.bf16.mxu0 %v15157_v6  ;;  %v2625_v6 = vld [vmem:[#allocation7 + $0x578] sm:$0xff] }
 0x6d9   :  { %13661 = vmatpush1.bf16.msra.mxu1 %v16698_v5  ;;  %v15253_v5 = vcombine.high %v2557_v7, %v2561_v57  ;;  %v2613_v52 = vld [vmem:[#allocation7 + $0x518] sm:$0xff]  ;;  %v15316_v61 = vcombine.low %v2621_v12, %v2625_v6 }
 0x6da   :  { %13662 = vmatprep.subr.bf16.mxu1 %v16691_v23  ;;  %v2553_v23 = vld [vmem:[#allocation7 + $0x338] sm:$0xff] }
 0x6db   :  { %13704 = vmatpush1.bf16.msra.mxu0 %v15156_v16  ;;  %v15317_v16 = vcombine.high %v2621_v12, %v2625_v6  ;;  %v2541_v4 = vld [vmem:[#allocation7 + $0x2d8] sm:$0xff]  ;;  %v15244_v32 = vcombine.low %v2549_v50, %v2553_v23 }
 0x6dc   :  { %13705 = vmatprep.subr.bf16.mxu0 %v15149_v31  ;;  %v2617_v31 = vld [vmem:[#allocation7 + $0x538] sm:$0xff] }
 0x6dd   :  { %13663 = vmatpush1.bf16.msra.mxu1 %v16690_v58  ;;  %v15245_v58 = vcombine.high %v2549_v50, %v2553_v23  ;;  %v2609_v19 = vld [vmem:[#allocation7 + $0x4f8] sm:$0xff] }
 0x6de   :  { %13664 = vmatprep.subr.bf16.mxu1 %v16683_v55  ;;  %v2545_v55 = vld [vmem:[#allocation7 + $0x2f8] sm:$0xff] }
 0x6df   :  { %13706 = vmatpush1.bf16.msra.mxu0 %v15148_v1  ;;  %v15309_v1 = vcombine.high %v2613_v52, %v2617_v31  ;;  %v2533_v38 = vld [vmem:[#allocation7 + $0x298] sm:$0xff] }
 0x6e0   :  { %13707 = vmatprep.subr.bf16.mxu0 %v15269_v2  ;;  %v15237_v2 = vcombine.high %v2541_v4, %v2545_v55  ;;  %v2537_v20 = vld [vmem:[#allocation7 + $0x2b8] sm:$0xff] }
 0x6e1   :  { %13665 = vmatpush1.bf16.msra.mxu1 %v16682_v30  ;;  %v15308_v30 = vcombine.low %v2613_v52, %v2617_v31  ;;  %v2597_v56 = vld [vmem:[#allocation7 + $0x498] sm:$0xff] }
 0x6e2   :  { %13732 = vmatprep.subr.bf16.mxu1 %v15333_v39  ;;  %v2601_v29 = vld [vmem:[#allocation7 + $0x4b8] sm:$0xff] }
 0x6e3   :  { %13708 = vmatpush2.bf16.msra.mxu0 %v15268_v46  ;;  %v15236_v46 = vcombine.low %v2541_v4, %v2545_v55  ;;  %v2525_v7 = vld [vmem:[#allocation7 + $0x258] sm:$0xff] }
 0x6e4   :  { %13683 = vmatmul.mubr.bf16.vlgmr.msra.gmra.mxu1 %v18410_v15  ;;  %13709 = vmatprep.subr.bf16.mxu0 %v15261_v33  ;;  %v15229_v33 = vcombine.high %v2533_v38, %v2537_v20  ;;  %v2529_v57 = vld [vmem:[#allocation7 + $0x278] sm:$0xff] }
 0x6e5   :  { %13733 = vmatpush1.bf16.msra.mxu1 %v15332_v25  ;;  %13764 = vmatprep.mubr.bf16.mxu1 %v18225_v14  ;;  %v2605_v14 = vld [vmem:[#allocation7 + $0x4d8] sm:$0xff] }
 0x6e6   :  { %13734 = vmatprep.subr.bf16.mxu1 %v15325_v11  ;;  %v15301_v39 = vcombine.high %v2605_v14, %v2609_v19  ;;  %v15300_v25 = vcombine.low %v2605_v14, %v2609_v19  ;;  %v15293_v11 = vcombine.high %v2597_v56, %v2601_v29  ;;  %v2589_v12 = vld [vmem:[#allocation7 + $0x458] sm:$0xff] }
 0x6e7   :  { %13710 = vmatpush2.bf16.msra.mxu0 %v15260_v48  ;;  %v15228_v48 = vcombine.low %v2533_v38, %v2537_v20  ;;  %v2593_v6 = vld [vmem:[#allocation7 + $0x478] sm:$0xff] }
 0x6e8   :  { %13711 = vmatprep.subr.bf16.mxu0 %v15253_v5  ;;  %v15221_v5 = vcombine.high %v2525_v7, %v2529_v57  ;;  %v2517_v50 = vld [vmem:[#allocation7 + $0x218] sm:$0xff] }
 0x6e9   :  { %13735 = vmatpush1.bf16.msra.mxu1 %v15324_v60  ;;  %v15292_v60 = vcombine.low %v2597_v56, %v2601_v29  ;;  %v2521_v23 = vld [vmem:[#allocation7 + $0x238] sm:$0xff] }
 0x6ea   :  { %13736 = vmatprep.subr.bf16.mxu1 %v15317_v16  ;;  %v15285_v16 = vcombine.high %v2589_v12, %v2593_v6  ;;  %v2581_v52 = vld [vmem:[#allocation7 + $0x418] sm:$0xff] }
 0x6eb   :  { %13712 = vmatpush2.bf16.msra.mxu0 %v15252_v18  ;;  %v15220_v18 = vcombine.low %v2525_v7, %v2529_v57  ;;  %v2585_v31 = vld [vmem:[#allocation7 + $0x438] sm:$0xff] }
 0x6ec   :  { %13713 = vmatprep.subr.bf16.mxu0 %v15245_v58  ;;  %v15213_v58 = vcombine.high %v2517_v50, %v2521_v23  ;;  %v2765_v4 = vld [vmem:[#allocation7 + $0x9d8] sm:$0xff] }
 0x6ed   :  { %13737 = vmatpush1.bf16.msra.mxu1 %v15316_v61  ;;  %v15284_v61 = vcombine.low %v2589_v12, %v2593_v6  ;;  %v2769_v55 = vld [vmem:[#allocation7 + $0x9f8] sm:$0xff] }
 0x6ee   :  { %13738 = vmatprep.subr.bf16.mxu1 %v15309_v1  ;;  %v15277_v1 = vcombine.high %v2581_v52, %v2585_v31  ;;  %v2701_v14 = vld [vmem:[#allocation7 + $0x7d8] sm:$0xff] }
 0x6ef   :  { %13714 = vmatpush2.bf16.msra.mxu0 %v15244_v32  ;;  %v15212_v32 = vcombine.low %v2517_v50, %v2521_v23  ;;  %v2705_v19 = vld [vmem:[#allocation7 + $0x7f8] sm:$0xff] }
 0x6f0   :  { %13715 = vmatprep.subr.bf16.mxu0 %v15237_v2  ;;  %v15461_v2 = vcombine.high %v2765_v4, %v2769_v55  ;;  %v2757_v38 = vld [vmem:[#allocation7 + $0x998] sm:$0xff] }
 0x6f1   :  { %13739 = vmatpush1.bf16.msra.mxu1 %v15308_v30  ;;  %v15276_v30 = vcombine.low %v2581_v52, %v2585_v31  ;;  %v2761_v20 = vld [vmem:[#allocation7 + $0x9b8] sm:$0xff] }
 0x6f2   :  { %13740 = vmatprep.subr.bf16.mxu1 %v15301_v39  ;;  %v15397_v39 = vcombine.high %v2701_v14, %v2705_v19  ;;  %v2693_v56 = vld [vmem:[#allocation7 + $0x798] sm:$0xff]  ;;  %v15452_v12 = vcombine.low %v2757_v38, %v2761_v20 }
 0x6f3   :  { %13716 = vmatpush2.bf16.msra.mxu0 %v15236_v46  ;;  %v15460_v46 = vcombine.low %v2765_v4, %v2769_v55  ;;  %v2697_v29 = vld [vmem:[#allocation7 + $0x7b8] sm:$0xff] }
 0x6f4   :  { %13717 = vmatprep.subr.bf16.mxu0 %v15229_v33  ;;  %v15453_v33 = vcombine.high %v2757_v38, %v2761_v20  ;;  %v2749_v7 = vld [vmem:[#allocation7 + $0x958] sm:$0xff] }
 0x6f5   :  { %13741 = vmatpush1.bf16.msra.mxu1 %v15300_v25  ;;  %v15396_v25 = vcombine.low %v2701_v14, %v2705_v19  ;;  %v2753_v57 = vld [vmem:[#allocation7 + $0x978] sm:$0xff] }
 0x6f6   :  { %13742 = vmatprep.subr.bf16.mxu1 %v15293_v11  ;;  %v2685_v6 = vld [vmem:[#allocation7 + $0x758] sm:$0xff]  ;;  %v15445_v23 = vcombine.high %v2749_v7, %v2753_v57 }
 0x6f7   :  { %13718 = vmatpush2.bf16.msra.mxu0 %v15228_v48  ;;  %v15389_v48 = vcombine.high %v2693_v56, %v2697_v29  ;;  %v2741_v52 = vld [vmem:[#allocation7 + $0x918] sm:$0xff] }
 0x6f8   :  { %13719 = vmatprep.subr.bf16.mxu0 %v15221_v5  ;;  %v2689_v5 = vld [vmem:[#allocation7 + $0x778] sm:$0xff] }
 0x6f9   :  { %13743 = vmatpush1.bf16.msra.mxu1 %v15292_v60  ;;  %v2745_v31 = vld [vmem:[#allocation7 + $0x938] sm:$0xff] }
 0x6fa   :  { %13744 = vmatprep.subr.bf16.mxu1 %v15285_v16  ;;  %v2677_v55 = vld [vmem:[#allocation7 + $0x718] sm:$0xff] }
 0x6fb   :  { %13720 = vmatpush2.bf16.msra.mxu0 %v15220_v18  ;;  %v15388_v18 = vcombine.low %v2693_v56, %v2697_v29  ;;  %v2737_v38 = vld [vmem:[#allocation7 + $0x8f8] sm:$0xff] }
 0x6fc   :  { %13721 = vmatprep.subr.bf16.mxu0 %v15213_v58  ;;  %v2669_v56 = vld [vmem:[#allocation7 + $0x6d8] sm:$0xff] }
 0x6fd   :  { %13745 = vmatpush1.bf16.msra.mxu1 %v15284_v61  ;;  %v15381_v61 = vcombine.high %v2685_v6, %v2689_v5  ;;  %v2673_v29 = vld [vmem:[#allocation7 + $0x6f8] sm:$0xff] }
 0x6fe   :  { %13746 = vmatprep.subr.bf16.mxu1 %v15277_v1  ;;  %v2681_v1 = vld [vmem:[#allocation7 + $0x738] sm:$0xff] }
 0x6ff   :  { %13722 = vmatpush2.bf16.msra.mxu0 %v15212_v32 }
 0x700   :  { %13773 = vmatprep.subr.bf16.mxu0 %v15461_v2  ;;  %v15380_v2 = vcombine.low %v2685_v6, %v2689_v5  ;;  %v2665_v6 = vld [vmem:[#allocation7 + $0x6b8] sm:$0xff] }
 0x701   :  { %13747 = vmatpush1.bf16.msra.mxu1 %v15276_v30  ;;  %v2733_v30 = vld [vmem:[#allocation7 + $0x8d8] sm:$0xff] }
 0x702   :  { %v13479_v11 = vpop.f32.mrf.mxu0  ;;  %13724 = vmatmul.mubr.bf16.vlgmr.msra.gmra.mxu0 %v18232_v21  ;;  %13748 = vmatprep.subr.bf16.mxu1 %v15397_v39 }
 0x703   :  { %13774 = vmatpush1.bf16.msra.mxu0 %v15460_v46  ;;  %13805 = vmatprep.mubr.bf16.mxu0 %v18235_v24  ;;  %v15444_v24 = vcombine.low %v2749_v7, %v2753_v57  ;;  %v15373_v46 = vcombine.high %v2677_v55, %v2681_v1  ;;  %v2725_v7 = vld [vmem:[#allocation7 + $0x898] sm:$0xff] }
 0x704   :  { %v13481_v60 = vpop.f32.mrf.mxu0  ;;  %v13438_v50 = vpop.f32.mrf.mxu1  ;;  %13775 = vmatprep.subr.bf16.mxu0 %v15453_v33  ;;  %v15429_v33 = vcombine.high %v2733_v30, %v2737_v38  ;;  %v2729_v57 = vld [vmem:[#allocation7 + $0x8b8] sm:$0xff] }
 0x705   :  { %v13439_v16 = vadd.f32 %v13438_v50, %v18574_v3  ;;  %13749 = vmatpush2.bf16.msra.mxu1 %v15396_v25  ;;  %v15437_v3 = vcombine.high %v2741_v52, %v2745_v31  ;;  %v15372_v25 = vcombine.low %v2677_v55, %v2681_v1  ;;  %v15421_v5 = vcombine.high %v2725_v7, %v2729_v57  ;;  %v2717_v50 = vld [vmem:[#allocation7 + $0x858] sm:$0xff] }
 0x706   :  { %v13483_v58 = vpop.f32.mrf.mxu0  ;;  %v13440_v21 = vpop.f32.mrf.mxu1  ;;  %13750 = vmatprep.subr.bf16.mxu1 %v15389_v48  ;;  %v15428_v48 = vcombine.low %v2733_v30, %v2737_v38  ;;  %v2645_v1 = vld [vmem:[#allocation7 + $0x618] sm:$0xff] }
 0x707   :  { %v13441_v4 = vadd.f32 %v13440_v21, %v18576_v35  ;;  %13776 = vmatpush1.bf16.msra.mxu0 %v15452_v12  ;;  %v18584_v32 = vadd.f32 %v13479_v11, %v13439_v16  ;;  %v15436_v35 = vcombine.low %v2741_v52, %v2745_v31  ;;  %v15365_v11 = vcombine.high %v2669_v56, %v2673_v29  ;;  %v2661_v12 = vld [vmem:[#allocation7 + $0x698] sm:$0xff] }
 0x708   :  { %v13484_v14 = vpop.f32.mrf.mxu0  ;;  %v13442_v19 = vpop.f32.mrf.mxu1  ;;  %13777 = vmatprep.subr.bf16.mxu0 %v15445_v23  ;;  %v2721_v23 = vld [vmem:[#allocation7 + $0x878] sm:$0xff]  ;;  %v15357_v16 = vcombine.high %v2661_v12, %v2665_v6  ;;  %v15356_v21 = vcombine.low %v2661_v12, %v2665_v6 }
 0x709   :  { %13751 = vmatpush2.bf16.msra.mxu1 %v15388_v18  ;;  %v18586_v20 = vadd.f32 %v13481_v60, %v13441_v4  ;;  %v15364_v60 = vcombine.low %v2669_v56, %v2673_v29  ;;  %v15420_v18 = vcombine.low %v2725_v7, %v2729_v57  ;;  %v2653_v52 = vld [vmem:[#allocation7 + $0x658] sm:$0xff]  ;;  %v15413_v58 = vcombine.high %v2717_v50, %v2721_v23 }
 0x70a   :  { %v13443_v39 = vpop.f32.mrf.mxu1  ;;  %13752 = vmatprep.subr.bf16.mxu1 %v15381_v61  ;;  %v2657_v31 = vld [vmem:[#allocation7 + $0x678] sm:$0xff]  ;;  %v15412_v55 = vcombine.low %v2717_v50, %v2721_v23 }
 0x70b   :  { %13778 = vmatpush1.bf16.msra.mxu0 %v15444_v24  ;;  %v2709_v61 = vld [vmem:[#allocation7 + $0x818] sm:$0xff]  ;;  %v15349_v24 = vcombine.high %v2653_v52, %v2657_v31 }
 0x70c   :  { %13779 = vmatprep.subr.bf16.mxu0 %v15437_v3  ;;  %v2713_v4 = vld [vmem:[#allocation7 + $0x838] sm:$0xff]  ;;  %v15348_v3 = vcombine.low %v2653_v52, %v2657_v31 }
 0x70d   :  { %13753 = vmatpush2.bf16.msra.mxu1 %v15380_v2  ;;  %v2649_v14 = vld [vmem:[#allocation7 + $0x638] sm:$0xff]  ;;  %v15405_v19 = vcombine.high %v2709_v61, %v2713_v4  ;;  %v15404_v39 = vcombine.low %v2709_v61, %v2713_v4 }
 0x70e   :  { %13754 = vmatprep.subr.bf16.mxu1 %v15373_v46  ;;  %v2829_v2 = vld [vmem:[#allocation7 + $0xbd8] sm:$0xff]  ;;  %v15341_v38 = vcombine.high %v2645_v1, %v2649_v14  ;;  %v15340_v29 = vcombine.low %v2645_v1, %v2649_v14 }
 0x70f   :  { %13780 = vmatpush1.bf16.msra.mxu0 %v15436_v35  ;;  %v2833_v30 = vld [vmem:[#allocation7 + $0xbf8] sm:$0xff] }
 0x710   :  { %13781 = vmatprep.subr.bf16.mxu0 %v15429_v33  ;;  %v2893_v46 = vld [vmem:[#allocation7 + $0xdd8] sm:$0xff]  ;;  %v15525_v56 = vcombine.high %v2829_v2, %v2833_v30  ;;  %v15524_v57 = vcombine.low %v2829_v2, %v2833_v30 }
 0x711   :  { %13755 = vmatpush2.bf16.msra.mxu1 %v15372_v25  ;;  %v2897_v35 = vld [vmem:[#allocation7 + $0xdf8] sm:$0xff] }
 0x712   :  { %13756 = vmatprep.subr.bf16.mxu1 %v15365_v11  ;;  %v2821_v33 = vld [vmem:[#allocation7 + $0xb98] sm:$0xff]  ;;  %v15589_v7 = vcombine.high %v2893_v46, %v2897_v35  ;;  %v15588_v6 = vcombine.low %v2893_v46, %v2897_v35 }
 0x713   :  { %13782 = vmatpush1.bf16.msra.mxu0 %v15428_v48  ;;  %v2825_v25 = vld [vmem:[#allocation7 + $0xbb8] sm:$0xff] }
 0x714   :  { %13783 = vmatprep.subr.bf16.mxu0 %v15421_v5  ;;  %v2885_v11 = vld [vmem:[#allocation7 + $0xd98] sm:$0xff]  ;;  %v15517_v12 = vcombine.high %v2821_v33, %v2825_v25  ;;  %v15516_v23 = vcombine.low %v2821_v33, %v2825_v25 }
 0x715   :  { %13757 = vmatpush2.bf16.msra.mxu1 %v15364_v60  ;;  %v2889_v48 = vld [vmem:[#allocation7 + $0xdb8] sm:$0xff] }
 0x716   :  { %13758 = vmatprep.subr.bf16.mxu1 %v15357_v16  ;;  %v2813_v5 = vld [vmem:[#allocation7 + $0xb58] sm:$0xff]  ;;  %v15581_v50 = vcombine.high %v2885_v11, %v2889_v48  ;;  %v15580_v31 = vcombine.low %v2885_v11, %v2889_v48 }
 0x717   :  { %13784 = vmatpush1.bf16.msra.mxu0 %v15420_v18  ;;  %v2817_v60 = vld [vmem:[#allocation7 + $0xb78] sm:$0xff] }
 0x718   :  { %13785 = vmatprep.subr.bf16.mxu0 %v15413_v58  ;;  %v2877_v16 = vld [vmem:[#allocation7 + $0xd58] sm:$0xff]  ;;  %v15509_v52 = vcombine.high %v2813_v5, %v2817_v60  ;;  %v15508_v4 = vcombine.low %v2813_v5, %v2817_v60 }
 0x719   :  { %13759 = vmatpush2.bf16.msra.mxu1 %v15356_v21  ;;  %v2881_v18 = vld [vmem:[#allocation7 + $0xd78] sm:$0xff] }
 0x71a   :  { %13760 = vmatprep.subr.bf16.mxu1 %v15349_v24  ;;  %v2805_v58 = vld [vmem:[#allocation7 + $0xb18] sm:$0xff]  ;;  %v15573_v61 = vcombine.high %v2877_v16, %v2881_v18  ;;  %v15572_v14 = vcombine.low %v2877_v16, %v2881_v18 }
 0x71b   :  { %13786 = vmatpush1.bf16.msra.mxu0 %v15412_v55  ;;  %v2809_v21 = vld [vmem:[#allocation7 + $0xb38] sm:$0xff] }
 0x71c   :  { %13787 = vmatprep.subr.bf16.mxu0 %v15405_v19  ;;  %v2869_v24 = vld [vmem:[#allocation7 + $0xd18] sm:$0xff]  ;;  %v15501_v1 = vcombine.high %v2805_v58, %v2809_v21  ;;  %v15500_v2 = vcombine.low %v2805_v58, %v2809_v21 }
 0x71d   :  { %13761 = vmatpush2.bf16.msra.mxu1 %v15348_v3  ;;  %v2873_v55 = vld [vmem:[#allocation7 + $0xd38] sm:$0xff] }
 0x71e   :  { %13762 = vmatprep.subr.bf16.mxu1 %v15341_v38  ;;  %v2797_v19 = vld [vmem:[#allocation7 + $0xad8] sm:$0xff]  ;;  %v15565_v3 = vcombine.high %v2869_v24, %v2873_v55 }
 0x71f   :  { %13788 = vmatpush1.bf16.msra.mxu0 %v15404_v39  ;;  %v2865_v30 = vld [vmem:[#allocation7 + $0xcf8] sm:$0xff]  ;;  %v15564_v39 = vcombine.low %v2869_v24, %v2873_v55 }
 0x720   :  { %13789 = vmatprep.subr.bf16.mxu0 %v15525_v56  ;;  %v2789_v46 = vld [vmem:[#allocation7 + $0xa98] sm:$0xff] }
 0x721   :  { %13763 = vmatpush2.bf16.msra.mxu1 %v15340_v29  ;;  %v2793_v35 = vld [vmem:[#allocation7 + $0xab8] sm:$0xff] }
 0x722   :  { %13814 = vmatprep.subr.bf16.mxu1 %v15589_v7  ;;  %v2853_v33 = vld [vmem:[#allocation7 + $0xc98] sm:$0xff]  ;;  %v15485_v7 = vcombine.high %v2789_v46, %v2793_v35 }
 0x723   :  { %13790 = vmatpush2.bf16.msra.mxu0 %v15524_v57  ;;  %v2857_v25 = vld [vmem:[#allocation7 + $0xcb8] sm:$0xff] }
 0x724   :  { %13765 = vmatmul.mubr.bf16.vlgmr.msra.gmra.mxu1 %v18229_v17  ;;  %13791 = vmatprep.subr.bf16.mxu0 %v15517_v12  ;;  %v2801_v17 = vld [vmem:[#allocation7 + $0xaf8] sm:$0xff]  ;;  %v15549_v12 = vcombine.high %v2853_v33, %v2857_v25 }
 0x725   :  { %13815 = vmatpush1.bf16.msra.mxu1 %v15588_v6  ;;  %13846 = vmatprep.mubr.bf16.mxu1 %v18250_v45  ;;  %v2861_v45 = vld [vmem:[#allocation7 + $0xcd8] sm:$0xff]  ;;  %v15493_v38 = vcombine.high %v2797_v19, %v2801_v17  ;;  %v15492_v29 = vcombine.low %v2797_v19, %v2801_v17  ;;  %v15484_v6 = vcombine.low %v2789_v46, %v2793_v35 }
 0x726   :  { %13816 = vmatprep.subr.bf16.mxu1 %v15581_v50  ;;  %v15557_v56 = vcombine.high %v2861_v45, %v2865_v30  ;;  %v15556_v57 = vcombine.low %v2861_v45, %v2865_v30  ;;  %v2781_v11 = vld [vmem:[#allocation7 + $0xa58] sm:$0xff] }
 0x727   :  { %13792 = vmatpush2.bf16.msra.mxu0 %v15516_v23  ;;  %v2785_v48 = vld [vmem:[#allocation7 + $0xa78] sm:$0xff]  ;;  %v15548_v23 = vcombine.low %v2853_v33, %v2857_v25 }
 0x728   :  { %13793 = vmatprep.subr.bf16.mxu0 %v15509_v52  ;;  %v2845_v5 = vld [vmem:[#allocation7 + $0xc58] sm:$0xff]  ;;  %v15477_v50 = vcombine.high %v2781_v11, %v2785_v48 }
 0x729   :  { %13817 = vmatpush1.bf16.msra.mxu1 %v15580_v31  ;;  %v2849_v60 = vld [vmem:[#allocation7 + $0xc78] sm:$0xff]  ;;  %v15476_v31 = vcombine.low %v2781_v11, %v2785_v48 }
 0x72a   :  { %13818 = vmatprep.subr.bf16.mxu1 %v15573_v61  ;;  %v2773_v16 = vld [vmem:[#allocation7 + $0xa18] sm:$0xff]  ;;  %v15541_v52 = vcombine.high %v2845_v5, %v2849_v60 }
 0x72b   :  { %13794 = vmatpush2.bf16.msra.mxu0 %v15508_v4  ;;  %v2777_v18 = vld [vmem:[#allocation7 + $0xa38] sm:$0xff]  ;;  %v15540_v4 = vcombine.low %v2845_v5, %v2849_v60 }
 0x72c   :  { %13795 = vmatprep.subr.bf16.mxu0 %v15501_v1  ;;  %v2837_v58 = vld [vmem:[#allocation7 + $0xc18] sm:$0xff]  ;;  %v15469_v61 = vcombine.high %v2773_v16, %v2777_v18 }
 0x72d   :  { %13819 = vmatpush1.bf16.msra.mxu1 %v15572_v14  ;;  %v2841_v21 = vld [vmem:[#allocation7 + $0xc38] sm:$0xff]  ;;  %v15468_v14 = vcombine.low %v2773_v16, %v2777_v18 }
 0x72e   :  { %13820 = vmatprep.subr.bf16.mxu1 %v15565_v3  ;;  %v3021_v24 = vld [vmem:[#allocation7 + $0x11d8] sm:$0xff]  ;;  %v15533_v1 = vcombine.high %v2837_v58, %v2841_v21 }
 0x72f   :  { %13796 = vmatpush2.bf16.msra.mxu0 %v15500_v2  ;;  %v3025_v55 = vld [vmem:[#allocation7 + $0x11f8] sm:$0xff]  ;;  %v15532_v2 = vcombine.low %v2837_v58, %v2841_v21 }
 0x730   :  { %13797 = vmatprep.subr.bf16.mxu0 %v15493_v38  ;;  %v2957_v19 = vld [vmem:[#allocation7 + $0xfd8] sm:$0xff]  ;;  %v15717_v3 = vcombine.high %v3021_v24, %v3025_v55 }
 0x731   :  { %13821 = vmatpush1.bf16.msra.mxu1 %v15564_v39  ;;  %v2961_v17 = vld [vmem:[#allocation7 + $0xff8] sm:$0xff]  ;;  %v15716_v39 = vcombine.low %v3021_v24, %v3025_v55 }
 0x732   :  { %13822 = vmatprep.subr.bf16.mxu1 %v15557_v56  ;;  %v3013_v45 = vld [vmem:[#allocation7 + $0x1198] sm:$0xff]  ;;  %v15653_v38 = vcombine.high %v2957_v19, %v2961_v17 }
 0x733   :  { %13798 = vmatpush2.bf16.msra.mxu0 %v15492_v29  ;;  %v3017_v30 = vld [vmem:[#allocation7 + $0x11b8] sm:$0xff]  ;;  %v15652_v29 = vcombine.low %v2957_v19, %v2961_v17 }
 0x734   :  { %13799 = vmatprep.subr.bf16.mxu0 %v15485_v7  ;;  %v2949_v46 = vld [vmem:[#allocation7 + $0xf98] sm:$0xff]  ;;  %v15709_v56 = vcombine.high %v3013_v45, %v3017_v30  ;;  %v15708_v11 = vcombine.low %v3013_v45, %v3017_v30 }
 0x735   :  { %13823 = vmatpush1.bf16.msra.mxu1 %v15556_v57  ;;  %v2953_v35 = vld [vmem:[#allocation7 + $0xfb8] sm:$0xff] }
 0x736   :  { %13824 = vmatprep.subr.bf16.mxu1 %v15549_v12  ;;  %v3005_v33 = vld [vmem:[#allocation7 + $0x1158] sm:$0xff]  ;;  %v15645_v57 = vcombine.high %v2949_v46, %v2953_v35 }
 0x737   :  { %13800 = vmatpush2.bf16.msra.mxu0 %v15484_v6  ;;  %v3009_v25 = vld [vmem:[#allocation7 + $0x1178] sm:$0xff] }
 0x738   :  { %13801 = vmatprep.subr.bf16.mxu0 %v15477_v50  ;;  %v2941_v48 = vld [vmem:[#allocation7 + $0xf58] sm:$0xff]  ;;  %v15701_v60 = vcombine.high %v3005_v33, %v3009_v25 }
 0x739   :  { %13825 = vmatpush1.bf16.msra.mxu1 %v15548_v23  ;;  %v2945_v12 = vld [vmem:[#allocation7 + $0xf78] sm:$0xff]  ;;  %v15644_v23 = vcombine.low %v2949_v46, %v2953_v35 }
 0x73a   :  { %13826 = vmatprep.subr.bf16.mxu1 %v15541_v52  ;;  %v2997_v16 = vld [vmem:[#allocation7 + $0x1118] sm:$0xff] }
 0x73b   :  { %13802 = vmatpush2.bf16.msra.mxu0 %v15476_v31  ;;  %v3001_v18 = vld [vmem:[#allocation7 + $0x1138] sm:$0xff]  ;;  %v15637_v31 = vcombine.high %v2941_v48, %v2945_v12 }
 0x73c   :  { %13803 = vmatprep.subr.bf16.mxu0 %v15469_v61  ;;  %v2933_v21 = vld [vmem:[#allocation7 + $0xf18] sm:$0xff] }
 0x73d   :  { %13827 = vmatpush1.bf16.msra.mxu1 %v15540_v4  ;;  %v2937_v61 = vld [vmem:[#allocation7 + $0xf38] sm:$0xff] }
 0x73e   :  { %13828 = vmatprep.subr.bf16.mxu1 %v15533_v1  ;;  %v15636_v1 = vcombine.low %v2941_v48, %v2945_v12  ;;  %v2993_v19 = vld [vmem:[#allocation7 + $0x10f8] sm:$0xff] }
 0x73f   :  { %13804 = vmatpush2.bf16.msra.mxu0 %v15468_v14  ;;  %v2989_v14 = vld [vmem:[#allocation7 + $0x10d8] sm:$0xff] }
 0x740   :  { %13855 = vmatprep.subr.bf16.mxu0 %v15717_v3  ;;  %v2925_v45 = vld [vmem:[#allocation7 + $0xed8] sm:$0xff] }
 0x741   :  { %13829 = vmatpush1.bf16.msra.mxu1 %v15532_v2  ;;  %v15629_v2 = vcombine.high %v2933_v21, %v2937_v61  ;;  %v2929_v30 = vld [vmem:[#allocation7 + $0xef8] sm:$0xff] }
 0x742   :  { %v13561_v7 = vpop.f32.mrf.mxu0  ;;  %13806 = vmatmul.mubr.bf16.vlgmr.msra.gmra.mxu0 %v18277_v8  ;;  %13830 = vmatprep.subr.bf16.mxu1 %v15653_v38  ;;  %v15685_v38 = vcombine.high %v2989_v14, %v2993_v19  ;;  %v2981_v46 = vld [vmem:[#allocation7 + $0x1098] sm:$0xff] }
 0x743   :  { %13856 = vmatpush1.bf16.msra.mxu0 %v15716_v39  ;;  %13887 = vmatprep.mubr.bf16.mxu0 %v18280_v9  ;;  %v15700_v9 = vcombine.low %v3005_v33, %v3009_v25  ;;  %v15628_v39 = vcombine.low %v2933_v21, %v2937_v61  ;;  %v2985_v35 = vld [vmem:[#allocation7 + $0x10b8] sm:$0xff] }
 0x744   :  { %v13563_v6 = vpop.f32.mrf.mxu0  ;;  %v13520_v5 = vpop.f32.mrf.mxu1  ;;  %13857 = vmatprep.subr.bf16.mxu0 %v15709_v56  ;;  %v15621_v56 = vcombine.high %v2925_v45, %v2929_v30  ;;  %v2917_v33 = vld [vmem:[#allocation7 + $0xe98] sm:$0xff] }
 0x745   :  { %v13521_v50 = vadd.f32 %v13520_v5, %v18584_v32  ;;  %13831 = vmatpush2.bf16.msra.mxu1 %v15652_v29  ;;  %v15693_v32 = vcombine.high %v2997_v16, %v3001_v18  ;;  %v15684_v29 = vcombine.low %v2989_v14, %v2993_v19  ;;  %v2921_v25 = vld [vmem:[#allocation7 + $0xeb8] sm:$0xff] }
 0x746   :  { %v13565_v52 = vpop.f32.mrf.mxu0  ;;  %v13522_v8 = vpop.f32.mrf.mxu1  ;;  %13832 = vmatprep.subr.bf16.mxu1 %v15645_v57  ;;  %v15620_v57 = vcombine.low %v2925_v45, %v2929_v30  ;;  %v2977_v48 = vld [vmem:[#allocation7 + $0x1078] sm:$0xff]  ;;  %v15613_v12 = vcombine.high %v2917_v33, %v2921_v25 }
 0x747   :  { %v13523_v58 = vadd.f32 %v13522_v8, %v18586_v20  ;;  %13858 = vmatpush1.bf16.msra.mxu0 %v15708_v11  ;;  %v18594_v4 = vadd.f32 %v13561_v7, %v13521_v50  ;;  %v15692_v20 = vcombine.low %v2997_v16, %v3001_v18  ;;  %v15677_v7 = vcombine.high %v2981_v46, %v2985_v35  ;;  %v2973_v11 = vld [vmem:[#allocation7 + $0x1058] sm:$0xff] }
 0x748   :  { %v13566_v24 = vpop.f32.mrf.mxu0  ;;  %v13524_v55 = vpop.f32.mrf.mxu1  ;;  %13859 = vmatprep.subr.bf16.mxu0 %v15701_v60  ;;  %v2909_v5 = vld [vmem:[#allocation7 + $0xe58] sm:$0xff]  ;;  %v15669_v50 = vcombine.high %v2973_v11, %v2977_v48  ;;  %v15668_v8 = vcombine.low %v2973_v11, %v2977_v48 }
 0x749   :  { %13833 = vmatpush2.bf16.msra.mxu1 %v15644_v23  ;;  %v18596_v17 = vadd.f32 %v13563_v6, %v13523_v58  ;;  %v15676_v6 = vcombine.low %v2981_v46, %v2985_v35  ;;  %v2913_v60 = vld [vmem:[#allocation7 + $0xe78] sm:$0xff]  ;;  %v15612_v23 = vcombine.low %v2917_v33, %v2921_v25 }
 0x74a   :  { %v13525_v3 = vpop.f32.mrf.mxu1  ;;  %13834 = vmatprep.subr.bf16.mxu1 %v15637_v31  ;;  %v2965_v16 = vld [vmem:[#allocation7 + $0x1018] sm:$0xff]  ;;  %v15605_v52 = vcombine.high %v2909_v5, %v2913_v60  ;;  %v15604_v21 = vcombine.low %v2909_v5, %v2913_v60 }
 0x74b   :  { %13860 = vmatpush1.bf16.msra.mxu0 %v15700_v9  ;;  %v2969_v18 = vld [vmem:[#allocation7 + $0x1038] sm:$0xff] }
 0x74c   :  { %13861 = vmatprep.subr.bf16.mxu0 %v15693_v32  ;;  %v2901_v31 = vld [vmem:[#allocation7 + $0xe18] sm:$0xff]  ;;  %v15661_v9 = vcombine.high %v2965_v16, %v2969_v18  ;;  %v15660_v32 = vcombine.low %v2965_v16, %v2969_v18 }
 0x74d   :  { %13835 = vmatpush2.bf16.msra.mxu1 %v15636_v1  ;;  %v2905_v58 = vld [vmem:[#allocation7 + $0xe38] sm:$0xff] }
 0x74e   :  { %13836 = vmatprep.subr.bf16.mxu1 %v15629_v2  ;;  %v3085_v61 = vld [vmem:[#allocation7 + $0x13d8] sm:$0xff]  ;;  %v15597_v55 = vcombine.high %v2901_v31, %v2905_v58  ;;  %v15596_v3 = vcombine.low %v2901_v31, %v2905_v58 }
 0x74f   :  { %13862 = vmatpush1.bf16.msra.mxu0 %v15692_v20  ;;  %v3089_v24 = vld [vmem:[#allocation7 + $0x13f8] sm:$0xff] }
 0x750   :  { %13863 = vmatprep.subr.bf16.mxu0 %v15685_v38  ;;  %v3149_v1 = vld [vmem:[#allocation7 + $0x15d8] sm:$0xff]  ;;  %v15781_v19 = vcombine.high %v3085_v61, %v3089_v24  ;;  %v15780_v30 = vcombine.low %v3085_v61, %v3089_v24 }
 0x751   :  { %13837 = vmatpush2.bf16.msra.mxu1 %v15628_v39  ;;  %v3153_v14 = vld [vmem:[#allocation7 + $0x15f8] sm:$0xff] }
 0x752   :  { %13838 = vmatprep.subr.bf16.mxu1 %v15621_v56  ;;  %v3077_v2 = vld [vmem:[#allocation7 + $0x1398] sm:$0xff]  ;;  %v15845_v45 = vcombine.high %v3149_v1, %v3153_v14  ;;  %v15844_v35 = vcombine.low %v3149_v1, %v3153_v14 }
 0x753   :  { %13864 = vmatpush1.bf16.msra.mxu0 %v15684_v29  ;;  %v3081_v20 = vld [vmem:[#allocation7 + $0x13b8] sm:$0xff] }
 0x754   :  { %13865 = vmatprep.subr.bf16.mxu0 %v15677_v7  ;;  %v3141_v38 = vld [vmem:[#allocation7 + $0x1598] sm:$0xff]  ;;  %v15773_v46 = vcombine.high %v3077_v2, %v3081_v20  ;;  %v15772_v25 = vcombine.low %v3077_v2, %v3081_v20 }
 0x755   :  { %13839 = vmatpush2.bf16.msra.mxu1 %v15620_v57  ;;  %v3145_v39 = vld [vmem:[#allocation7 + $0x15b8] sm:$0xff] }
 0x756   :  { %13840 = vmatprep.subr.bf16.mxu1 %v15613_v12  ;;  %v3069_v56 = vld [vmem:[#allocation7 + $0x1358] sm:$0xff]  ;;  %v15837_v33 = vcombine.high %v3141_v38, %v3145_v39  ;;  %v15836_v48 = vcombine.low %v3141_v38, %v3145_v39 }
 0x757   :  { %13866 = vmatpush1.bf16.msra.mxu0 %v15676_v6  ;;  %v3073_v29 = vld [vmem:[#allocation7 + $0x1378] sm:$0xff] }
 0x758   :  { %13867 = vmatprep.subr.bf16.mxu0 %v15669_v50  ;;  %v3133_v7 = vld [vmem:[#allocation7 + $0x1558] sm:$0xff]  ;;  %v15765_v11 = vcombine.high %v3069_v56, %v3073_v29  ;;  %v15764_v60 = vcombine.low %v3069_v56, %v3073_v29 }
 0x759   :  { %13841 = vmatpush2.bf16.msra.mxu1 %v15612_v23  ;;  %v3137_v57 = vld [vmem:[#allocation7 + $0x1578] sm:$0xff] }
 0x75a   :  { %13842 = vmatprep.subr.bf16.mxu1 %v15605_v52  ;;  %v3061_v12 = vld [vmem:[#allocation7 + $0x1318] sm:$0xff]  ;;  %v15829_v5 = vcombine.high %v3133_v7, %v3137_v57  ;;  %v15828_v18 = vcombine.low %v3133_v7, %v3137_v57 }
 0x75b   :  { %13868 = vmatpush1.bf16.msra.mxu0 %v15668_v8  ;;  %v3065_v6 = vld [vmem:[#allocation7 + $0x1338] sm:$0xff] }
 0x75c   :  { %13869 = vmatprep.subr.bf16.mxu0 %v15661_v9  ;;  %v3125_v50 = vld [vmem:[#allocation7 + $0x1518] sm:$0xff]  ;;  %v15757_v16 = vcombine.high %v3061_v12, %v3065_v6  ;;  %v15756_v31 = vcombine.low %v3061_v12, %v3065_v6 }
 0x75d   :  { %13843 = vmatpush2.bf16.msra.mxu1 %v15604_v21  ;;  %v3129_v23 = vld [vmem:[#allocation7 + $0x1538] sm:$0xff] }
 0x75e   :  { %13844 = vmatprep.subr.bf16.mxu1 %v15597_v55  ;;  %v3053_v52 = vld [vmem:[#allocation7 + $0x12d8] sm:$0xff]  ;;  %v15821_v8 = vcombine.high %v3125_v50, %v3129_v23  ;;  %v15820_v21 = vcombine.low %v3125_v50, %v3129_v23 }
 0x75f   :  { %13870 = vmatpush1.bf16.msra.mxu0 %v15660_v32  ;;  %v3121_v58 = vld [vmem:[#allocation7 + $0x14f8] sm:$0xff] }
 0x760   :  { %13871 = vmatprep.subr.bf16.mxu0 %v15781_v19  ;;  %v3045_v61 = vld [vmem:[#allocation7 + $0x1298] sm:$0xff] }
 0x761   :  { %13845 = vmatpush2.bf16.msra.mxu1 %v15596_v3  ;;  %v3049_v24 = vld [vmem:[#allocation7 + $0x12b8] sm:$0xff] }
 0x762   :  { %13896 = vmatprep.subr.bf16.mxu1 %v15845_v45  ;;  %v3109_v1 = vld [vmem:[#allocation7 + $0x1498] sm:$0xff]  ;;  %v15741_v19 = vcombine.high %v3045_v61, %v3049_v24 }
 0x763   :  { %13872 = vmatpush2.bf16.msra.mxu0 %v15780_v30  ;;  %v3113_v14 = vld [vmem:[#allocation7 + $0x14b8] sm:$0xff]  ;;  %v15740_v30 = vcombine.low %v3045_v61, %v3049_v24 }
 0x764   :  { %13847 = vmatmul.mubr.bf16.vlgmr.msra.gmra.mxu1 %v18273_v0  ;;  %13873 = vmatprep.subr.bf16.mxu0 %v15773_v46  ;;  %v3057_v0 = vld [vmem:[#allocation7 + $0x12f8] sm:$0xff]  ;;  %v15805_v45 = vcombine.high %v3109_v1, %v3113_v14 }
 0x765   :  { %13897 = vmatpush1.bf16.msra.mxu1 %v15844_v35  ;;  %13928 = vmatprep.mubr.bf16.mxu1 %v18275_v42  ;;  %v3117_v42 = vld [vmem:[#allocation7 + $0x14d8] sm:$0xff]  ;;  %v15749_v9 = vcombine.high %v3053_v52, %v3057_v0  ;;  %v15748_v32 = vcombine.low %v3053_v52, %v3057_v0  ;;  %v15804_v35 = vcombine.low %v3109_v1, %v3113_v14 }
 0x766   :  { %13898 = vmatprep.subr.bf16.mxu1 %v15837_v33  ;;  %v15813_v55 = vcombine.high %v3117_v42, %v3121_v58  ;;  %v15812_v3 = vcombine.low %v3117_v42, %v3121_v58  ;;  %v3037_v2 = vld [vmem:[#allocation7 + $0x1258] sm:$0xff] }
 0x767   :  { %13874 = vmatpush2.bf16.msra.mxu0 %v15772_v25  ;;  %v3041_v20 = vld [vmem:[#allocation7 + $0x1278] sm:$0xff] }
 0x768   :  { %13875 = vmatprep.subr.bf16.mxu0 %v15765_v11  ;;  %v3101_v38 = vld [vmem:[#allocation7 + $0x1458] sm:$0xff]  ;;  %v15733_v46 = vcombine.high %v3037_v2, %v3041_v20  ;;  %v15732_v25 = vcombine.low %v3037_v2, %v3041_v20 }
 0x769   :  { %13899 = vmatpush1.bf16.msra.mxu1 %v15836_v48  ;;  %v3105_v39 = vld [vmem:[#allocation7 + $0x1478] sm:$0xff] }
 0x76a   :  { %13900 = vmatprep.subr.bf16.mxu1 %v15829_v5  ;;  %v3029_v56 = vld [vmem:[#allocation7 + $0x1218] sm:$0xff]  ;;  %v15797_v33 = vcombine.high %v3101_v38, %v3105_v39  ;;  %v15796_v48 = vcombine.low %v3101_v38, %v3105_v39 }
 0x76b   :  { %13876 = vmatpush2.bf16.msra.mxu0 %v15764_v60  ;;  %v3033_v29 = vld [vmem:[#allocation7 + $0x1238] sm:$0xff] }
 0x76c   :  { %13877 = vmatprep.subr.bf16.mxu0 %v15757_v16  ;;  %v3093_v7 = vld [vmem:[#allocation7 + $0x1418] sm:$0xff]  ;;  %v15725_v11 = vcombine.high %v3029_v56, %v3033_v29  ;;  %v15724_v60 = vcombine.low %v3029_v56, %v3033_v29 }
 0x76d   :  { %13901 = vmatpush1.bf16.msra.mxu1 %v15828_v18  ;;  %v3097_v57 = vld [vmem:[#allocation7 + $0x1438] sm:$0xff] }
 0x76e   :  { %13902 = vmatprep.subr.bf16.mxu1 %v15821_v8  ;;  %v3277_v12 = vld [vmem:[#allocation7 + $0x19d8] sm:$0xff]  ;;  %v15789_v5 = vcombine.high %v3093_v7, %v3097_v57  ;;  %v15788_v18 = vcombine.low %v3093_v7, %v3097_v57 }
 0x76f   :  { %13878 = vmatpush2.bf16.msra.mxu0 %v15756_v31  ;;  %v3281_v6 = vld [vmem:[#allocation7 + $0x19f8] sm:$0xff] }
 0x770   :  { %13879 = vmatprep.subr.bf16.mxu0 %v15749_v9  ;;  %v3213_v50 = vld [vmem:[#allocation7 + $0x17d8] sm:$0xff]  ;;  %v15973_v16 = vcombine.high %v3277_v12, %v3281_v6  ;;  %v15972_v31 = vcombine.low %v3277_v12, %v3281_v6 }
 0x771   :  { %13903 = vmatpush1.bf16.msra.mxu1 %v15820_v21  ;;  %v3217_v23 = vld [vmem:[#allocation7 + $0x17f8] sm:$0xff] }
 0x772   :  { %13904 = vmatprep.subr.bf16.mxu1 %v15813_v55  ;;  %v3269_v52 = vld [vmem:[#allocation7 + $0x1998] sm:$0xff]  ;;  %v15909_v8 = vcombine.high %v3213_v50, %v3217_v23  ;;  %v15908_v21 = vcombine.low %v3213_v50, %v3217_v23 }
 0x773   :  { %13880 = vmatpush2.bf16.msra.mxu0 %v15748_v32  ;;  %v3273_v0 = vld [vmem:[#allocation7 + $0x19b8] sm:$0xff] }
 0x774   :  { %13881 = vmatprep.subr.bf16.mxu0 %v15741_v19  ;;  %v3205_v42 = vld [vmem:[#allocation7 + $0x1798] sm:$0xff]  ;;  %v15965_v9 = vcombine.high %v3269_v52, %v3273_v0  ;;  %v15964_v1 = vcombine.low %v3269_v52, %v3273_v0 }
 0x775   :  { %13905 = vmatpush1.bf16.msra.mxu1 %v15812_v3  ;;  %v3209_v58 = vld [vmem:[#allocation7 + $0x17b8] sm:$0xff] }
 0x776   :  { %13906 = vmatprep.subr.bf16.mxu1 %v15805_v45  ;;  %v3261_v61 = vld [vmem:[#allocation7 + $0x1958] sm:$0xff]  ;;  %v15901_v32 = vcombine.high %v3205_v42, %v3209_v58 }
 0x777   :  { %13882 = vmatpush2.bf16.msra.mxu0 %v15740_v30  ;;  %v3265_v24 = vld [vmem:[#allocation7 + $0x1978] sm:$0xff]  ;;  %v15900_v30 = vcombine.low %v3205_v42, %v3209_v58 }
 0x778   :  { %13883 = vmatprep.subr.bf16.mxu0 %v15733_v46  ;;  %v3197_v14 = vld [vmem:[#allocation7 + $0x1758] sm:$0xff]  ;;  %v15957_v20 = vcombine.high %v3261_v61, %v3265_v24 }
 0x779   :  { %13907 = vmatpush1.bf16.msra.mxu1 %v15804_v35  ;;  %v3201_v19 = vld [vmem:[#allocation7 + $0x1778] sm:$0xff] }
 0x77a   :  { %13908 = vmatprep.subr.bf16.mxu1 %v15797_v33  ;;  %v3253_v38 = vld [vmem:[#allocation7 + $0x1918] sm:$0xff]  ;;  %v15893_v35 = vcombine.high %v3197_v14, %v3201_v19 }
 0x77b   :  { %13884 = vmatpush2.bf16.msra.mxu0 %v15732_v25  ;;  %v3257_v39 = vld [vmem:[#allocation7 + $0x1938] sm:$0xff] }
 0x77c   :  { %13885 = vmatprep.subr.bf16.mxu0 %v15725_v11  ;;  %v3189_v29 = vld [vmem:[#allocation7 + $0x1718] sm:$0xff]  ;;  %v15892_v11 = vcombine.low %v3197_v14, %v3201_v19 }
 0x77d   :  { %13909 = vmatpush1.bf16.msra.mxu1 %v15796_v48  ;;  %v3193_v33 = vld [vmem:[#allocation7 + $0x1738] sm:$0xff] }
 0x77e   :  { %13910 = vmatprep.subr.bf16.mxu1 %v15789_v5  ;;  %v3245_v48 = vld [vmem:[#allocation7 + $0x18d8] sm:$0xff] }
 0x77f   :  { %13886 = vmatpush2.bf16.msra.mxu0 %v15724_v60  ;;  %v3249_v12 = vld [vmem:[#allocation7 + $0x18f8] sm:$0xff]  ;;  %v15885_v60 = vcombine.high %v3189_v29, %v3193_v33 }
 0x780   :  { %13937 = vmatprep.subr.bf16.mxu0 %v15973_v16  ;;  %v3181_v50 = vld [vmem:[#allocation7 + $0x16d8] sm:$0xff]  ;;  %v15941_v16 = vcombine.high %v3245_v48, %v3249_v12 }
 0x781   :  { %13911 = vmatpush1.bf16.msra.mxu1 %v15788_v18  ;;  %v3185_v23 = vld [vmem:[#allocation7 + $0x16f8] sm:$0xff]  ;;  %v15884_v18 = vcombine.low %v3189_v29, %v3193_v33 }
 0x782   :  { %v13643_v55 = vpop.f32.mrf.mxu0  ;;  %13888 = vmatmul.mubr.bf16.vlgmr.msra.gmra.mxu0 %v18315_v41  ;;  %13912 = vmatprep.subr.bf16.mxu1 %v15909_v8  ;;  %v3237_v52 = vld [vmem:[#allocation7 + $0x1898] sm:$0xff]  ;;  %v15877_v8 = vcombine.high %v3181_v50, %v3185_v23 }
 0x783   :  { %13938 = vmatpush1.bf16.msra.mxu0 %v15972_v31  ;;  %13969 = vmatprep.mubr.bf16.mxu0 %v18318_v44  ;;  %v15956_v44 = vcombine.low %v3261_v61, %v3265_v24  ;;  %v3241_v0 = vld [vmem:[#allocation7 + $0x18b8] sm:$0xff]  ;;  %v15940_v31 = vcombine.low %v3245_v48, %v3249_v12 }
 0x784   :  { %v13645_v3 = vpop.f32.mrf.mxu0  ;;  %v13602_v2 = vpop.f32.mrf.mxu1  ;;  %13939 = vmatprep.subr.bf16.mxu0 %v15965_v9  ;;  %v3173_v42 = vld [vmem:[#allocation7 + $0x1698] sm:$0xff]  ;;  %v15933_v9 = vcombine.high %v3237_v52, %v3241_v0 }
 0x785   :  { %v13603_v45 = vadd.f32 %v13602_v2, %v18594_v4  ;;  %13913 = vmatpush2.bf16.msra.mxu1 %v15908_v21  ;;  %v15949_v4 = vcombine.high %v3253_v38, %v3257_v39  ;;  %v3177_v58 = vld [vmem:[#allocation7 + $0x16b8] sm:$0xff]  ;;  %v15876_v21 = vcombine.low %v3181_v50, %v3185_v23 }
 0x786   :  { %v13647_v46 = vpop.f32.mrf.mxu0  ;;  %v13604_v41 = vpop.f32.mrf.mxu1  ;;  %13914 = vmatprep.subr.bf16.mxu1 %v15901_v32  ;;  %v3229_v61 = vld [vmem:[#allocation7 + $0x1858] sm:$0xff]  ;;  %v15932_v32 = vcombine.low %v3237_v52, %v3241_v0 }
 0x787   :  { %v13605_v56 = vadd.f32 %v13604_v41, %v18596_v17  ;;  %13940 = vmatpush1.bf16.msra.mxu0 %v15964_v1  ;;  %v18604_v25 = vadd.f32 %v13643_v55, %v13603_v45  ;;  %v15948_v17 = vcombine.low %v3253_v38, %v3257_v39  ;;  %v3233_v24 = vld [vmem:[#allocation7 + $0x1878] sm:$0xff]  ;;  %v15869_v55 = vcombine.high %v3173_v42, %v3177_v58 }
 0x788   :  { %v13648_v7 = vpop.f32.mrf.mxu0  ;;  %v13606_v57 = vpop.f32.mrf.mxu1  ;;  %13941 = vmatprep.subr.bf16.mxu0 %v15957_v20  ;;  %v3165_v1 = vld [vmem:[#allocation7 + $0x1658] sm:$0xff]  ;;  %v15925_v19 = vcombine.high %v3229_v61, %v3233_v24 }
 0x789   :  { %13915 = vmatpush2.bf16.msra.mxu1 %v15900_v30  ;;  %v18606_v6 = vadd.f32 %v13645_v3, %v13605_v56  ;;  %v3169_v14 = vld [vmem:[#allocation7 + $0x1678] sm:$0xff]  ;;  %v15868_v3 = vcombine.low %v3173_v42, %v3177_v58  ;;  %v15924_v30 = vcombine.low %v3229_v61, %v3233_v24 }
 0x78a   :  { %v13607_v5 = vpop.f32.mrf.mxu1  ;;  %13916 = vmatprep.subr.bf16.mxu1 %v15893_v35  ;;  %v3221_v2 = vld [vmem:[#allocation7 + $0x1818] sm:$0xff]  ;;  %v15861_v45 = vcombine.high %v3165_v1, %v3169_v14  ;;  %v15860_v41 = vcombine.low %v3165_v1, %v3169_v14 }
 0x78b   :  { %13942 = vmatpush1.bf16.msra.mxu0 %v15956_v44  ;;  %v3225_v20 = vld [vmem:[#allocation7 + $0x1838] sm:$0xff] }
 0x78c   :  { %13943 = vmatprep.subr.bf16.mxu0 %v15949_v4  ;;  %v3157_v38 = vld [vmem:[#allocation7 + $0x1618] sm:$0xff]  ;;  %v15917_v46 = vcombine.high %v3221_v2, %v3225_v20  ;;  %v15916_v29 = vcombine.low %v3221_v2, %v3225_v20 }
 0x78d   :  { %13917 = vmatpush2.bf16.msra.mxu1 %v15892_v11  ;;  %v3161_v39 = vld [vmem:[#allocation7 + $0x1638] sm:$0xff] }
 0x78e   :  { %13918 = vmatprep.subr.bf16.mxu1 %v15885_v60  ;;  %v3341_v35 = vld [vmem:[#allocation7 + $0x1bd8] sm:$0xff]  ;;  %v15853_v44 = vcombine.high %v3157_v38, %v3161_v39  ;;  %v15852_v4 = vcombine.low %v3157_v38, %v3161_v39 }
 0x78f   :  { %13944 = vmatpush1.bf16.msra.mxu0 %v15948_v17  ;;  %v3345_v56 = vld [vmem:[#allocation7 + $0x1bf8] sm:$0xff] }
 0x790   :  { %13945 = vmatprep.subr.bf16.mxu0 %v15941_v16  ;;  %v3405_v33 = vld [vmem:[#allocation7 + $0x1dd8] sm:$0xff]  ;;  %v16037_v57 = vcombine.high %v3341_v35, %v3345_v56  ;;  %v16036_v5 = vcombine.low %v3341_v35, %v3345_v56 }
 0x791   :  { %13919 = vmatpush2.bf16.msra.mxu1 %v15884_v18  ;;  %v3409_v7 = vld [vmem:[#allocation7 + $0x1df8] sm:$0xff] }
 0x792   :  { %13920 = vmatprep.subr.bf16.mxu1 %v15877_v8  ;;  %v3333_v11 = vld [vmem:[#allocation7 + $0x1b98] sm:$0xff]  ;;  %v16101_v12 = vcombine.high %v3405_v33, %v3409_v7  ;;  %v16100_v23 = vcombine.low %v3405_v33, %v3409_v7 }
 0x793   :  { %13946 = vmatpush1.bf16.msra.mxu0 %v15940_v31  ;;  %v3337_v48 = vld [vmem:[#allocation7 + $0x1bb8] sm:$0xff] }
 0x794   :  { %13947 = vmatprep.subr.bf16.mxu0 %v15933_v9  ;;  %v3397_v60 = vld [vmem:[#allocation7 + $0x1d98] sm:$0xff]  ;;  %v16029_v50 = vcombine.high %v3333_v11, %v3337_v48  ;;  %v16028_v0 = vcombine.low %v3333_v11, %v3337_v48 }
 0x795   :  { %13921 = vmatpush2.bf16.msra.mxu1 %v15876_v21  ;;  %v3401_v17 = vld [vmem:[#allocation7 + $0x1db8] sm:$0xff] }
 0x796   :  { %13922 = vmatprep.subr.bf16.mxu1 %v15869_v55  ;;  %v3325_v16 = vld [vmem:[#allocation7 + $0x1b58] sm:$0xff]  ;;  %v16093_v52 = vcombine.high %v3397_v60, %v3401_v17  ;;  %v16092_v21 = vcombine.low %v3397_v60, %v3401_v17 }
 0x797   :  { %13948 = vmatpush1.bf16.msra.mxu0 %v15932_v32  ;;  %v3329_v18 = vld [vmem:[#allocation7 + $0x1b78] sm:$0xff] }
 0x798   :  { %13949 = vmatprep.subr.bf16.mxu0 %v15925_v19  ;;  %v3389_v8 = vld [vmem:[#allocation7 + $0x1d58] sm:$0xff]  ;;  %v16021_v58 = vcombine.high %v3325_v16, %v3329_v18  ;;  %v16020_v14 = vcombine.low %v3325_v16, %v3329_v18 }
 0x799   :  { %13923 = vmatpush2.bf16.msra.mxu1 %v15868_v3  ;;  %v3393_v31 = vld [vmem:[#allocation7 + $0x1d78] sm:$0xff] }
 0x79a   :  { %13924 = vmatprep.subr.bf16.mxu1 %v15861_v45  ;;  %v3317_v61 = vld [vmem:[#allocation7 + $0x1b18] sm:$0xff]  ;;  %v16085_v32 = vcombine.high %v3389_v8, %v3393_v31  ;;  %v16084_v2 = vcombine.low %v3389_v8, %v3393_v31 }
 0x79b   :  { %13950 = vmatpush1.bf16.msra.mxu0 %v15924_v30  ;;  %v3321_v24 = vld [vmem:[#allocation7 + $0x1b38] sm:$0xff] }
 0x79c   :  { %13951 = vmatprep.subr.bf16.mxu0 %v15917_v46  ;;  %v3385_v19 = vld [vmem:[#allocation7 + $0x1d38] sm:$0xff]  ;;  %v16012_v38 = vcombine.low %v3317_v61, %v3321_v24 }
 0x79d   :  { %13925 = vmatpush2.bf16.msra.mxu1 %v15860_v41  ;;  %v3309_v20 = vld [vmem:[#allocation7 + $0x1ad8] sm:$0xff] }
 0x79e   :  { %13926 = vmatprep.subr.bf16.mxu1 %v15853_v44  ;;  %v3373_v39 = vld [vmem:[#allocation7 + $0x1cd8] sm:$0xff] }
 0x79f   :  { %13952 = vmatpush1.bf16.msra.mxu0 %v15916_v29  ;;  %v3377_v46 = vld [vmem:[#allocation7 + $0x1cf8] sm:$0xff] }
 0x7a0   :  { %13953 = vmatprep.subr.bf16.mxu0 %v16037_v57  ;;  %v3301_v35 = vld [vmem:[#allocation7 + $0x1a98] sm:$0xff]  ;;  %v16069_v44 = vcombine.high %v3373_v39, %v3377_v46 }
 0x7a1   :  { %13927 = vmatpush2.bf16.msra.mxu1 %v15852_v4  ;;  %v3305_v56 = vld [vmem:[#allocation7 + $0x1ab8] sm:$0xff]  ;;  %v16068_v4 = vcombine.low %v3373_v39, %v3377_v46 }
 0x7a2   :  { %13978 = vmatprep.subr.bf16.mxu1 %v16101_v12  ;;  %v3365_v33 = vld [vmem:[#allocation7 + $0x1c98] sm:$0xff]  ;;  %v15997_v57 = vcombine.high %v3301_v35, %v3305_v56 }
 0x7a3   :  { %13954 = vmatpush2.bf16.msra.mxu0 %v16036_v5  ;;  %v3369_v7 = vld [vmem:[#allocation7 + $0x1cb8] sm:$0xff]  ;;  %v15996_v5 = vcombine.low %v3301_v35, %v3305_v56 }
 0x7a4   :  { %v13684_v42 = vpop.f32.mrf.mxu1  ;;  %13929 = vmatmul.mubr.bf16.vlgmr.msra.gmra.mxu1 %v18311_v22  ;;  %13955 = vmatprep.subr.bf16.mxu0 %v16029_v50  ;;  %v3381_v22 = vld [vmem:[#allocation7 + $0x1d18] sm:$0xff]  ;;  %v16061_v12 = vcombine.high %v3365_v33, %v3369_v7 }
 0x7a5   :  { %v18610_v9 = vadd.f32 %v13684_v42, %v18604_v25  ;;  %13979 = vmatpush1.bf16.msra.mxu1 %v16100_v23  ;;  %14010 = vmatprep.mubr.bf16.mxu1 %v18313_v26  ;;  %v16013_v25 = vcombine.high %v3317_v61, %v3321_v24  ;;  %v3313_v26 = vld [vmem:[#allocation7 + $0x1af8] sm:$0xff]  ;;  %v16077_v30 = vcombine.high %v3381_v22, %v3385_v19 }
 0x7a6   :  { %v13686_v55 = vpop.f32.mrf.mxu1  ;;  %13980 = vmatprep.subr.bf16.mxu1 %v16093_v52  ;;  %v16076_v41 = vcombine.low %v3381_v22, %v3385_v19  ;;  %v16004_v29 = vcombine.low %v3309_v20, %v3313_v26  ;;  %v3293_v11 = vld [vmem:[#allocation7 + $0x1a58] sm:$0xff]  ;;  %v16060_v23 = vcombine.low %v3365_v33, %v3369_v7 }
 0x7a7   :  { %v18614_v1 = vadd.f32 %v13686_v55, %v18606_v6  ;;  %13956 = vmatpush2.bf16.msra.mxu0 %v16028_v0  ;;  %v16005_v6 = vcombine.high %v3309_v20, %v3313_v26  ;;  %v3297_v48 = vld [vmem:[#allocation7 + $0x1a78] sm:$0xff] }
 0x7a8   :  { %v13688_v3 = vpop.f32.mrf.mxu1  ;;  %13957 = vmatprep.subr.bf16.mxu0 %v16021_v58  ;;  %v3357_v60 = vld [vmem:[#allocation7 + $0x1c58] sm:$0xff]  ;;  %v15989_v50 = vcombine.high %v3293_v11, %v3297_v48  ;;  %v15988_v0 = vcombine.low %v3293_v11, %v3297_v48 }
 0x7a9   :  { %13981 = vmatpush1.bf16.msra.mxu1 %v16092_v21  ;;  %v3361_v17 = vld [vmem:[#allocation7 + $0x1c78] sm:$0xff] }
 0x7aa   :  { %v13689_v45 = vpop.f32.mrf.mxu1  ;;  %13982 = vmatprep.subr.bf16.mxu1 %v16085_v32  ;;  %v3285_v16 = vld [vmem:[#allocation7 + $0x1a18] sm:$0xff]  ;;  %v16053_v52 = vcombine.high %v3357_v60, %v3361_v17  ;;  %v16052_v58 = vcombine.low %v3357_v60, %v3361_v17 }
 0x7ab   :  { %13958 = vmatpush2.bf16.msra.mxu0 %v16020_v14  ;;  %v3289_v18 = vld [vmem:[#allocation7 + $0x1a38] sm:$0xff] }
 0x7ac   :  { %13959 = vmatprep.subr.bf16.mxu0 %v16013_v25  ;;  %v3349_v8 = vld [vmem:[#allocation7 + $0x1c18] sm:$0xff]  ;;  %v15981_v42 = vcombine.high %v3285_v16, %v3289_v18  ;;  %v15980_v55 = vcombine.low %v3285_v16, %v3289_v18 }
 0x7ad   :  { %13983 = vmatpush1.bf16.msra.mxu1 %v16084_v2  ;;  %v3353_v31 = vld [vmem:[#allocation7 + $0x1c38] sm:$0xff] }
 0x7ae   :  { %13984 = vmatprep.subr.bf16.mxu1 %v16077_v30  ;;  %v3533_v21 = vld [vmem:[#allocation7 + $0x21d8] sm:$0xff]  ;;  %v16045_v24 = vcombine.high %v3349_v8, %v3353_v31  ;;  %v16044_v19 = vcombine.low %v3349_v8, %v3353_v31 }
 0x7af   :  { %13960 = vmatpush2.bf16.msra.mxu0 %v16012_v38  ;;  %v3537_v61 = vld [vmem:[#allocation7 + $0x21f8] sm:$0xff] }
 0x7b0   :  { %13961 = vmatprep.subr.bf16.mxu0 %v16005_v6  ;;  %v3469_v32 = vld [vmem:[#allocation7 + $0x1fd8] sm:$0xff]  ;;  %v16229_v22 = vcombine.high %v3533_v21, %v3537_v61  ;;  %v16228_v20 = vcombine.low %v3533_v21, %v3537_v61 }
 0x7b1   :  { %13985 = vmatpush1.bf16.msra.mxu1 %v16076_v41  ;;  %v3473_v14 = vld [vmem:[#allocation7 + $0x1ff8] sm:$0xff] }
 0x7b2   :  { %13986 = vmatprep.subr.bf16.mxu1 %v16069_v44  ;;  %v3525_v3 = vld [vmem:[#allocation7 + $0x2198] sm:$0xff]  ;;  %v16165_v2 = vcombine.high %v3469_v32, %v3473_v14  ;;  %v16164_v38 = vcombine.low %v3469_v32, %v3473_v14 }
 0x7b3   :  { %13962 = vmatpush2.bf16.msra.mxu0 %v16004_v29  ;;  %v3529_v25 = vld [vmem:[#allocation7 + $0x21b8] sm:$0xff] }
 0x7b4   :  { %13963 = vmatprep.subr.bf16.mxu0 %v15997_v57  ;;  %v3461_v26 = vld [vmem:[#allocation7 + $0x1f98] sm:$0xff]  ;;  %v16221_v30 = vcombine.high %v3525_v3, %v3529_v25  ;;  %v16220_v35 = vcombine.low %v3525_v3, %v3529_v25 }
 0x7b5   :  { %13987 = vmatpush1.bf16.msra.mxu1 %v16068_v4  ;;  %v3465_v45 = vld [vmem:[#allocation7 + $0x1fb8] sm:$0xff] }
 0x7b6   :  { %13988 = vmatprep.subr.bf16.mxu1 %v16061_v12  ;;  %v3517_v39 = vld [vmem:[#allocation7 + $0x2158] sm:$0xff]  ;;  %v16157_v41 = vcombine.high %v3461_v26, %v3465_v45  ;;  %v16156_v7 = vcombine.low %v3461_v26, %v3465_v45 }
 0x7b7   :  { %13964 = vmatpush2.bf16.msra.mxu0 %v15996_v5  ;;  %v3521_v46 = vld [vmem:[#allocation7 + $0x2178] sm:$0xff] }
 0x7b8   :  { %13965 = vmatprep.subr.bf16.mxu0 %v15989_v50  ;;  %v3453_v56 = vld [vmem:[#allocation7 + $0x1f58] sm:$0xff]  ;;  %v16213_v33 = vcombine.high %v3517_v39, %v3521_v46 }
 0x7b9   :  { %13989 = vmatpush1.bf16.msra.mxu1 %v16060_v23  ;;  %v3457_v44 = vld [vmem:[#allocation7 + $0x1f78] sm:$0xff] }
 0x7ba   :  { %13990 = vmatprep.subr.bf16.mxu1 %v16053_v52  ;;  %v3509_v57 = vld [vmem:[#allocation7 + $0x2118] sm:$0xff]  ;;  %v16149_v48 = vcombine.high %v3453_v56, %v3457_v44  ;;  %v16148_v17 = vcombine.low %v3453_v56, %v3457_v44 }
 0x7bb   :  { %13966 = vmatpush2.bf16.msra.mxu0 %v15988_v0  ;;  %v3513_v4 = vld [vmem:[#allocation7 + $0x2138] sm:$0xff] }
 0x7bc   :  { %13967 = vmatprep.subr.bf16.mxu0 %v15981_v42  ;;  %v3445_v12 = vld [vmem:[#allocation7 + $0x1f18] sm:$0xff]  ;;  %v16204_v18 = vcombine.low %v3509_v57, %v3513_v4 }
 0x7bd   :  { %13991 = vmatpush1.bf16.msra.mxu1 %v16052_v58  ;;  %v3449_v5 = vld [vmem:[#allocation7 + $0x1f38] sm:$0xff] }
 0x7be   :  { %13992 = vmatprep.subr.bf16.mxu1 %v16045_v24  ;;  %v3501_v50 = vld [vmem:[#allocation7 + $0x20d8] sm:$0xff]  ;;  %v16141_v16 = vcombine.high %v3445_v12, %v3449_v5  ;;  %v16140_v31 = vcombine.low %v3445_v12, %v3449_v5 }
 0x7bf   :  { %13968 = vmatpush2.bf16.msra.mxu0 %v15980_v55  ;;  %v3505_v23 = vld [vmem:[#allocation7 + $0x20f8] sm:$0xff] }
 0x7c0   :  { %14019 = vmatprep.subr.bf16.mxu0 %v16229_v22  ;;  %v3437_v52 = vld [vmem:[#allocation7 + $0x1ed8] sm:$0xff]  ;;  %v16197_v8 = vcombine.high %v3501_v50, %v3505_v23  ;;  %v16196_v61 = vcombine.low %v3501_v50, %v3505_v23 }
 0x7c1   :  { %13993 = vmatpush1.bf16.msra.mxu1 %v16044_v19  ;;  %v3441_v0 = vld [vmem:[#allocation7 + $0x1ef8] sm:$0xff] }
 0x7c2   :  { %v18616_v6 = vpop.f32.mrf.mxu0  ;;  %13970 = vmatmul.mubr.bf16.vlgmr.msra.gmra.mxu0 %v18346_v28  ;;  %13994 = vmatprep.subr.bf16.mxu1 %v16165_v2  ;;  %v16212_v28 = vcombine.low %v3517_v39, %v3521_v46  ;;  %v3493_v42 = vld [vmem:[#allocation7 + $0x2098] sm:$0xff]  ;;  %v16133_v21 = vcombine.high %v3437_v52, %v3441_v0  ;;  %v16132_v14 = vcombine.low %v3437_v52, %v3441_v0 }
 0x7c3   :  { %14020 = vmatpush1.bf16.msra.mxu0 %v16228_v20  ;;  %14051 = vmatprep.mubr.bf16.mxu0 %v18349_v34  ;;  %v16205_v34 = vcombine.high %v3509_v57, %v3513_v4  ;;  %v3497_v58 = vld [vmem:[#allocation7 + $0x20b8] sm:$0xff] }
 0x7c4   :  { %v18620_v29 = vpop.f32.mrf.mxu0  ;;  %14021 = vmatprep.subr.bf16.mxu0 %v16221_v30  ;;  %v3429_v24 = vld [vmem:[#allocation7 + $0x1e98] sm:$0xff]  ;;  %v16189_v32 = vcombine.high %v3493_v42, %v3497_v58  ;;  %v16188_v25 = vcombine.low %v3493_v42, %v3497_v58 }
 0x7c5   :  { %13995 = vmatpush2.bf16.msra.mxu1 %v16164_v38  ;;  %v3433_v55 = vld [vmem:[#allocation7 + $0x1eb8] sm:$0xff] }
 0x7c6   :  { %v13729_v11 = vpop.f32.mrf.mxu0  ;;  %13996 = vmatprep.subr.bf16.mxu1 %v16157_v41  ;;  %v3485_v22 = vld [vmem:[#allocation7 + $0x2058] sm:$0xff]  ;;  %v16125_v3 = vcombine.high %v3429_v24, %v3433_v55  ;;  %v16124_v45 = vcombine.low %v3429_v24, %v3433_v55 }
 0x7c7   :  { %14022 = vmatpush1.bf16.msra.mxu0 %v16220_v35  ;;  %v3489_v19 = vld [vmem:[#allocation7 + $0x2078] sm:$0xff] }
 0x7c8   :  { %v13730_v60 = vpop.f32.mrf.mxu0  ;;  %14023 = vmatprep.subr.bf16.mxu0 %v16213_v33  ;;  %v3421_v2 = vld [vmem:[#allocation7 + $0x1e58] sm:$0xff]  ;;  %v16181_v26 = vcombine.high %v3485_v22, %v3489_v19  ;;  %v16180_v46 = vcombine.low %v3485_v22, %v3489_v19 }
 0x7c9   :  { %13997 = vmatpush2.bf16.msra.mxu1 %v16156_v7  ;;  %v3425_v20 = vld [vmem:[#allocation7 + $0x1e78] sm:$0xff] }
 0x7ca   :  { %13998 = vmatprep.subr.bf16.mxu1 %v16149_v48  ;;  %v3477_v30 = vld [vmem:[#allocation7 + $0x2018] sm:$0xff]  ;;  %v16117_v39 = vcombine.high %v3421_v2, %v3425_v20  ;;  %v16116_v44 = vcombine.low %v3421_v2, %v3425_v20 }
 0x7cb   :  { %14024 = vmatpush1.bf16.msra.mxu0 %v16212_v28  ;;  %v3481_v38 = vld [vmem:[#allocation7 + $0x2038] sm:$0xff] }
 0x7cc   :  { %14025 = vmatprep.subr.bf16.mxu0 %v16205_v34  ;;  %v3413_v41 = vld [vmem:[#allocation7 + $0x1e18] sm:$0xff]  ;;  %v16173_v56 = vcombine.high %v3477_v30, %v3481_v38  ;;  %v16172_v4 = vcombine.low %v3477_v30, %v3481_v38 }
 0x7cd   :  { %13999 = vmatpush2.bf16.msra.mxu1 %v16148_v17  ;;  %v3417_v35 = vld [vmem:[#allocation7 + $0x1e38] sm:$0xff]  ;;  %v17393_v17 = vld [vmem:[#allocation8] sm:$0xff] }
 0x7ce   :  { %14000 = vmatprep.subr.bf16.mxu1 %v16141_v16  ;;  %v3597_v33 = vld [vmem:[#allocation7 + $0x23d8] sm:$0xff]  ;;  %v16109_v57 = vcombine.high %v3413_v41, %v3417_v35  ;;  %v16108_v12 = vcombine.low %v3413_v41, %v3417_v35  ;;  %v4079_v50 = vrot.slane %v17393_v17, %v18254_v47  ;;  %v4083_v0 = vrot.slane %v17393_v17, %v18240_v63 }
 0x7cf   :  { %14026 = vmatpush1.bf16.msra.mxu0 %v16204_v18  ;;  %v3601_v7 = vld [vmem:[#allocation7 + $0x23f8] sm:$0xff] }
 0x7d0   :  { %14027 = vmatprep.subr.bf16.mxu0 %v16197_v8  ;;  %v3661_v11 = vld [vmem:[#allocation7 + $0x25d8] sm:$0xff]  ;;  %v16293_v28 = vcombine.high %v3597_v33, %v3601_v7  ;;  %v16292_v23 = vcombine.low %v3597_v33, %v3601_v7 }
 0x7d1   :  { %14001 = vmatpush2.bf16.msra.mxu1 %v16140_v31  ;;  %v3665_v48 = vld [vmem:[#allocation7 + $0x25f8] sm:$0xff] }
 0x7d2   :  { %14002 = vmatprep.subr.bf16.mxu1 %v16133_v21  ;;  %v3589_v5 = vld [vmem:[#allocation7 + $0x2398] sm:$0xff]  ;;  %v16357_v34 = vcombine.high %v3661_v11, %v3665_v48  ;;  %v16356_v8 = vcombine.low %v3661_v11, %v3665_v48  ;;  %v13726_v21 = vadd.f32 %v18616_v6, %v4079_v50 }
 0x7d3   :  { %14028 = vmatpush1.bf16.msra.mxu0 %v16196_v61  ;;  %v3593_v60 = vld [vmem:[#allocation7 + $0x23b8] sm:$0xff] }
 0x7d4   :  { %14029 = vmatprep.subr.bf16.mxu0 %v16189_v32  ;;  %v3653_v16 = vld [vmem:[#allocation7 + $0x2598] sm:$0xff]  ;;  %v16285_v52 = vcombine.high %v3589_v5, %v3593_v60  ;;  %v16284_v61 = vcombine.low %v3589_v5, %v3593_v60 }
 0x7d5   :  { %14003 = vmatpush2.bf16.msra.mxu1 %v16132_v14  ;;  %v3657_v18 = vld [vmem:[#allocation7 + $0x25b8] sm:$0xff]  ;;  %v13728_v14 = vadd.f32 %v18620_v29, %v4083_v0 }
 0x7d6   :  { %14004 = vmatprep.subr.bf16.mxu1 %v16125_v3  ;;  %v3581_v31 = vld [vmem:[#allocation7 + $0x2358] sm:$0xff]  ;;  %v16349_v58 = vcombine.high %v3653_v16, %v3657_v18  ;;  %v16348_v22 = vcombine.low %v3653_v16, %v3657_v18 }
 0x7d7   :  { %14030 = vmatpush1.bf16.msra.mxu0 %v16188_v25  ;;  %v3585_v42 = vld [vmem:[#allocation7 + $0x2378] sm:$0xff] }
 0x7d8   :  { %14031 = vmatprep.subr.bf16.mxu0 %v16181_v26  ;;  %v3645_v24 = vld [vmem:[#allocation7 + $0x2558] sm:$0xff]  ;;  %v16277_v32 = vcombine.high %v3581_v31, %v3585_v42  ;;  %v16276_v20 = vcombine.low %v3581_v31, %v3585_v42 }
 0x7d9   :  { %14005 = vmatpush2.bf16.msra.mxu1 %v16124_v45  ;;  %v3649_v47 = vld [vmem:[#allocation7 + $0x2578] sm:$0xff] }
 0x7da   :  { %14006 = vmatprep.subr.bf16.mxu1 %v16117_v39  ;;  %v3573_v19 = vld [vmem:[#allocation7 + $0x2318] sm:$0xff]  ;;  %v16341_v25 = vcombine.high %v3645_v24, %v3649_v47  ;;  %v16340_v30 = vcombine.low %v3645_v24, %v3649_v47 }
 0x7db   :  { %14032 = vmatpush1.bf16.msra.mxu0 %v16180_v46  ;;  %v3577_v3 = vld [vmem:[#allocation7 + $0x2338] sm:$0xff] }
 0x7dc   :  { %14033 = vmatprep.subr.bf16.mxu0 %v16173_v56  ;;  %v3641_v26 = vld [vmem:[#allocation7 + $0x2538] sm:$0xff]  ;;  %v16269_v29 = vcombine.high %v3573_v19, %v3577_v3  ;;  %v16268_v41 = vcombine.low %v3573_v19, %v3577_v3 }
 0x7dd   :  { %14007 = vmatpush2.bf16.msra.mxu1 %v16116_v44  ;;  %v3565_v38 = vld [vmem:[#allocation7 + $0x22d8] sm:$0xff] }
 0x7de   :  { %14008 = vmatprep.subr.bf16.mxu1 %v16109_v57  ;;  %v3569_v39 = vld [vmem:[#allocation7 + $0x22f8] sm:$0xff] }
 0x7df   :  { %14034 = vmatpush1.bf16.msra.mxu0 %v16172_v4  ;;  %v3629_v35 = vld [vmem:[#allocation7 + $0x24d8] sm:$0xff]  ;;  %v16261_v44 = vcombine.high %v3565_v38, %v3569_v39  ;;  %v16260_v11 = vcombine.low %v3565_v38, %v3569_v39 }
 0x7e0   :  { %14035 = vmatprep.subr.bf16.mxu0 %v16293_v28  ;;  %v3633_v56 = vld [vmem:[#allocation7 + $0x24f8] sm:$0xff] }
 0x7e1   :  { %14009 = vmatpush2.bf16.msra.mxu1 %v16108_v12  ;;  %v3557_v7 = vld [vmem:[#allocation7 + $0x2298] sm:$0xff]  ;;  %v16325_v4 = vcombine.high %v3629_v35, %v3633_v56  ;;  %v16324_v5 = vcombine.low %v3629_v35, %v3633_v56 }
 0x7e2   :  { %14060 = vmatprep.subr.bf16.mxu1 %v16357_v34  ;;  %v3561_v57 = vld [vmem:[#allocation7 + $0x22b8] sm:$0xff] }
 0x7e3   :  { %14036 = vmatpush2.bf16.msra.mxu0 %v16292_v23  ;;  %v3621_v48 = vld [vmem:[#allocation7 + $0x2498] sm:$0xff]  ;;  %v16253_v12 = vcombine.high %v3557_v7, %v3561_v57  ;;  %v16252_v50 = vcombine.low %v3557_v7, %v3561_v57 }
 0x7e4   :  { %v13766_v55 = vpop.f32.mrf.mxu1  ;;  %14011 = vmatmul.mubr.bf16.vlgmr.msra.gmra.mxu1 %v18341_v36  ;;  %14037 = vmatprep.subr.bf16.mxu0 %v16285_v52  ;;  %v3637_v36 = vld [vmem:[#allocation7 + $0x2518] sm:$0xff] }
 0x7e5   :  { %v18627_v63 = vadd.f32 %v13766_v55, %v13726_v21  ;;  %14061 = vmatpush1.bf16.msra.mxu1 %v16356_v8  ;;  %14092 = vmatprep.mubr.bf16.mxu1 %v18343_v51  ;;  %v16333_v46 = vcombine.high %v3637_v36, %v3641_v26  ;;  %v16332_v33 = vcombine.low %v3637_v36, %v3641_v26  ;;  %v3625_v28 = vld [vmem:[#allocation7 + $0x24b8] sm:$0xff] }
 0x7e6   :  { %v13768_v6 = vpop.f32.mrf.mxu1  ;;  %14062 = vmatprep.subr.bf16.mxu1 %v16349_v58  ;;  %v3549_v60 = vld [vmem:[#allocation7 + $0x2258] sm:$0xff]  ;;  %v16317_v17 = vcombine.high %v3621_v48, %v3625_v28  ;;  %v16316_v52 = vcombine.low %v3621_v48, %v3625_v28 }
 0x7e7   :  { %v18630_v2 = vadd.f32 %v13768_v6, %v13728_v14  ;;  %14038 = vmatpush2.bf16.msra.mxu0 %v16284_v61  ;;  %v3553_v34 = vld [vmem:[#allocation7 + $0x2278] sm:$0xff] }
 0x7e8   :  { %v13770_v45 = vpop.f32.mrf.mxu1  ;;  %14039 = vmatprep.subr.bf16.mxu0 %v16277_v32  ;;  %v3613_v23 = vld [vmem:[#allocation7 + $0x2458] sm:$0xff]  ;;  %v16245_v18 = vcombine.high %v3549_v60, %v3553_v34  ;;  %v16244_v42 = vcombine.low %v3549_v60, %v3553_v34 }
 0x7e9   :  { %14063 = vmatpush1.bf16.msra.mxu1 %v16348_v22  ;;  %v3617_v16 = vld [vmem:[#allocation7 + $0x2478] sm:$0xff] }
 0x7ea   :  { %v13771_v51 = vpop.f32.mrf.mxu1  ;;  %14064 = vmatprep.subr.bf16.mxu1 %v16341_v25  ;;  %v3541_v0 = vld [vmem:[#allocation7 + $0x2218] sm:$0xff]  ;;  %v16309_v31 = vcombine.high %v3613_v23, %v3617_v16  ;;  %v16308_v24 = vcombine.low %v3613_v23, %v3617_v16 }
 0x7eb   :  { %14040 = vmatpush2.bf16.msra.mxu0 %v16276_v20  ;;  %v3545_v8 = vld [vmem:[#allocation7 + $0x2238] sm:$0xff] }
 0x7ec   :  { %14041 = vmatprep.subr.bf16.mxu0 %v16269_v29  ;;  %v3605_v58 = vld [vmem:[#allocation7 + $0x2418] sm:$0xff]  ;;  %v16237_v61 = vcombine.high %v3541_v0, %v3545_v8  ;;  %v16236_v14 = vcombine.low %v3541_v0, %v3545_v8 }
 0x7ed   :  { %14065 = vmatpush1.bf16.msra.mxu1 %v16340_v30  ;;  %v3609_v21 = vld [vmem:[#allocation7 + $0x2438] sm:$0xff] }
 0x7ee   :  { %14066 = vmatprep.subr.bf16.mxu1 %v16333_v46  ;;  %v3789_v47 = vld [vmem:[#allocation7 + $0x29d8] sm:$0xff]  ;;  %v16301_v32 = vcombine.high %v3605_v58, %v3609_v21  ;;  %v16300_v6 = vcombine.low %v3605_v58, %v3609_v21 }
 0x7ef   :  { %14042 = vmatpush2.bf16.msra.mxu0 %v16268_v41  ;;  %v3793_v55 = vld [vmem:[#allocation7 + $0x29f8] sm:$0xff] }
 0x7f0   :  { %14043 = vmatprep.subr.bf16.mxu0 %v16261_v44  ;;  %v3725_v22 = vld [vmem:[#allocation7 + $0x27d8] sm:$0xff]  ;;  %v16485_v3 = vcombine.high %v3789_v47, %v3793_v55  ;;  %v16484_v26 = vcombine.low %v3789_v47, %v3793_v55 }
 0x7f1   :  { %14067 = vmatpush1.bf16.msra.mxu1 %v16332_v33  ;;  %v3729_v19 = vld [vmem:[#allocation7 + $0x27f8] sm:$0xff] }
 0x7f2   :  { %14068 = vmatprep.subr.bf16.mxu1 %v16325_v4  ;;  %v3781_v25 = vld [vmem:[#allocation7 + $0x2998] sm:$0xff]  ;;  %v16421_v36 = vcombine.high %v3725_v22, %v3729_v19  ;;  %v16420_v38 = vcombine.low %v3725_v22, %v3729_v19 }
 0x7f3   :  { %14044 = vmatpush2.bf16.msra.mxu0 %v16260_v11  ;;  %v3785_v20 = vld [vmem:[#allocation7 + $0x29b8] sm:$0xff] }
 0x7f4   :  { %14045 = vmatprep.subr.bf16.mxu0 %v16253_v12  ;;  %v3717_v45 = vld [vmem:[#allocation7 + $0x2798] sm:$0xff]  ;;  %v16477_v30 = vcombine.high %v3781_v25, %v3785_v20  ;;  %v16476_v56 = vcombine.low %v3781_v25, %v3785_v20 }
 0x7f5   :  { %14069 = vmatpush1.bf16.msra.mxu1 %v16324_v5  ;;  %v3721_v29 = vld [vmem:[#allocation7 + $0x27b8] sm:$0xff] }
 0x7f6   :  { %14070 = vmatprep.subr.bf16.mxu1 %v16317_v17  ;;  %v3773_v39 = vld [vmem:[#allocation7 + $0x2958] sm:$0xff]  ;;  %v16413_v41 = vcombine.high %v3717_v45, %v3721_v29  ;;  %v16412_v11 = vcombine.low %v3717_v45, %v3721_v29 }
 0x7f7   :  { %14046 = vmatpush2.bf16.msra.mxu0 %v16252_v50  ;;  %v3777_v51 = vld [vmem:[#allocation7 + $0x2978] sm:$0xff] }
 0x7f8   :  { %14047 = vmatprep.subr.bf16.mxu0 %v16245_v18  ;;  %v3709_v44 = vld [vmem:[#allocation7 + $0x2758] sm:$0xff]  ;;  %v16469_v57 = vcombine.high %v3773_v39, %v3777_v51  ;;  %v16468_v12 = vcombine.low %v3773_v39, %v3777_v51 }
 0x7f9   :  { %14071 = vmatpush1.bf16.msra.mxu1 %v16316_v52  ;;  %v3713_v33 = vld [vmem:[#allocation7 + $0x2778] sm:$0xff] }
 0x7fa   :  { %14072 = vmatprep.subr.bf16.mxu1 %v16309_v31  ;;  %v3769_v48 = vld [vmem:[#allocation7 + $0x2938] sm:$0xff]  ;;  %v16404_v17 = vcombine.low %v3709_v44, %v3713_v33 }
 0x7fb   :  { %14048 = vmatpush2.bf16.msra.mxu0 %v16244_v42  ;;  %v3701_v5 = vld [vmem:[#allocation7 + $0x2718] sm:$0xff] }
 0x7fc   :  { %14049 = vmatprep.subr.bf16.mxu0 %v16237_v61  ;;  %v3757_v50 = vld [vmem:[#allocation7 + $0x28d8] sm:$0xff] }
 0x7fd   :  { %14073 = vmatpush1.bf16.msra.mxu1 %v16308_v24  ;;  %v3761_v23 = vld [vmem:[#allocation7 + $0x28f8] sm:$0xff] }
 0x7fe   :  { %14074 = vmatprep.subr.bf16.mxu1 %v16301_v32  ;;  %v3693_v18 = vld [vmem:[#allocation7 + $0x26d8] sm:$0xff]  ;;  %v16453_v0 = vcombine.high %v3757_v50, %v3761_v23  ;;  %v16452_v21 = vcombine.low %v3757_v50, %v3761_v23 }
 0x7ff   :  { %14050 = vmatpush2.bf16.msra.mxu0 %v16236_v14  ;;  %v3697_v52 = vld [vmem:[#allocation7 + $0x26f8] sm:$0xff] }
 0x800   :  { %14101 = vmatprep.subr.bf16.mxu0 %v16485_v3  ;;  %v3749_v31 = vld [vmem:[#allocation7 + $0x2898] sm:$0xff]  ;;  %v16389_v58 = vcombine.high %v3693_v18, %v3697_v52  ;;  %v16388_v55 = vcombine.low %v3693_v18, %v3697_v52 }
 0x801   :  { %14075 = vmatpush1.bf16.msra.mxu1 %v16300_v6  ;;  %v3753_v42 = vld [vmem:[#allocation7 + $0x28b8] sm:$0xff] }
 0x802   :  { %v13807_v46 = vpop.f32.mrf.mxu0  ;;  %14052 = vmatmul.mubr.bf16.vlgmr.msra.gmra.mxu0 %v18375_v59  ;;  %14076 = vmatprep.subr.bf16.mxu1 %v16421_v36  ;;  %v3765_v59 = vld [vmem:[#allocation7 + $0x2918] sm:$0xff]  ;;  %v16445_v47 = vcombine.high %v3749_v31, %v3753_v42  ;;  %v16444_v19 = vcombine.low %v3749_v31, %v3753_v42 }
 0x803   :  { %v18634_v35 = vadd.f32 %v13807_v46, %v18627_v63  ;;  %14102 = vmatpush1.bf16.msra.mxu0 %v16484_v26  ;;  %14133 = vmatprep.mubr.bf16.mxu0 %v18378_v10  ;;  %v16405_v63 = vcombine.high %v3709_v44, %v3713_v33  ;;  %v3705_v10 = vld [vmem:[#allocation7 + $0x2738] sm:$0xff]  ;;  %v16461_v34 = vcombine.high %v3765_v59, %v3769_v48 }
 0x804   :  { %v13809_v7 = vpop.f32.mrf.mxu0  ;;  %14103 = vmatprep.subr.bf16.mxu0 %v16477_v30  ;;  %v16460_v16 = vcombine.low %v3765_v59, %v3769_v48  ;;  %v16396_v8 = vcombine.low %v3701_v5, %v3705_v10  ;;  %v3685_v61 = vld [vmem:[#allocation7 + $0x2698] sm:$0xff] }
 0x805   :  { %v18638_v4 = vadd.f32 %v13809_v7, %v18630_v2  ;;  %14077 = vmatpush2.bf16.msra.mxu1 %v16420_v38  ;;  %v16397_v2 = vcombine.high %v3701_v5, %v3705_v10  ;;  %v3689_v24 = vld [vmem:[#allocation7 + $0x26b8] sm:$0xff] }
 0x806   :  { %v13811_v28 = vpop.f32.mrf.mxu0  ;;  %14078 = vmatprep.subr.bf16.mxu1 %v16413_v41  ;;  %v3741_v32 = vld [vmem:[#allocation7 + $0x2858] sm:$0xff]  ;;  %v16381_v22 = vcombine.high %v3685_v61, %v3689_v24  ;;  %v16380_v20 = vcombine.low %v3685_v61, %v3689_v24 }
 0x807   :  { %14104 = vmatpush1.bf16.msra.mxu0 %v16476_v56  ;;  %v3745_v14 = vld [vmem:[#allocation7 + $0x2878] sm:$0xff] }
 0x808   :  { %v13812_v60 = vpop.f32.mrf.mxu0  ;;  %14105 = vmatprep.subr.bf16.mxu0 %v16469_v57  ;;  %v3677_v3 = vld [vmem:[#allocation7 + $0x2658] sm:$0xff]  ;;  %v16437_v25 = vcombine.high %v3741_v32, %v3745_v14  ;;  %v16436_v29 = vcombine.low %v3741_v32, %v3745_v14 }
 0x809   :  { %14079 = vmatpush2.bf16.msra.mxu1 %v16412_v11  ;;  %v3681_v6 = vld [vmem:[#allocation7 + $0x2678] sm:$0xff] }
 0x80a   :  { %14080 = vmatprep.subr.bf16.mxu1 %v16405_v63  ;;  %v3733_v36 = vld [vmem:[#allocation7 + $0x2818] sm:$0xff]  ;;  %v16373_v45 = vcombine.high %v3677_v3, %v3681_v6  ;;  %v16372_v51 = vcombine.low %v3677_v3, %v3681_v6 }
 0x80b   :  { %14106 = vmatpush1.bf16.msra.mxu0 %v16468_v12  ;;  %v3737_v26 = vld [vmem:[#allocation7 + $0x2838] sm:$0xff] }
 0x80c   :  { %14107 = vmatprep.subr.bf16.mxu0 %v16461_v34  ;;  %v3669_v30 = vld [vmem:[#allocation7 + $0x2618] sm:$0xff]  ;;  %v16429_v39 = vcombine.high %v3733_v36, %v3737_v26  ;;  %v16428_v44 = vcombine.low %v3733_v36, %v3737_v26 }
 0x80d   :  { %14081 = vmatpush2.bf16.msra.mxu1 %v16404_v17  ;;  %v3673_v38 = vld [vmem:[#allocation7 + $0x2638] sm:$0xff] }
 0x80e   :  { %14082 = vmatprep.subr.bf16.mxu1 %v16397_v2  ;;  %v3853_v46 = vld [vmem:[#allocation7 + $0x2bd8] sm:$0xff]  ;;  %v16365_v56 = vcombine.high %v3669_v30, %v3673_v38  ;;  %v16364_v11 = vcombine.low %v3669_v30, %v3673_v38 }
 0x80f   :  { %14108 = vmatpush1.bf16.msra.mxu0 %v16460_v16  ;;  %v3857_v41 = vld [vmem:[#allocation7 + $0x2bf8] sm:$0xff] }
 0x810   :  { %14109 = vmatprep.subr.bf16.mxu0 %v16453_v0  ;;  %v3917_v33 = vld [vmem:[#allocation7 + $0x2dd8] sm:$0xff]  ;;  %v16549_v57 = vcombine.high %v3853_v46, %v3857_v41  ;;  %v16548_v63 = vcombine.low %v3853_v46, %v3857_v41 }
 0x811   :  { %14083 = vmatpush2.bf16.msra.mxu1 %v16396_v8  ;;  %v3921_v7 = vld [vmem:[#allocation7 + $0x2df8] sm:$0xff] }
 0x812   :  { %14084 = vmatprep.subr.bf16.mxu1 %v16389_v58  ;;  %v3845_v59 = vld [vmem:[#allocation7 + $0x2b98] sm:$0xff]  ;;  %v16613_v28 = vcombine.high %v3917_v33, %v3921_v7  ;;  %v16612_v60 = vcombine.low %v3917_v33, %v3921_v7 }
 0x813   :  { %14110 = vmatpush1.bf16.msra.mxu0 %v16452_v21  ;;  %v3849_v48 = vld [vmem:[#allocation7 + $0x2bb8] sm:$0xff] }
 0x814   :  { %14111 = vmatprep.subr.bf16.mxu0 %v16445_v47  ;;  %v3909_v12 = vld [vmem:[#allocation7 + $0x2d98] sm:$0xff]  ;;  %v16541_v10 = vcombine.high %v3845_v59, %v3849_v48  ;;  %v16540_v23 = vcombine.low %v3845_v59, %v3849_v48 }
 0x815   :  { %14085 = vmatpush2.bf16.msra.mxu1 %v16388_v55  ;;  %v3913_v5 = vld [vmem:[#allocation7 + $0x2db8] sm:$0xff] }
 0x816   :  { %14086 = vmatprep.subr.bf16.mxu1 %v16381_v22  ;;  %v3837_v34 = vld [vmem:[#allocation7 + $0x2b58] sm:$0xff]  ;;  %v16605_v50 = vcombine.high %v3909_v12, %v3913_v5  ;;  %v16604_v8 = vcombine.low %v3909_v12, %v3913_v5 }
 0x817   :  { %14112 = vmatpush1.bf16.msra.mxu0 %v16444_v19  ;;  %v3841_v17 = vld [vmem:[#allocation7 + $0x2b78] sm:$0xff] }
 0x818   :  { %14113 = vmatprep.subr.bf16.mxu0 %v16437_v25  ;;  %v3901_v2 = vld [vmem:[#allocation7 + $0x2d58] sm:$0xff]  ;;  %v16533_v52 = vcombine.high %v3837_v34, %v3841_v17  ;;  %v16532_v24 = vcombine.low %v3837_v34, %v3841_v17 }
 0x819   :  { %14087 = vmatpush2.bf16.msra.mxu1 %v16380_v20  ;;  %v3905_v16 = vld [vmem:[#allocation7 + $0x2d78] sm:$0xff] }
 0x81a   :  { %14088 = vmatprep.subr.bf16.mxu1 %v16373_v45  ;;  %v3829_v31 = vld [vmem:[#allocation7 + $0x2b18] sm:$0xff]  ;;  %v16597_v21 = vcombine.high %v3901_v2, %v3905_v16  ;;  %v16596_v32 = vcombine.low %v3901_v2, %v3905_v16 }
 0x81b   :  { %14114 = vmatpush1.bf16.msra.mxu0 %v16436_v29  ;;  %v3833_v42 = vld [vmem:[#allocation7 + $0x2b38] sm:$0xff] }
 0x81c   :  { %14115 = vmatprep.subr.bf16.mxu0 %v16429_v39  ;;  %v3897_v47 = vld [vmem:[#allocation7 + $0x2d38] sm:$0xff]  ;;  %v16524_v3 = vcombine.low %v3829_v31, %v3833_v42 }
 0x81d   :  { %14089 = vmatpush2.bf16.msra.mxu1 %v16372_v51  ;;  %v3821_v14 = vld [vmem:[#allocation7 + $0x2ad8] sm:$0xff] }
 0x81e   :  { %14090 = vmatprep.subr.bf16.mxu1 %v16365_v56  ;;  %v3885_v6 = vld [vmem:[#allocation7 + $0x2cd8] sm:$0xff] }
 0x81f   :  { %14116 = vmatpush1.bf16.msra.mxu0 %v16428_v44  ;;  %v3889_v25 = vld [vmem:[#allocation7 + $0x2cf8] sm:$0xff] }
 0x820   :  { %14117 = vmatprep.subr.bf16.mxu0 %v16549_v57  ;;  %v3813_v36 = vld [vmem:[#allocation7 + $0x2a98] sm:$0xff]  ;;  %v16581_v45 = vcombine.high %v3885_v6, %v3889_v25  ;;  %v16580_v51 = vcombine.low %v3885_v6, %v3889_v25 }
 0x821   :  { %14091 = vmatpush2.bf16.msra.mxu1 %v16364_v11  ;;  %v3817_v26 = vld [vmem:[#allocation7 + $0x2ab8] sm:$0xff] }
 0x822   :  { %14142 = vmatprep.subr.bf16.mxu1 %v16613_v28  ;;  %v3877_v30 = vld [vmem:[#allocation7 + $0x2c98] sm:$0xff]  ;;  %v16509_v39 = vcombine.high %v3813_v36, %v3817_v26  ;;  %v16508_v44 = vcombine.low %v3813_v36, %v3817_v26 }
 0x823   :  { %14118 = vmatpush2.bf16.msra.mxu0 %v16548_v63  ;;  %v3881_v38 = vld [vmem:[#allocation7 + $0x2cb8] sm:$0xff] }
 0x824   :  { %v13848_v18 = vpop.f32.mrf.mxu1  ;;  %14093 = vmatmul.mubr.bf16.vlgmr.msra.gmra.mxu1 %v18371_v27  ;;  %14119 = vmatprep.subr.bf16.mxu0 %v16541_v10  ;;  %v3893_v27 = vld [vmem:[#allocation7 + $0x2d18] sm:$0xff]  ;;  %v16573_v56 = vcombine.high %v3877_v30, %v3881_v38  ;;  %v16572_v11 = vcombine.low %v3877_v30, %v3881_v38 }
 0x825   :  { %v18642_v0 = vadd.f32 %v13848_v18, %v18634_v35  ;;  %14143 = vmatpush1.bf16.msra.mxu1 %v16612_v60  ;;  %14174 = vmatprep.mubr.bf16.mxu1 %v18373_v54  ;;  %v16525_v35 = vcombine.high %v3829_v31, %v3833_v42  ;;  %v3825_v54 = vld [vmem:[#allocation7 + $0x2af8] sm:$0xff]  ;;  %v16589_v19 = vcombine.high %v3893_v27, %v3897_v47 }
 0x826   :  { %v13850_v58 = vpop.f32.mrf.mxu1  ;;  %14144 = vmatprep.subr.bf16.mxu1 %v16605_v50  ;;  %v16588_v20 = vcombine.low %v3893_v27, %v3897_v47  ;;  %v16516_v29 = vcombine.low %v3821_v14, %v3825_v54  ;;  %v3805_v46 = vld [vmem:[#allocation7 + $0x2a58] sm:$0xff] }
 0x827   :  { %v18646_v61 = vadd.f32 %v13850_v58, %v18638_v4  ;;  %14120 = vmatpush2.bf16.msra.mxu0 %v16540_v23  ;;  %v16517_v4 = vcombine.high %v3821_v14, %v3825_v54  ;;  %v3809_v41 = vld [vmem:[#allocation7 + $0x2a78] sm:$0xff] }
 0x828   :  { %v13852_v55 = vpop.f32.mrf.mxu1  ;;  %14121 = vmatprep.subr.bf16.mxu0 %v16533_v52  ;;  %v3869_v33 = vld [vmem:[#allocation7 + $0x2c58] sm:$0xff]  ;;  %v16501_v57 = vcombine.high %v3805_v46, %v3809_v41  ;;  %v16500_v63 = vcombine.low %v3805_v46, %v3809_v41 }
 0x829   :  { %14145 = vmatpush1.bf16.msra.mxu1 %v16604_v8  ;;  %v3873_v7 = vld [vmem:[#allocation7 + $0x2c78] sm:$0xff] }
 0x82a   :  { %v13853_v22 = vpop.f32.mrf.mxu1  ;;  %14146 = vmatprep.subr.bf16.mxu1 %v16597_v21  ;;  %v3797_v59 = vld [vmem:[#allocation7 + $0x2a18] sm:$0xff]  ;;  %v16565_v28 = vcombine.high %v3869_v33, %v3873_v7  ;;  %v16564_v60 = vcombine.low %v3869_v33, %v3873_v7 }
 0x82b   :  { %14122 = vmatpush2.bf16.msra.mxu0 %v16532_v24  ;;  %v3801_v48 = vld [vmem:[#allocation7 + $0x2a38] sm:$0xff] }
 0x82c   :  { %14123 = vmatprep.subr.bf16.mxu0 %v16525_v35  ;;  %v3861_v12 = vld [vmem:[#allocation7 + $0x2c18] sm:$0xff]  ;;  %v16493_v10 = vcombine.high %v3797_v59, %v3801_v48  ;;  %v16492_v23 = vcombine.low %v3797_v59, %v3801_v48 }
 0x82d   :  { %14147 = vmatpush1.bf16.msra.mxu1 %v16596_v32  ;;  %v3865_v5 = vld [vmem:[#allocation7 + $0x2c38] sm:$0xff] }
 0x82e   :  { %14148 = vmatprep.subr.bf16.mxu1 %v16589_v19  ;;  %v4045_v34 = vld [vmem:[#allocation7 + $0x31d8] sm:$0xff]  ;;  %v16557_v50 = vcombine.high %v3861_v12, %v3865_v5  ;;  %v16556_v52 = vcombine.low %v3861_v12, %v3865_v5 }
 0x82f   :  { %14124 = vmatpush2.bf16.msra.mxu0 %v16524_v3  ;;  %v4049_v17 = vld [vmem:[#allocation7 + $0x31f8] sm:$0xff] }
 0x830   :  { %14125 = vmatprep.subr.bf16.mxu0 %v16517_v4  ;;  %v3981_v2 = vld [vmem:[#allocation7 + $0x2fd8] sm:$0xff]  ;;  %v16741_v18 = vcombine.high %v4045_v34, %v4049_v17  ;;  %v16740_v58 = vcombine.low %v4045_v34, %v4049_v17 }
 0x831   :  { %14149 = vmatpush1.bf16.msra.mxu1 %v16588_v20  ;;  %v3985_v16 = vld [vmem:[#allocation7 + $0x2ff8] sm:$0xff] }
 0x832   :  { %14150 = vmatprep.subr.bf16.mxu1 %v16581_v45  ;;  %v4037_v8 = vld [vmem:[#allocation7 + $0x3198] sm:$0xff]  ;;  %v16677_v42 = vcombine.high %v3981_v2, %v3985_v16  ;;  %v16676_v47 = vcombine.low %v3981_v2, %v3985_v16 }
 0x833   :  { %14126 = vmatpush2.bf16.msra.mxu0 %v16516_v29  ;;  %v4041_v31 = vld [vmem:[#allocation7 + $0x31b8] sm:$0xff] }
 0x834   :  { %14127 = vmatprep.subr.bf16.mxu0 %v16509_v39  ;;  %v3973_v21 = vld [vmem:[#allocation7 + $0x2f98] sm:$0xff]  ;;  %v16733_v27 = vcombine.high %v4037_v8, %v4041_v31  ;;  %v16732_v22 = vcombine.low %v4037_v8, %v4041_v31 }
 0x835   :  { %14151 = vmatpush1.bf16.msra.mxu1 %v16580_v51  ;;  %v3977_v24 = vld [vmem:[#allocation7 + $0x2fb8] sm:$0xff] }
 0x836   :  { %14152 = vmatprep.subr.bf16.mxu1 %v16573_v56  ;;  %v4029_v55 = vld [vmem:[#allocation7 + $0x3158] sm:$0xff]  ;;  %v16669_v14 = vcombine.high %v3973_v21, %v3977_v24  ;;  %v16668_v20 = vcombine.low %v3973_v21, %v3977_v24 }
 0x837   :  { %14128 = vmatpush2.bf16.msra.mxu0 %v16508_v44  ;;  %v4033_v35 = vld [vmem:[#allocation7 + $0x3178] sm:$0xff] }
 0x838   :  { %14129 = vmatprep.subr.bf16.mxu0 %v16501_v57  ;;  %v3965_v19 = vld [vmem:[#allocation7 + $0x2f58] sm:$0xff]  ;;  %v16725_v25 = vcombine.high %v4029_v55, %v4033_v35  ;;  %v16724_v45 = vcombine.low %v4029_v55, %v4033_v35  ;;  %v17327_v55 = vld [vmem:[#allocation10 + $0xf8] sm:$0xff]   ;;  %v14227_v35 = vmax.f32 %v18546_v53, 0.0 }
 0x839   :  { %14153 = vmatpush1.bf16.msra.mxu1 %v16572_v11  ;;  %v3969_v3 = vld [vmem:[#allocation7 + $0x2f78] sm:$0xff] }
 0x83a   :  { %14154 = vmatprep.subr.bf16.mxu1 %v16565_v28  ;;  %v4025_v36 = vld [vmem:[#allocation7 + $0x3138] sm:$0xff]  ;;  %v16660_v39 = vcombine.low %v3965_v19, %v3969_v3 }
 0x83b   :  { %14130 = vmatpush2.bf16.msra.mxu0 %v16500_v63  ;;  %v3957_v29 = vld [vmem:[#allocation7 + $0x2f18] sm:$0xff] }
 0x83c   :  { %14131 = vmatprep.subr.bf16.mxu0 %v16493_v10  ;;  %v3961_v30 = vld [vmem:[#allocation7 + $0x2f38] sm:$0xff] }
 0x83d   :  { %14155 = vmatpush1.bf16.msra.mxu1 %v16564_v60  ;;  %v4013_v51 = vld [vmem:[#allocation7 + $0x30d8] sm:$0xff]  ;;  %v16652_v7 = vcombine.low %v3957_v29, %v3961_v30 }
 0x83e   :  { %14156 = vmatprep.subr.bf16.mxu1 %v16557_v50  ;;  %v4017_v46 = vld [vmem:[#allocation7 + $0x30f8] sm:$0xff] }
 0x83f   :  { %14132 = vmatpush2.bf16.msra.mxu0 %v16492_v23  ;;  %v3949_v56 = vld [vmem:[#allocation7 + $0x2ed8] sm:$0xff]  ;;  %v16709_v33 = vcombine.high %v4013_v51, %v4017_v46  ;;  %v16708_v48 = vcombine.low %v4013_v51, %v4017_v46  ;;  %v17340_v51 = vld [vmem:[#allocation10 + $0xa0] sm:$0xff]   ;;  %v17343_v46 = vld [vmem:[#allocation10 + $0xd8] sm:$0xff]  }
 0x840   :  { %14183 = vmatprep.subr.bf16.mxu0 %v16741_v18  ;;  %v3953_v44 = vld [vmem:[#allocation7 + $0x2ef8] sm:$0xff] }
 0x841   :  { %14157 = vmatpush1.bf16.msra.mxu1 %v16556_v52  ;;  %v4005_v57 = vld [vmem:[#allocation7 + $0x3098] sm:$0xff]  ;;  %v16645_v59 = vcombine.high %v3949_v56, %v3953_v44  ;;  %v16644_v5 = vcombine.low %v3949_v56, %v3953_v44  ;;  %v17346_v44 = vld [vmem:[#allocation10 + $0x18] sm:$0xff]  }
 0x842   :  { %v13889_v32 = vpop.f32.mrf.mxu0  ;;  %14134 = vmatmul.mubr.bf16.vlgmr.msra.gmra.mxu0 %v18397_v62  ;;  %14158 = vmatprep.subr.bf16.mxu1 %v16677_v42  ;;  %v4021_v62 = vld [vmem:[#allocation7 + $0x3118] sm:$0xff] }
 0x843   :  { %v18650_v54 = vadd.f32 %v13889_v32, %v18642_v0  ;;  %14184 = vmatpush1.bf16.msra.mxu0 %v16740_v58  ;;  %14215 = vmatprep.mubr.bf16.mxu0 %v17558_v13  ;;  %v16661_v0 = vcombine.high %v3965_v19, %v3969_v3  ;;  %v16717_v13 = vcombine.high %v4021_v62, %v4025_v36  ;;  %v4009_v11 = vld [vmem:[#allocation7 + $0x30b8] sm:$0xff]  ;;  %v17328_v19 = vld [vmem:[#allocation10 + $0xb8] sm:$0xff]  }
 0x844   :  { %v13891_v6 = vpop.f32.mrf.mxu0  ;;  %14185 = vmatprep.subr.bf16.mxu0 %v16733_v27  ;;  %v16716_v41 = vcombine.low %v4021_v62, %v4025_v36  ;;  %v3941_v28 = vld [vmem:[#allocation7 + $0x2e98] sm:$0xff]  ;;  %v16701_v12 = vcombine.high %v4005_v57, %v4009_v11  ;;  %v16700_v17 = vcombine.low %v4005_v57, %v4009_v11  ;;  %v17351_v57 = vld [vmem:[#allocation10 + $0xc8] sm:$0xff]  }
 0x845   :  { %v18654_v4 = vadd.f32 %v13891_v6, %v18646_v61  ;;  %14159 = vmatpush2.bf16.msra.mxu1 %v16676_v47  ;;  %v16653_v61 = vcombine.high %v3957_v29, %v3961_v30  ;;  %v3945_v63 = vld [vmem:[#allocation7 + $0x2eb8] sm:$0xff]  ;;  %v14235_v6 = vpack.c.bf16 %v14227_v35, %v14227_v35  ;;  %v17336_v30 = vld [vmem:[#allocation10 + $0xa8] sm:$0xff]   ;;  %v17365_v35 = vld [vmem:[#allocation10 + $0x160] sm:$0xff]  }
 0x846   :  { %v13893_v26 = vpop.f32.mrf.mxu0  ;;  %14160 = vmatprep.subr.bf16.mxu1 %v16669_v14  ;;  %v3997_v10 = vld [vmem:[#allocation7 + $0x3058] sm:$0xff]  ;;  %v16637_v34 = vcombine.high %v3941_v28, %v3945_v63  ;;  %v16636_v16 = vcombine.low %v3941_v28, %v3945_v63  ;;  %v17329_v14 = vld [vmem:[#allocation10 + $0x78] sm:$0xff]   ;;  %v17355_v28 = vld [vmem:[#allocation10 + $0xc0] sm:$0xff]  }
 0x847   :  { %14186 = vmatpush1.bf16.msra.mxu0 %v16732_v22  ;;  %v4001_v60 = vld [vmem:[#allocation7 + $0x3078] sm:$0xff]  ;;  %v14225_v22 = vmax.f32 %v18448_v37, 0.0  ;;  %v17335_v37 = vld [vmem:[#allocation10 + $0xe8] sm:$0xff]  }
 0x848   :  { %v13894_v38 = vpop.f32.mrf.mxu0  ;;  %14187 = vmatprep.subr.bf16.mxu0 %v16725_v25  ;;  %v3933_v50 = vld [vmem:[#allocation7 + $0x2e58] sm:$0xff]  ;;  %v16693_v2 = vcombine.high %v3997_v10, %v4001_v60  ;;  %v16692_v31 = vcombine.low %v3997_v10, %v4001_v60  ;;  %v17330_v25 = vld [vmem:[#allocation10 + $0x38] sm:$0xff]   ;;  %v17354_v63 = vld [vmem:[#allocation10 + $0x8] sm:$0xff]   ;;  %v14226_v10 = vmax.f32 %v18543_v43, 0.0 }
 0x849   :  { %14161 = vmatpush2.bf16.msra.mxu1 %v16668_v20  ;;  %v3937_v23 = vld [vmem:[#allocation7 + $0x2e78] sm:$0xff]  ;;  %v14233_v62 = vpack.c.bf16 %v14225_v22, %v14225_v22  ;;  %v17358_v60 = vld [vmem:[#allocation10] sm:$0xff]  }
 0x84a   :  { %14162 = vmatprep.subr.bf16.mxu1 %v16661_v0  ;;  %v3989_v18 = vld [vmem:[#allocation7 + $0x3018] sm:$0xff]  ;;  %v16629_v8 = vcombine.high %v3933_v50, %v3937_v23  ;;  %v16628_v24 = vcombine.low %v3933_v50, %v3937_v23  ;;  %v14229_v50 = vmax.f32 %v18614_v1, 0.0  ;;  %v14234_v23 = vpack.c.bf16 %v14226_v10, %v14226_v10  ;;  %v17366_v22 = vld [vmem:[#allocation10 + $0x120] sm:$0xff]  }
 0x84b   :  { %14188 = vmatpush1.bf16.msra.mxu0 %v16724_v45  ;;  %v3993_v52 = vld [vmem:[#allocation7 + $0x3038] sm:$0xff] }
 0x84c   :  { %14189 = vmatprep.subr.bf16.mxu0 %v16717_v13  ;;  %v3925_v42 = vld [vmem:[#allocation7 + $0x2e18] sm:$0xff]  ;;  %v16685_v21 = vcombine.high %v3989_v18, %v3993_v52  ;;  %v16684_v47 = vcombine.low %v3989_v18, %v3993_v52  ;;  %v17339_v13 = vld [vmem:[#allocation10 + $0xe0] sm:$0xff]  }
 0x84d   :  { %14163 = vmatpush2.bf16.msra.mxu1 %v16660_v39  ;;  %v3929_v58 = vld [vmem:[#allocation7 + $0x2e38] sm:$0xff] }
 0x84e   :  { %14164 = vmatprep.subr.bf16.mxu1 %v16653_v61  ;;  %v16621_v27 = vcombine.high %v3925_v42, %v3929_v58  ;;  %v16620_v32 = vcombine.low %v3925_v42, %v3929_v58  ;;  %v17331_v3 = vld [vmem:[#allocation10 + $0xf0] sm:$0xff]   ;;  %v17342_v61 = vld [vmem:[#allocation10 + $0x20] sm:$0xff]   ;;  %v17363_v58 = vld [vmem:[#allocation10 + $0x168] sm:$0xff]  }
 0x84f   :  { %14190 = vmatpush1.bf16.msra.mxu0 %v16716_v41  ;;  %v17333_v20 = vld [vmem:[#allocation10 + $0x70] sm:$0xff]   ;;  %v17345_v41 = vld [vmem:[#allocation10 + $0x58] sm:$0xff]  }
 0x850   :  { %14191 = vmatprep.subr.bf16.mxu0 %v16709_v33  ;;  %v17332_v53 = vld [vmem:[#allocation10 + $0xb0] sm:$0xff]  }
 0x851   :  { %14165 = vmatpush2.bf16.msra.mxu1 %v16652_v7  ;;  %v17334_v0 = vld [vmem:[#allocation10 + $0x30] sm:$0xff]  }
 0x852   :  { %14166 = vmatprep.subr.bf16.mxu1 %v16645_v59  ;;  %v17347_v56 = vld [vmem:[#allocation10 + $0xd0] sm:$0xff]   ;;  %v17353_v59 = vld [vmem:[#allocation10 + $0x48] sm:$0xff]  }
 0x853   :  { %14192 = vmatpush1.bf16.msra.mxu0 %v16708_v48  ;;  %v17349_v33 = vld [vmem:[#allocation10 + $0x50] sm:$0xff]   ;;  %v17352_v48 = vld [vmem:[#allocation10 + $0x88] sm:$0xff]  }
 0x854   :  { %14193 = vmatprep.subr.bf16.mxu0 %v16701_v12  ;;  %v17348_v7 = vld [vmem:[#allocation10 + $0x90] sm:$0xff]   ;;  %v17357_v12 = vld [vmem:[#allocation10 + $0x40] sm:$0xff]  }
 0x855   :  { %14167 = vmatpush2.bf16.msra.mxu1 %v16644_v5  ;;  %v17350_v11 = vld [vmem:[#allocation10 + $0x10] sm:$0xff]   ;;  %v17356_v5 = vld [vmem:[#allocation10 + $0x80] sm:$0xff]  }
 0x856   :  { %14168 = vmatprep.subr.bf16.mxu1 %v16637_v34  ;;  %v14224_v34 = vmax.f32 %v18444_v40, 0.0  ;;  %v17361_v52 = vld [vmem:[#allocation10 + $0x170] sm:$0xff]  }
 0x857   :  { %14194 = vmatpush1.bf16.msra.mxu0 %v16700_v17  ;;  %v17359_v17 = vld [vmem:[#allocation10 + $0x178] sm:$0xff]   ;;  %v17362_v42 = vld [vmem:[#allocation10 + $0x130] sm:$0xff]  }
 0x858   :  { %14195 = vmatprep.subr.bf16.mxu0 %v16693_v2  ;;  %v17360_v2 = vld [vmem:[#allocation10 + $0x138] sm:$0xff]  }
 0x859   :  { %14169 = vmatpush2.bf16.msra.mxu1 %v16636_v16  ;;  %v14232_v16 = vpack.c.bf16 %v14224_v34, %v14224_v34 }
 0x85a   :  { %14170 = vmatprep.subr.bf16.mxu1 %v16629_v8  ;;  %v14237_v8 = vpack.c.bf16 %v14229_v50, %v14229_v50 }
 0x85b   :  { %14196 = vmatpush1.bf16.msra.mxu0 %v16692_v31 }
 0x85c   :  { %14197 = vmatprep.subr.bf16.mxu0 %v16685_v21 }
 0x85d   :  { %14171 = vmatpush2.bf16.msra.mxu1 %v16628_v24  ;;  %v17375_v24 = vld [vmem:[#allocation10 + $0x1f8] sm:$0xff]  }
 0x85e   :  { %14172 = vmatprep.subr.bf16.mxu1 %v16621_v27  ;;  %v17376_v27 = vld [vmem:[#allocation10 + $0x1b8] sm:$0xff]  }
 0x85f   :  { %14198 = vmatpush1.bf16.msra.mxu0 %v16684_v47  ;;  %v17377_v47 = vld [vmem:[#allocation10 + $0x1f0] sm:$0xff]  }
 0x860   :  { %16977 = vmatprep.subr.bf16.mxu0 %v17327_v55  ;;  %v17364_v55 = vld [vmem:[#allocation10 + $0x128] sm:$0xff]  }
 0x861   :  { %14173 = vmatpush2.bf16.msra.mxu1 %v16620_v32  ;;  %v17378_v32 = vld [vmem:[#allocation10 + $0x1b0] sm:$0xff]  }
 0x862   :  { %14216 = vmatmul.mubr.bf16.vlgmr.msra.gmra.mxu0 %v18410_v15  ;;  %16955 = vmatprep.subr.bf16.mxu1 %v17329_v14  ;;  %v17337_v15 = vld [vmem:[#allocation10 + $0x68] sm:$0xff]  }
 0x863   :  { %16978 = vmatpush3.bf16.msra.mxu0 %v17328_v19  ;;  %14831 = vmatprep.mubr.bf16.mxu0 %v14235_v6  ;;  %v17379_v14 = vld [vmem:[#allocation10 + $0x1e8] sm:$0xff]   ;;  %v17367_v19 = vld [vmem:[#allocation10 + $0x158] sm:$0xff]   ;;  %v17381_v6 = vld [vmem:[#allocation10 + $0x1e0] sm:$0xff]  }
 0x864   :  { %v13930_v36 = vpop.f32.mrf.mxu1  ;;  %14175 = vmatmul.mubr.bf16.vlgmr.msra.gmra.mxu1 %v18395_v49  ;;  %16979 = vmatprep.subr.bf16.mxu0 %v17331_v3  ;;  %v17338_v49 = vld [vmem:[#allocation10 + $0x28] sm:$0xff]  }
 0x865   :  { %v18661_v26 = vadd.f32 %v13930_v36, %v18650_v54  ;;  %16956 = vmatpush3.bf16.msra.mxu1 %v17330_v25  ;;  %14791 = vmatprep.mubr.bf16.mxu1 %v14233_v62  ;;  %v17341_v54 = vld [vmem:[#allocation10 + $0x60] sm:$0xff]   ;;  %v17380_v3 = vld [vmem:[#allocation10 + $0x1a8] sm:$0xff]   ;;  %v17368_v25 = vld [vmem:[#allocation10 + $0x118] sm:$0xff]  }
 0x866   :  { %v13932_v45 = vpop.f32.mrf.mxu1  ;;  %16957 = vmatprep.subr.bf16.mxu1 %v17333_v20  ;;  %v17369_v20 = vld [vmem:[#allocation10 + $0x150] sm:$0xff]   ;;  %v17382_v62 = vld [vmem:[#allocation10 + $0x1a0] sm:$0xff]  }
 0x867   :  { %v18664_v29 = vadd.f32 %v13932_v45, %v18654_v4  ;;  %16980 = vmatpush3.bf16.msra.mxu0 %v17332_v53  ;;  %v17344_v4 = vld [vmem:[#allocation10 + $0x98] sm:$0xff]   ;;  %v17370_v36 = vld [vmem:[#allocation10 + $0x110] sm:$0xff]   ;;  %v17374_v45 = vld [vmem:[#allocation10 + $0x100] sm:$0xff]  }
 0x868   :  { %v13934_v38 = vpop.f32.mrf.mxu1  ;;  %16981 = vmatprep.subr.bf16.mxu0 %v17335_v37  ;;  %v17383_v53 = vld [vmem:[#allocation10 + $0x1d8] sm:$0xff]   ;;  %v17371_v37 = vld [vmem:[#allocation10 + $0x148] sm:$0xff]  }
 0x869   :  { %16958 = vmatpush3.bf16.msra.mxu1 %v17334_v0  ;;  %v17373_v0 = vld [vmem:[#allocation10 + $0x140] sm:$0xff]   ;;  %v17385_v38 = vld [vmem:[#allocation10 + $0x1d0] sm:$0xff]  }
 0x86a   :  { %v13935_v39 = vpop.f32.mrf.mxu1  ;;  %16959 = vmatprep.subr.bf16.mxu1 %v17337_v15  ;;  %v14228_v15 = vmax.f32 %v18610_v9, 0.0  ;;  %v17389_v9 = vld [vmem:[#allocation10 + $0x1c0] sm:$0xff]  }
 0x86b   :  { %16982 = vmatpush3.bf16.msra.mxu0 %v17336_v30 }
 0x86c   :  { %16983 = vmatprep.subr.bf16.mxu0 %v17339_v13  ;;  %v14236_v30 = vpack.c.bf16 %v14228_v15, %v14228_v15 }
 0x86d   :  { %16960 = vmatpush3.bf16.msra.mxu1 %v17338_v49  ;;  %v17386_v49 = vld [vmem:[#allocation10 + $0x190] sm:$0xff]  }
 0x86e   :  { %16961 = vmatprep.subr.bf16.mxu1 %v17341_v54 }
 0x86f   :  { %16984 = vmatpush3.bf16.msra.mxu0 %v17340_v51 }
 0x870   :  { %16985 = vmatprep.subr.bf16.mxu0 %v17343_v46  ;;  %v17387_v46 = vld [vmem:[#allocation10 + $0x1c8] sm:$0xff]  }
 0x871   :  { %16962 = vmatpush3.bf16.msra.mxu1 %v17342_v61 }
 0x872   :  { %16963 = vmatprep.subr.bf16.mxu1 %v17345_v41  ;;  %v17388_v41 = vld [vmem:[#allocation10 + $0x188] sm:$0xff]  }
 0x873   :  { %16986 = vmatpush3.bf16.msra.mxu0 %v17344_v4 }
 0x874   :  { %16987 = vmatprep.subr.bf16.mxu0 %v17347_v56  ;;  %v17390_v56 = vld [vmem:[#allocation10 + $0x180] sm:$0xff]  }
 0x875   :  { %16964 = vmatpush3.bf16.msra.mxu1 %v17346_v44 }
 0x876   :  { %16965 = vmatprep.subr.bf16.mxu1 %v17349_v33 }
 0x877   :  { %16988 = vmatpush3.bf16.msra.mxu0 %v17348_v7 }
 0x878   :  { %16989 = vmatprep.subr.bf16.mxu0 %v17351_v57 }
 0x879   :  { %16966 = vmatpush3.bf16.msra.mxu1 %v17350_v11 }
 0x87a   :  { %16967 = vmatprep.subr.bf16.mxu1 %v17353_v59 }
 0x87b   :  { %16990 = vmatpush3.bf16.msra.mxu0 %v17352_v48 }
 0x87c   :  { %16991 = vmatprep.subr.bf16.mxu0 %v17355_v28 }
 0x87d   :  { %16968 = vmatpush3.bf16.msra.mxu1 %v17354_v63 }
 0x87e   :  { %16969 = vmatprep.subr.bf16.mxu1 %v17357_v12 }
 0x87f   :  { %16992 = vmatpush3.bf16.msra.mxu0 %v17356_v5 }
 0x880   :  { %17021 = vmatprep.subr.bf16.mxu0 %v17375_v24 }
 0x881   :  { %16970 = vmatpush3.bf16.msra.mxu1 %v17358_v60 }
 0x882   :  { %v13971_v18 = vpop.f32.mrf.mxu0  ;;  %14832 = vmatmul.mubr.bf16.vlgmr.msra.gmra.mxu0 %v14234_v23  ;;  %16999 = vmatprep.subr.bf16.mxu1 %v17359_v17 }
 0x883   :  { %v13972_v43 = vadd.f32 %v13971_v18, %v18661_v26  ;;  %17022 = vmatpush3.bf16.msra.mxu0 %v17376_v27  ;;  %v17372_v26 = vld [vmem:[#allocation10 + $0x108] sm:$0xff]  }
 0x884   :  { %v13973_v31 = vpop.f32.mrf.mxu0  ;;  %14792 = vmatmul.mubr.bf16.vlgmr.msra.gmra.mxu1 %v14232_v16  ;;  %17023 = vmatprep.subr.bf16.mxu0 %v17377_v47 }
 0x885   :  { %v13974_v40 = vadd.f32 %v13973_v31, %v18664_v29  ;;  %17000 = vmatpush3.bf16.msra.mxu1 %v17360_v2  ;;  %14871 = vmatprep.mubr.bf16.mxu1 %v14237_v8  ;;  %v17384_v29 = vld [vmem:[#allocation10 + $0x198] sm:$0xff]  }
 0x886   :  { %v13975_v1 = vpop.f32.mrf.mxu0  ;;  %17001 = vmatprep.subr.bf16.mxu1 %v17361_v52 }
 0x887   :  { %17024 = vmatpush3.bf16.msra.mxu0 %v17378_v32 }
 0x888   :  { %v13976_v21 = vpop.f32.mrf.mxu0  ;;  %17025 = vmatprep.subr.bf16.mxu0 %v17379_v14 }
 0x889   :  { %17002 = vmatpush3.bf16.msra.mxu1 %v17362_v42 }
 0x88a   :  { %17003 = vmatprep.subr.bf16.mxu1 %v17363_v58 }
 0x88b   :  { %17026 = vmatpush3.bf16.msra.mxu0 %v17380_v3 }
 0x88c   :  { %17027 = vmatprep.subr.bf16.mxu0 %v17381_v6  ;;  %v16742_v6 = vld [vmem:[#allocation11] ss:$0 sm:$0xff] }
 0x88d   :  { %17004 = vmatpush3.bf16.msra.mxu1 %v17364_v55 }
 0x88e   :  { %17005 = vmatprep.subr.bf16.mxu1 %v17365_v35 }
 0x88f   :  { %17028 = vmatpush3.bf16.msra.mxu0 %v17382_v62 }
 0x890   :  { %17029 = vmatprep.subr.bf16.mxu0 %v17383_v53 }
 0x891   :  { %17006 = vmatpush3.bf16.msra.mxu1 %v17366_v22 }
 0x892   :  { %17007 = vmatprep.subr.bf16.mxu1 %v17367_v19 }
 0x893   :  { %17030 = vmatpush3.bf16.msra.mxu0 %v17384_v29 }
 0x894   :  { %17031 = vmatprep.subr.bf16.mxu0 %v17385_v38 }
 0x895   :  { %17008 = vmatpush3.bf16.msra.mxu1 %v17368_v25 }
 0x896   :  { %17009 = vmatprep.subr.bf16.mxu1 %v17369_v20 }
 0x897   :  { %17032 = vmatpush3.bf16.msra.mxu0 %v17386_v49 }
 0x898   :  { %17033 = vmatprep.subr.bf16.mxu0 %v17387_v46 }
 0x899   :  { %17010 = vmatpush3.bf16.msra.mxu1 %v17370_v36 }
 0x89a   :  { %17011 = vmatprep.subr.bf16.mxu1 %v17371_v37 }
 0x89b   :  { %17034 = vmatpush3.bf16.msra.mxu0 %v17388_v41 }
 0x89c   :  { %17035 = vmatprep.subr.bf16.mxu0 %v17389_v9 }
 0x89d   :  { %17012 = vmatpush3.bf16.msra.mxu1 %v17372_v26 }
 0x89e   :  { %17013 = vmatprep.subr.bf16.mxu1 %v17373_v0 }
 0x89f   :  { %17036 = vmatpush3.bf16.msra.mxu0 %v17390_v56 }
 0x8a1   :  { %17014 = vmatpush3.bf16.msra.mxu1 %v17374_v45 }
 0x8a4   :  { %v14012_v13 = vpop.f32.mrf.mxu1  ;;  %14872 = vmatmul.mubr.bf16.vlgmr.msra.gmra.mxu1 %v14236_v30 }
 0x8a5   :  { %v14013_v39 = vadd.f32 %v14012_v13, %v13972_v43 }
 0x8a6   :  { %v14014_v54 = vpop.f32.mrf.mxu1 }
 0x8a7   :  { %v14015_v51 = vadd.f32 %v14014_v54, %v13974_v40 }
 0x8a8   :  { %v14016_v61 = vpop.f32.mrf.mxu1 }
 0x8aa   :  { %v14017_v4 = vpop.f32.mrf.mxu1 }
 0x8c2   :  { %v14053_v44 = vpop.f32.mrf.mxu0 }
 0x8c3   :  { %v14054_v33 = vadd.f32 %v14053_v44, %v14013_v39 }
 0x8c4   :  { %v14055_v7 = vpop.f32.mrf.mxu0 }
 0x8c5   :  { %v14056_v57 = vadd.f32 %v14055_v7, %v14015_v51 }
 0x8c6   :  { %v14057_v11 = vpop.f32.mrf.mxu0 }
 0x8c8   :  { %v14058_v59 = vpop.f32.mrf.mxu0 }
 0x8e4   :  { %v14094_v48 = vpop.f32.mrf.mxu1 }
 0x8e5   :  { %v14095_v17 = vadd.f32 %v14094_v48, %v14054_v33 }
 0x8e6   :  { %v14096_v28 = vpop.f32.mrf.mxu1 }
 0x8e7   :  { %v14097_v23 = vadd.f32 %v14096_v28, %v14056_v57 }
 0x8e8   :  { %v14098_v63 = vpop.f32.mrf.mxu1 }
 0x8ea   :  { %v14099_v12 = vpop.f32.mrf.mxu1 }
 0x902   :  { %v14135_v5 = vpop.f32.mrf.mxu0 }
 0x903   :  { %v14136_v2 = vadd.f32 %v14135_v5, %v14095_v17 }
 0x904   :  { %v14137_v10 = vpop.f32.mrf.mxu0 }
 0x905   :  { %v14138_v52 = vadd.f32 %v14137_v10, %v14097_v23 }
 0x906   :  { %v14139_v60 = vpop.f32.mrf.mxu0 }
 0x908   :  { %v14140_v34 = vpop.f32.mrf.mxu0 }
 0x922   :  { %v14217_v50 = vpop.f32.mrf.mxu0 }
 0x924   :  { %v14219_v16 = vpop.f32.mrf.mxu0  ;;  %v14176_v18 = vpop.f32.mrf.mxu1 }
 0x925   :  { %v14177_v8 = vadd.f32 %v14176_v18, %v14136_v2 }
 0x926   :  { %v14221_v43 = vpop.f32.mrf.mxu0  ;;  %v14178_v31 = vpop.f32.mrf.mxu1 }
 0x927   :  { %v14218_v40 = vadd.f32 %v14217_v50, %v14177_v8  ;;  %v14179_v42 = vadd.f32 %v14178_v31, %v14138_v52 }
 0x928   :  { %v14222_v1 = vpop.f32.mrf.mxu0  ;;  %v14180_v58 = vpop.f32.mrf.mxu1 }
 0x929   :  { %v14220_v21 = vadd.f32 %v14219_v16, %v14179_v42  ;;  %v14230_v24 = vmax.f32 %v14218_v40, 0.0 }
 0x92a   :  { %v14181_v27 = vpop.f32.mrf.mxu1 }
 0x92b   :  { %v14231_v47 = vmax.f32 %v14220_v21, 0.0  ;;  %v14238_v35 = vpack.c.bf16 %v14230_v24, %v14230_v24 }
 0x92d   :  { %v14239_v55 = vpack.c.bf16 %v14231_v47, %v14231_v47 }
 0x92f   :  { %14911 = vmatprep.mubr.bf16.mxu0 %v14239_v55 }
 0x930   :  { %14912 = vmatmul.mubr.bf16.vlgmr.msra.gmra.mxu0 %v14238_v35 }
 0x942   :  { %v16993_v32 = vpop.f32.mrf.mxu0 }
 0x944   :  { %v16994_v14 = vpop.f32.mrf.mxu0  ;;  %v16971_v22 = vpop.f32.mrf.mxu1 }
 0x945   :  { %v16995_v19 = vadd.f32 %v16994_v14, %v16993_v32 }
 0x946   :  { %v16996_v3 = vpop.f32.mrf.mxu0  ;;  %v16972_v25 = vpop.f32.mrf.mxu1 }
 0x947   :  { %v16973_v20 = vadd.f32 %v16972_v25, %v16971_v22 }
 0x948   :  { %v16997_v62 = vpop.f32.mrf.mxu0  ;;  %v16974_v53 = vpop.f32.mrf.mxu1 }
 0x949   :  { %v14794_v36 = vadd.f32 %v16973_v20, %v16742_v6 }
 0x94a   :  { %v16975_v37 = vpop.f32.mrf.mxu1 }
 0x94b   :  { %v14834_v26 = vadd.f32 %v16995_v19, %v14794_v36 }
 0x964   :  { %v17015_v0 = vpop.f32.mrf.mxu1 }
 0x966   :  { %v17016_v45 = vpop.f32.mrf.mxu1 }
 0x967   :  { %v17017_v15 = vadd.f32 %v17016_v45, %v17015_v0 }
 0x968   :  { %v17018_v29 = vpop.f32.mrf.mxu1 }
 0x969   :  { %v14874_v30 = vadd.f32 %v17017_v15, %v14834_v26 }
 0x96a   :  { %v17019_v38 = vpop.f32.mrf.mxu1 }
 0x9f0   :  { %v17037_v13 = vpop.f32.mrf.mxu0 }
 0x9f2   :  { %v17038_v49 = vpop.f32.mrf.mxu0 }
 0x9f3   :  { %v17039_v39 = vadd.f32 %v17038_v49, %v17037_v13 }
 0x9f4   :  { %v17040_v54 = vpop.f32.mrf.mxu0 }
 0x9f5   :  { %v14914_v51 = vadd.f32 %v17039_v39, %v14874_v30 }
 0x9f6   :  { %v17041_v46 = vpop.f32.mrf.mxu0 }
 0x9f7   :  { %14919 = vst [vmem:[#allocation13] sm:$0x3] %v14914_v51 }
 0x9f8   :  { %17525 = shalt.err (!%p17522_p6)
}
 0x9f9   :  { %14929 = dma.vmem_to_hbm [thread:$0]  %s14927_s27, 32, %s18683_s8, [#allocation4]  }
 0x9fa   :  { %17542 = dma.done.wait [#allocation4], 32  }
 0x9fb   :  { %17543 = vsyncadd [#allocation4], 4294967264 }
 0x9fc   :  { %14933 = vsyncpa [#allocation3], 1 }
 0x9fd   :  { %14934 = vsyncpa [#allocation6], 1 }
 0x9fe   :  { %14935 = vsyncpa [#allocation9], 1 }
 0x9ff   :  { %14936 = vsyncpa [#allocation12], 1 }
 0xa00   :  { %14937 = vsyncpa [#allocation4], 1 }

</bundles_post_ra>
